<compile_context>
chip_gen: v7x
topology: tpu7x:2x2x1
jax: 0.10.0
libtpu: 0.0.40
codegen_flags: <defaults>
</compile_context>

<pallas_src>
import jax
import jax.numpy as jnp
from jax.experimental import pallas as pl
from jax.experimental.pallas import tpu as pltpu


def _round_up(a, b):
    return ((a + b - 1) // b) * b


# ----------------------------------------------------------------------------
# Kernel 1: adaptive avg-pool to (4,4) + 1x1 conv + folded BatchNorm + ReLU.
#           B1 images per grid step; conv is one (16*B1, C) @ (C, 128) matmul.
# ----------------------------------------------------------------------------
def _pool_conv_bn_relu_kernel(x_ref, w_ref, scale_ref, shift_ref, o_ref):
    # x_ref:     (B1, H, W, C)   bf16
    # w_ref:     (C, 128)        bf16   1x1 conv weight, (in, out)
    # scale_ref: (1, 128)        f32    gamma / sqrt(var + eps)
    # shift_ref: (1, 128)        f32    beta - mean * scale
    # o_ref:     (16, B1, 128)   bf16   spatial-major conv output block
    B, H, W, C = x_ref.shape
    bh, bw = H // 4, W // 4
    inv = 1.0 / float(bh * bw)
    sums = []
    for oh in range(4):
        for ow in range(4):
            win = x_ref[:, oh * bh:(oh + 1) * bh, ow * bw:(ow + 1) * bw, :]
            sums.append(jnp.sum(win.astype(jnp.float32), axis=(1, 2)) * inv)  # (B, C)
    # (16, B, C) -> (16*B, C); rows ordered spatial-major (s*B + b).
    pooled = jnp.stack(sums, axis=0).reshape(16 * B, C)
    y = jnp.dot(pooled.astype(jnp.bfloat16), w_ref[...],
                preferred_element_type=jnp.float32)                # (16*B, 128)
    y = jnp.maximum(y * scale_ref[...] + shift_ref[...], 0.0)
    o_ref[...] = y.reshape(16, B, 128).astype(o_ref.dtype)


# ----------------------------------------------------------------------------
# Kernel 2: fc1 + ReLU + fc2 fused, tiled over the batch.  The flattened 2048
# inputs are consumed as 16 spatial slabs of 128 channels; fc1 is 16
# accumulating (B2, 128) @ (128, 1024) MXU matmuls against the re-laid-out
# fc1 weight, so no activation transpose/reshape is needed anywhere.
# ----------------------------------------------------------------------------
def _mlp_kernel(y_ref, w1_ref, b1_ref, w2_ref, b2_ref, o_ref):
    # y_ref:  (16, B2, 128)   bf16   conv output tile (spatial-major)
    # w1_ref: (16, 128, 1024) bf16   fc1 weight; [s, c, :] == fc1_w[:, c*16+s]
    # b1_ref: (1, 1024)       f32
    # w2_ref: (1024, NCP)     bf16   fc2 weight padded to NCP lanes
    # b2_ref: (1, NCP)        f32
    # o_ref:  (B2, NCP)       f32
    h = jnp.dot(y_ref[0], w1_ref[0], preferred_element_type=jnp.float32)
    for s in range(1, 16):
        h = h + jnp.dot(y_ref[s], w1_ref[s], preferred_element_type=jnp.float32)
    h = jnp.maximum(h + b1_ref[...], 0.0)
    o_ref[...] = (jnp.dot(h.astype(jnp.bfloat16), w2_ref[...],
                          preferred_element_type=jnp.float32) + b2_ref[...])


# ----------------------------------------------------------------------------
# Wrapper
# ----------------------------------------------------------------------------
def inception_aux_forward(x_nchw, params):
    N, C, H, W = x_nchw.shape
    assert H % 4 == 0 and W % 4 == 0, "spatial dims must be divisible by 4"

    # NCHW -> NHWC (channels on the lane dim); bf16 activations for the MXU.
    x = jnp.transpose(x_nchw, (0, 2, 3, 1)).astype(jnp.bfloat16)

    # Batch tiling: kernel 1 uses B1=16 (256 pooled rows = full MXU tile on
    # v6e/v7x); kernel 2 uses the largest tile <= 256 (multiple of 16) that
    # divides the padded batch.
    B1 = 16
    n_pad = _round_up(N, B1)
    B2 = B1
    for cand in (256, 128, 64, 32, 16):
        if n_pad % cand == 0:
            B2 = cand
            break
    if n_pad != N:
        x = jnp.pad(x, ((0, n_pad - N), (0, 0), (0, 0), (0, 0)))

    # Fold BatchNorm (eval: running stats) into per-channel scale / shift.
    eps = 1e-3
    scale = (params["bn_gamma"] / jnp.sqrt(params["bn_var"] + eps)).astype(jnp.float32)
    shift = (params["bn_beta"] - params["bn_mean"] * scale).astype(jnp.float32)
    w_conv = params["conv_w"].T.astype(jnp.bfloat16)          # (C, 128)
    scale = scale.reshape(1, 128)
    shift = shift.reshape(1, 128)

    conv_out = pl.pallas_call(
        _pool_conv_bn_relu_kernel,
        out_shape=jax.ShapeDtypeStruct((16, n_pad, 128), jnp.bfloat16),
        grid=(n_pad // B1,),
        in_specs=[
            pl.BlockSpec((B1, H, W, C), lambda n: (n, 0, 0, 0)),
            pl.BlockSpec((C, 128), lambda n: (0, 0)),
            pl.BlockSpec((1, 128), lambda n: (0, 0)),
            pl.BlockSpec((1, 128), lambda n: (0, 0)),
        ],
        out_specs=pl.BlockSpec((16, B1, 128), lambda n: (0, n, 0)),
        compiler_params=pltpu.CompilerParams(dimension_semantics=("parallel",)),
    )(x, w_conv, scale, shift)

    # One-time fc1 weight re-layout (absorbs the PyTorch channel-major flatten):
    # flatten index j = c*16 + s  ->  w1r[s, c, :] = fc1_w[:, j].
    w1r = (params["fc1_w"].T.reshape(128, 16, 1024)
           .transpose(1, 0, 2).astype(jnp.bfloat16))          # (16, 128, 1024)
    b1 = params["fc1_b"].reshape(1, 1024).astype(jnp.float32)
    nc = params["fc2_w"].shape[0]
    ncp = _round_up(nc, 128)                                  # lane-dense output
    w2 = jnp.pad(params["fc2_w"].T.astype(jnp.bfloat16), ((0, 0), (0, ncp - nc)))
    b2 = jnp.pad(params["fc2_b"], (0, ncp - nc)).reshape(1, ncp).astype(jnp.float32)

    out = pl.pallas_call(
        _mlp_kernel,
        out_shape=jax.ShapeDtypeStruct((n_pad, ncp), jnp.float32),
        grid=(n_pad // B2,),
        in_specs=[
            pl.BlockSpec((16, B2, 128), lambda m: (0, m, 0)),
            pl.BlockSpec((16, 128, 1024), lambda m: (0, 0, 0)),
            pl.BlockSpec((1, 1024), lambda m: (0, 0)),
            pl.BlockSpec((1024, ncp), lambda m: (0, 0)),
            pl.BlockSpec((1, ncp), lambda m: (0, 0)),
        ],
        out_specs=pl.BlockSpec((B2, ncp), lambda m: (m, 0)),
        compiler_params=pltpu.CompilerParams(dimension_semantics=("parallel",)),
    )(conv_out, w1r, b1, w2, b2)
    return out[:N, :nc]


# ----------------------------------------------------------------------------
# Deterministic parameter init (shapes from InceptionAux.__init__)
# ----------------------------------------------------------------------------
def init_params(key, in_channels, num_classes):
    ks = jax.random.split(key, 8)
    return {
        "conv_w":  0.1 * jax.random.normal(ks[0], (128, in_channels), jnp.float32),
        "bn_gamma": 1.0 + 0.05 * jax.random.normal(ks[1], (128,), jnp.float32),
        "bn_beta":  0.05 * jax.random.normal(ks[2], (128,), jnp.float32),
        "bn_mean":  0.05 * jax.random.normal(ks[3], (128,), jnp.float32),
        "bn_var":   1.0 + 0.1 * jnp.abs(jax.random.normal(ks[4], (128,), jnp.float32)),
        "fc1_w": 0.02 * jax.random.normal(ks[5], (1024, 2048), jnp.float32),
        "fc1_b": 0.01 * jax.random.normal(ks[6], (1024,), jnp.float32),
        "fc2_w": 0.02 * jax.random.normal(ks[7], (num_classes, 1024), jnp.float32),
        "fc2_b": jnp.zeros((num_classes,), jnp.float32),
    }


# Pure-JAX f32 reference for correctness check.
def reference_forward(x_nchw, params):
    N, C, H, W = x_nchw.shape
    bh, bw = H // 4, W // 4
    pooled = x_nchw.reshape(N, C, 4, bh, 4, bw).mean(axis=(3, 5))       # (N,C,4,4)
    y = jnp.einsum("nchw,oc->nohw", pooled, params["conv_w"])           # 1x1 conv
    scale = params["bn_gamma"] / jnp.sqrt(params["bn_var"] + 1e-3)
    shift = params["bn_beta"] - params["bn_mean"] * scale
    y = jnp.maximum(y * scale[None, :, None, None] + shift[None, :, None, None], 0.0)
    flat = y.reshape(N, -1)                                             # c*16 + s order
    h = jnp.maximum(flat @ params["fc1_w"].T + params["fc1_b"], 0.0)
    return h @ params["fc2_w"].T + params["fc2_b"]


if __name__ == "__main__":
    key = jax.random.PRNGKey(0)
    kx, kp = jax.random.split(key)
    N, C, H, W = 2, 8, 8, 8          # small shapes; in_channels=8
    num_classes = 10
    x = jax.random.normal(kx, (N, C, H, W), jnp.float32)   # PyTorch NCHW input
    params = init_params(kp, C, num_classes)

    out = jax.block_until_ready(inception_aux_forward(x, params))
    assert out.shape == (N, num_classes)

    ref = reference_forward(x, params)
    max_err = float(jnp.max(jnp.abs(out - ref)))
    assert jnp.allclose(out, ref, rtol=5e-2, atol=5e-2), max_err

    print("KERNEL_OK")
</pallas_src>

<mosaic_0001>
module attributes {stable_mosaic.version = 11 : i64} {
  func.func @_pool_conv_bn_relu_kernel(%arg0: i32, %arg1: memref<16x8x8x8xbf16, #tpu.memory_space<vmem>>, %arg2: memref<8x128xbf16, #tpu.memory_space<vmem>>, %arg3: memref<1x128xf32, #tpu.memory_space<vmem>>, %arg4: memref<1x128xf32, #tpu.memory_space<vmem>>, %arg5: memref<16x16x128xbf16, #tpu.memory_space<vmem>>) attributes {dimension_semantics = [#tpu.dimension_semantics<parallel>], iteration_bounds = array<i64: 1>, scalar_prefetch = 0 : i64, scratch_operands = 0 : i64, tpu.core_type = #tpu.core_type<tc>, window_params = [{transform_indices = @transform_0, window_bounds = array<i64: 16, 8, 8, 8>}, {pipeline_mode = #tpu.pipeline_mode<synchronous>, transform_indices = @transform_1, window_bounds = array<i64: 8, 128>}, {pipeline_mode = #tpu.pipeline_mode<synchronous>, transform_indices = @transform_2, window_bounds = array<i64: 1, 128>}, {pipeline_mode = #tpu.pipeline_mode<synchronous>, transform_indices = @transform_3, window_bounds = array<i64: 1, 128>}, {transform_indices = @transform_4, window_bounds = array<i64: 16, 16, 128>}]} {
    %c0 = arith.constant 0 : index
    %c0_0 = arith.constant 0 : index
    %c0_1 = arith.constant 0 : index
    %c0_2 = arith.constant 0 : index
    %0 = vector.load %arg1[%c0, %c0_0, %c0_1, %c0_2] : memref<16x8x8x8xbf16, #tpu.memory_space<vmem>>, vector<16x2x2x8xbf16>
    %1 = arith.extf %0 : vector<16x2x2x8xbf16> to vector<16x2x2x8xf32>
    %cst = arith.constant dense<0.000000e+00> : vector<16x8xf32>
    %2 = vector.multi_reduction <add>, %1, %cst [1, 2] : vector<16x2x2x8xf32> to vector<16x8xf32>
    %cst_3 = arith.constant 2.500000e-01 : f32
    %3 = vector.broadcast %cst_3 : f32 to vector<16x8xf32>
    %4 = arith.mulf %2, %3 : vector<16x8xf32>
    %c0_4 = arith.constant 0 : index
    %c0_5 = arith.constant 0 : index
    %c2 = arith.constant 2 : index
    %c0_6 = arith.constant 0 : index
    %5 = vector.load %arg1[%c0_4, %c0_5, %c2, %c0_6] : memref<16x8x8x8xbf16, #tpu.memory_space<vmem>>, vector<16x2x2x8xbf16>
    %6 = arith.extf %5 : vector<16x2x2x8xbf16> to vector<16x2x2x8xf32>
    %cst_7 = arith.constant dense<0.000000e+00> : vector<16x8xf32>
    %7 = vector.multi_reduction <add>, %6, %cst_7 [1, 2] : vector<16x2x2x8xf32> to vector<16x8xf32>
    %cst_8 = arith.constant 2.500000e-01 : f32
    %8 = vector.broadcast %cst_8 : f32 to vector<16x8xf32>
    %9 = arith.mulf %7, %8 : vector<16x8xf32>
    %c0_9 = arith.constant 0 : index
    %c0_10 = arith.constant 0 : index
    %c4 = arith.constant 4 : index
    %c0_11 = arith.constant 0 : index
    %10 = vector.load %arg1[%c0_9, %c0_10, %c4, %c0_11] : memref<16x8x8x8xbf16, #tpu.memory_space<vmem>>, vector<16x2x2x8xbf16>
    %11 = arith.extf %10 : vector<16x2x2x8xbf16> to vector<16x2x2x8xf32>
    %cst_12 = arith.constant dense<0.000000e+00> : vector<16x8xf32>
    %12 = vector.multi_reduction <add>, %11, %cst_12 [1, 2] : vector<16x2x2x8xf32> to vector<16x8xf32>
    %cst_13 = arith.constant 2.500000e-01 : f32
    %13 = vector.broadcast %cst_13 : f32 to vector<16x8xf32>
    %14 = arith.mulf %12, %13 : vector<16x8xf32>
    %c0_14 = arith.constant 0 : index
    %c0_15 = arith.constant 0 : index
    %c6 = arith.constant 6 : index
    %c0_16 = arith.constant 0 : index
    %15 = vector.load %arg1[%c0_14, %c0_15, %c6, %c0_16] : memref<16x8x8x8xbf16, #tpu.memory_space<vmem>>, vector<16x2x2x8xbf16>
    %16 = arith.extf %15 : vector<16x2x2x8xbf16> to vector<16x2x2x8xf32>
    %cst_17 = arith.constant dense<0.000000e+00> : vector<16x8xf32>
    %17 = vector.multi_reduction <add>, %16, %cst_17 [1, 2] : vector<16x2x2x8xf32> to vector<16x8xf32>
    %cst_18 = arith.constant 2.500000e-01 : f32
    %18 = vector.broadcast %cst_18 : f32 to vector<16x8xf32>
    %19 = arith.mulf %17, %18 : vector<16x8xf32>
    %c0_19 = arith.constant 0 : index
    %c2_20 = arith.constant 2 : index
    %c0_21 = arith.constant 0 : index
    %c0_22 = arith.constant 0 : index
    %20 = vector.load %arg1[%c0_19, %c2_20, %c0_21, %c0_22] : memref<16x8x8x8xbf16, #tpu.memory_space<vmem>>, vector<16x2x2x8xbf16>
    %21 = arith.extf %20 : vector<16x2x2x8xbf16> to vector<16x2x2x8xf32>
    %cst_23 = arith.constant dense<0.000000e+00> : vector<16x8xf32>
    %22 = vector.multi_reduction <add>, %21, %cst_23 [1, 2] : vector<16x2x2x8xf32> to vector<16x8xf32>
    %cst_24 = arith.constant 2.500000e-01 : f32
    %23 = vector.broadcast %cst_24 : f32 to vector<16x8xf32>
    %24 = arith.mulf %22, %23 : vector<16x8xf32>
    %c0_25 = arith.constant 0 : index
    %c2_26 = arith.constant 2 : index
    %c2_27 = arith.constant 2 : index
    %c0_28 = arith.constant 0 : index
    %25 = vector.load %arg1[%c0_25, %c2_26, %c2_27, %c0_28] : memref<16x8x8x8xbf16, #tpu.memory_space<vmem>>, vector<16x2x2x8xbf16>
    %26 = arith.extf %25 : vector<16x2x2x8xbf16> to vector<16x2x2x8xf32>
    %cst_29 = arith.constant dense<0.000000e+00> : vector<16x8xf32>
    %27 = vector.multi_reduction <add>, %26, %cst_29 [1, 2] : vector<16x2x2x8xf32> to vector<16x8xf32>
    %cst_30 = arith.constant 2.500000e-01 : f32
    %28 = vector.broadcast %cst_30 : f32 to vector<16x8xf32>
    %29 = arith.mulf %27, %28 : vector<16x8xf32>
    %c0_31 = arith.constant 0 : index
    %c2_32 = arith.constant 2 : index
    %c4_33 = arith.constant 4 : index
    %c0_34 = arith.constant 0 : index
    %30 = vector.load %arg1[%c0_31, %c2_32, %c4_33, %c0_34] : memref<16x8x8x8xbf16, #tpu.memory_space<vmem>>, vector<16x2x2x8xbf16>
    %31 = arith.extf %30 : vector<16x2x2x8xbf16> to vector<16x2x2x8xf32>
    %cst_35 = arith.constant dense<0.000000e+00> : vector<16x8xf32>
    %32 = vector.multi_reduction <add>, %31, %cst_35 [1, 2] : vector<16x2x2x8xf32> to vector<16x8xf32>
    %cst_36 = arith.constant 2.500000e-01 : f32
    %33 = vector.broadcast %cst_36 : f32 to vector<16x8xf32>
    %34 = arith.mulf %32, %33 : vector<16x8xf32>
    %c0_37 = arith.constant 0 : index
    %c2_38 = arith.constant 2 : index
    %c6_39 = arith.constant 6 : index
    %c0_40 = arith.constant 0 : index
    %35 = vector.load %arg1[%c0_37, %c2_38, %c6_39, %c0_40] : memref<16x8x8x8xbf16, #tpu.memory_space<vmem>>, vector<16x2x2x8xbf16>
    %36 = arith.extf %35 : vector<16x2x2x8xbf16> to vector<16x2x2x8xf32>
    %cst_41 = arith.constant dense<0.000000e+00> : vector<16x8xf32>
    %37 = vector.multi_reduction <add>, %36, %cst_41 [1, 2] : vector<16x2x2x8xf32> to vector<16x8xf32>
    %cst_42 = arith.constant 2.500000e-01 : f32
    %38 = vector.broadcast %cst_42 : f32 to vector<16x8xf32>
    %39 = arith.mulf %37, %38 : vector<16x8xf32>
    %c0_43 = arith.constant 0 : index
    %c4_44 = arith.constant 4 : index
    %c0_45 = arith.constant 0 : index
    %c0_46 = arith.constant 0 : index
    %40 = vector.load %arg1[%c0_43, %c4_44, %c0_45, %c0_46] : memref<16x8x8x8xbf16, #tpu.memory_space<vmem>>, vector<16x2x2x8xbf16>
    %41 = arith.extf %40 : vector<16x2x2x8xbf16> to vector<16x2x2x8xf32>
    %cst_47 = arith.constant dense<0.000000e+00> : vector<16x8xf32>
    %42 = vector.multi_reduction <add>, %41, %cst_47 [1, 2] : vector<16x2x2x8xf32> to vector<16x8xf32>
    %cst_48 = arith.constant 2.500000e-01 : f32
    %43 = vector.broadcast %cst_48 : f32 to vector<16x8xf32>
    %44 = arith.mulf %42, %43 : vector<16x8xf32>
    %c0_49 = arith.constant 0 : index
    %c4_50 = arith.constant 4 : index
    %c2_51 = arith.constant 2 : index
    %c0_52 = arith.constant 0 : index
    %45 = vector.load %arg1[%c0_49, %c4_50, %c2_51, %c0_52] : memref<16x8x8x8xbf16, #tpu.memory_space<vmem>>, vector<16x2x2x8xbf16>
    %46 = arith.extf %45 : vector<16x2x2x8xbf16> to vector<16x2x2x8xf32>
    %cst_53 = arith.constant dense<0.000000e+00> : vector<16x8xf32>
    %47 = vector.multi_reduction <add>, %46, %cst_53 [1, 2] : vector<16x2x2x8xf32> to vector<16x8xf32>
    %cst_54 = arith.constant 2.500000e-01 : f32
    %48 = vector.broadcast %cst_54 : f32 to vector<16x8xf32>
    %49 = arith.mulf %47, %48 : vector<16x8xf32>
    %c0_55 = arith.constant 0 : index
    %c4_56 = arith.constant 4 : index
    %c4_57 = arith.constant 4 : index
    %c0_58 = arith.constant 0 : index
    %50 = vector.load %arg1[%c0_55, %c4_56, %c4_57, %c0_58] : memref<16x8x8x8xbf16, #tpu.memory_space<vmem>>, vector<16x2x2x8xbf16>
    %51 = arith.extf %50 : vector<16x2x2x8xbf16> to vector<16x2x2x8xf32>
    %cst_59 = arith.constant dense<0.000000e+00> : vector<16x8xf32>
    %52 = vector.multi_reduction <add>, %51, %cst_59 [1, 2] : vector<16x2x2x8xf32> to vector<16x8xf32>
    %cst_60 = arith.constant 2.500000e-01 : f32
    %53 = vector.broadcast %cst_60 : f32 to vector<16x8xf32>
    %54 = arith.mulf %52, %53 : vector<16x8xf32>
    %c0_61 = arith.constant 0 : index
    %c4_62 = arith.constant 4 : index
    %c6_63 = arith.constant 6 : index
    %c0_64 = arith.constant 0 : index
    %55 = vector.load %arg1[%c0_61, %c4_62, %c6_63, %c0_64] : memref<16x8x8x8xbf16, #tpu.memory_space<vmem>>, vector<16x2x2x8xbf16>
    %56 = arith.extf %55 : vector<16x2x2x8xbf16> to vector<16x2x2x8xf32>
    %cst_65 = arith.constant dense<0.000000e+00> : vector<16x8xf32>
    %57 = vector.multi_reduction <add>, %56, %cst_65 [1, 2] : vector<16x2x2x8xf32> to vector<16x8xf32>
    %cst_66 = arith.constant 2.500000e-01 : f32
    %58 = vector.broadcast %cst_66 : f32 to vector<16x8xf32>
    %59 = arith.mulf %57, %58 : vector<16x8xf32>
    %c0_67 = arith.constant 0 : index
    %c6_68 = arith.constant 6 : index
    %c0_69 = arith.constant 0 : index
    %c0_70 = arith.constant 0 : index
    %60 = vector.load %arg1[%c0_67, %c6_68, %c0_69, %c0_70] : memref<16x8x8x8xbf16, #tpu.memory_space<vmem>>, vector<16x2x2x8xbf16>
    %61 = arith.extf %60 : vector<16x2x2x8xbf16> to vector<16x2x2x8xf32>
    %cst_71 = arith.constant dense<0.000000e+00> : vector<16x8xf32>
    %62 = vector.multi_reduction <add>, %61, %cst_71 [1, 2] : vector<16x2x2x8xf32> to vector<16x8xf32>
    %cst_72 = arith.constant 2.500000e-01 : f32
    %63 = vector.broadcast %cst_72 : f32 to vector<16x8xf32>
    %64 = arith.mulf %62, %63 : vector<16x8xf32>
    %c0_73 = arith.constant 0 : index
    %c6_74 = arith.constant 6 : index
    %c2_75 = arith.constant 2 : index
    %c0_76 = arith.constant 0 : index
    %65 = vector.load %arg1[%c0_73, %c6_74, %c2_75, %c0_76] : memref<16x8x8x8xbf16, #tpu.memory_space<vmem>>, vector<16x2x2x8xbf16>
    %66 = arith.extf %65 : vector<16x2x2x8xbf16> to vector<16x2x2x8xf32>
    %cst_77 = arith.constant dense<0.000000e+00> : vector<16x8xf32>
    %67 = vector.multi_reduction <add>, %66, %cst_77 [1, 2] : vector<16x2x2x8xf32> to vector<16x8xf32>
    %cst_78 = arith.constant 2.500000e-01 : f32
    %68 = vector.broadcast %cst_78 : f32 to vector<16x8xf32>
    %69 = arith.mulf %67, %68 : vector<16x8xf32>
    %c0_79 = arith.constant 0 : index
    %c6_80 = arith.constant 6 : index
    %c4_81 = arith.constant 4 : index
    %c0_82 = arith.constant 0 : index
    %70 = vector.load %arg1[%c0_79, %c6_80, %c4_81, %c0_82] : memref<16x8x8x8xbf16, #tpu.memory_space<vmem>>, vector<16x2x2x8xbf16>
    %71 = arith.extf %70 : vector<16x2x2x8xbf16> to vector<16x2x2x8xf32>
    %cst_83 = arith.constant dense<0.000000e+00> : vector<16x8xf32>
    %72 = vector.multi_reduction <add>, %71, %cst_83 [1, 2] : vector<16x2x2x8xf32> to vector<16x8xf32>
    %cst_84 = arith.constant 2.500000e-01 : f32
    %73 = vector.broadcast %cst_84 : f32 to vector<16x8xf32>
    %74 = arith.mulf %72, %73 : vector<16x8xf32>
    %c0_85 = arith.constant 0 : index
    %c6_86 = arith.constant 6 : index
    %c6_87 = arith.constant 6 : index
    %c0_88 = arith.constant 0 : index
    %75 = vector.load %arg1[%c0_85, %c6_86, %c6_87, %c0_88] : memref<16x8x8x8xbf16, #tpu.memory_space<vmem>>, vector<16x2x2x8xbf16>
    %76 = arith.extf %75 : vector<16x2x2x8xbf16> to vector<16x2x2x8xf32>
    %cst_89 = arith.constant dense<0.000000e+00> : vector<16x8xf32>
    %77 = vector.multi_reduction <add>, %76, %cst_89 [1, 2] : vector<16x2x2x8xf32> to vector<16x8xf32>
    %cst_90 = arith.constant 2.500000e-01 : f32
    %78 = vector.broadcast %cst_90 : f32 to vector<16x8xf32>
    %79 = arith.mulf %77, %78 : vector<16x8xf32>
    %80 = vector.shape_cast %4 : vector<16x8xf32> to vector<1x16x8xf32>
    %81 = vector.shape_cast %9 : vector<16x8xf32> to vector<1x16x8xf32>
    %82 = vector.shape_cast %14 : vector<16x8xf32> to vector<1x16x8xf32>
    %83 = vector.shape_cast %19 : vector<16x8xf32> to vector<1x16x8xf32>
    %84 = vector.shape_cast %24 : vector<16x8xf32> to vector<1x16x8xf32>
    %85 = vector.shape_cast %29 : vector<16x8xf32> to vector<1x16x8xf32>
    %86 = vector.shape_cast %34 : vector<16x8xf32> to vector<1x16x8xf32>
    %87 = vector.shape_cast %39 : vector<16x8xf32> to vector<1x16x8xf32>
    %88 = vector.shape_cast %44 : vector<16x8xf32> to vector<1x16x8xf32>
    %89 = vector.shape_cast %49 : vector<16x8xf32> to vector<1x16x8xf32>
    %90 = vector.shape_cast %54 : vector<16x8xf32> to vector<1x16x8xf32>
    %91 = vector.shape_cast %59 : vector<16x8xf32> to vector<1x16x8xf32>
    %92 = vector.shape_cast %64 : vector<16x8xf32> to vector<1x16x8xf32>
    %93 = vector.shape_cast %69 : vector<16x8xf32> to vector<1x16x8xf32>
    %94 = vector.shape_cast %74 : vector<16x8xf32> to vector<1x16x8xf32>
    %95 = vector.shape_cast %79 : vector<16x8xf32> to vector<1x16x8xf32>
    %96 = tpu.concatenate %80, %81, %82, %83, %84, %85, %86, %87, %88, %89, %90, %91, %92, %93, %94, %95 in 0 : vector<1x16x8xf32>, vector<1x16x8xf32>, vector<1x16x8xf32>, vector<1x16x8xf32>, vector<1x16x8xf32>, vector<1x16x8xf32>, vector<1x16x8xf32>, vector<1x16x8xf32>, vector<1x16x8xf32>, vector<1x16x8xf32>, vector<1x16x8xf32>, vector<1x16x8xf32>, vector<1x16x8xf32>, vector<1x16x8xf32>, vector<1x16x8xf32>, vector<1x16x8xf32> -> vector<16x16x8xf32>
    %97 = vector.shape_cast %96 : vector<16x16x8xf32> to vector<256x8xf32>
    %98 = arith.truncf %97 : vector<256x8xf32> to vector<256x8xbf16>
    %c0_91 = arith.constant 0 : index
    %c0_92 = arith.constant 0 : index
    %99 = vector.load %arg2[%c0_91, %c0_92] : memref<8x128xbf16, #tpu.memory_space<vmem>>, vector<8x128xbf16>
    %cst_93 = arith.constant dense<0.000000e+00> : vector<256x128xf32>
    %100 = tpu.matmul %98, %99, %cst_93 {dimension_numbers = #tpu.dot_dimension_numbers<[1], [0], [0], [1], [0, 0, 1, 1], [], []>} : vector<256x8xbf16>, vector<8x128xbf16>, vector<256x128xf32> -> vector<256x128xf32>
    %c0_94 = arith.constant 0 : index
    %c0_95 = arith.constant 0 : index
    %101 = vector.load %arg3[%c0_94, %c0_95] : memref<1x128xf32, #tpu.memory_space<vmem>>, vector<1x128xf32>
    %102 = vector.broadcast %101 : vector<1x128xf32> to vector<256x128xf32>
    %103 = arith.mulf %100, %102 : vector<256x128xf32>
    %c0_96 = arith.constant 0 : index
    %c0_97 = arith.constant 0 : index
    %104 = vector.load %arg4[%c0_96, %c0_97] : memref<1x128xf32, #tpu.memory_space<vmem>>, vector<1x128xf32>
    %105 = vector.broadcast %104 : vector<1x128xf32> to vector<256x128xf32>
    %106 = arith.addf %103, %105 : vector<256x128xf32>
    %cst_98 = arith.constant 0.000000e+00 : f32
    %107 = vector.broadcast %cst_98 : f32 to vector<256x128xf32>
    %108 = arith.maximumf %106, %107 : vector<256x128xf32>
    %109 = vector.shape_cast %108 : vector<256x128xf32> to vector<16x16x128xf32>
    %110 = arith.truncf %109 : vector<16x16x128xf32> to vector<16x16x128xbf16>
    %c0_99 = arith.constant 0 : index
    %c0_100 = arith.constant 0 : index
    %c0_101 = arith.constant 0 : index
    %111 = vector.load %arg5[%c0_99, %c0_100, %c0_101] : memref<16x16x128xbf16, #tpu.memory_space<vmem>>, vector<16x16x128xbf16>
    tpu.vector_store %arg5[%c0_99, %c0_100, %c0_101], %110 {strides = array<i32>} : memref<16x16x128xbf16, #tpu.memory_space<vmem>>, vector<16x16x128xbf16>,
    return
  }
  func.func @transform_0(%arg0: i32) -> (i32, i32, i32, i32) {
    %c0_i32 = arith.constant 0 : i32
    %c0_i32_0 = arith.constant 0 : i32
    %c0_i32_1 = arith.constant 0 : i32
    %c0_i32_2 = arith.constant 0 : i32
    return %arg0, %c0_i32, %c0_i32_0, %c0_i32_1 : i32, i32, i32, i32
  }
  func.func @transform_1(%arg0: i32) -> (i32, i32) {
    %c0_i32 = arith.constant 0 : i32
    %c0_i32_0 = arith.constant 0 : i32
    %c0_i32_1 = arith.constant 0 : i32
    return %c0_i32, %c0_i32_0 : i32, i32
  }
  func.func @transform_2(%arg0: i32) -> (i32, i32) {
    %c0_i32 = arith.constant 0 : i32
    %c0_i32_0 = arith.constant 0 : i32
    %c0_i32_1 = arith.constant 0 : i32
    return %c0_i32, %c0_i32_0 : i32, i32
  }
  func.func @transform_3(%arg0: i32) -> (i32, i32) {
    %c0_i32 = arith.constant 0 : i32
    %c0_i32_0 = arith.constant 0 : i32
    %c0_i32_1 = arith.constant 0 : i32
    return %c0_i32, %c0_i32_0 : i32, i32
  }
  func.func @transform_4(%arg0: i32) -> (i32, i32, i32) {
    %c0_i32 = arith.constant 0 : i32
    %c0_i32_0 = arith.constant 0 : i32
    %c0_i32_1 = arith.constant 0 : i32
    return %c0_i32, %arg0, %c0_i32_0 : i32, i32, i32
  }
}

</mosaic_0001>

<bundles_post_ra>
// kernel: tpu_custom_call.1
= control target key start
LH: loop header
LB: loop body
LE: loop exit
PB: predicated region body
PF: predicated region fallthrough
CT: control target
= control target key end

     0   :  { %9 = vsyncpa [#allocation3], 0  ;;  %vm83_vm0 = vcmask 58368   ;;  %vm5529_vm1 = vcmask 1041409   ;;  %vm5532_vm2 = vcmask 1042434   ;;  %vm5535_vm3 = vcmask 1043459   ;;  %s13437_s0 = inlined_call_operand.vmem [shape: bf16[16,8,8,8], index: 0, kind: input, shape index: {}]   ;;  %s13438_s1 = inlined_call_operand.vmem [shape: bf16[8,128], index: 1, kind: input, shape index: {}]   ;;  %s13439_s2 = inlined_call_operand.vmem [shape: f32[1,128], index: 2, kind: input, shape index: {}]   ;;  %s13440_s3 = inlined_call_operand.vmem [shape: f32[1,128], index: 3, kind: input, shape index: {}]   ;;  %s13441_s4 = inlined_call_operand.hbm [shape: bf16[16,16,128], index: 4, kind: output, shape index: {}]  }
   0x1   :  { %v19_v0 = vld [vmem:[%s13437_s0] sm:$0x1]  ;;  %v20_v1 = vld [vmem:[%s13437_s0 + $0x4] sm:$0x1]  ;;  %vm5538_vm4 = vcmask 1044484   ;;  %vm5541_vm5 = vcmask 1045509  }
   0x2   :  { %v21_v2 = vld [vmem:[%s13437_s0 + $0x20] sm:$0x1]  ;;  %v22_v3 = vld [vmem:[%s13437_s0 + $0x24] sm:$0x1]  ;;  %v51_v14 = vunpack.c.l.bf16 %v19_v0  ;;  %v52_v18 = vunpack.c.l.bf16 %v20_v1  ;;  %vm5544_vm6 = vcmask 1046534   ;;  %vm5547_vm7 = vcmask 1047559  }
   0x3   :  { %v23_v4 = vld [vmem:[%s13437_s0 + $0x40] sm:$0x1]  ;;  %v24_v5 = vld [vmem:[%s13437_s0 + $0x44] sm:$0x1]  ;;  %v53_v19 = vunpack.c.l.bf16 %v21_v2  ;;  %v54_v20 = vunpack.c.l.bf16 %v22_v3  ;;  %vm5999_vm8 = vcmask 64512   ;;  %vm6048_vm9 = vcmask 1043456  }
   0x4   :  { %v25_v6 = vld [vmem:[%s13437_s0 + $0x60] sm:$0x1]  ;;  %v26_v7 = vld [vmem:[%s13437_s0 + $0x64] sm:$0x1]  ;;  %v55_v21 = vunpack.c.l.bf16 %v23_v4  ;;  %v56_v25 = vunpack.c.l.bf16 %v24_v5  ;;  %v84_v44 = vsel %vm83_vm0, %v51_v14, 0.0  ;;  %v85_v45 = vsel %vm83_vm0, %v52_v18, 0.0 }
   0x5   :  { %v27_v8 = vld [vmem:[%s13437_s0 + $0x80] sm:$0x1]  ;;  %v28_v9 = vld [vmem:[%s13437_s0 + $0x84] sm:$0x1]  ;;  %v57_v26 = vunpack.c.l.bf16 %v25_v6  ;;  %v58_v27 = vunpack.c.l.bf16 %v26_v7  ;;  %v93_v58 = vsel %vm83_vm0, %v53_v19, 0.0  ;;  %v7310_v60 = vadd.f32 %v85_v45, %v84_v44 }
   0x6   :  { %v7203_v10 = vld [vmem:[%s13437_s0 + $0xa0] sm:$0x1]  ;;  %v7208_v11 = vld [vmem:[%s13437_s0 + $0xa4] sm:$0x1]  ;;  %v59_v28 = vunpack.c.l.bf16 %v27_v8  ;;  %v60_v32 = vunpack.c.l.bf16 %v28_v9  ;;  %v94_v61 = vsel %vm83_vm0, %v54_v20, 0.0  ;;  %v102_v62 = vsel %vm83_vm0, %v55_v21, 0.0 }
   0x7   :  { %v7213_v12 = vld [vmem:[%s13437_s0 + $0xc0] sm:$0x1]  ;;  %v7218_v13 = vld [vmem:[%s13437_s0 + $0xc4] sm:$0x1]  ;;  %v61_v33 = vunpack.c.l.bf16 %v7203_v10  ;;  %v62_v34 = vunpack.c.l.bf16 %v7208_v11  ;;  %v103_v63 = vsel %vm83_vm0, %v56_v25, 0.0  ;;  %v111_v0 = vsel %vm83_vm0, %v57_v26, 0.0 }
   0x8   :  { %v7223_v15 = vld [vmem:[%s13437_s0 + $0xe0] sm:$0x1]  ;;  %v7228_v16 = vld [vmem:[%s13437_s0 + $0xe4] sm:$0x1]  ;;  %v63_v35 = vunpack.c.l.bf16 %v7213_v12  ;;  %v64_v38 = vunpack.c.l.bf16 %v7218_v13  ;;  %v112_v1 = vsel %vm83_vm0, %v58_v27, 0.0  ;;  %v120_v2 = vsel %vm83_vm0, %v59_v28, 0.0 }
   0x9   :  { %v7233_v17 = vld [vmem:[%s13437_s0 + $0x100] sm:$0x1]  ;;  %v7238_v22 = vld [vmem:[%s13437_s0 + $0x104] sm:$0x1]  ;;  %v65_v39 = vunpack.c.l.bf16 %v7223_v15  ;;  %v66_v40 = vunpack.c.l.bf16 %v7228_v16  ;;  %v121_v3 = vsel %vm83_vm0, %v60_v32, 0.0  ;;  %v95_v11 = vadd.f32 %v94_v61, %v93_v58 }
   0xa   :  { %v7243_v23 = vld [vmem:[%s13437_s0 + $0x120] sm:$0x1]  ;;  %v7248_v24 = vld [vmem:[%s13437_s0 + $0x124] sm:$0x1]  ;;  %v67_v42 = vunpack.c.l.bf16 %v7233_v17  ;;  %v68_v43 = vunpack.c.l.bf16 %v7238_v22  ;;  %v87_v12 = vrot.slane %v7310_v60, 4  ;;  %v104_v13 = vadd.f32 %v103_v63, %v102_v62 }
   0xb   :  { %v7253_v29 = vld [vmem:[%s13437_s0 + $0x140] sm:$0x1]  ;;  %v7258_v30 = vld [vmem:[%s13437_s0 + $0x144] sm:$0x1]  ;;  %v69_v49 = vunpack.c.l.bf16 %v7243_v23  ;;  %v70_v50 = vunpack.c.l.bf16 %v7248_v24  ;;  %v113_v14 = vadd.f32 %v112_v1, %v111_v0  ;;  %v122_v15 = vadd.f32 %v121_v3, %v120_v2 }
   0xc   :  { %v7263_v31 = vld [vmem:[%s13437_s0 + $0x160] sm:$0x1]  ;;  %v42_v36 = vld [vmem:[%s13437_s0 + $0x164] sm:$0x1]  ;;  %v71_v51 = vunpack.c.l.bf16 %v7253_v29  ;;  %v72_v52 = vunpack.c.l.bf16 %v7258_v30  ;;  %v129_v16 = vsel %vm83_vm0, %v61_v33, 0.0  ;;  %v130_v17 = vsel %vm83_vm0, %v62_v34, 0.0 }
   0xd   :  { %v43_v37 = vld [vmem:[%s13437_s0 + $0x180] sm:$0x1]  ;;  %v44_v41 = vld [vmem:[%s13437_s0 + $0x184] sm:$0x1]  ;;  %v73_v55 = vunpack.c.l.bf16 %v7263_v31  ;;  %v74_v56 = vunpack.c.l.bf16 %v42_v36  ;;  %v138_v18 = vsel %vm83_vm0, %v63_v35, 0.0  ;;  %v139_v19 = vsel %vm83_vm0, %v64_v38, 0.0 }
   0xe   :  { %v45_v46 = vld [vmem:[%s13437_s0 + $0x1a0] sm:$0x1]  ;;  %v46_v47 = vld [vmem:[%s13437_s0 + $0x1a4] sm:$0x1]  ;;  %v75_v57 = vunpack.c.l.bf16 %v43_v37  ;;  %v76_v4 = vunpack.c.l.bf16 %v44_v41  ;;  %v147_v20 = vsel %vm83_vm0, %v65_v39, 0.0  ;;  %v148_v21 = vsel %vm83_vm0, %v66_v40, 0.0 }
   0xf   :  { %v47_v48 = vld [vmem:[%s13437_s0 + $0x1c0] sm:$0x1]  ;;  %v48_v53 = vld [vmem:[%s13437_s0 + $0x1c4] sm:$0x1]  ;;  %v77_v5 = vunpack.c.l.bf16 %v45_v46  ;;  %v78_v6 = vunpack.c.l.bf16 %v46_v47  ;;  %v156_v22 = vsel %vm83_vm0, %v67_v42, 0.0  ;;  %v157_v23 = vsel %vm83_vm0, %v68_v43, 0.0 }
  0x10   :  { %v7303_v54 = vld [vmem:[%s13437_s0 + $0x1e0] sm:$0x1]  ;;  %v50_v59 = vld [vmem:[%s13437_s0 + $0x1e4] sm:$0x1]  ;;  %v79_v7 = vunpack.c.l.bf16 %v47_v48  ;;  %v80_v8 = vunpack.c.l.bf16 %v48_v53  ;;  %v165_v24 = vsel %vm83_vm0, %v69_v49, 0.0  ;;  %v166_v25 = vsel %vm83_vm0, %v70_v50, 0.0 }
  0x11   :  { %v81_v9 = vunpack.c.l.bf16 %v7303_v54  ;;  %v82_v10 = vunpack.c.l.bf16 %v50_v59  ;;  %v174_v26 = vsel %vm83_vm0, %v71_v51, 0.0  ;;  %v175_v27 = vsel %vm83_vm0, %v72_v52, 0.0 }
  0x12   :  { %v183_v28 = vsel %vm83_vm0, %v73_v55, 0.0  ;;  %v184_v29 = vsel %vm83_vm0, %v74_v56, 0.0  ;;  %v192_v30 = vsel %vm83_vm0, %v75_v57, 0.0  ;;  %v193_v31 = vsel %vm83_vm0, %v76_v4, 0.0 }
  0x13   :  { %v131_v32 = vadd.f32 %v130_v17, %v129_v16  ;;  %v140_v33 = vadd.f32 %v139_v19, %v138_v18  ;;  %v201_v34 = vsel %vm83_vm0, %v77_v5, 0.0  ;;  %v202_v35 = vsel %vm83_vm0, %v78_v6, 0.0 }
  0x14   :  { %v149_v36 = vadd.f32 %v148_v21, %v147_v20  ;;  %v158_v37 = vadd.f32 %v157_v23, %v156_v22  ;;  %v210_v38 = vsel %vm83_vm0, %v79_v7, 0.0  ;;  %v211_v39 = vsel %vm83_vm0, %v80_v8, 0.0 }
  0x15   :  { %v167_v40 = vadd.f32 %v166_v25, %v165_v24  ;;  %v176_v41 = vadd.f32 %v175_v27, %v174_v26  ;;  %v185_v42 = vadd.f32 %v184_v29, %v183_v28  ;;  %v194_v43 = vadd.f32 %v193_v31, %v192_v30 }
  0x16   :  { %v96_v44 = vrot.slane %v95_v11, 4  ;;  %v105_v45 = vrot.slane %v104_v13, 4  ;;  %v114_v46 = vrot.slane %v113_v14, 4  ;;  %v203_v47 = vadd.f32 %v202_v35, %v201_v34 }
  0x17   :  { %v123_v48 = vrot.slane %v122_v15, 4  ;;  %v132_v49 = vrot.slane %v131_v32, 4  ;;  %v141_v50 = vrot.slane %v140_v33, 4  ;;  %v212_v51 = vadd.f32 %v211_v39, %v210_v38 }
  0x18   :  { %v150_v52 = vrot.slane %v149_v36, 4  ;;  %v159_v53 = vrot.slane %v158_v37, 4  ;;  %v219_v54 = vsel %vm83_vm0, %v81_v9, 0.0  ;;  %v220_v55 = vsel %vm83_vm0, %v82_v10, 0.0 }
  0x19   :  { %v168_v56 = vrot.slane %v167_v40, 4  ;;  %v177_v57 = vrot.slane %v176_v41, 4  ;;  %v186_v58 = vrot.slane %v185_v42, 4  ;;  %v195_v59 = vrot.slane %v194_v43, 4 }
  0x1a   :  { %v88_v61 = vadd.f32 %v87_v12, %v7310_v60  ;;  %v97_v62 = vadd.f32 %v96_v44, %v95_v11  ;;  %v106_v63 = vadd.f32 %v105_v45, %v104_v13  ;;  %v204_v0 = vrot.slane %v203_v47, 4 }
  0x1b   :  { %v115_v1 = vadd.f32 %v114_v46, %v113_v14  ;;  %v124_v2 = vadd.f32 %v123_v48, %v122_v15  ;;  %v213_v3 = vrot.slane %v212_v51, 4  ;;  %v221_v4 = vadd.f32 %v220_v55, %v219_v54 }
  0x1c   :  { %v133_v5 = vadd.f32 %v132_v49, %v131_v32  ;;  %v142_v6 = vadd.f32 %v141_v50, %v140_v33  ;;  %v151_v7 = vadd.f32 %v150_v52, %v149_v36  ;;  %v160_v8 = vadd.f32 %v159_v53, %v158_v37 }
  0x1d   :  { %v169_v9 = vadd.f32 %v168_v56, %v167_v40  ;;  %v178_v16 = vadd.f32 %v177_v57, %v176_v41  ;;  %v187_v10 = vadd.f32 %v186_v58, %v185_v42  ;;  %v196_v17 = vadd.f32 %v195_v59, %v194_v43 }
  0x1e   :  { %v89_v18 = vrot.slane %v88_v61, 2  ;;  %v98_v19 = vrot.slane %v97_v62, 2  ;;  %v107_v20 = vrot.slane %v106_v63, 2  ;;  %v205_v21 = vadd.f32 %v204_v0, %v203_v47 }
  0x1f   :  { %v116_v60 = vrot.slane %v115_v1, 2  ;;  %v125_v11 = vrot.slane %v124_v2, 2  ;;  %v214_v12 = vadd.f32 %v213_v3, %v212_v51  ;;  %v222_v13 = vrot.slane %v221_v4, 4 }
  0x20   :  { %v134_v14 = vrot.slane %v133_v5, 2  ;;  %v143_v15 = vrot.slane %v142_v6, 2  ;;  %v152_v22 = vrot.slane %v151_v7, 2  ;;  %v161_v23 = vrot.slane %v160_v8, 2 }
  0x21   :  { %v170_v24 = vrot.slane %v169_v9, 2  ;;  %v179_v25 = vrot.slane %v178_v16, 2  ;;  %v188_v26 = vrot.slane %v187_v10, 2  ;;  %v197_v27 = vrot.slane %v196_v17, 2 }
  0x22   :  { %v90_v28 = vadd.f32 %v89_v18, %v88_v61  ;;  %v99_v29 = vadd.f32 %v98_v19, %v97_v62  ;;  %v108_v30 = vadd.f32 %v107_v20, %v106_v63  ;;  %v206_v31 = vrot.slane %v205_v21, 2  ;;  %v7347_v18 = vld [vmem:[%s13437_s0] sm:$0x2]  ;;  %v7352_v19 = vld [vmem:[%s13437_s0 + $0x4] sm:$0x2] }
  0x23   :  { %v117_v32 = vadd.f32 %v116_v60, %v115_v1  ;;  %v126_v33 = vadd.f32 %v125_v11, %v124_v2  ;;  %v215_v34 = vrot.slane %v214_v12, 2  ;;  %v223_v35 = vadd.f32 %v222_v13, %v221_v4  ;;  %v7357_v20 = vld [vmem:[%s13437_s0 + $0x20] sm:$0x2]  ;;  %v7368_v13 = vld [vmem:[%s13437_s0 + $0x24] sm:$0x2] }
  0x24   :  { %v135_v36 = vadd.f32 %v134_v14, %v133_v5  ;;  %v144_v37 = vadd.f32 %v143_v15, %v142_v6  ;;  %v153_v38 = vadd.f32 %v152_v22, %v151_v7  ;;  %v162_v39 = vadd.f32 %v161_v23, %v160_v8  ;;  %v7373_v14 = vld [vmem:[%s13437_s0 + $0x40] sm:$0x2] }
  0x25   :  { %v171_v40 = vadd.f32 %v170_v24, %v169_v9  ;;  %v180_v41 = vadd.f32 %v179_v25, %v178_v16  ;;  %v189_v42 = vadd.f32 %v188_v26, %v187_v10  ;;  %v198_v43 = vadd.f32 %v197_v27, %v196_v17  ;;  %v7382_v25 = vld [vmem:[%s13437_s0 + $0x44] sm:$0x2]  ;;  %v7387_v26 = vld [vmem:[%s13437_s0 + $0x60] sm:$0x2] }
  0x26   :  { %v91_v44 = vrot.slane %v90_v28, 1  ;;  %v100_v45 = vrot.slane %v99_v29, 1  ;;  %v109_v46 = vrot.slane %v108_v30, 1  ;;  %v207_v47 = vadd.f32 %v206_v31, %v205_v21  ;;  %v7392_v27 = vld [vmem:[%s13437_s0 + $0x64] sm:$0x2] }
  0x27   :  { %v118_v48 = vrot.slane %v117_v32, 1  ;;  %v127_v49 = vrot.slane %v126_v33, 1  ;;  %v216_v50 = vadd.f32 %v215_v34, %v214_v12  ;;  %v224_v51 = vrot.slane %v223_v35, 2  ;;  %v7415_v34 = vld [vmem:[%s13437_s0 + $0xa0] sm:$0x2] }
  0x28   :  { %v136_v52 = vrot.slane %v135_v36, 1  ;;  %v145_v53 = vrot.slane %v144_v37, 1  ;;  %v154_v54 = vrot.slane %v153_v38, 1  ;;  %v163_v55 = vrot.slane %v162_v39, 1 }
  0x29   :  { %v172_v56 = vrot.slane %v171_v40, 1  ;;  %v181_v57 = vrot.slane %v180_v41, 1  ;;  %v190_v58 = vrot.slane %v189_v42, 1  ;;  %v199_v59 = vrot.slane %v198_v43, 1 }
  0x2a   :  { %v92_v61 = vadd.f32 %v91_v44, %v90_v28  ;;  %v101_v62 = vadd.f32 %v100_v45, %v99_v29  ;;  %v110_v63 = vadd.f32 %v109_v46, %v108_v30  ;;  %v208_v0 = vrot.slane %v207_v47, 1  ;;  %v7397_v28 = vld [vmem:[%s13437_s0 + $0x80] sm:$0x2]  ;;  %v7460_v46 = vld [vmem:[%s13437_s0 + $0x104] sm:$0x2] }
  0x2b   :  { %v119_v1 = vadd.f32 %v118_v48, %v117_v32  ;;  %v128_v2 = vadd.f32 %v127_v49, %v126_v33  ;;  %v217_v3 = vrot.slane %v216_v50, 1  ;;  %v225_v4 = vadd.f32 %v224_v51, %v223_v35  ;;  %v7410_v33 = vld [vmem:[%s13437_s0 + $0x84] sm:$0x2]  ;;  %v7453_v44 = vld [vmem:[%s13437_s0 + $0x100] sm:$0x2] }
  0x2c   :  { %v137_v5 = vadd.f32 %v136_v52, %v135_v36  ;;  %v146_v6 = vadd.f32 %v145_v53, %v144_v37  ;;  %v155_v7 = vadd.f32 %v154_v54, %v153_v38  ;;  %v164_v8 = vadd.f32 %v163_v55, %v162_v39  ;;  %v7420_v35 = vld [vmem:[%s13437_s0 + $0xa4] sm:$0x2]  ;;  %v7425_v36 = vld [vmem:[%s13437_s0 + $0xc0] sm:$0x2] }
  0x2d   :  { %v173_v9 = vadd.f32 %v172_v56, %v171_v40  ;;  %v182_v16 = vadd.f32 %v181_v57, %v180_v41  ;;  %v191_v10 = vadd.f32 %v190_v58, %v189_v42  ;;  %v200_v17 = vadd.f32 %v199_v59, %v198_v43  ;;  %v7438_v41 = vld [vmem:[%s13437_s0 + $0xc4] sm:$0x2]  ;;  %v7443_v42 = vld [vmem:[%s13437_s0 + $0xe0] sm:$0x2] }
  0x2e   :  { %v209_v21 = vadd.f32 %v208_v0, %v207_v47  ;;  %v7359_v60 = vmul.f32 0.25, %v92_v61  ;;  %v7361_v11 = vmul.f32 0.25, %v101_v62  ;;  %v7363_v12 = vmul.f32 0.25, %v110_v63  ;;  %v7448_v43 = vld [vmem:[%s13437_s0 + $0xe4] sm:$0x2] }
  0x2f   :  { %v218_v15 = vadd.f32 %v217_v3, %v216_v50  ;;  %v226_v22 = vrot.slane %v225_v4, 1  ;;  %v7375_v23 = vmul.f32 0.25, %v119_v1  ;;  %v7377_v24 = vmul.f32 0.25, %v128_v2  ;;  %v7465_v47 = vld [vmem:[%s13437_s0 + $0x120] sm:$0x2] }
  0x30   :  { %v7399_v29 = vmul.f32 0.25, %v137_v5  ;;  %v7401_v30 = vmul.f32 0.25, %v146_v6  ;;  %v7403_v31 = vmul.f32 0.25, %v155_v7  ;;  %v7405_v32 = vmul.f32 0.25, %v164_v8  ;;  %v7475_v53 = vld [vmem:[%s13437_s0 + $0x124] sm:$0x2] }
  0x31   :  { %v7427_v37 = vmul.f32 0.25, %v173_v9  ;;  %v7429_v38 = vmul.f32 0.25, %v182_v16  ;;  %v7431_v39 = vmul.f32 0.25, %v191_v10  ;;  %v7433_v40 = vmul.f32 0.25, %v200_v17  ;;  %v7480_v54 = vld [vmem:[%s13437_s0 + $0x140] sm:$0x2] }
  0x32   :  { %v7455_v45 = vmul.f32 0.25, %v209_v21  ;;  %v276_v48 = vunpack.c.l.bf16 %v7347_v18  ;;  %v277_v49 = vunpack.c.l.bf16 %v7352_v19  ;;  %v278_v50 = vunpack.c.l.bf16 %v7357_v20  ;;  %v265_v57 = vld [vmem:[%s13437_s0 + $0x144] sm:$0x2]  ;;  %v266_v58 = vld [vmem:[%s13437_s0 + $0x160] sm:$0x2] }
  0x33   :  { %13679 = vst [vmem:[#allocation5_spill] sm:$0xff] %v7433_v40  ;;  %v227_v51 = vadd.f32 %v226_v22, %v225_v4  ;;  %v7470_v52 = vmul.f32 0.25, %v218_v15  ;;  %v279_v55 = vunpack.c.l.bf16 %v7368_v13  ;;  %v280_v56 = vunpack.c.l.bf16 %v7373_v14  ;;  %v267_v59 = vld [vmem:[%s13437_s0 + $0x164] sm:$0x2]  ;;  %v268_v1 = vld [vmem:[%s13437_s0 + $0x180] sm:$0x2] }
  0x34   :  { %13680 = vst [vmem:[#allocation6_spill] sm:$0xff] %v7455_v45  ;;  %v281_v61 = vunpack.c.l.bf16 %v7382_v25  ;;  %v282_v62 = vunpack.c.l.bf16 %v7387_v26  ;;  %v283_v63 = vunpack.c.l.bf16 %v7392_v27  ;;  %v284_v0 = vunpack.c.l.bf16 %v7397_v28  ;;  %v7503_v2 = vld [vmem:[%s13437_s0 + $0x184] sm:$0x2]  ;;  %v7508_v3 = vld [vmem:[%s13437_s0 + $0x1a0] sm:$0x2] }
  0x35   :  { %13681 = vst [vmem:[#allocation7_spill] sm:$0xff] %v7470_v52  ;;  %v285_v4 = vunpack.c.l.bf16 %v7410_v33  ;;  %v286_v5 = vunpack.c.l.bf16 %v7415_v34  ;;  %v287_v6 = vunpack.c.l.bf16 %v7420_v35  ;;  %v288_v7 = vunpack.c.l.bf16 %v7425_v36  ;;  %v7517_v8 = vld [vmem:[%s13437_s0 + $0x1a4] sm:$0x2]  ;;  %v7522_v9 = vld [vmem:[%s13437_s0 + $0x1c0] sm:$0x2] }
  0x36   :  { %v7527_v16 = vld [vmem:[%s13437_s0 + $0x1c4] sm:$0x2]  ;;  %v289_v10 = vunpack.c.l.bf16 %v7438_v41  ;;  %v290_v17 = vunpack.c.l.bf16 %v7443_v42  ;;  %v291_v18 = vunpack.c.l.bf16 %v7448_v43  ;;  %v292_v19 = vunpack.c.l.bf16 %v7453_v44  ;;  %v274_v21 = vld [vmem:[%s13437_s0 + $0x1e0] sm:$0x2] }
  0x37   :  { %v7533_v20 = vmul.f32 0.25, %v227_v51  ;;  %v275_v13 = vld [vmem:[%s13437_s0 + $0x1e4] sm:$0x2]  ;;  %v293_v14 = vunpack.c.l.bf16 %v7460_v46  ;;  %v294_v15 = vunpack.c.l.bf16 %v7465_v47  ;;  %v295_v22 = vunpack.c.l.bf16 %v7475_v53 }
  0x38   :  { %v296_v25 = vunpack.c.l.bf16 %v7480_v54  ;;  %v297_v26 = vunpack.c.l.bf16 %v265_v57  ;;  %v298_v27 = vunpack.c.l.bf16 %v266_v58  ;;  %v299_v28 = vunpack.c.l.bf16 %v267_v59 }
  0x39   :  { %13682 = vst [vmem:[#allocation8_spill] sm:$0xff] %v7533_v20  ;;  %v300_v33 = vunpack.c.l.bf16 %v268_v1  ;;  %v301_v34 = vunpack.c.l.bf16 %v7503_v2  ;;  %v302_v35 = vunpack.c.l.bf16 %v7508_v3  ;;  %v303_v36 = vunpack.c.l.bf16 %v7517_v8 }
  0x3a   :  { %v304_v41 = vunpack.c.l.bf16 %v7522_v9  ;;  %v305_v42 = vunpack.c.l.bf16 %v7527_v16  ;;  %v306_v43 = vunpack.c.l.bf16 %v274_v21  ;;  %v307_v44 = vunpack.c.l.bf16 %v275_v13 }
  0x3b   :  { %v340_v46 = vrot.slane %v276_v48, 2  ;;  %v341_v47 = vrot.slane %v277_v49, 2  ;;  %v342_v51 = vrot.slane %v278_v50, 2  ;;  %v343_v53 = vrot.slane %v279_v55, 2 }
  0x3c   :  { %v344_v54 = vrot.slane %v280_v56, 2  ;;  %v345_v57 = vrot.slane %v281_v61, 2  ;;  %v346_v58 = vrot.slane %v282_v62, 2  ;;  %v347_v59 = vrot.slane %v283_v63, 2 }
  0x3d   :  { %v348_v1 = vrot.slane %v284_v0, 2  ;;  %v349_v2 = vrot.slane %v285_v4, 2  ;;  %v350_v20 = vrot.slane %v286_v5, 2  ;;  %v351_v3 = vrot.slane %v287_v6, 2 }
  0x3e   :  { %v352_v52 = vrot.slane %v288_v7, 2  ;;  %v353_v8 = vrot.slane %v289_v10, 2  ;;  %v354_v45 = vrot.slane %v290_v17, 2  ;;  %v355_v9 = vrot.slane %v291_v18, 2 }
  0x3f   :  { %v356_v40 = vrot.slane %v292_v19, 2  ;;  %v357_v16 = vrot.slane %v293_v14, 2  ;;  %v404_v21 = vsel %vm83_vm0, %v340_v46, 0.0  ;;  %v405_v48 = vsel %vm83_vm0, %v341_v47, 0.0 }
  0x40   :  { %v358_v49 = vrot.slane %v294_v15, 2  ;;  %v359_v50 = vrot.slane %v295_v22, 2  ;;  %v360_v55 = vrot.slane %v296_v25, 2  ;;  %v361_v56 = vrot.slane %v297_v26, 2 }
  0x41   :  { %v362_v61 = vrot.slane %v298_v27, 2  ;;  %v363_v62 = vrot.slane %v299_v28, 2  ;;  %v364_v63 = vrot.slane %v300_v33, 2  ;;  %v413_v0 = vsel %vm83_vm0, %v342_v51, 0.0 }
  0x42   :  { %v7553_v4 = vadd.f32 %v405_v48, %v404_v21  ;;  %v414_v5 = vsel %vm83_vm0, %v343_v53, 0.0  ;;  %v422_v6 = vsel %vm83_vm0, %v344_v54, 0.0  ;;  %v423_v7 = vsel %vm83_vm0, %v345_v57, 0.0 }
  0x43   :  { %v431_v10 = vsel %vm83_vm0, %v346_v58, 0.0  ;;  %v432_v17 = vsel %vm83_vm0, %v347_v59, 0.0  ;;  %v440_v18 = vsel %vm83_vm0, %v348_v1, 0.0  ;;  %v441_v19 = vsel %vm83_vm0, %v349_v2, 0.0 }
  0x44   :  { %v365_v13 = vrot.slane %v301_v34, 2  ;;  %v366_v14 = vrot.slane %v302_v35, 2  ;;  %v367_v15 = vrot.slane %v303_v36, 2  ;;  %v368_v22 = vrot.slane %v304_v41, 2 }
  0x45   :  { %v369_v25 = vrot.slane %v305_v42, 2  ;;  %v370_v26 = vrot.slane %v306_v43, 2  ;;  %v371_v27 = vrot.slane %v307_v44, 2  ;;  %v415_v28 = vadd.f32 %v414_v5, %v413_v0 }
  0x46   :  { %v407_v33 = vrot.slane %v7553_v4, 4  ;;  %v424_v46 = vadd.f32 %v423_v7, %v422_v6  ;;  %v433_v47 = vadd.f32 %v432_v17, %v431_v10  ;;  %v442_v51 = vadd.f32 %v441_v19, %v440_v18 }
  0x47   :  { %v449_v53 = vsel %vm83_vm0, %v350_v20, 0.0  ;;  %v450_v54 = vsel %vm83_vm0, %v351_v3, 0.0  ;;  %v458_v57 = vsel %vm83_vm0, %v352_v52, 0.0  ;;  %v459_v34 = vsel %vm83_vm0, %v353_v8, 0.0 }
  0x48   :  { %v467_v35 = vsel %vm83_vm0, %v354_v45, 0.0  ;;  %v468_v36 = vsel %vm83_vm0, %v355_v9, 0.0  ;;  %v476_v41 = vsel %vm83_vm0, %v356_v40, 0.0  ;;  %v477_v42 = vsel %vm83_vm0, %v357_v16, 0.0 }
  0x49   :  { %v485_v43 = vsel %vm83_vm0, %v358_v49, 0.0  ;;  %v486_v44 = vsel %vm83_vm0, %v359_v50, 0.0  ;;  %v494_v20 = vsel %vm83_vm0, %v360_v55, 0.0  ;;  %v495_v58 = vsel %vm83_vm0, %v361_v56, 0.0 }
  0x4a   :  { %v503_v52 = vsel %vm83_vm0, %v362_v61, 0.0  ;;  %v504_v59 = vsel %vm83_vm0, %v363_v62, 0.0  ;;  %v512_v45 = vsel %vm83_vm0, %v364_v63, 0.0  ;;  %v513_v1 = vsel %vm83_vm0, %v365_v13, 0.0 }
  0x4b   :  { %v451_v2 = vadd.f32 %v450_v54, %v449_v53  ;;  %v460_v40 = vadd.f32 %v459_v34, %v458_v57  ;;  %v521_v3 = vsel %vm83_vm0, %v366_v14, 0.0  ;;  %v522_v8 = vsel %vm83_vm0, %v367_v15, 0.0 }
  0x4c   :  { %v469_v9 = vadd.f32 %v468_v36, %v467_v35  ;;  %v478_v16 = vadd.f32 %v477_v42, %v476_v41  ;;  %v530_v21 = vsel %vm83_vm0, %v368_v22, 0.0  ;;  %v531_v48 = vsel %vm83_vm0, %v369_v25, 0.0 }
  0x4d   :  { %v487_v49 = vadd.f32 %v486_v44, %v485_v43  ;;  %v496_v50 = vadd.f32 %v495_v58, %v494_v20  ;;  %v505_v55 = vadd.f32 %v504_v59, %v503_v52  ;;  %v514_v56 = vadd.f32 %v513_v1, %v512_v45 }
  0x4e   :  { %v416_v61 = vrot.slane %v415_v28, 4  ;;  %v425_v62 = vrot.slane %v424_v46, 4  ;;  %v434_v63 = vrot.slane %v433_v47, 4  ;;  %v523_v0 = vadd.f32 %v522_v8, %v521_v3 }
  0x4f   :  { %v443_v5 = vrot.slane %v442_v51, 4  ;;  %v452_v6 = vrot.slane %v451_v2, 4  ;;  %v461_v7 = vrot.slane %v460_v40, 4  ;;  %v532_v10 = vadd.f32 %v531_v48, %v530_v21 }
  0x50   :  { %v470_v17 = vrot.slane %v469_v9, 4  ;;  %v479_v18 = vrot.slane %v478_v16, 4  ;;  %v539_v19 = vsel %vm83_vm0, %v370_v26, 0.0  ;;  %v540_v13 = vsel %vm83_vm0, %v371_v27, 0.0 }
  0x51   :  { %v488_v14 = vrot.slane %v487_v49, 4  ;;  %v497_v15 = vrot.slane %v496_v50, 4  ;;  %v506_v22 = vrot.slane %v505_v55, 4  ;;  %v515_v25 = vrot.slane %v514_v56, 4 }
  0x52   :  { %v408_v53 = vadd.f32 %v407_v33, %v7553_v4  ;;  %v417_v54 = vadd.f32 %v416_v61, %v415_v28  ;;  %v426_v57 = vadd.f32 %v425_v62, %v424_v46  ;;  %v524_v34 = vrot.slane %v523_v0, 4 }
  0x53   :  { %v435_v35 = vadd.f32 %v434_v63, %v433_v47  ;;  %v444_v36 = vadd.f32 %v443_v5, %v442_v51  ;;  %v533_v41 = vrot.slane %v532_v10, 4  ;;  %v541_v42 = vadd.f32 %v540_v13, %v539_v19 }
  0x54   :  { %v453_v43 = vadd.f32 %v452_v6, %v451_v2  ;;  %v462_v44 = vadd.f32 %v461_v7, %v460_v40  ;;  %v471_v20 = vadd.f32 %v470_v17, %v469_v9  ;;  %v480_v58 = vadd.f32 %v479_v18, %v478_v16 }
  0x55   :  { %v489_v26 = vadd.f32 %v488_v14, %v487_v49  ;;  %v498_v52 = vadd.f32 %v497_v15, %v496_v50  ;;  %v507_v27 = vadd.f32 %v506_v22, %v505_v55  ;;  %v516_v59 = vadd.f32 %v515_v25, %v514_v56 }
  0x56   :  { %v409_v45 = vrot.slane %v408_v53, 2  ;;  %v418_v1 = vrot.slane %v417_v54, 2  ;;  %v427_v3 = vrot.slane %v426_v57, 2  ;;  %v525_v8 = vadd.f32 %v524_v34, %v523_v0 }
  0x57   :  { %v436_v4 = vrot.slane %v435_v35, 2  ;;  %v445_v28 = vrot.slane %v444_v36, 2  ;;  %v534_v33 = vadd.f32 %v533_v41, %v532_v10  ;;  %v542_v46 = vrot.slane %v541_v42, 4 }
  0x58   :  { %v454_v47 = vrot.slane %v453_v43, 2  ;;  %v463_v51 = vrot.slane %v462_v44, 2  ;;  %v472_v21 = vrot.slane %v471_v20, 2  ;;  %v481_v48 = vrot.slane %v480_v58, 2 }
  0x59   :  { %v490_v2 = vrot.slane %v489_v26, 2  ;;  %v499_v40 = vrot.slane %v498_v52, 2  ;;  %v508_v9 = vrot.slane %v507_v27, 2  ;;  %v517_v16 = vrot.slane %v516_v59, 2 }
  0x5a   :  { %v410_v49 = vadd.f32 %v409_v45, %v408_v53  ;;  %v419_v50 = vadd.f32 %v418_v1, %v417_v54  ;;  %v428_v55 = vadd.f32 %v427_v3, %v426_v57  ;;  %v526_v56 = vrot.slane %v525_v8, 2 }
  0x5b   :  { %v437_v61 = vadd.f32 %v436_v4, %v435_v35  ;;  %v446_v62 = vadd.f32 %v445_v28, %v444_v36  ;;  %v535_v63 = vrot.slane %v534_v33, 2  ;;  %v543_v0 = vadd.f32 %v542_v46, %v541_v42 }
  0x5c   :  { %v455_v5 = vadd.f32 %v454_v47, %v453_v43  ;;  %v464_v6 = vadd.f32 %v463_v51, %v462_v44  ;;  %v473_v7 = vadd.f32 %v472_v21, %v471_v20  ;;  %v482_v10 = vadd.f32 %v481_v48, %v480_v58 }
  0x5d   :  { %v491_v17 = vadd.f32 %v490_v2, %v489_v26  ;;  %v500_v18 = vadd.f32 %v499_v40, %v498_v52  ;;  %v509_v19 = vadd.f32 %v508_v9, %v507_v27  ;;  %v518_v13 = vadd.f32 %v517_v16, %v516_v59  ;;  %v7589_v2 = vld [vmem:[%s13437_s0] sm:$0x4]  ;;  %v7594_v40 = vld [vmem:[%s13437_s0 + $0x4] sm:$0x4] }
  0x5e   :  { %v411_v14 = vrot.slane %v410_v49, 1  ;;  %v420_v15 = vrot.slane %v419_v50, 1  ;;  %v429_v22 = vrot.slane %v428_v55, 1  ;;  %v527_v25 = vadd.f32 %v526_v56, %v525_v8  ;;  %v7599_v9 = vld [vmem:[%s13437_s0 + $0x20] sm:$0x4] }
  0x5f   :  { %v438_v53 = vrot.slane %v437_v61, 1  ;;  %v447_v54 = vrot.slane %v446_v62, 1  ;;  %v536_v57 = vadd.f32 %v535_v63, %v534_v33  ;;  %v544_v34 = vrot.slane %v543_v0, 2  ;;  %v7610_v56 = vld [vmem:[%s13437_s0 + $0x24] sm:$0x4] }
  0x60   :  { %v456_v35 = vrot.slane %v455_v5, 1  ;;  %v465_v36 = vrot.slane %v464_v6, 1  ;;  %v474_v41 = vrot.slane %v473_v7, 1  ;;  %v483_v42 = vrot.slane %v482_v10, 1 }
  0x61   :  { %v492_v43 = vrot.slane %v491_v17, 1  ;;  %v501_v44 = vrot.slane %v500_v18, 1  ;;  %v510_v20 = vrot.slane %v509_v19, 1  ;;  %v519_v58 = vrot.slane %v518_v13, 1 }
  0x62   :  { %v412_v26 = vadd.f32 %v411_v14, %v410_v49  ;;  %v421_v52 = vadd.f32 %v420_v15, %v419_v50  ;;  %v430_v27 = vadd.f32 %v429_v22, %v428_v55  ;;  %v528_v59 = vrot.slane %v527_v25, 1  ;;  %v7652_v15 = vld [vmem:[%s13437_s0 + $0x84] sm:$0x4]  ;;  %v7657_v22 = vld [vmem:[%s13437_s0 + $0xa0] sm:$0x4] }
  0x63   :  { %v439_v45 = vadd.f32 %v438_v53, %v437_v61  ;;  %v448_v1 = vadd.f32 %v447_v54, %v446_v62  ;;  %v537_v3 = vrot.slane %v536_v57, 1  ;;  %v545_v8 = vadd.f32 %v544_v34, %v543_v0  ;;  %v7615_v61 = vld [vmem:[%s13437_s0 + $0x40] sm:$0x4] }
  0x64   :  { %v457_v4 = vadd.f32 %v456_v35, %v455_v5  ;;  %v466_v28 = vadd.f32 %v465_v36, %v464_v6  ;;  %v475_v33 = vadd.f32 %v474_v41, %v473_v7  ;;  %v484_v46 = vadd.f32 %v483_v42, %v482_v10  ;;  %v7624_v6 = vld [vmem:[%s13437_s0 + $0x44] sm:$0x4]  ;;  %v7629_v7 = vld [vmem:[%s13437_s0 + $0x60] sm:$0x4] }
  0x65   :  { %v493_v47 = vadd.f32 %v492_v43, %v491_v17  ;;  %v502_v51 = vadd.f32 %v501_v44, %v500_v18  ;;  %v511_v21 = vadd.f32 %v510_v20, %v509_v19  ;;  %v520_v48 = vadd.f32 %v519_v58, %v518_v13  ;;  %v7634_v10 = vld [vmem:[%s13437_s0 + $0x64] sm:$0x4]  ;;  %v7639_v17 = vld [vmem:[%s13437_s0 + $0x80] sm:$0x4] }
  0x66   :  { %v529_v16 = vadd.f32 %v528_v59, %v527_v25  ;;  %v7601_v49 = vmul.f32 0.25, %v412_v26  ;;  %v7603_v50 = vmul.f32 0.25, %v421_v52  ;;  %v7605_v55 = vmul.f32 0.25, %v430_v27  ;;  %v7662_v25 = vld [vmem:[%s13437_s0 + $0xa4] sm:$0x4] }
  0x67   :  { %v538_v62 = vadd.f32 %v537_v3, %v536_v57  ;;  %v546_v63 = vrot.slane %v545_v8, 1  ;;  %v7617_v0 = vmul.f32 0.25, %v439_v45  ;;  %v7619_v5 = vmul.f32 0.25, %v448_v1  ;;  %v7667_v53 = vld [vmem:[%s13437_s0 + $0xc0] sm:$0x4] }
  0x68   :  { %13683 = vst [vmem:[#allocation9_spill] sm:$0xff] %v7601_v49  ;;  %13684 = vst [vmem:[#allocation10_spill] sm:$0xff] %v7603_v50  ;;  %v7641_v18 = vmul.f32 0.25, %v457_v4  ;;  %v7643_v19 = vmul.f32 0.25, %v466_v28  ;;  %v7645_v13 = vmul.f32 0.25, %v475_v33  ;;  %v7647_v14 = vmul.f32 0.25, %v484_v46 }
  0x69   :  { %13685 = vst [vmem:[#allocation11_spill] sm:$0xff] %v7605_v55  ;;  %13686 = vst [vmem:[#allocation12_spill] sm:$0xff] %v7617_v0  ;;  %v7669_v54 = vmul.f32 0.25, %v493_v47  ;;  %v7671_v57 = vmul.f32 0.25, %v502_v51  ;;  %v7673_v34 = vmul.f32 0.25, %v511_v21  ;;  %v7675_v35 = vmul.f32 0.25, %v520_v48 }
  0x6a   :  { %13687 = vst [vmem:[#allocation13_spill] sm:$0xff] %v7619_v5  ;;  %13688 = vst [vmem:[#allocation14_spill] sm:$0xff] %v7641_v18  ;;  %v7680_v36 = vld [vmem:[%s13437_s0 + $0xc4] sm:$0x4]  ;;  %v7685_v41 = vld [vmem:[%s13437_s0 + $0xe0] sm:$0x4]  ;;  %v596_v26 = vunpack.c.l.bf16 %v7589_v2  ;;  %v597_v52 = vunpack.c.l.bf16 %v7594_v40  ;;  %v598_v27 = vunpack.c.l.bf16 %v7599_v9  ;;  %v547_v59 = vadd.f32 %v546_v63, %v545_v8 }
  0x6b   :  { %13689 = vst [vmem:[#allocation15_spill] sm:$0xff] %v7643_v19  ;;  %13690 = vst [vmem:[#allocation16_spill] sm:$0xff] %v7645_v13  ;;  %v7690_v42 = vld [vmem:[%s13437_s0 + $0xe4] sm:$0x4]  ;;  %v7695_v43 = vld [vmem:[%s13437_s0 + $0x100] sm:$0x4]  ;;  %v599_v4 = vunpack.c.l.bf16 %v7610_v56  ;;  %v600_v28 = vunpack.c.l.bf16 %v7615_v61  ;;  %v601_v47 = vunpack.c.l.bf16 %v7624_v6  ;;  %v602_v51 = vunpack.c.l.bf16 %v7629_v7 }
  0x6c   :  { %13691 = vst [vmem:[#allocation17_spill] sm:$0xff] %v7647_v14  ;;  %13692 = vst [vmem:[#allocation18_spill] sm:$0xff] %v7669_v54  ;;  %v7697_v44 = vmul.f32 0.25, %v529_v16  ;;  %v7702_v20 = vld [vmem:[%s13437_s0 + $0x104] sm:$0x4]  ;;  %v7712_v45 = vmul.f32 0.25, %v538_v62  ;;  %v603_v21 = vunpack.c.l.bf16 %v7634_v10  ;;  %v604_v48 = vunpack.c.l.bf16 %v7639_v17 }
  0x6d   :  { %13693 = vst [vmem:[#allocation19_spill] sm:$0xff] %v7671_v57  ;;  %13694 = vst [vmem:[#allocation20_spill] sm:$0xff] %v7673_v34  ;;  %v7707_v58 = vld [vmem:[%s13437_s0 + $0x120] sm:$0x4]  ;;  %v7717_v1 = vld [vmem:[%s13437_s0 + $0x124] sm:$0x4]  ;;  %v605_v16 = vunpack.c.l.bf16 %v7652_v15  ;;  %v606_v56 = vunpack.c.l.bf16 %v7657_v22  ;;  %v607_v61 = vunpack.c.l.bf16 %v7662_v25  ;;  %v608_v62 = vunpack.c.l.bf16 %v7667_v53 }
  0x6e   :  { %13695 = vst [vmem:[#allocation21_spill] sm:$0xff] %v7675_v35  ;;  %13696 = vst [vmem:[#allocation22_spill] sm:$0xff] %v7697_v44  ;;  %v7722_v3 = vld [vmem:[%s13437_s0 + $0x140] sm:$0x4]  ;;  %v585_v8 = vld [vmem:[%s13437_s0 + $0x144] sm:$0x4]  ;;  %v609_v10 = vunpack.c.l.bf16 %v7680_v36  ;;  %v610_v17 = vunpack.c.l.bf16 %v7685_v41  ;;  %v611_v15 = vunpack.c.l.bf16 %v7690_v42  ;;  %v612_v22 = vunpack.c.l.bf16 %v7695_v43 }
  0x6f   :  { %13697 = vst [vmem:[#allocation23_spill] sm:$0xff] %v7712_v45  ;;  %v586_v33 = vld [vmem:[%s13437_s0 + $0x160] sm:$0x4]  ;;  %v587_v46 = vld [vmem:[%s13437_s0 + $0x164] sm:$0x4]  ;;  %v7775_v25 = vmul.f32 0.25, %v547_v59  ;;  %v613_v44 = vunpack.c.l.bf16 %v7702_v20  ;;  %v614_v36 = vunpack.c.l.bf16 %v7707_v58  ;;  %v615_v41 = vunpack.c.l.bf16 %v7717_v1 }
  0x70   :  { %v588_v2 = vld [vmem:[%s13437_s0 + $0x180] sm:$0x4]  ;;  %v7745_v40 = vld [vmem:[%s13437_s0 + $0x184] sm:$0x4]  ;;  %v616_v42 = vunpack.c.l.bf16 %v7722_v3  ;;  %v617_v35 = vunpack.c.l.bf16 %v585_v8  ;;  %v618_v43 = vunpack.c.l.bf16 %v586_v33  ;;  %v619_v59 = vunpack.c.l.bf16 %v587_v46 }
  0x71   :  { %v7750_v9 = vld [vmem:[%s13437_s0 + $0x1a0] sm:$0x4]  ;;  %v7759_v63 = vld [vmem:[%s13437_s0 + $0x1a4] sm:$0x4]  ;;  %13698 = vst [vmem:[#allocation24_spill] sm:$0xff] %v7775_v25  ;;  %v620_v25 = vunpack.c.l.bf16 %v588_v2  ;;  %v621_v34 = vunpack.c.l.bf16 %v7745_v40  ;;  %v660_v19 = vrot.slane %v596_v26, 4 }
  0x72   :  { %v7764_v6 = vld [vmem:[%s13437_s0 + $0x1c0] sm:$0x4]  ;;  %v7769_v7 = vld [vmem:[%s13437_s0 + $0x1c4] sm:$0x4]  ;;  %v622_v57 = vunpack.c.l.bf16 %v7750_v9  ;;  %v623_v54 = vunpack.c.l.bf16 %v7759_v63  ;;  %v661_v1 = vrot.slane %v597_v52, 4  ;;  %v662_v18 = vrot.slane %v598_v27, 4 }
  0x73   :  { %v594_v53 = vld [vmem:[%s13437_s0 + $0x1e0] sm:$0x4]  ;;  %v595_v45 = vld [vmem:[%s13437_s0 + $0x1e4] sm:$0x4]  ;;  %v624_v14 = vunpack.c.l.bf16 %v7764_v6  ;;  %v625_v20 = vunpack.c.l.bf16 %v7769_v7  ;;  %v663_v3 = vrot.slane %v599_v4, 4  ;;  %v664_v8 = vrot.slane %v600_v28, 4 }
  0x74   :  { %v626_v13 = vunpack.c.l.bf16 %v594_v53  ;;  %v627_v58 = vunpack.c.l.bf16 %v595_v45  ;;  %v665_v33 = vrot.slane %v601_v47, 4  ;;  %v666_v46 = vrot.slane %v602_v51, 4 }
  0x75   :  { %v667_v2 = vrot.slane %v603_v21, 4  ;;  %v668_v5 = vrot.slane %v604_v48, 4  ;;  %v669_v40 = vrot.slane %v605_v16, 4  ;;  %v670_v0 = vrot.slane %v606_v56, 4 }
  0x76   :  { %v671_v9 = vrot.slane %v607_v61, 4  ;;  %v672_v55 = vrot.slane %v608_v62, 4  ;;  %v673_v63 = vrot.slane %v609_v10, 4  ;;  %v674_v50 = vrot.slane %v610_v17, 4 }
  0x77   :  { %v675_v6 = vrot.slane %v611_v15, 4  ;;  %v676_v49 = vrot.slane %v612_v22, 4  ;;  %v677_v7 = vrot.slane %v613_v44, 4  ;;  %v724_v45 = vsel %vm83_vm0, %v660_v19, 0.0 }
  0x78   :  { %v725_v26 = vsel %vm83_vm0, %v661_v1, 0.0  ;;  %v678_v52 = vrot.slane %v614_v36, 4  ;;  %v679_v27 = vrot.slane %v615_v41, 4  ;;  %v680_v4 = vrot.slane %v616_v42, 4 }
  0x79   :  { %v681_v28 = vrot.slane %v617_v35, 4  ;;  %v682_v47 = vrot.slane %v618_v43, 4  ;;  %v683_v51 = vrot.slane %v619_v59, 4  ;;  %v684_v21 = vrot.slane %v620_v25, 4 }
  0x7a   :  { %v733_v48 = vsel %vm83_vm0, %v662_v18, 0.0  ;;  %v7795_v16 = vadd.f32 %v725_v26, %v724_v45  ;;  %v734_v56 = vsel %vm83_vm0, %v663_v3, 0.0  ;;  %v742_v61 = vsel %vm83_vm0, %v664_v8, 0.0 }
  0x7b   :  { %v743_v44 = vsel %vm83_vm0, %v665_v33, 0.0  ;;  %v751_v19 = vsel %vm83_vm0, %v666_v46, 0.0  ;;  %v752_v62 = vsel %vm83_vm0, %v667_v2, 0.0  ;;  %v760_v10 = vsel %vm83_vm0, %v668_v5, 0.0 }
  0x7c   :  { %v761_v35 = vsel %vm83_vm0, %v669_v40, 0.0  ;;  %v685_v17 = vrot.slane %v621_v34, 4  ;;  %v686_v15 = vrot.slane %v622_v57, 4  ;;  %v687_v22 = vrot.slane %v623_v54, 4 }
  0x7d   :  { %v688_v18 = vrot.slane %v624_v14, 4  ;;  %v689_v25 = vrot.slane %v625_v20, 4  ;;  %v690_v53 = vrot.slane %v626_v13, 4  ;;  %v691_v36 = vrot.slane %v627_v58, 4 }
  0x7e   :  { %v735_v41 = vadd.f32 %v734_v56, %v733_v48  ;;  %v727_v42 = vrot.slane %v7795_v16, 4  ;;  %v744_v43 = vadd.f32 %v743_v44, %v742_v61  ;;  %v753_v59 = vadd.f32 %v752_v62, %v751_v19 }
  0x7f   :  { %v762_v1 = vadd.f32 %v761_v35, %v760_v10  ;;  %v769_v3 = vsel %vm83_vm0, %v670_v0, 0.0  ;;  %v770_v8 = vsel %vm83_vm0, %v671_v9, 0.0  ;;  %v778_v5 = vsel %vm83_vm0, %v672_v55, 0.0 }
  0x80   :  { %v779_v34 = vsel %vm83_vm0, %v673_v63, 0.0  ;;  %v787_v54 = vsel %vm83_vm0, %v674_v50, 0.0  ;;  %v788_v14 = vsel %vm83_vm0, %v675_v6, 0.0  ;;  %v796_v13 = vsel %vm83_vm0, %v676_v49, 0.0 }
  0x81   :  { %v797_v57 = vsel %vm83_vm0, %v677_v7, 0.0  ;;  %v805_v20 = vsel %vm83_vm0, %v678_v52, 0.0  ;;  %v806_v58 = vsel %vm83_vm0, %v679_v27, 0.0  ;;  %v814_v0 = vsel %vm83_vm0, %v680_v4, 0.0 }
  0x82   :  { %v815_v33 = vsel %vm83_vm0, %v681_v28, 0.0  ;;  %v823_v55 = vsel %vm83_vm0, %v682_v47, 0.0  ;;  %v824_v46 = vsel %vm83_vm0, %v683_v51, 0.0  ;;  %v832_v50 = vsel %vm83_vm0, %v684_v21, 0.0 }
  0x83   :  { %v833_v2 = vsel %vm83_vm0, %v685_v17, 0.0  ;;  %v771_v40 = vadd.f32 %v770_v8, %v769_v3  ;;  %v780_v49 = vadd.f32 %v779_v34, %v778_v5  ;;  %v841_v9 = vsel %vm83_vm0, %v686_v15, 0.0 }
  0x84   :  { %v842_v63 = vsel %vm83_vm0, %v687_v22, 0.0  ;;  %v789_v6 = vadd.f32 %v788_v14, %v787_v54  ;;  %v798_v7 = vadd.f32 %v797_v57, %v796_v13  ;;  %v850_v45 = vsel %vm83_vm0, %v688_v18, 0.0 }
  0x85   :  { %v851_v26 = vsel %vm83_vm0, %v689_v25, 0.0  ;;  %v807_v52 = vadd.f32 %v806_v58, %v805_v20  ;;  %v816_v27 = vadd.f32 %v815_v33, %v814_v0  ;;  %v825_v4 = vadd.f32 %v824_v46, %v823_v55 }
  0x86   :  { %v834_v28 = vadd.f32 %v833_v2, %v832_v50  ;;  %v736_v47 = vrot.slane %v735_v41, 4  ;;  %v745_v51 = vrot.slane %v744_v43, 4  ;;  %v754_v21 = vrot.slane %v753_v59, 4 }
  0x87   :  { %v843_v48 = vadd.f32 %v842_v63, %v841_v9  ;;  %v763_v56 = vrot.slane %v762_v1, 4  ;;  %v772_v61 = vrot.slane %v771_v40, 4  ;;  %v781_v44 = vrot.slane %v780_v49, 4 }
  0x88   :  { %v852_v19 = vadd.f32 %v851_v26, %v850_v45  ;;  %v790_v62 = vrot.slane %v789_v6, 4  ;;  %v799_v10 = vrot.slane %v798_v7, 4  ;;  %v859_v35 = vsel %vm83_vm0, %v690_v53, 0.0 }
  0x89   :  { %v860_v17 = vsel %vm83_vm0, %v691_v36, 0.0  ;;  %v808_v15 = vrot.slane %v807_v52, 4  ;;  %v817_v22 = vrot.slane %v816_v27, 4  ;;  %v826_v18 = vrot.slane %v825_v4, 4 }
  0x8a   :  { %v835_v25 = vrot.slane %v834_v28, 4  ;;  %v728_v3 = vadd.f32 %v727_v42, %v7795_v16  ;;  %v737_v8 = vadd.f32 %v736_v47, %v735_v41  ;;  %v746_v5 = vadd.f32 %v745_v51, %v744_v43 }
  0x8b   :  { %v844_v34 = vrot.slane %v843_v48, 4  ;;  %v755_v54 = vadd.f32 %v754_v21, %v753_v59  ;;  %v764_v14 = vadd.f32 %v763_v56, %v762_v1  ;;  %v853_v13 = vrot.slane %v852_v19, 4 }
  0x8c   :  { %v861_v57 = vadd.f32 %v860_v17, %v859_v35  ;;  %v773_v20 = vadd.f32 %v772_v61, %v771_v40  ;;  %v782_v58 = vadd.f32 %v781_v44, %v780_v49  ;;  %v791_v0 = vadd.f32 %v790_v62, %v789_v6 }
  0x8d   :  { %v800_v33 = vadd.f32 %v799_v10, %v798_v7  ;;  %v809_v53 = vadd.f32 %v808_v15, %v807_v52  ;;  %v818_v55 = vadd.f32 %v817_v22, %v816_v27  ;;  %v827_v36 = vadd.f32 %v826_v18, %v825_v4 }
  0x8e   :  { %v836_v46 = vadd.f32 %v835_v25, %v834_v28  ;;  %v729_v50 = vrot.slane %v728_v3, 2  ;;  %v738_v2 = vrot.slane %v737_v8, 2  ;;  %v747_v9 = vrot.slane %v746_v5, 2 }
  0x8f   :  { %v845_v63 = vadd.f32 %v844_v34, %v843_v48  ;;  %v756_v16 = vrot.slane %v755_v54, 2  ;;  %v765_v41 = vrot.slane %v764_v14, 2  ;;  %v854_v42 = vadd.f32 %v853_v13, %v852_v19 }
  0x90   :  { %v862_v43 = vrot.slane %v861_v57, 4  ;;  %v774_v59 = vrot.slane %v773_v20, 2  ;;  %v783_v1 = vrot.slane %v782_v58, 2  ;;  %v792_v45 = vrot.slane %v791_v0, 2 }
  0x91   :  { %v801_v26 = vrot.slane %v800_v33, 2  ;;  %v810_v40 = vrot.slane %v809_v53, 2  ;;  %v819_v49 = vrot.slane %v818_v55, 2  ;;  %v828_v6 = vrot.slane %v827_v36, 2 }
  0x92   :  { %v837_v7 = vrot.slane %v836_v46, 2  ;;  %v730_v52 = vadd.f32 %v729_v50, %v728_v3  ;;  %v739_v27 = vadd.f32 %v738_v2, %v737_v8  ;;  %v748_v4 = vadd.f32 %v747_v9, %v746_v5 }
  0x93   :  { %v846_v28 = vrot.slane %v845_v63, 2  ;;  %v757_v47 = vadd.f32 %v756_v16, %v755_v54  ;;  %v766_v51 = vadd.f32 %v765_v41, %v764_v14  ;;  %v855_v21 = vrot.slane %v854_v42, 2 }
  0x94   :  { %v863_v48 = vadd.f32 %v862_v43, %v861_v57  ;;  %v775_v56 = vadd.f32 %v774_v59, %v773_v20  ;;  %v784_v61 = vadd.f32 %v783_v1, %v782_v58  ;;  %v793_v44 = vadd.f32 %v792_v45, %v791_v0 }
  0x95   :  { %v802_v19 = vadd.f32 %v801_v26, %v800_v33  ;;  %v811_v62 = vadd.f32 %v810_v40, %v809_v53  ;;  %v820_v10 = vadd.f32 %v819_v49, %v818_v55  ;;  %v829_v35 = vadd.f32 %v828_v6, %v827_v36  ;;  %v7831_v40 = vld [vmem:[%s13437_s0] sm:$0x8]  ;;  %v7836_v49 = vld [vmem:[%s13437_s0 + $0x4] sm:$0x8] }
  0x96   :  { %v838_v17 = vadd.f32 %v837_v7, %v836_v46  ;;  %v731_v15 = vrot.slane %v730_v52, 1  ;;  %v740_v22 = vrot.slane %v739_v27, 1  ;;  %v749_v18 = vrot.slane %v748_v4, 1  ;;  %v7841_v6 = vld [vmem:[%s13437_s0 + $0x20] sm:$0x8] }
  0x97   :  { %v847_v25 = vadd.f32 %v846_v28, %v845_v63  ;;  %v758_v3 = vrot.slane %v757_v47, 1  ;;  %v767_v8 = vrot.slane %v766_v51, 1  ;;  %v856_v5 = vadd.f32 %v855_v21, %v854_v42  ;;  %v7852_v28 = vld [vmem:[%s13437_s0 + $0x24] sm:$0x8] }
  0x98   :  { %v864_v34 = vrot.slane %v863_v48, 2  ;;  %v776_v54 = vrot.slane %v775_v56, 1  ;;  %v785_v14 = vrot.slane %v784_v61, 1  ;;  %v794_v13 = vrot.slane %v793_v44, 1 }
  0x99   :  { %v803_v57 = vrot.slane %v802_v19, 1  ;;  %v812_v20 = vrot.slane %v811_v62, 1  ;;  %v821_v58 = vrot.slane %v820_v10, 1  ;;  %v830_v0 = vrot.slane %v829_v35, 1 }
  0x9a   :  { %v839_v33 = vrot.slane %v838_v17, 1  ;;  %v732_v53 = vadd.f32 %v731_v15, %v730_v52  ;;  %v741_v55 = vadd.f32 %v740_v22, %v739_v27  ;;  %v750_v36 = vadd.f32 %v749_v18, %v748_v4  ;;  %v7894_v22 = vld [vmem:[%s13437_s0 + $0x84] sm:$0x8]  ;;  %v7899_v18 = vld [vmem:[%s13437_s0 + $0xa0] sm:$0x8] }
  0x9b   :  { %v848_v46 = vrot.slane %v847_v25, 1  ;;  %v759_v50 = vadd.f32 %v758_v3, %v757_v47  ;;  %v768_v2 = vadd.f32 %v767_v8, %v766_v51  ;;  %v857_v9 = vrot.slane %v856_v5, 1  ;;  %v7857_v47 = vld [vmem:[%s13437_s0 + $0x40] sm:$0x8] }
  0x9c   :  { %v865_v63 = vadd.f32 %v864_v34, %v863_v48  ;;  %v777_v16 = vadd.f32 %v776_v54, %v775_v56  ;;  %v786_v41 = vadd.f32 %v785_v14, %v784_v61  ;;  %v795_v42 = vadd.f32 %v794_v13, %v793_v44  ;;  %v7866_v61 = vld [vmem:[%s13437_s0 + $0x44] sm:$0x8]  ;;  %v7871_v44 = vld [vmem:[%s13437_s0 + $0x60] sm:$0x8] }
  0x9d   :  { %v804_v43 = vadd.f32 %v803_v57, %v802_v19  ;;  %v813_v59 = vadd.f32 %v812_v20, %v811_v62  ;;  %v822_v1 = vadd.f32 %v821_v58, %v820_v10  ;;  %v831_v45 = vadd.f32 %v830_v0, %v829_v35  ;;  %v7876_v19 = vld [vmem:[%s13437_s0 + $0x64] sm:$0x8]  ;;  %v7881_v62 = vld [vmem:[%s13437_s0 + $0x80] sm:$0x8] }
  0x9e   :  { %v840_v26 = vadd.f32 %v839_v33, %v838_v17  ;;  %v849_v7 = vadd.f32 %v848_v46, %v847_v25  ;;  %v7843_v52 = vmul.f32 0.25, %v732_v53  ;;  %v7845_v27 = vmul.f32 0.25, %v741_v55  ;;  %v7904_v25 = vld [vmem:[%s13437_s0 + $0xa4] sm:$0x8]  ;;  %v7909_v3 = vld [vmem:[%s13437_s0 + $0xc0] sm:$0x8] }
  0x9f   :  { %v7847_v4 = vmul.f32 0.25, %v750_v36  ;;  %v858_v51 = vadd.f32 %v857_v9, %v856_v5  ;;  %v866_v21 = vrot.slane %v865_v63, 1  ;;  %v7859_v48 = vmul.f32 0.25, %v759_v50  ;;  %v7922_v14 = vld [vmem:[%s13437_s0 + $0xc4] sm:$0x8] }
  0xa0   :  { %13699 = vst [vmem:[#allocation25_spill] sm:$0xff] %v7843_v52  ;;  %13700 = vst [vmem:[#allocation26_spill] sm:$0xff] %v7845_v27  ;;  %v7861_v56 = vmul.f32 0.25, %v768_v2  ;;  %v7883_v10 = vmul.f32 0.25, %v777_v16  ;;  %v7885_v35 = vmul.f32 0.25, %v786_v41  ;;  %v7887_v17 = vmul.f32 0.25, %v795_v42 }
  0xa1   :  { %13701 = vst [vmem:[#allocation27_spill] sm:$0xff] %v7847_v4  ;;  %13702 = vst [vmem:[#allocation28_spill] sm:$0xff] %v7859_v48  ;;  %v7889_v15 = vmul.f32 0.25, %v804_v43  ;;  %v7911_v8 = vmul.f32 0.25, %v813_v59  ;;  %v7913_v5 = vmul.f32 0.25, %v822_v1  ;;  %v7915_v34 = vmul.f32 0.25, %v831_v45 }
  0xa2   :  { %13703 = vst [vmem:[#allocation29_spill] sm:$0xff] %v7861_v56  ;;  %13704 = vst [vmem:[#allocation30_spill] sm:$0xff] %v7883_v10  ;;  %v7917_v54 = vmul.f32 0.25, %v840_v26  ;;  %v7927_v13 = vld [vmem:[%s13437_s0 + $0xe0] sm:$0x8]  ;;  %v7939_v58 = vmul.f32 0.25, %v849_v7  ;;  %v916_v53 = vunpack.c.l.bf16 %v7831_v40  ;;  %v917_v55 = vunpack.c.l.bf16 %v7836_v49 }
  0xa3   :  { %13705 = vst [vmem:[#allocation31_spill] sm:$0xff] %v7885_v35  ;;  %13706 = vst [vmem:[#allocation32_spill] sm:$0xff] %v7887_v17  ;;  %v7932_v57 = vld [vmem:[%s13437_s0 + $0xe4] sm:$0x8]  ;;  %v7937_v20 = vld [vmem:[%s13437_s0 + $0x100] sm:$0x8]  ;;  %v918_v36 = vunpack.c.l.bf16 %v7841_v6  ;;  %v867_v46 = vadd.f32 %v866_v21, %v865_v63  ;;  %v919_v16 = vunpack.c.l.bf16 %v7852_v28  ;;  %v920_v41 = vunpack.c.l.bf16 %v7857_v47 }
  0xa4   :  { %13707 = vst [vmem:[#allocation33_spill] sm:$0xff] %v7889_v15  ;;  %13708 = vst [vmem:[#allocation34_spill] sm:$0xff] %v7911_v8  ;;  %v7944_v0 = vld [vmem:[%s13437_s0 + $0x104] sm:$0x8]  ;;  %v7949_v33 = vld [vmem:[%s13437_s0 + $0x120] sm:$0x8]  ;;  %v921_v59 = vunpack.c.l.bf16 %v7866_v61  ;;  %v922_v1 = vunpack.c.l.bf16 %v7871_v44  ;;  %v923_v45 = vunpack.c.l.bf16 %v7876_v19  ;;  %v924_v26 = vunpack.c.l.bf16 %v7881_v62 }
  0xa5   :  { %13709 = vst [vmem:[#allocation35_spill] sm:$0xff] %v7913_v5  ;;  %13710 = vst [vmem:[#allocation36_spill] sm:$0xff] %v7915_v34  ;;  %v7954_v50 = vmul.f32 0.25, %v858_v51  ;;  %v7959_v2 = vld [vmem:[%s13437_s0 + $0x124] sm:$0x8]  ;;  %v925_v7 = vunpack.c.l.bf16 %v7894_v22  ;;  %v926_v28 = vunpack.c.l.bf16 %v7899_v18  ;;  %v927_v47 = vunpack.c.l.bf16 %v7904_v25 }
  0xa6   :  { %13711 = vst [vmem:[#allocation37_spill] sm:$0xff] %v7917_v54  ;;  %13712 = vst [vmem:[#allocation38_spill] sm:$0xff] %v7939_v58  ;;  %v7964_v9 = vld [vmem:[%s13437_s0 + $0x140] sm:$0x8]  ;;  %v905_v63 = vld [vmem:[%s13437_s0 + $0x144] sm:$0x8]  ;;  %v928_v51 = vunpack.c.l.bf16 %v7909_v3  ;;  %v929_v19 = vunpack.c.l.bf16 %v7922_v14  ;;  %v930_v62 = vunpack.c.l.bf16 %v7927_v13  ;;  %v931_v22 = vunpack.c.l.bf16 %v7932_v57 }
  0xa7   :  { %13713 = vst [vmem:[#allocation39_spill] sm:$0xff] %v7954_v50  ;;  %v906_v42 = vld [vmem:[%s13437_s0 + $0x160] sm:$0x8]  ;;  %v907_v43 = vld [vmem:[%s13437_s0 + $0x164] sm:$0x8]  ;;  %v932_v18 = vunpack.c.l.bf16 %v7937_v20  ;;  %v8017_v25 = vmul.f32 0.25, %v867_v46  ;;  %v933_v58 = vunpack.c.l.bf16 %v7944_v0  ;;  %v934_v14 = vunpack.c.l.bf16 %v7949_v33 }
  0xa8   :  { %v908_v40 = vld [vmem:[%s13437_s0 + $0x180] sm:$0x8]  ;;  %v7987_v49 = vld [vmem:[%s13437_s0 + $0x184] sm:$0x8]  ;;  %v935_v13 = vunpack.c.l.bf16 %v7959_v2  ;;  %v936_v57 = vunpack.c.l.bf16 %v7964_v9  ;;  %v937_v54 = vunpack.c.l.bf16 %v905_v63  ;;  %v938_v20 = vunpack.c.l.bf16 %v906_v42 }
  0xa9   :  { %v7992_v6 = vld [vmem:[%s13437_s0 + $0x1a0] sm:$0x8]  ;;  %v8001_v21 = vld [vmem:[%s13437_s0 + $0x1a4] sm:$0x8]  ;;  %13714 = vst [vmem:[#allocation40_spill] sm:$0xff] %v8017_v25  ;;  %v939_v46 = vunpack.c.l.bf16 %v907_v43  ;;  %v940_v25 = vunpack.c.l.bf16 %v908_v40  ;;  %v941_v34 = vunpack.c.l.bf16 %v7987_v49  ;;  %v980_v35 = vrot.slane %v916_v53, 6 }
  0xaa   :  { %v8006_v61 = vld [vmem:[%s13437_s0 + $0x1c0] sm:$0x8]  ;;  %v8011_v44 = vld [vmem:[%s13437_s0 + $0x1c4] sm:$0x8]  ;;  %v942_v5 = vunpack.c.l.bf16 %v7992_v6  ;;  %v943_v8 = vunpack.c.l.bf16 %v8001_v21  ;;  %v981_v2 = vrot.slane %v917_v55, 6  ;;  %v982_v10 = vrot.slane %v918_v36, 6 }
  0xab   :  { %v914_v3 = vld [vmem:[%s13437_s0 + $0x1e0] sm:$0x8]  ;;  %v915_v50 = vld [vmem:[%s13437_s0 + $0x1e4] sm:$0x8]  ;;  %v944_v15 = vunpack.c.l.bf16 %v8006_v61  ;;  %v945_v0 = vunpack.c.l.bf16 %v8011_v44  ;;  %v983_v9 = vrot.slane %v919_v16, 6  ;;  %v984_v63 = vrot.slane %v920_v41, 6 }
  0xac   :  { %v946_v17 = vunpack.c.l.bf16 %v914_v3  ;;  %v947_v33 = vunpack.c.l.bf16 %v915_v50  ;;  %v985_v42 = vrot.slane %v921_v59, 6  ;;  %v986_v43 = vrot.slane %v922_v1, 6 }
  0xad   :  { %v987_v40 = vrot.slane %v923_v45, 6  ;;  %v988_v56 = vrot.slane %v924_v26, 6  ;;  %v989_v49 = vrot.slane %v925_v7, 6  ;;  %v990_v48 = vrot.slane %v926_v28, 6 }
  0xae   :  { %v991_v6 = vrot.slane %v927_v47, 6  ;;  %v992_v4 = vrot.slane %v928_v51, 6  ;;  %v993_v21 = vrot.slane %v929_v19, 6  ;;  %v994_v27 = vrot.slane %v930_v62, 6 }
  0xaf   :  { %v995_v61 = vrot.slane %v931_v22, 6  ;;  %v996_v52 = vrot.slane %v932_v18, 6  ;;  %v997_v44 = vrot.slane %v933_v58, 6  ;;  %v1044_v50 = vsel %vm83_vm0, %v980_v35, 0.0 }
  0xb0   :  { %v1045_v53 = vsel %vm83_vm0, %v981_v2, 0.0  ;;  %v998_v55 = vrot.slane %v934_v14, 6  ;;  %v999_v36 = vrot.slane %v935_v13, 6  ;;  %v1000_v16 = vrot.slane %v936_v57, 6 }
  0xb1   :  { %v1001_v41 = vrot.slane %v937_v54, 6  ;;  %v1002_v59 = vrot.slane %v938_v20, 6  ;;  %v1003_v1 = vrot.slane %v939_v46, 6  ;;  %v1004_v45 = vrot.slane %v940_v25, 6 }
  0xb2   :  { %v1053_v26 = vsel %vm83_vm0, %v982_v10, 0.0  ;;  %v8037_v7 = vadd.f32 %v1045_v53, %v1044_v50  ;;  %v1054_v28 = vsel %vm83_vm0, %v983_v9, 0.0  ;;  %v1062_v47 = vsel %vm83_vm0, %v984_v63, 0.0 }
  0xb3   :  { %v1063_v58 = vsel %vm83_vm0, %v985_v42, 0.0  ;;  %v1071_v35 = vsel %vm83_vm0, %v986_v43, 0.0  ;;  %v1072_v51 = vsel %vm83_vm0, %v987_v40, 0.0  ;;  %v1080_v19 = vsel %vm83_vm0, %v988_v56, 0.0 }
  0xb4   :  { %v1081_v54 = vsel %vm83_vm0, %v989_v49, 0.0  ;;  %v1005_v62 = vrot.slane %v941_v34, 6  ;;  %v1006_v22 = vrot.slane %v942_v5, 6  ;;  %v1007_v18 = vrot.slane %v943_v8, 6 }
  0xb5   :  { %v1008_v10 = vrot.slane %v944_v15, 6  ;;  %v1009_v25 = vrot.slane %v945_v0, 6  ;;  %v1010_v3 = vrot.slane %v946_v17, 6  ;;  %v1011_v14 = vrot.slane %v947_v33, 6 }
  0xb6   :  { %v1055_v13 = vadd.f32 %v1054_v28, %v1053_v26  ;;  %v1047_v57 = vrot.slane %v8037_v7, 4  ;;  %v1064_v20 = vadd.f32 %v1063_v58, %v1062_v47  ;;  %v1073_v46 = vadd.f32 %v1072_v51, %v1071_v35 }
  0xb7   :  { %v1082_v2 = vadd.f32 %v1081_v54, %v1080_v19  ;;  %v1089_v9 = vsel %vm83_vm0, %v990_v48, 0.0  ;;  %v1090_v63 = vsel %vm83_vm0, %v991_v6, 0.0  ;;  %v1098_v56 = vsel %vm83_vm0, %v992_v4, 0.0 }
  0xb8   :  { %v1099_v34 = vsel %vm83_vm0, %v993_v21, 0.0  ;;  %v1107_v8 = vsel %vm83_vm0, %v994_v27, 0.0  ;;  %v1108_v15 = vsel %vm83_vm0, %v995_v61, 0.0  ;;  %v1116_v17 = vsel %vm83_vm0, %v996_v52, 0.0 }
  0xb9   :  { %v1117_v5 = vsel %vm83_vm0, %v997_v44, 0.0  ;;  %v1125_v0 = vsel %vm83_vm0, %v998_v55, 0.0  ;;  %v1126_v33 = vsel %vm83_vm0, %v999_v36, 0.0  ;;  %v1134_v48 = vsel %vm83_vm0, %v1000_v16, 0.0 }
  0xba   :  { %v1135_v42 = vsel %vm83_vm0, %v1001_v41, 0.0  ;;  %v1143_v4 = vsel %vm83_vm0, %v1002_v59, 0.0  ;;  %v1144_v43 = vsel %vm83_vm0, %v1003_v1, 0.0  ;;  %v1152_v27 = vsel %vm83_vm0, %v1004_v45, 0.0 }
  0xbb   :  { %v1153_v40 = vsel %vm83_vm0, %v1005_v62, 0.0  ;;  %v1091_v49 = vadd.f32 %v1090_v63, %v1089_v9  ;;  %v1100_v52 = vadd.f32 %v1099_v34, %v1098_v56  ;;  %v1161_v6 = vsel %vm83_vm0, %v1006_v22, 0.0 }
  0xbc   :  { %v1162_v21 = vsel %vm83_vm0, %v1007_v18, 0.0  ;;  %v1109_v61 = vadd.f32 %v1108_v15, %v1107_v8  ;;  %v1118_v44 = vadd.f32 %v1117_v5, %v1116_v17  ;;  %v1170_v50 = vsel %vm83_vm0, %v1008_v10, 0.0 }
  0xbd   :  { %v1171_v53 = vsel %vm83_vm0, %v1009_v25, 0.0  ;;  %v1127_v55 = vadd.f32 %v1126_v33, %v1125_v0  ;;  %v1136_v36 = vadd.f32 %v1135_v42, %v1134_v48  ;;  %v1145_v16 = vadd.f32 %v1144_v43, %v1143_v4 }
  0xbe   :  { %v1154_v41 = vadd.f32 %v1153_v40, %v1152_v27  ;;  %v1056_v59 = vrot.slane %v1055_v13, 4  ;;  %v1065_v1 = vrot.slane %v1064_v20, 4  ;;  %v1074_v45 = vrot.slane %v1073_v46, 4 }
  0xbf   :  { %v1163_v26 = vadd.f32 %v1162_v21, %v1161_v6  ;;  %v1083_v28 = vrot.slane %v1082_v2, 4  ;;  %v1092_v47 = vrot.slane %v1091_v49, 4  ;;  %v1101_v58 = vrot.slane %v1100_v52, 4 }
  0xc0   :  { %v1172_v35 = vadd.f32 %v1171_v53, %v1170_v50  ;;  %v1110_v51 = vrot.slane %v1109_v61, 4  ;;  %v1119_v19 = vrot.slane %v1118_v44, 4  ;;  %v1179_v54 = vsel %vm83_vm0, %v1010_v3, 0.0 }
  0xc1   :  { %v1180_v62 = vsel %vm83_vm0, %v1011_v14, 0.0  ;;  %v1128_v22 = vrot.slane %v1127_v55, 4  ;;  %v1137_v18 = vrot.slane %v1136_v36, 4  ;;  %v1146_v10 = vrot.slane %v1145_v16, 4 }
  0xc2   :  { %v1155_v25 = vrot.slane %v1154_v41, 4  ;;  %v1048_v9 = vadd.f32 %v1047_v57, %v8037_v7  ;;  %v1057_v63 = vadd.f32 %v1056_v59, %v1055_v13  ;;  %v1066_v56 = vadd.f32 %v1065_v1, %v1064_v20 }
  0xc3   :  { %v1164_v34 = vrot.slane %v1163_v26, 4  ;;  %v1075_v8 = vadd.f32 %v1074_v45, %v1073_v46  ;;  %v1084_v15 = vadd.f32 %v1083_v28, %v1082_v2  ;;  %v1173_v17 = vrot.slane %v1172_v35, 4 }
  0xc4   :  { %v1181_v5 = vadd.f32 %v1180_v62, %v1179_v54  ;;  %v1093_v0 = vadd.f32 %v1092_v47, %v1091_v49  ;;  %v1102_v33 = vadd.f32 %v1101_v58, %v1100_v52  ;;  %v1111_v48 = vadd.f32 %v1110_v51, %v1109_v61 }
  0xc5   :  { %v1120_v42 = vadd.f32 %v1119_v19, %v1118_v44  ;;  %v1129_v3 = vadd.f32 %v1128_v22, %v1127_v55  ;;  %v1138_v4 = vadd.f32 %v1137_v18, %v1136_v36  ;;  %v1147_v14 = vadd.f32 %v1146_v10, %v1145_v16 }
  0xc6   :  { %v1156_v43 = vadd.f32 %v1155_v25, %v1154_v41  ;;  %v1049_v27 = vrot.slane %v1048_v9, 2  ;;  %v1058_v40 = vrot.slane %v1057_v63, 2  ;;  %v1067_v6 = vrot.slane %v1066_v56, 2 }
  0xc7   :  { %v1165_v21 = vadd.f32 %v1164_v34, %v1163_v26  ;;  %v1076_v7 = vrot.slane %v1075_v8, 2  ;;  %v1085_v13 = vrot.slane %v1084_v15, 2  ;;  %v1174_v57 = vadd.f32 %v1173_v17, %v1172_v35 }
  0xc8   :  { %v1182_v20 = vrot.slane %v1181_v5, 4  ;;  %v1094_v46 = vrot.slane %v1093_v0, 2  ;;  %v1103_v2 = vrot.slane %v1102_v33, 2  ;;  %v1112_v50 = vrot.slane %v1111_v48, 2 }
  0xc9   :  { %v1121_v53 = vrot.slane %v1120_v42, 2  ;;  %v1130_v49 = vrot.slane %v1129_v3, 2  ;;  %v1139_v52 = vrot.slane %v1138_v4, 2  ;;  %v1148_v61 = vrot.slane %v1147_v14, 2 }
  0xca   :  { %v1157_v44 = vrot.slane %v1156_v43, 2  ;;  %v1050_v55 = vadd.f32 %v1049_v27, %v1048_v9  ;;  %v1059_v36 = vadd.f32 %v1058_v40, %v1057_v63  ;;  %v1068_v16 = vadd.f32 %v1067_v6, %v1066_v56 }
  0xcb   :  { %v1166_v41 = vrot.slane %v1165_v21, 2  ;;  %v1077_v59 = vadd.f32 %v1076_v7, %v1075_v8  ;;  %v1086_v1 = vadd.f32 %v1085_v13, %v1084_v15  ;;  %v1175_v45 = vrot.slane %v1174_v57, 2 }
  0xcc   :  { %v1183_v26 = vadd.f32 %v1182_v20, %v1181_v5  ;;  %v1095_v28 = vadd.f32 %v1094_v46, %v1093_v0  ;;  %v1104_v47 = vadd.f32 %v1103_v2, %v1102_v33  ;;  %v1113_v58 = vadd.f32 %v1112_v50, %v1111_v48 }
  0xcd   :  { %v1122_v35 = vadd.f32 %v1121_v53, %v1120_v42  ;;  %v1131_v51 = vadd.f32 %v1130_v49, %v1129_v3  ;;  %v1140_v19 = vadd.f32 %v1139_v52, %v1138_v4  ;;  %v1149_v54 = vadd.f32 %v1148_v61, %v1147_v14  ;;  %v8073_v49 = vld [vmem:[%s13437_s0 + $0x8] sm:$0x1] }
  0xce   :  { %v1158_v62 = vadd.f32 %v1157_v44, %v1156_v43  ;;  %v1051_v22 = vrot.slane %v1050_v55, 1  ;;  %v1060_v18 = vrot.slane %v1059_v36, 1  ;;  %v1069_v10 = vrot.slane %v1068_v16, 1  ;;  %v8078_v52 = vld [vmem:[%s13437_s0 + $0x28] sm:$0x1] }
  0xcf   :  { %v1167_v25 = vadd.f32 %v1166_v41, %v1165_v21  ;;  %v1078_v9 = vrot.slane %v1077_v59, 1  ;;  %v1087_v63 = vrot.slane %v1086_v1, 1  ;;  %v1176_v56 = vadd.f32 %v1175_v45, %v1174_v57  ;;  %v8092_v41 = vld [vmem:[%s13437_s0 + $0x2c] sm:$0x1] }
  0xd0   :  { %v1184_v34 = vrot.slane %v1183_v26, 2  ;;  %v1096_v8 = vrot.slane %v1095_v28, 1  ;;  %v1105_v15 = vrot.slane %v1104_v47, 1  ;;  %v1114_v17 = vrot.slane %v1113_v58, 1 }
  0xd1   :  { %v1123_v5 = vrot.slane %v1122_v35, 1  ;;  %v1132_v0 = vrot.slane %v1131_v51, 1  ;;  %v1141_v33 = vrot.slane %v1140_v19, 1  ;;  %v1150_v48 = vrot.slane %v1149_v54, 1 }
  0xd2   :  { %v1159_v42 = vrot.slane %v1158_v62, 1  ;;  %v1052_v3 = vadd.f32 %v1051_v22, %v1050_v55  ;;  %v1061_v4 = vadd.f32 %v1060_v18, %v1059_v36  ;;  %v1070_v14 = vadd.f32 %v1069_v10, %v1068_v16  ;;  %v6500_v16 = vld [vmem:[%s13437_s0 + $0xc] sm:$0x1]  ;;  %v8139_v10 = vld [vmem:[%s13437_s0 + $0xa8] sm:$0x1] }
  0xd3   :  { %v1168_v43 = vrot.slane %v1167_v25, 1  ;;  %v1079_v27 = vadd.f32 %v1078_v9, %v1077_v59  ;;  %v1088_v40 = vadd.f32 %v1087_v63, %v1086_v1  ;;  %v1177_v6 = vrot.slane %v1176_v56, 1  ;;  %v8097_v59 = vld [vmem:[%s13437_s0 + $0x48] sm:$0x1]  ;;  %v8134_v18 = vld [vmem:[%s13437_s0 + $0x8c] sm:$0x1] }
  0xd4   :  { %v1185_v21 = vadd.f32 %v1184_v34, %v1183_v26  ;;  %v1097_v7 = vadd.f32 %v1096_v8, %v1095_v28  ;;  %v1106_v13 = vadd.f32 %v1105_v15, %v1104_v47  ;;  %v1115_v57 = vadd.f32 %v1114_v17, %v1113_v58  ;;  %v8106_v47 = vld [vmem:[%s13437_s0 + $0x4c] sm:$0x1]  ;;  %v8111_v58 = vld [vmem:[%s13437_s0 + $0x68] sm:$0x1] }
  0xd5   :  { %v1124_v20 = vadd.f32 %v1123_v5, %v1122_v35  ;;  %v1133_v46 = vadd.f32 %v1132_v0, %v1131_v51  ;;  %v1142_v2 = vadd.f32 %v1141_v33, %v1140_v19  ;;  %v1151_v50 = vadd.f32 %v1150_v48, %v1149_v54  ;;  %v8116_v35 = vld [vmem:[%s13437_s0 + $0x6c] sm:$0x1]  ;;  %v8121_v51 = vld [vmem:[%s13437_s0 + $0x88] sm:$0x1] }
  0xd6   :  { %v1160_v53 = vadd.f32 %v1159_v42, %v1158_v62  ;;  %v1169_v61 = vadd.f32 %v1168_v43, %v1167_v25  ;;  %v8080_v44 = vmul.f32 0.25, %v1052_v3  ;;  %v8082_v55 = vmul.f32 0.25, %v1061_v4  ;;  %v8144_v25 = vld [vmem:[%s13437_s0 + $0xac] sm:$0x1]  ;;  %v8157_v8 = vld [vmem:[%s13437_s0 + $0xc8] sm:$0x1] }
  0xd7   :  { %v8084_v36 = vmul.f32 0.25, %v1070_v14  ;;  %v1178_v1 = vadd.f32 %v1177_v6, %v1176_v56  ;;  %v1186_v45 = vrot.slane %v1185_v21, 1  ;;  %v8099_v26 = vmul.f32 0.25, %v1079_v27  ;;  %v8164_v17 = vld [vmem:[%s13437_s0 + $0xcc] sm:$0x1] }
  0xd8   :  { %13715 = vst [vmem:[#allocation41_spill] sm:$0xff] %v8080_v44  ;;  %13716 = vst [vmem:[#allocation42_spill] sm:$0xff] %v8082_v55  ;;  %v8101_v28 = vmul.f32 0.25, %v1088_v40  ;;  %v8123_v19 = vmul.f32 0.25, %v1097_v7  ;;  %v8125_v54 = vmul.f32 0.25, %v1106_v13  ;;  %v8127_v62 = vmul.f32 0.25, %v1115_v57 }
  0xd9   :  { %13717 = vst [vmem:[#allocation43_spill] sm:$0xff] %v8084_v36  ;;  %13718 = vst [vmem:[#allocation44_spill] sm:$0xff] %v8099_v26  ;;  %v8129_v22 = vmul.f32 0.25, %v1124_v20  ;;  %v8146_v9 = vmul.f32 0.25, %v1133_v46  ;;  %v8148_v63 = vmul.f32 0.25, %v1142_v2  ;;  %v8150_v56 = vmul.f32 0.25, %v1151_v50 }
  0xda   :  { %13719 = vst [vmem:[#allocation45_spill] sm:$0xff] %v8101_v28  ;;  %13720 = vst [vmem:[#allocation46_spill] sm:$0xff] %v8123_v19  ;;  %v8152_v34 = vmul.f32 0.25, %v1160_v53  ;;  %v8159_v15 = vmul.f32 0.25, %v1169_v61  ;;  %v8169_v5 = vld [vmem:[%s13437_s0 + $0xe8] sm:$0x1]  ;;  %v1237_v0 = vunpack.c.l.bf16 %v8073_v49  ;;  %v1238_v33 = vunpack.c.l.bf16 %v6500_v16 }
  0xdb   :  { %13721 = vst [vmem:[#allocation47_spill] sm:$0xff] %v8125_v54  ;;  %13722 = vst [vmem:[#allocation48_spill] sm:$0xff] %v8127_v62  ;;  %v1239_v48 = vunpack.c.l.bf16 %v8078_v52  ;;  %v1187_v42 = vadd.f32 %v1186_v45, %v1185_v21  ;;  %v8173_v3 = vmul.f32 0.25, %v1178_v1  ;;  %v8178_v4 = vld [vmem:[%s13437_s0 + $0xec] sm:$0x1]  ;;  %v1240_v43 = vunpack.c.l.bf16 %v8092_v41 }
  0xdc   :  { %13723 = vst [vmem:[#allocation49_spill] sm:$0xff] %v8129_v22  ;;  %13724 = vst [vmem:[#allocation50_spill] sm:$0xff] %v8146_v9  ;;  %v8183_v14 = vld [vmem:[%s13437_s0 + $0x108] sm:$0x1]  ;;  %v1241_v27 = vunpack.c.l.bf16 %v8097_v59  ;;  %v8190_v40 = vld [vmem:[%s13437_s0 + $0x10c] sm:$0x1]  ;;  %v1242_v21 = vunpack.c.l.bf16 %v8106_v47  ;;  %v1243_v7 = vunpack.c.l.bf16 %v8111_v58  ;;  %v1244_v13 = vunpack.c.l.bf16 %v8116_v35 }
  0xdd   :  { %13725 = vst [vmem:[#allocation51_spill] sm:$0xff] %v8148_v63  ;;  %13726 = vst [vmem:[#allocation52_spill] sm:$0xff] %v8150_v56  ;;  %v8195_v6 = vld [vmem:[%s13437_s0 + $0x128] sm:$0x1]  ;;  %v1245_v57 = vunpack.c.l.bf16 %v8121_v51  ;;  %v8204_v20 = vld [vmem:[%s13437_s0 + $0x12c] sm:$0x1]  ;;  %v1246_v50 = vunpack.c.l.bf16 %v8134_v18  ;;  %v1247_v53 = vunpack.c.l.bf16 %v8139_v10  ;;  %v1248_v49 = vunpack.c.l.bf16 %v8144_v25 }
  0xde   :  { %13727 = vst [vmem:[#allocation53_spill] sm:$0xff] %v8152_v34  ;;  %13728 = vst [vmem:[#allocation54_spill] sm:$0xff] %v8159_v15  ;;  %v8209_v46 = vld [vmem:[%s13437_s0 + $0x148] sm:$0x1]  ;;  %v8214_v2 = vld [vmem:[%s13437_s0 + $0x14c] sm:$0x1]  ;;  %v1249_v52 = vunpack.c.l.bf16 %v8157_v8  ;;  %v1250_v59 = vunpack.c.l.bf16 %v8164_v17  ;;  %v1251_v1 = vunpack.c.l.bf16 %v8169_v5  ;;  %v1252_v45 = vunpack.c.l.bf16 %v8178_v4 }
  0xdf   :  { %13729 = vst [vmem:[#allocation55_spill] sm:$0xff] %v8173_v3  ;;  %v6521_v61 = vld [vmem:[%s13437_s0 + $0x168] sm:$0x1]  ;;  %v6522_v16 = vld [vmem:[%s13437_s0 + $0x16c] sm:$0x1]  ;;  %v1253_v47 = vunpack.c.l.bf16 %v8183_v14  ;;  %v8233_v58 = vmul.f32 0.25, %v1187_v42  ;;  %v1254_v51 = vunpack.c.l.bf16 %v8190_v40  ;;  %v1255_v5 = vunpack.c.l.bf16 %v8195_v6 }
  0xe0   :  { %v6523_v41 = vld [vmem:[%s13437_s0 + $0x188] sm:$0x1]  ;;  %v6524_v35 = vld [vmem:[%s13437_s0 + $0x18c] sm:$0x1]  ;;  %v1269_v18 = vsel %vm83_vm0, %v1237_v0, 0.0  ;;  %v1270_v10 = vsel %vm83_vm0, %v1238_v33, 0.0  ;;  %v1256_v42 = vunpack.c.l.bf16 %v8204_v20  ;;  %v1257_v0 = vunpack.c.l.bf16 %v8209_v46 }
  0xe1   :  { %13730 = vst [vmem:[#allocation56_spill] sm:$0xff] %v8233_v58  ;;  %v6525_v25 = vld [vmem:[%s13437_s0 + $0x1a8] sm:$0x1]  ;;  %v6526_v8 = vld [vmem:[%s13437_s0 + $0x1ac] sm:$0x1]  ;;  %v1258_v33 = vunpack.c.l.bf16 %v8214_v2  ;;  %v1259_v40 = vunpack.c.l.bf16 %v6521_v61  ;;  %v1260_v58 = vunpack.c.l.bf16 %v6522_v16  ;;  %v1261_v3 = vunpack.c.l.bf16 %v6523_v41 }
  0xe2   :  { %v6527_v17 = vld [vmem:[%s13437_s0 + $0x1c8] sm:$0x1]  ;;  %v6528_v4 = vld [vmem:[%s13437_s0 + $0x1cc] sm:$0x1]  ;;  %v1278_v6 = vsel %vm83_vm0, %v1239_v48, 0.0  ;;  %v8266_v46 = vadd.f32 %v1270_v10, %v1269_v18  ;;  %v1279_v2 = vsel %vm83_vm0, %v1240_v43, 0.0  ;;  %v1262_v41 = vunpack.c.l.bf16 %v6524_v35 }
  0xe3   :  { %v8260_v14 = vld [vmem:[%s13437_s0 + $0x1e8] sm:$0x1]  ;;  %v6530_v20 = vld [vmem:[%s13437_s0 + $0x1ec] sm:$0x1]  ;;  %v1287_v15 = vsel %vm83_vm0, %v1241_v27, 0.0  ;;  %v1288_v34 = vsel %vm83_vm0, %v1242_v21, 0.0  ;;  %v1263_v63 = vunpack.c.l.bf16 %v6525_v25  ;;  %v1264_v9 = vunpack.c.l.bf16 %v6526_v8 }
  0xe4   :  { %v1296_v56 = vsel %vm83_vm0, %v1243_v7, 0.0  ;;  %v1297_v61 = vsel %vm83_vm0, %v1244_v13, 0.0  ;;  %v1305_v16 = vsel %vm83_vm0, %v1245_v57, 0.0  ;;  %v1306_v48 = vsel %vm83_vm0, %v1246_v50, 0.0 }
  0xe5   :  { %v1265_v22 = vunpack.c.l.bf16 %v6527_v17  ;;  %v1266_v18 = vunpack.c.l.bf16 %v6528_v4  ;;  %v1267_v10 = vunpack.c.l.bf16 %v8260_v14  ;;  %v1268_v43 = vunpack.c.l.bf16 %v6530_v20 }
  0xe6   :  { %v1280_v62 = vadd.f32 %v1279_v2, %v1278_v6  ;;  %v1272_v27 = vrot.slane %v8266_v46, 4  ;;  %v1289_v21 = vadd.f32 %v1288_v34, %v1287_v15  ;;  %v1298_v54 = vadd.f32 %v1297_v61, %v1296_v56 }
  0xe7   :  { %v1307_v7 = vadd.f32 %v1306_v48, %v1305_v16  ;;  %v1314_v13 = vsel %vm83_vm0, %v1247_v53, 0.0  ;;  %v1315_v57 = vsel %vm83_vm0, %v1248_v49, 0.0  ;;  %v1323_v50 = vsel %vm83_vm0, %v1249_v52, 0.0 }
  0xe8   :  { %v1324_v35 = vsel %vm83_vm0, %v1250_v59, 0.0  ;;  %v1332_v25 = vsel %vm83_vm0, %v1251_v1, 0.0  ;;  %v1333_v8 = vsel %vm83_vm0, %v1252_v45, 0.0  ;;  %v1341_v17 = vsel %vm83_vm0, %v1253_v47, 0.0 }
  0xe9   :  { %v1342_v4 = vsel %vm83_vm0, %v1254_v51, 0.0  ;;  %v1350_v34 = vsel %vm83_vm0, %v1255_v5, 0.0  ;;  %v1351_v56 = vsel %vm83_vm0, %v1256_v42, 0.0  ;;  %v1359_v15 = vsel %vm83_vm0, %v1257_v0, 0.0 }
  0xea   :  { %v1360_v53 = vsel %vm83_vm0, %v1258_v33, 0.0  ;;  %v1368_v49 = vsel %vm83_vm0, %v1259_v40, 0.0  ;;  %v1369_v52 = vsel %vm83_vm0, %v1260_v58, 0.0  ;;  %v1377_v59 = vsel %vm83_vm0, %v1261_v3, 0.0 }
  0xeb   :  { %v1378_v1 = vsel %vm83_vm0, %v1262_v41, 0.0  ;;  %v1316_v45 = vadd.f32 %v1315_v57, %v1314_v13  ;;  %v1325_v47 = vadd.f32 %v1324_v35, %v1323_v50  ;;  %v1386_v51 = vsel %vm83_vm0, %v1263_v63, 0.0 }
  0xec   :  { %v1387_v5 = vsel %vm83_vm0, %v1264_v9, 0.0  ;;  %v1334_v14 = vadd.f32 %v1333_v8, %v1332_v25  ;;  %v1343_v42 = vadd.f32 %v1342_v4, %v1341_v17  ;;  %v1395_v0 = vsel %vm83_vm0, %v1265_v22, 0.0 }
  0xed   :  { %v1396_v33 = vsel %vm83_vm0, %v1266_v18, 0.0  ;;  %v1352_v6 = vadd.f32 %v1351_v56, %v1350_v34  ;;  %v1361_v40 = vadd.f32 %v1360_v53, %v1359_v15  ;;  %v1370_v20 = vadd.f32 %v1369_v52, %v1368_v49 }
  0xee   :  { %v1379_v58 = vadd.f32 %v1378_v1, %v1377_v59  ;;  %v1281_v2 = vrot.slane %v1280_v62, 4  ;;  %v1290_v3 = vrot.slane %v1289_v21, 4  ;;  %v1299_v61 = vrot.slane %v1298_v54, 4 }
  0xef   :  { %v1388_v16 = vadd.f32 %v1387_v5, %v1386_v51  ;;  %v1308_v48 = vrot.slane %v1307_v7, 4  ;;  %v1317_v41 = vrot.slane %v1316_v45, 4  ;;  %v1326_v13 = vrot.slane %v1325_v47, 4 }
  0xf0   :  { %v1397_v63 = vadd.f32 %v1396_v33, %v1395_v0  ;;  %v1335_v57 = vrot.slane %v1334_v14, 4  ;;  %v1344_v9 = vrot.slane %v1343_v42, 4  ;;  %v1404_v50 = vsel %vm83_vm0, %v1267_v10, 0.0 }
  0xf1   :  { %v1405_v22 = vsel %vm83_vm0, %v1268_v43, 0.0  ;;  %v1353_v35 = vrot.slane %v1352_v6, 4  ;;  %v1362_v18 = vrot.slane %v1361_v40, 4  ;;  %v1371_v25 = vrot.slane %v1370_v20, 4 }
  0xf2   :  { %v1380_v8 = vrot.slane %v1379_v58, 4  ;;  %v1273_v17 = vadd.f32 %v1272_v27, %v8266_v46  ;;  %v1282_v4 = vadd.f32 %v1281_v2, %v1280_v62  ;;  %v1291_v34 = vadd.f32 %v1290_v3, %v1289_v21 }
  0xf3   :  { %v1389_v56 = vrot.slane %v1388_v16, 4  ;;  %v1300_v15 = vadd.f32 %v1299_v61, %v1298_v54  ;;  %v1309_v53 = vadd.f32 %v1308_v48, %v1307_v7  ;;  %v1398_v49 = vrot.slane %v1397_v63, 4 }
  0xf4   :  { %v1406_v52 = vadd.f32 %v1405_v22, %v1404_v50  ;;  %v1318_v59 = vadd.f32 %v1317_v41, %v1316_v45  ;;  %v1327_v1 = vadd.f32 %v1326_v13, %v1325_v47  ;;  %v1336_v51 = vadd.f32 %v1335_v57, %v1334_v14 }
  0xf5   :  { %v1345_v5 = vadd.f32 %v1344_v9, %v1343_v42  ;;  %v1354_v10 = vadd.f32 %v1353_v35, %v1352_v6  ;;  %v1363_v0 = vadd.f32 %v1362_v18, %v1361_v40  ;;  %v1372_v43 = vadd.f32 %v1371_v25, %v1370_v20 }
  0xf6   :  { %v1381_v33 = vadd.f32 %v1380_v8, %v1379_v58  ;;  %v1274_v19 = vrot.slane %v1273_v17, 2  ;;  %v1283_v28 = vrot.slane %v1282_v4, 2  ;;  %v1292_v26 = vrot.slane %v1291_v34, 2 }
  0xf7   :  { %v1390_v36 = vadd.f32 %v1389_v56, %v1388_v16  ;;  %v1301_v46 = vrot.slane %v1300_v15, 2  ;;  %v1310_v62 = vrot.slane %v1309_v53, 2  ;;  %v1399_v27 = vadd.f32 %v1398_v49, %v1397_v63 }
  0xf8   :  { %v1407_v21 = vrot.slane %v1406_v52, 4  ;;  %v1319_v54 = vrot.slane %v1318_v59, 2  ;;  %v1328_v7 = vrot.slane %v1327_v1, 2  ;;  %v1337_v2 = vrot.slane %v1336_v51, 2 }
  0xf9   :  { %v1346_v3 = vrot.slane %v1345_v5, 2  ;;  %v1355_v45 = vrot.slane %v1354_v10, 2  ;;  %v1364_v47 = vrot.slane %v1363_v0, 2  ;;  %v1373_v14 = vrot.slane %v1372_v43, 2 }
  0xfa   :  { %v1382_v42 = vrot.slane %v1381_v33, 2  ;;  %v1275_v6 = vadd.f32 %v1274_v19, %v1273_v17  ;;  %v1284_v40 = vadd.f32 %v1283_v28, %v1282_v4  ;;  %v1293_v20 = vadd.f32 %v1292_v26, %v1291_v34 }
  0xfb   :  { %v1391_v58 = vrot.slane %v1390_v36, 2  ;;  %v1302_v61 = vadd.f32 %v1301_v46, %v1300_v15  ;;  %v1311_v48 = vadd.f32 %v1310_v62, %v1309_v53  ;;  %v1400_v41 = vrot.slane %v1399_v27, 2 }
  0xfc   :  { %v1408_v16 = vadd.f32 %v1407_v21, %v1406_v52  ;;  %v1320_v13 = vadd.f32 %v1319_v54, %v1318_v59  ;;  %v1329_v57 = vadd.f32 %v1328_v7, %v1327_v1  ;;  %v1338_v63 = vadd.f32 %v1337_v2, %v1336_v51 }
  0xfd   :  { %v1347_v9 = vadd.f32 %v1346_v3, %v1345_v5  ;;  %v1356_v50 = vadd.f32 %v1355_v45, %v1354_v10  ;;  %v1365_v22 = vadd.f32 %v1364_v47, %v1363_v0  ;;  %v1374_v35 = vadd.f32 %v1373_v14, %v1372_v43  ;;  %v8303_v14 = vld [vmem:[%s13437_s0 + $0x8] sm:$0x2] }
  0xfe   :  { %v1383_v18 = vadd.f32 %v1382_v42, %v1381_v33  ;;  %v1276_v25 = vrot.slane %v1275_v6, 1  ;;  %v1285_v8 = vrot.slane %v1284_v40, 1  ;;  %v1294_v56 = vrot.slane %v1293_v20, 1  ;;  %v8308_v42 = vld [vmem:[%s13437_s0 + $0xc] sm:$0x2] }
  0xff   :  { %v1392_v49 = vadd.f32 %v1391_v58, %v1390_v36  ;;  %v1303_v19 = vrot.slane %v1302_v61, 1  ;;  %v1312_v28 = vrot.slane %v1311_v48, 1  ;;  %v1401_v26 = vadd.f32 %v1400_v41, %v1399_v27  ;;  %v8329_v41 = vld [vmem:[%s13437_s0 + $0x48] sm:$0x2] }
 0x100   :  { %v1409_v17 = vrot.slane %v1408_v16, 2  ;;  %v1321_v4 = vrot.slane %v1320_v13, 1  ;;  %v1330_v34 = vrot.slane %v1329_v57, 1  ;;  %v1339_v15 = vrot.slane %v1338_v63, 1 }
 0x101   :  { %v1348_v53 = vrot.slane %v1347_v9, 1  ;;  %v1357_v52 = vrot.slane %v1356_v50, 1  ;;  %v1366_v59 = vrot.slane %v1365_v22, 1  ;;  %v1375_v1 = vrot.slane %v1374_v35, 1 }
 0x102   :  { %v1384_v51 = vrot.slane %v1383_v18, 1  ;;  %v1277_v5 = vadd.f32 %v1276_v25, %v1275_v6  ;;  %v1286_v10 = vadd.f32 %v1285_v8, %v1284_v40  ;;  %v1295_v0 = vadd.f32 %v1294_v56, %v1293_v20  ;;  %v8313_v6 = vld [vmem:[%s13437_s0 + $0x28] sm:$0x2] }
 0x103   :  { %v1393_v43 = vrot.slane %v1392_v49, 1  ;;  %v1304_v33 = vadd.f32 %v1303_v19, %v1302_v61  ;;  %v1313_v46 = vadd.f32 %v1312_v28, %v1311_v48  ;;  %v1402_v62 = vrot.slane %v1401_v26, 1  ;;  %v8324_v48 = vld [vmem:[%s13437_s0 + $0x2c] sm:$0x2]  ;;  %v8371_v19 = vld [vmem:[%s13437_s0 + $0xa8] sm:$0x2] }
 0x104   :  { %v1410_v36 = vadd.f32 %v1409_v17, %v1408_v16  ;;  %v1322_v21 = vadd.f32 %v1321_v4, %v1320_v13  ;;  %v1331_v54 = vadd.f32 %v1330_v34, %v1329_v57  ;;  %v1340_v27 = vadd.f32 %v1339_v15, %v1338_v63  ;;  %v8376_v28 = vld [vmem:[%s13437_s0 + $0xac] sm:$0x2] }
 0x105   :  { %v1349_v7 = vadd.f32 %v1348_v53, %v1347_v9  ;;  %v1358_v2 = vadd.f32 %v1357_v52, %v1356_v50  ;;  %v1367_v3 = vadd.f32 %v1366_v59, %v1365_v22  ;;  %v1376_v45 = vadd.f32 %v1375_v1, %v1374_v35  ;;  %v8338_v9 = vld [vmem:[%s13437_s0 + $0x4c] sm:$0x2]  ;;  %v8343_v50 = vld [vmem:[%s13437_s0 + $0x68] sm:$0x2] }
 0x106   :  { %v1385_v47 = vadd.f32 %v1384_v51, %v1383_v18  ;;  %v1394_v40 = vadd.f32 %v1393_v43, %v1392_v49  ;;  %v8315_v20 = vmul.f32 0.25, %v1277_v5  ;;  %v8317_v58 = vmul.f32 0.25, %v1286_v10  ;;  %v8348_v22 = vld [vmem:[%s13437_s0 + $0x6c] sm:$0x2]  ;;  %v8353_v35 = vld [vmem:[%s13437_s0 + $0x88] sm:$0x2] }
 0x107   :  { %v8319_v61 = vmul.f32 0.25, %v1295_v0  ;;  %v1403_v16 = vadd.f32 %v1402_v62, %v1401_v26  ;;  %v1411_v13 = vrot.slane %v1410_v36, 1  ;;  %v8331_v57 = vmul.f32 0.25, %v1304_v33  ;;  %v8366_v49 = vld [vmem:[%s13437_s0 + $0x8c] sm:$0x2] }
 0x108   :  { %13731 = vst [vmem:[#allocation57_spill] sm:$0xff] %v8315_v20  ;;  %13732 = vst [vmem:[#allocation58_spill] sm:$0xff] %v8317_v58  ;;  %v8333_v63 = vmul.f32 0.25, %v1313_v46  ;;  %v8355_v18 = vmul.f32 0.25, %v1322_v21  ;;  %v8357_v25 = vmul.f32 0.25, %v1331_v54  ;;  %v8359_v8 = vmul.f32 0.25, %v1340_v27 }
 0x109   :  { %13733 = vst [vmem:[#allocation59_spill] sm:$0xff] %v8319_v61  ;;  %13734 = vst [vmem:[#allocation60_spill] sm:$0xff] %v8331_v57  ;;  %v8361_v56 = vmul.f32 0.25, %v1349_v7  ;;  %v8381_v26 = vld [vmem:[%s13437_s0 + $0xc8] sm:$0x2]  ;;  %v8383_v17 = vmul.f32 0.25, %v1358_v2  ;;  %v1461_v0 = vunpack.c.l.bf16 %v8303_v14  ;;  %v1462_v43 = vunpack.c.l.bf16 %v8308_v42 }
 0x10a   :  { %13735 = vst [vmem:[#allocation61_spill] sm:$0xff] %v8333_v63  ;;  %13736 = vst [vmem:[#allocation62_spill] sm:$0xff] %v8355_v18  ;;  %v8385_v4 = vmul.f32 0.25, %v1367_v3  ;;  %v8387_v34 = vmul.f32 0.25, %v1376_v45  ;;  %v8389_v15 = vmul.f32 0.25, %v1385_v47  ;;  %v8411_v51 = vmul.f32 0.25, %v1394_v40 }
 0x10b   :  { %13737 = vst [vmem:[#allocation63_spill] sm:$0xff] %v8357_v25  ;;  %13738 = vst [vmem:[#allocation64_spill] sm:$0xff] %v8359_v8  ;;  %v8394_v53 = vld [vmem:[%s13437_s0 + $0xcc] sm:$0x2]  ;;  %v8399_v52 = vld [vmem:[%s13437_s0 + $0xe8] sm:$0x2]  ;;  %v1463_v33 = vunpack.c.l.bf16 %v8313_v6  ;;  %v1412_v46 = vadd.f32 %v1411_v13, %v1410_v36  ;;  %v1464_v27 = vunpack.c.l.bf16 %v8324_v48  ;;  %v1465_v7 = vunpack.c.l.bf16 %v8329_v41 }
 0x10c   :  { %13739 = vst [vmem:[#allocation65_spill] sm:$0xff] %v8361_v56  ;;  %13740 = vst [vmem:[#allocation66_spill] sm:$0xff] %v8383_v17  ;;  %v8404_v59 = vld [vmem:[%s13437_s0 + $0xec] sm:$0x2]  ;;  %v8409_v1 = vld [vmem:[%s13437_s0 + $0x108] sm:$0x2]  ;;  %v1466_v45 = vunpack.c.l.bf16 %v8338_v9  ;;  %v1467_v47 = vunpack.c.l.bf16 %v8343_v50  ;;  %v1468_v14 = vunpack.c.l.bf16 %v8348_v22  ;;  %v1469_v42 = vunpack.c.l.bf16 %v8353_v35 }
 0x10d   :  { %13741 = vst [vmem:[#allocation67_spill] sm:$0xff] %v8385_v4  ;;  %13742 = vst [vmem:[#allocation68_spill] sm:$0xff] %v8387_v34  ;;  %v8416_v5 = vld [vmem:[%s13437_s0 + $0x10c] sm:$0x2]  ;;  %v8421_v10 = vld [vmem:[%s13437_s0 + $0x128] sm:$0x2]  ;;  %v1470_v41 = vunpack.c.l.bf16 %v8366_v49  ;;  %v1472_v13 = vunpack.c.l.bf16 %v8376_v28  ;;  %v1473_v9 = vunpack.c.l.bf16 %v8381_v26  ;;  %v1474_v49 = vunpack.c.l.bf16 %v8394_v53 }
 0x10e   :  { %13743 = vst [vmem:[#allocation69_spill] sm:$0xff] %v8389_v15  ;;  %13744 = vst [vmem:[#allocation70_spill] sm:$0xff] %v8411_v51  ;;  %v8426_v62 = vmul.f32 0.25, %v1403_v16  ;;  %v8431_v21 = vld [vmem:[%s13437_s0 + $0x12c] sm:$0x2]  ;;  %v1471_v16 = vunpack.c.l.bf16 %v8371_v19  ;;  %v1475_v19 = vunpack.c.l.bf16 %v8399_v52  ;;  %v1476_v28 = vunpack.c.l.bf16 %v8404_v59 }
 0x10f   :  { %v8436_v54 = vld [vmem:[%s13437_s0 + $0x148] sm:$0x2]  ;;  %v6552_v36 = vld [vmem:[%s13437_s0 + $0x14c] sm:$0x2]  ;;  %v1477_v26 = vunpack.c.l.bf16 %v8409_v1  ;;  %v1478_v34 = vunpack.c.l.bf16 %v8416_v5  ;;  %v1479_v53 = vunpack.c.l.bf16 %v8421_v10  ;;  %v1480_v52 = vunpack.c.l.bf16 %v8431_v21 }
 0x110   :  { %13745 = vst [vmem:[#allocation71_spill] sm:$0xff] %v8426_v62  ;;  %v6553_v2 = vld [vmem:[%s13437_s0 + $0x168] sm:$0x2]  ;;  %v6554_v3 = vld [vmem:[%s13437_s0 + $0x16c] sm:$0x2]  ;;  %v8489_v62 = vmul.f32 0.25, %v1412_v46  ;;  %v1481_v59 = vunpack.c.l.bf16 %v8436_v54  ;;  %v1482_v4 = vunpack.c.l.bf16 %v6552_v36 }
 0x111   :  { %v6555_v6 = vld [vmem:[%s13437_s0 + $0x188] sm:$0x2]  ;;  %v8459_v40 = vld [vmem:[%s13437_s0 + $0x18c] sm:$0x2]  ;;  %v1483_v1 = vunpack.c.l.bf16 %v6553_v2  ;;  %v1484_v46 = vunpack.c.l.bf16 %v6554_v3  ;;  %v1525_v63 = vrot.slane %v1461_v0, 2  ;;  %v1526_v21 = vrot.slane %v1462_v43, 2 }
 0x112   :  { %v8464_v48 = vld [vmem:[%s13437_s0 + $0x1a8] sm:$0x2]  ;;  %v8473_v50 = vld [vmem:[%s13437_s0 + $0x1ac] sm:$0x2]  ;;  %13746 = vst [vmem:[#allocation72_spill] sm:$0xff] %v8489_v62  ;;  %v1485_v62 = vunpack.c.l.bf16 %v6555_v6  ;;  %v1486_v17 = vunpack.c.l.bf16 %v8459_v40  ;;  %v1527_v57 = vrot.slane %v1463_v33, 2 }
 0x113   :  { %v8478_v22 = vld [vmem:[%s13437_s0 + $0x1c8] sm:$0x2]  ;;  %v8483_v35 = vld [vmem:[%s13437_s0 + $0x1cc] sm:$0x2]  ;;  %v1487_v56 = vunpack.c.l.bf16 %v8464_v48  ;;  %v1488_v8 = vunpack.c.l.bf16 %v8473_v50  ;;  %v1528_v54 = vrot.slane %v1464_v27, 2  ;;  %v1529_v36 = vrot.slane %v1465_v7, 2 }
 0x114   :  { %v6561_v51 = vld [vmem:[%s13437_s0 + $0x1e8] sm:$0x2]  ;;  %v6562_v15 = vld [vmem:[%s13437_s0 + $0x1ec] sm:$0x2]  ;;  %v1489_v25 = vunpack.c.l.bf16 %v8478_v22  ;;  %v1490_v5 = vunpack.c.l.bf16 %v8483_v35  ;;  %v1530_v2 = vrot.slane %v1466_v45, 2  ;;  %v1531_v3 = vrot.slane %v1467_v47, 2 }
 0x115   :  { %v1491_v18 = vunpack.c.l.bf16 %v6561_v51  ;;  %v1492_v10 = vunpack.c.l.bf16 %v6562_v15  ;;  %v1532_v6 = vrot.slane %v1468_v14, 2  ;;  %v1533_v61 = vrot.slane %v1469_v42, 2 }
 0x116   :  { %v1534_v40 = vrot.slane %v1470_v41, 2  ;;  %v1535_v58 = vrot.slane %v1471_v16, 2  ;;  %v1536_v48 = vrot.slane %v1472_v13, 2  ;;  %v1537_v20 = vrot.slane %v1473_v9, 2 }
 0x117   :  { %v1538_v50 = vrot.slane %v1474_v49, 2  ;;  %v1539_v55 = vrot.slane %v1475_v19, 2  ;;  %v1540_v22 = vrot.slane %v1476_v28, 2  ;;  %v1541_v44 = vrot.slane %v1477_v26, 2 }
 0x118   :  { %v1542_v35 = vrot.slane %v1478_v34, 2  ;;  %v1589_v15 = vsel %vm83_vm0, %v1525_v63, 0.0  ;;  %v1590_v51 = vsel %vm83_vm0, %v1526_v21, 0.0  ;;  %v1543_v0 = vrot.slane %v1479_v53, 2 }
 0x119   :  { %v1544_v43 = vrot.slane %v1480_v52, 2  ;;  %v1545_v33 = vrot.slane %v1481_v59, 2  ;;  %v1546_v27 = vrot.slane %v1482_v4, 2  ;;  %v1547_v7 = vrot.slane %v1483_v1, 2 }
 0x11a   :  { %v1548_v45 = vrot.slane %v1484_v46, 2  ;;  %v1549_v47 = vrot.slane %v1485_v62, 2  ;;  %v1598_v14 = vsel %vm83_vm0, %v1527_v57, 0.0  ;;  %v8509_v42 = vadd.f32 %v1590_v51, %v1589_v15 }
 0x11b   :  { %v1599_v41 = vsel %vm83_vm0, %v1528_v54, 0.0  ;;  %v1607_v16 = vsel %vm83_vm0, %v1529_v36, 0.0  ;;  %v1608_v34 = vsel %vm83_vm0, %v1530_v2, 0.0  ;;  %v1616_v63 = vsel %vm83_vm0, %v1531_v3, 0.0 }
 0x11c   :  { %v1617_v13 = vsel %vm83_vm0, %v1532_v6, 0.0  ;;  %v1625_v9 = vsel %vm83_vm0, %v1533_v61, 0.0  ;;  %v1626_v4 = vsel %vm83_vm0, %v1534_v40, 0.0  ;;  %v1550_v49 = vrot.slane %v1486_v17, 2 }
 0x11d   :  { %v1551_v62 = vrot.slane %v1487_v56, 2  ;;  %v1552_v19 = vrot.slane %v1488_v8, 2  ;;  %v1553_v57 = vrot.slane %v1489_v25, 2  ;;  %v1554_v28 = vrot.slane %v1490_v5, 2 }
 0x11e   :  { %v1555_v26 = vrot.slane %v1491_v18, 2  ;;  %v1556_v53 = vrot.slane %v1492_v10, 2  ;;  %v1600_v52 = vadd.f32 %v1599_v41, %v1598_v14  ;;  %v1592_v59 = vrot.slane %v8509_v42, 4 }
 0x11f   :  { %v1609_v1 = vadd.f32 %v1608_v34, %v1607_v16  ;;  %v1618_v46 = vadd.f32 %v1617_v13, %v1616_v63  ;;  %v1627_v21 = vadd.f32 %v1626_v4, %v1625_v9  ;;  %v1634_v54 = vsel %vm83_vm0, %v1535_v58, 0.0 }
 0x120   :  { %v1635_v36 = vsel %vm83_vm0, %v1536_v48, 0.0  ;;  %v1643_v61 = vsel %vm83_vm0, %v1537_v20, 0.0  ;;  %v1644_v17 = vsel %vm83_vm0, %v1538_v50, 0.0  ;;  %v1652_v8 = vsel %vm83_vm0, %v1539_v55, 0.0 }
 0x121   :  { %v1653_v25 = vsel %vm83_vm0, %v1540_v22, 0.0  ;;  %v1661_v18 = vsel %vm83_vm0, %v1541_v44, 0.0  ;;  %v1662_v56 = vsel %vm83_vm0, %v1542_v35, 0.0  ;;  %v1670_v5 = vsel %vm83_vm0, %v1543_v0, 0.0 }
 0x122   :  { %v1671_v10 = vsel %vm83_vm0, %v1544_v43, 0.0  ;;  %v1679_v58 = vsel %vm83_vm0, %v1545_v33, 0.0  ;;  %v1680_v2 = vsel %vm83_vm0, %v1546_v27, 0.0  ;;  %v1688_v20 = vsel %vm83_vm0, %v1547_v7, 0.0 }
 0x123   :  { %v1689_v3 = vsel %vm83_vm0, %v1548_v45, 0.0  ;;  %v1697_v55 = vsel %vm83_vm0, %v1549_v47, 0.0  ;;  %v1698_v6 = vsel %vm83_vm0, %v1550_v49, 0.0  ;;  %v1636_v40 = vadd.f32 %v1635_v36, %v1634_v54 }
 0x124   :  { %v1645_v44 = vadd.f32 %v1644_v17, %v1643_v61  ;;  %v1706_v48 = vsel %vm83_vm0, %v1551_v62, 0.0  ;;  %v1707_v50 = vsel %vm83_vm0, %v1552_v19, 0.0  ;;  %v1654_v22 = vadd.f32 %v1653_v25, %v1652_v8 }
 0x125   :  { %v1663_v35 = vadd.f32 %v1662_v56, %v1661_v18  ;;  %v1715_v15 = vsel %vm83_vm0, %v1553_v57, 0.0  ;;  %v1716_v51 = vsel %vm83_vm0, %v1554_v28, 0.0  ;;  %v1672_v0 = vadd.f32 %v1671_v10, %v1670_v5 }
 0x126   :  { %v1681_v43 = vadd.f32 %v1680_v2, %v1679_v58  ;;  %v1690_v33 = vadd.f32 %v1689_v3, %v1688_v20  ;;  %v1699_v27 = vadd.f32 %v1698_v6, %v1697_v55  ;;  %v1601_v7 = vrot.slane %v1600_v52, 4 }
 0x127   :  { %v1610_v45 = vrot.slane %v1609_v1, 4  ;;  %v1619_v47 = vrot.slane %v1618_v46, 4  ;;  %v1708_v14 = vadd.f32 %v1707_v50, %v1706_v48  ;;  %v1628_v41 = vrot.slane %v1627_v21, 4 }
 0x128   :  { %v1637_v16 = vrot.slane %v1636_v40, 4  ;;  %v1646_v34 = vrot.slane %v1645_v44, 4  ;;  %v1717_v63 = vadd.f32 %v1716_v51, %v1715_v15  ;;  %v1655_v13 = vrot.slane %v1654_v22, 4 }
 0x129   :  { %v1664_v9 = vrot.slane %v1663_v35, 4  ;;  %v1724_v4 = vsel %vm83_vm0, %v1555_v26, 0.0  ;;  %v1725_v49 = vsel %vm83_vm0, %v1556_v53, 0.0  ;;  %v1673_v62 = vrot.slane %v1672_v0, 4 }
 0x12a   :  { %v1682_v19 = vrot.slane %v1681_v43, 4  ;;  %v1691_v57 = vrot.slane %v1690_v33, 4  ;;  %v1700_v28 = vrot.slane %v1699_v27, 4  ;;  %v1593_v54 = vadd.f32 %v1592_v59, %v8509_v42 }
 0x12b   :  { %v1602_v36 = vadd.f32 %v1601_v7, %v1600_v52  ;;  %v1611_v61 = vadd.f32 %v1610_v45, %v1609_v1  ;;  %v1709_v17 = vrot.slane %v1708_v14, 4  ;;  %v1620_v8 = vadd.f32 %v1619_v47, %v1618_v46 }
 0x12c   :  { %v1629_v25 = vadd.f32 %v1628_v41, %v1627_v21  ;;  %v1718_v18 = vrot.slane %v1717_v63, 4  ;;  %v1726_v56 = vadd.f32 %v1725_v49, %v1724_v4  ;;  %v1638_v5 = vadd.f32 %v1637_v16, %v1636_v40 }
 0x12d   :  { %v1647_v10 = vadd.f32 %v1646_v34, %v1645_v44  ;;  %v1656_v58 = vadd.f32 %v1655_v13, %v1654_v22  ;;  %v1665_v2 = vadd.f32 %v1664_v9, %v1663_v35  ;;  %v1674_v26 = vadd.f32 %v1673_v62, %v1672_v0 }
 0x12e   :  { %v1683_v20 = vadd.f32 %v1682_v19, %v1681_v43  ;;  %v1692_v53 = vadd.f32 %v1691_v57, %v1690_v33  ;;  %v1701_v3 = vadd.f32 %v1700_v28, %v1699_v27  ;;  %v1594_v55 = vrot.slane %v1593_v54, 2 }
 0x12f   :  { %v1603_v6 = vrot.slane %v1602_v36, 2  ;;  %v1612_v48 = vrot.slane %v1611_v61, 2  ;;  %v1710_v50 = vadd.f32 %v1709_v17, %v1708_v14  ;;  %v1621_v42 = vrot.slane %v1620_v8, 2 }
 0x130   :  { %v1630_v52 = vrot.slane %v1629_v25, 2  ;;  %v1719_v59 = vadd.f32 %v1718_v18, %v1717_v63  ;;  %v1727_v1 = vrot.slane %v1726_v56, 4  ;;  %v1639_v46 = vrot.slane %v1638_v5, 2 }
 0x131   :  { %v1648_v21 = vrot.slane %v1647_v10, 2  ;;  %v1657_v15 = vrot.slane %v1656_v58, 2  ;;  %v1666_v51 = vrot.slane %v1665_v2, 2  ;;  %v1675_v40 = vrot.slane %v1674_v26, 2 }
 0x132   :  { %v1684_v44 = vrot.slane %v1683_v20, 2  ;;  %v1693_v22 = vrot.slane %v1692_v53, 2  ;;  %v1702_v35 = vrot.slane %v1701_v3, 2  ;;  %v1595_v0 = vadd.f32 %v1594_v55, %v1593_v54 }
 0x133   :  { %v1604_v43 = vadd.f32 %v1603_v6, %v1602_v36  ;;  %v1613_v33 = vadd.f32 %v1612_v48, %v1611_v61  ;;  %v1711_v27 = vrot.slane %v1710_v50, 2  ;;  %v1622_v7 = vadd.f32 %v1621_v42, %v1620_v8 }
 0x134   :  { %v1631_v45 = vadd.f32 %v1630_v52, %v1629_v25  ;;  %v1720_v47 = vrot.slane %v1719_v59, 2  ;;  %v1728_v14 = vadd.f32 %v1727_v1, %v1726_v56  ;;  %v1640_v41 = vadd.f32 %v1639_v46, %v1638_v5 }
 0x135   :  { %v1649_v16 = vadd.f32 %v1648_v21, %v1647_v10  ;;  %v1658_v34 = vadd.f32 %v1657_v15, %v1656_v58  ;;  %v1667_v63 = vadd.f32 %v1666_v51, %v1665_v2  ;;  %v1676_v13 = vadd.f32 %v1675_v40, %v1674_v26  ;;  %v8545_v40 = vld [vmem:[%s13437_s0 + $0x8] sm:$0x4] }
 0x136   :  { %v1685_v9 = vadd.f32 %v1684_v44, %v1683_v20  ;;  %v1694_v4 = vadd.f32 %v1693_v22, %v1692_v53  ;;  %v1703_v49 = vadd.f32 %v1702_v35, %v1701_v3  ;;  %v1596_v62 = vrot.slane %v1595_v0, 1  ;;  %v8550_v44 = vld [vmem:[%s13437_s0 + $0x28] sm:$0x4] }
 0x137   :  { %v1605_v19 = vrot.slane %v1604_v43, 1  ;;  %v1614_v57 = vrot.slane %v1613_v33, 1  ;;  %v1712_v28 = vadd.f32 %v1711_v27, %v1710_v50  ;;  %v1623_v54 = vrot.slane %v1622_v7, 1  ;;  %v8566_v27 = vld [vmem:[%s13437_s0 + $0x2c] sm:$0x4] }
 0x138   :  { %v1632_v36 = vrot.slane %v1631_v45, 1  ;;  %v1721_v61 = vadd.f32 %v1720_v47, %v1719_v59  ;;  %v1729_v17 = vrot.slane %v1728_v14, 2  ;;  %v1641_v8 = vrot.slane %v1640_v41, 1 }
 0x139   :  { %v1650_v25 = vrot.slane %v1649_v16, 1  ;;  %v1659_v18 = vrot.slane %v1658_v34, 1  ;;  %v1668_v56 = vrot.slane %v1667_v63, 1  ;;  %v1677_v5 = vrot.slane %v1676_v13, 1 }
 0x13a   :  { %v1686_v10 = vrot.slane %v1685_v9, 1  ;;  %v1695_v58 = vrot.slane %v1694_v4, 1  ;;  %v1704_v2 = vrot.slane %v1703_v49, 1  ;;  %v1597_v26 = vadd.f32 %v1596_v62, %v1595_v0 }
 0x13b   :  { %v1606_v20 = vadd.f32 %v1605_v19, %v1604_v43  ;;  %v1615_v53 = vadd.f32 %v1614_v57, %v1613_v33  ;;  %v1713_v3 = vrot.slane %v1712_v28, 1  ;;  %v1624_v55 = vadd.f32 %v1623_v54, %v1622_v7  ;;  %v8561_v33 = vld [vmem:[%s13437_s0 + $0xc] sm:$0x4]  ;;  %v8571_v7 = vld [vmem:[%s13437_s0 + $0x48] sm:$0x4] }
 0x13c   :  { %v1633_v6 = vadd.f32 %v1632_v36, %v1631_v45  ;;  %v1722_v48 = vrot.slane %v1721_v61, 1  ;;  %v1730_v50 = vadd.f32 %v1729_v17, %v1728_v14  ;;  %v1642_v42 = vadd.f32 %v1641_v8, %v1640_v41  ;;  %v8608_v19 = vld [vmem:[%s13437_s0 + $0x8c] sm:$0x4]  ;;  %v8613_v57 = vld [vmem:[%s13437_s0 + $0xa8] sm:$0x4] }
 0x13d   :  { %v1651_v52 = vadd.f32 %v1650_v25, %v1649_v16  ;;  %v1660_v59 = vadd.f32 %v1659_v18, %v1658_v34  ;;  %v1669_v1 = vadd.f32 %v1668_v56, %v1667_v63  ;;  %v1678_v46 = vadd.f32 %v1677_v5, %v1676_v13  ;;  %v8580_v16 = vld [vmem:[%s13437_s0 + $0x4c] sm:$0x4]  ;;  %v8585_v34 = vld [vmem:[%s13437_s0 + $0x68] sm:$0x4] }
 0x13e   :  { %v1687_v21 = vadd.f32 %v1686_v10, %v1685_v9  ;;  %v1696_v15 = vadd.f32 %v1695_v58, %v1694_v4  ;;  %v1705_v51 = vadd.f32 %v1704_v2, %v1703_v49  ;;  %v1714_v22 = vadd.f32 %v1713_v3, %v1712_v28  ;;  %v8590_v63 = vld [vmem:[%s13437_s0 + $0x6c] sm:$0x4]  ;;  %v8595_v13 = vld [vmem:[%s13437_s0 + $0x88] sm:$0x4] }
 0x13f   :  { %v8552_v35 = vmul.f32 0.25, %v1597_v26  ;;  %v8554_v0 = vmul.f32 0.25, %v1606_v20  ;;  %v8556_v43 = vmul.f32 0.25, %v1615_v53  ;;  %v1723_v45 = vadd.f32 %v1722_v48, %v1721_v61  ;;  %v8618_v28 = vld [vmem:[%s13437_s0 + $0xac] sm:$0x4] }
 0x140   :  { %v1731_v47 = vrot.slane %v1730_v50, 1  ;;  %v8573_v14 = vmul.f32 0.25, %v1624_v55  ;;  %v8575_v41 = vmul.f32 0.25, %v1633_v6  ;;  %v8597_v9 = vmul.f32 0.25, %v1642_v42  ;;  %v8623_v54 = vld [vmem:[%s13437_s0 + $0xc8] sm:$0x4] }
 0x141   :  { %13747 = vst [vmem:[#allocation73_spill] sm:$0xff] %v8552_v35  ;;  %13748 = vst [vmem:[#allocation74_spill] sm:$0xff] %v8554_v0  ;;  %v8599_v4 = vmul.f32 0.25, %v1651_v52  ;;  %v8601_v49 = vmul.f32 0.25, %v1660_v59  ;;  %v8603_v62 = vmul.f32 0.25, %v1669_v1  ;;  %v8625_v36 = vmul.f32 0.25, %v1678_v46 }
 0x142   :  { %13749 = vst [vmem:[#allocation75_spill] sm:$0xff] %v8556_v43  ;;  %13750 = vst [vmem:[#allocation76_spill] sm:$0xff] %v8573_v14  ;;  %v8627_v61 = vmul.f32 0.25, %v1687_v21  ;;  %v8629_v17 = vmul.f32 0.25, %v1696_v15  ;;  %v8631_v8 = vmul.f32 0.25, %v1705_v51  ;;  %v8653_v10 = vmul.f32 0.25, %v1714_v22 }
 0x143   :  { %13751 = vst [vmem:[#allocation77_spill] sm:$0xff] %v8575_v41  ;;  %13752 = vst [vmem:[#allocation78_spill] sm:$0xff] %v8597_v9  ;;  %v8636_v25 = vld [vmem:[%s13437_s0 + $0xcc] sm:$0x4]  ;;  %v8641_v18 = vld [vmem:[%s13437_s0 + $0xe8] sm:$0x4]  ;;  %v1781_v26 = vunpack.c.l.bf16 %v8545_v40  ;;  %v1782_v20 = vunpack.c.l.bf16 %v8561_v33  ;;  %v1783_v53 = vunpack.c.l.bf16 %v8550_v44  ;;  %v1732_v3 = vadd.f32 %v1731_v47, %v1730_v50 }
 0x144   :  { %13753 = vst [vmem:[#allocation79_spill] sm:$0xff] %v8599_v4  ;;  %13754 = vst [vmem:[#allocation80_spill] sm:$0xff] %v8601_v49  ;;  %v8646_v56 = vld [vmem:[%s13437_s0 + $0xec] sm:$0x4]  ;;  %v8651_v5 = vld [vmem:[%s13437_s0 + $0x108] sm:$0x4]  ;;  %v1784_v42 = vunpack.c.l.bf16 %v8566_v27  ;;  %v1785_v52 = vunpack.c.l.bf16 %v8571_v7  ;;  %v1786_v46 = vunpack.c.l.bf16 %v8580_v16  ;;  %v1787_v21 = vunpack.c.l.bf16 %v8585_v34 }
 0x145   :  { %13755 = vst [vmem:[#allocation81_spill] sm:$0xff] %v8603_v62  ;;  %13756 = vst [vmem:[#allocation82_spill] sm:$0xff] %v8625_v36  ;;  %v8658_v58 = vld [vmem:[%s13437_s0 + $0x10c] sm:$0x4]  ;;  %v8663_v2 = vld [vmem:[%s13437_s0 + $0x128] sm:$0x4]  ;;  %v1788_v15 = vunpack.c.l.bf16 %v8590_v63  ;;  %v1789_v51 = vunpack.c.l.bf16 %v8595_v13  ;;  %v1790_v33 = vunpack.c.l.bf16 %v8608_v19  ;;  %v1791_v27 = vunpack.c.l.bf16 %v8613_v57 }
 0x146   :  { %13757 = vst [vmem:[#allocation83_spill] sm:$0xff] %v8627_v61  ;;  %13758 = vst [vmem:[#allocation84_spill] sm:$0xff] %v8629_v17  ;;  %v8668_v55 = vmul.f32 0.25, %v1723_v45  ;;  %v8673_v6 = vld [vmem:[%s13437_s0 + $0x12c] sm:$0x4]  ;;  %v1792_v7 = vunpack.c.l.bf16 %v8618_v28  ;;  %v1793_v45 = vunpack.c.l.bf16 %v8623_v54  ;;  %v1794_v63 = vunpack.c.l.bf16 %v8636_v25 }
 0x147   :  { %13759 = vst [vmem:[#allocation85_spill] sm:$0xff] %v8631_v8  ;;  %13760 = vst [vmem:[#allocation86_spill] sm:$0xff] %v8653_v10  ;;  %v8678_v48 = vld [vmem:[%s13437_s0 + $0x148] sm:$0x4]  ;;  %v6584_v50 = vld [vmem:[%s13437_s0 + $0x14c] sm:$0x4]  ;;  %v1795_v13 = vunpack.c.l.bf16 %v8641_v18  ;;  %v1796_v19 = vunpack.c.l.bf16 %v8646_v56  ;;  %v1797_v57 = vunpack.c.l.bf16 %v8651_v5  ;;  %v1798_v10 = vunpack.c.l.bf16 %v8658_v58 }
 0x148   :  { %13761 = vst [vmem:[#allocation87_spill] sm:$0xff] %v8668_v55  ;;  %v6585_v59 = vld [vmem:[%s13437_s0 + $0x168] sm:$0x4]  ;;  %v6586_v1 = vld [vmem:[%s13437_s0 + $0x16c] sm:$0x4]  ;;  %v8731_v28 = vmul.f32 0.25, %v1732_v3  ;;  %v1799_v25 = vunpack.c.l.bf16 %v8663_v2  ;;  %v1800_v18 = vunpack.c.l.bf16 %v8673_v6  ;;  %v1801_v56 = vunpack.c.l.bf16 %v8678_v48 }
 0x149   :  { %v6587_v40 = vld [vmem:[%s13437_s0 + $0x188] sm:$0x4]  ;;  %v8701_v44 = vld [vmem:[%s13437_s0 + $0x18c] sm:$0x4]  ;;  %v1802_v8 = vunpack.c.l.bf16 %v6584_v50  ;;  %v1803_v5 = vunpack.c.l.bf16 %v6585_v59  ;;  %v1804_v3 = vunpack.c.l.bf16 %v6586_v1  ;;  %v1845_v4 = vrot.slane %v1781_v26, 4 }
 0x14a   :  { %v8706_v22 = vld [vmem:[%s13437_s0 + $0x1a8] sm:$0x4]  ;;  %v8715_v47 = vld [vmem:[%s13437_s0 + $0x1ac] sm:$0x4]  ;;  %13762 = vst [vmem:[#allocation88_spill] sm:$0xff] %v8731_v28  ;;  %v1805_v28 = vunpack.c.l.bf16 %v6587_v40  ;;  %v1806_v17 = vunpack.c.l.bf16 %v8701_v44  ;;  %v1846_v6 = vrot.slane %v1782_v20, 4 }
 0x14b   :  { %v8720_v16 = vld [vmem:[%s13437_s0 + $0x1c8] sm:$0x4]  ;;  %v8725_v34 = vld [vmem:[%s13437_s0 + $0x1cc] sm:$0x4]  ;;  %v1807_v61 = vunpack.c.l.bf16 %v8706_v22  ;;  %v1808_v36 = vunpack.c.l.bf16 %v8715_v47  ;;  %v1847_v9 = vrot.slane %v1783_v53, 4  ;;  %v1848_v48 = vrot.slane %v1784_v42, 4 }
 0x14c   :  { %v6593_v54 = vld [vmem:[%s13437_s0 + $0x1e8] sm:$0x4]  ;;  %v6594_v55 = vld [vmem:[%s13437_s0 + $0x1ec] sm:$0x4]  ;;  %v1809_v62 = vunpack.c.l.bf16 %v8720_v16  ;;  %v1810_v58 = vunpack.c.l.bf16 %v8725_v34  ;;  %v1849_v50 = vrot.slane %v1785_v52, 4  ;;  %v1850_v59 = vrot.slane %v1786_v46, 4 }
 0x14d   :  { %v1811_v49 = vunpack.c.l.bf16 %v6593_v54  ;;  %v1812_v2 = vunpack.c.l.bf16 %v6594_v55  ;;  %v1851_v1 = vrot.slane %v1787_v21, 4  ;;  %v1852_v40 = vrot.slane %v1788_v15, 4 }
 0x14e   :  { %v1853_v41 = vrot.slane %v1789_v51, 4  ;;  %v1854_v44 = vrot.slane %v1790_v33, 4  ;;  %v1855_v14 = vrot.slane %v1791_v27, 4  ;;  %v1856_v22 = vrot.slane %v1792_v7, 4 }
 0x14f   :  { %v1857_v43 = vrot.slane %v1793_v45, 4  ;;  %v1858_v47 = vrot.slane %v1794_v63, 4  ;;  %v1859_v0 = vrot.slane %v1795_v13, 4  ;;  %v1860_v16 = vrot.slane %v1796_v19, 4 }
 0x150   :  { %v1861_v35 = vrot.slane %v1797_v57, 4  ;;  %v1862_v34 = vrot.slane %v1798_v10, 4  ;;  %v1909_v55 = vsel %vm83_vm0, %v1845_v4, 0.0  ;;  %v1910_v26 = vsel %vm83_vm0, %v1846_v6, 0.0 }
 0x151   :  { %v1863_v20 = vrot.slane %v1799_v25, 4  ;;  %v1864_v53 = vrot.slane %v1800_v18, 4  ;;  %v1865_v42 = vrot.slane %v1801_v56, 4  ;;  %v1866_v52 = vrot.slane %v1802_v8, 4 }
 0x152   :  { %v1867_v46 = vrot.slane %v1803_v5, 4  ;;  %v1868_v21 = vrot.slane %v1804_v3, 4  ;;  %v1869_v15 = vrot.slane %v1805_v28, 4  ;;  %v1918_v51 = vsel %vm83_vm0, %v1847_v9, 0.0 }
 0x153   :  { %v8751_v33 = vadd.f32 %v1910_v26, %v1909_v55  ;;  %v1919_v27 = vsel %vm83_vm0, %v1848_v48, 0.0  ;;  %v1927_v7 = vsel %vm83_vm0, %v1849_v50, 0.0  ;;  %v1928_v10 = vsel %vm83_vm0, %v1850_v59, 0.0 }
 0x154   :  { %v1936_v4 = vsel %vm83_vm0, %v1851_v1, 0.0  ;;  %v1937_v45 = vsel %vm83_vm0, %v1852_v40, 0.0  ;;  %v1945_v63 = vsel %vm83_vm0, %v1853_v41, 0.0  ;;  %v1946_v8 = vsel %vm83_vm0, %v1854_v44, 0.0 }
 0x155   :  { %v1870_v13 = vrot.slane %v1806_v17, 4  ;;  %v1871_v19 = vrot.slane %v1807_v61, 4  ;;  %v1872_v57 = vrot.slane %v1808_v36, 4  ;;  %v1873_v9 = vrot.slane %v1809_v62, 4 }
 0x156   :  { %v1874_v28 = vrot.slane %v1810_v58, 4  ;;  %v1875_v54 = vrot.slane %v1811_v49, 4  ;;  %v1876_v25 = vrot.slane %v1812_v2, 4  ;;  %v1920_v18 = vadd.f32 %v1919_v27, %v1918_v51 }
 0x157   :  { %v1912_v56 = vrot.slane %v8751_v33, 4  ;;  %v1929_v5 = vadd.f32 %v1928_v10, %v1927_v7  ;;  %v1938_v3 = vadd.f32 %v1937_v45, %v1936_v4  ;;  %v1947_v6 = vadd.f32 %v1946_v8, %v1945_v63 }
 0x158   :  { %v1954_v48 = vsel %vm83_vm0, %v1855_v14, 0.0  ;;  %v1955_v50 = vsel %vm83_vm0, %v1856_v22, 0.0  ;;  %v1963_v41 = vsel %vm83_vm0, %v1857_v43, 0.0  ;;  %v1964_v17 = vsel %vm83_vm0, %v1858_v47, 0.0 }
 0x159   :  { %v1972_v36 = vsel %vm83_vm0, %v1859_v0, 0.0  ;;  %v1973_v62 = vsel %vm83_vm0, %v1860_v16, 0.0  ;;  %v1981_v49 = vsel %vm83_vm0, %v1861_v35, 0.0  ;;  %v1982_v61 = vsel %vm83_vm0, %v1862_v34, 0.0 }
 0x15a   :  { %v1990_v58 = vsel %vm83_vm0, %v1863_v20, 0.0  ;;  %v1991_v2 = vsel %vm83_vm0, %v1864_v53, 0.0  ;;  %v1999_v14 = vsel %vm83_vm0, %v1865_v42, 0.0  ;;  %v2000_v59 = vsel %vm83_vm0, %v1866_v52, 0.0 }
 0x15b   :  { %v2008_v43 = vsel %vm83_vm0, %v1867_v46, 0.0  ;;  %v2009_v1 = vsel %vm83_vm0, %v1868_v21, 0.0  ;;  %v2017_v0 = vsel %vm83_vm0, %v1869_v15, 0.0  ;;  %v2018_v40 = vsel %vm83_vm0, %v1870_v13, 0.0 }
 0x15c   :  { %v1956_v44 = vadd.f32 %v1955_v50, %v1954_v48  ;;  %v1965_v35 = vadd.f32 %v1964_v17, %v1963_v41  ;;  %v2026_v22 = vsel %vm83_vm0, %v1871_v19, 0.0  ;;  %v2027_v47 = vsel %vm83_vm0, %v1872_v57, 0.0 }
 0x15d   :  { %v1974_v16 = vadd.f32 %v1973_v62, %v1972_v36  ;;  %v1983_v34 = vadd.f32 %v1982_v61, %v1981_v49  ;;  %v2035_v55 = vsel %vm83_vm0, %v1873_v9, 0.0  ;;  %v2036_v26 = vsel %vm83_vm0, %v1874_v28, 0.0 }
 0x15e   :  { %v1992_v20 = vadd.f32 %v1991_v2, %v1990_v58  ;;  %v2001_v53 = vadd.f32 %v2000_v59, %v1999_v14  ;;  %v2010_v42 = vadd.f32 %v2009_v1, %v2008_v43  ;;  %v2019_v52 = vadd.f32 %v2018_v40, %v2017_v0 }
 0x15f   :  { %v1921_v46 = vrot.slane %v1920_v18, 4  ;;  %v1930_v21 = vrot.slane %v1929_v5, 4  ;;  %v1939_v15 = vrot.slane %v1938_v3, 4  ;;  %v2028_v51 = vadd.f32 %v2027_v47, %v2026_v22 }
 0x160   :  { %v1948_v27 = vrot.slane %v1947_v6, 4  ;;  %v1957_v7 = vrot.slane %v1956_v44, 4  ;;  %v1966_v10 = vrot.slane %v1965_v35, 4  ;;  %v2037_v4 = vadd.f32 %v2036_v26, %v2035_v55 }
 0x161   :  { %v1975_v45 = vrot.slane %v1974_v16, 4  ;;  %v1984_v63 = vrot.slane %v1983_v34, 4  ;;  %v2044_v8 = vsel %vm83_vm0, %v1875_v54, 0.0  ;;  %v2045_v13 = vsel %vm83_vm0, %v1876_v25, 0.0 }
 0x162   :  { %v1993_v19 = vrot.slane %v1992_v20, 4  ;;  %v2002_v57 = vrot.slane %v2001_v53, 4  ;;  %v2011_v9 = vrot.slane %v2010_v42, 4  ;;  %v2020_v28 = vrot.slane %v2019_v52, 4 }
 0x163   :  { %v1913_v48 = vadd.f32 %v1912_v56, %v8751_v33  ;;  %v1922_v50 = vadd.f32 %v1921_v46, %v1920_v18  ;;  %v1931_v41 = vadd.f32 %v1930_v21, %v1929_v5  ;;  %v2029_v17 = vrot.slane %v2028_v51, 4 }
 0x164   :  { %v1940_v36 = vadd.f32 %v1939_v15, %v1938_v3  ;;  %v1949_v62 = vadd.f32 %v1948_v27, %v1947_v6  ;;  %v2038_v49 = vrot.slane %v2037_v4, 4  ;;  %v2046_v61 = vadd.f32 %v2045_v13, %v2044_v8 }
 0x165   :  { %v1958_v58 = vadd.f32 %v1957_v7, %v1956_v44  ;;  %v1967_v2 = vadd.f32 %v1966_v10, %v1965_v35  ;;  %v1976_v14 = vadd.f32 %v1975_v45, %v1974_v16  ;;  %v1985_v59 = vadd.f32 %v1984_v63, %v1983_v34 }
 0x166   :  { %v1994_v54 = vadd.f32 %v1993_v19, %v1992_v20  ;;  %v2003_v43 = vadd.f32 %v2002_v57, %v2001_v53  ;;  %v2012_v25 = vadd.f32 %v2011_v9, %v2010_v42  ;;  %v2021_v1 = vadd.f32 %v2020_v28, %v2019_v52 }
 0x167   :  { %v1914_v0 = vrot.slane %v1913_v48, 2  ;;  %v1923_v40 = vrot.slane %v1922_v50, 2  ;;  %v1932_v22 = vrot.slane %v1931_v41, 2  ;;  %v2030_v47 = vadd.f32 %v2029_v17, %v2028_v51 }
 0x168   :  { %v1941_v33 = vrot.slane %v1940_v36, 2  ;;  %v1950_v18 = vrot.slane %v1949_v62, 2  ;;  %v2039_v56 = vadd.f32 %v2038_v49, %v2037_v4  ;;  %v2047_v5 = vrot.slane %v2046_v61, 4 }
 0x169   :  { %v1959_v3 = vrot.slane %v1958_v58, 2  ;;  %v1968_v6 = vrot.slane %v1967_v2, 2  ;;  %v1977_v55 = vrot.slane %v1976_v14, 2  ;;  %v1986_v26 = vrot.slane %v1985_v59, 2 }
 0x16a   :  { %v1995_v44 = vrot.slane %v1994_v54, 2  ;;  %v2004_v35 = vrot.slane %v2003_v43, 2  ;;  %v2013_v16 = vrot.slane %v2012_v25, 2  ;;  %v2022_v34 = vrot.slane %v2021_v1, 2 }
 0x16b   :  { %v1915_v20 = vadd.f32 %v1914_v0, %v1913_v48  ;;  %v1924_v53 = vadd.f32 %v1923_v40, %v1922_v50  ;;  %v1933_v42 = vadd.f32 %v1932_v22, %v1931_v41  ;;  %v2031_v52 = vrot.slane %v2030_v47, 2 }
 0x16c   :  { %v1942_v46 = vadd.f32 %v1941_v33, %v1940_v36  ;;  %v1951_v21 = vadd.f32 %v1950_v18, %v1949_v62  ;;  %v2040_v15 = vrot.slane %v2039_v56, 2  ;;  %v2048_v51 = vadd.f32 %v2047_v5, %v2046_v61 }
 0x16d   :  { %v1960_v27 = vadd.f32 %v1959_v3, %v1958_v58  ;;  %v1969_v7 = vadd.f32 %v1968_v6, %v1967_v2  ;;  %v1978_v10 = vadd.f32 %v1977_v55, %v1976_v14  ;;  %v1987_v4 = vadd.f32 %v1986_v26, %v1985_v59 }
 0x16e   :  { %v1996_v45 = vadd.f32 %v1995_v44, %v1994_v54  ;;  %v2005_v63 = vadd.f32 %v2004_v35, %v2003_v43  ;;  %v2014_v8 = vadd.f32 %v2013_v16, %v2012_v25  ;;  %v2023_v13 = vadd.f32 %v2022_v34, %v2021_v1  ;;  %v8787_v44 = vld [vmem:[%s13437_s0 + $0x8] sm:$0x8]  ;;  %v8792_v35 = vld [vmem:[%s13437_s0 + $0xc] sm:$0x8] }
 0x16f   :  { %v1916_v19 = vrot.slane %v1915_v20, 1  ;;  %v1925_v57 = vrot.slane %v1924_v53, 1  ;;  %v1934_v9 = vrot.slane %v1933_v42, 1  ;;  %v2032_v28 = vadd.f32 %v2031_v52, %v2030_v47  ;;  %v8797_v16 = vld [vmem:[%s13437_s0 + $0x28] sm:$0x8] }
 0x170   :  { %v1943_v48 = vrot.slane %v1942_v46, 1  ;;  %v1952_v50 = vrot.slane %v1951_v21, 1  ;;  %v2041_v41 = vadd.f32 %v2040_v15, %v2039_v56  ;;  %v2049_v17 = vrot.slane %v2048_v51, 2  ;;  %v8808_v52 = vld [vmem:[%s13437_s0 + $0x2c] sm:$0x8] }
 0x171   :  { %v1961_v36 = vrot.slane %v1960_v27, 1  ;;  %v1970_v62 = vrot.slane %v1969_v7, 1  ;;  %v1979_v49 = vrot.slane %v1978_v10, 1  ;;  %v1988_v61 = vrot.slane %v1987_v4, 1 }
 0x172   :  { %v1997_v58 = vrot.slane %v1996_v45, 1  ;;  %v2006_v2 = vrot.slane %v2005_v63, 1  ;;  %v2015_v14 = vrot.slane %v2014_v8, 1  ;;  %v2024_v59 = vrot.slane %v2023_v13, 1 }
 0x173   :  { %v1917_v54 = vadd.f32 %v1916_v19, %v1915_v20  ;;  %v1926_v43 = vadd.f32 %v1925_v57, %v1924_v53  ;;  %v1935_v25 = vadd.f32 %v1934_v9, %v1933_v42  ;;  %v2033_v1 = vrot.slane %v2032_v28, 1  ;;  %v8850_v57 = vld [vmem:[%s13437_s0 + $0x8c] sm:$0x8]  ;;  %v8855_v9 = vld [vmem:[%s13437_s0 + $0xa8] sm:$0x8] }
 0x174   :  { %v1944_v0 = vadd.f32 %v1943_v48, %v1942_v46  ;;  %v1953_v40 = vadd.f32 %v1952_v50, %v1951_v21  ;;  %v2042_v22 = vrot.slane %v2041_v41, 1  ;;  %v2050_v47 = vadd.f32 %v2049_v17, %v2048_v51  ;;  %v8813_v46 = vld [vmem:[%s13437_s0 + $0x48] sm:$0x8] }
 0x175   :  { %v1962_v33 = vadd.f32 %v1961_v36, %v1960_v27  ;;  %v1971_v18 = vadd.f32 %v1970_v62, %v1969_v7  ;;  %v1980_v56 = vadd.f32 %v1979_v49, %v1978_v10  ;;  %v1989_v5 = vadd.f32 %v1988_v61, %v1987_v4  ;;  %v8822_v7 = vld [vmem:[%s13437_s0 + $0x4c] sm:$0x8]  ;;  %v8827_v10 = vld [vmem:[%s13437_s0 + $0x68] sm:$0x8] }
 0x176   :  { %v1998_v3 = vadd.f32 %v1997_v58, %v1996_v45  ;;  %v2007_v6 = vadd.f32 %v2006_v2, %v2005_v63  ;;  %v2016_v55 = vadd.f32 %v2015_v14, %v2014_v8  ;;  %v2025_v26 = vadd.f32 %v2024_v59, %v2023_v13  ;;  %v8832_v4 = vld [vmem:[%s13437_s0 + $0x6c] sm:$0x8]  ;;  %v8837_v45 = vld [vmem:[%s13437_s0 + $0x88] sm:$0x8] }
 0x177   :  { %v2034_v34 = vadd.f32 %v2033_v1, %v2032_v28  ;;  %v8799_v20 = vmul.f32 0.25, %v1917_v54  ;;  %v8801_v53 = vmul.f32 0.25, %v1926_v43  ;;  %v8803_v42 = vmul.f32 0.25, %v1935_v25  ;;  %v8860_v28 = vld [vmem:[%s13437_s0 + $0xac] sm:$0x8] }
 0x178   :  { %v2043_v21 = vadd.f32 %v2042_v22, %v2041_v41  ;;  %v2051_v15 = vrot.slane %v2050_v47, 1  ;;  %v8815_v51 = vmul.f32 0.25, %v1944_v0  ;;  %v8817_v27 = vmul.f32 0.25, %v1953_v40  ;;  %v8865_v48 = vld [vmem:[%s13437_s0 + $0xc8] sm:$0x8] }
 0x179   :  { %13763 = vst [vmem:[#allocation89_spill] sm:$0xff] %v8799_v20  ;;  %13764 = vst [vmem:[#allocation90_spill] sm:$0xff] %v8801_v53  ;;  %v8839_v63 = vmul.f32 0.25, %v1962_v33  ;;  %v8841_v8 = vmul.f32 0.25, %v1971_v18  ;;  %v8843_v13 = vmul.f32 0.25, %v1980_v56  ;;  %v8845_v19 = vmul.f32 0.25, %v1989_v5 }
 0x17a   :  { %13765 = vst [vmem:[#allocation91_spill] sm:$0xff] %v8803_v42  ;;  %13766 = vst [vmem:[#allocation92_spill] sm:$0xff] %v8815_v51  ;;  %v8867_v50 = vmul.f32 0.25, %v1998_v3  ;;  %v8869_v41 = vmul.f32 0.25, %v2007_v6  ;;  %v8871_v17 = vmul.f32 0.25, %v2016_v55  ;;  %v8873_v36 = vmul.f32 0.25, %v2025_v26 }
 0x17b   :  { %13767 = vst [vmem:[#allocation93_spill] sm:$0xff] %v8817_v27  ;;  %13768 = vst [vmem:[#allocation94_spill] sm:$0xff] %v8839_v63  ;;  %v8878_v62 = vld [vmem:[%s13437_s0 + $0xcc] sm:$0x8]  ;;  %v8883_v49 = vld [vmem:[%s13437_s0 + $0xe8] sm:$0x8]  ;;  %v2101_v54 = vunpack.c.l.bf16 %v8787_v44  ;;  %v2102_v43 = vunpack.c.l.bf16 %v8792_v35  ;;  %v2103_v25 = vunpack.c.l.bf16 %v8797_v16  ;;  %v2052_v1 = vadd.f32 %v2051_v15, %v2050_v47 }
 0x17c   :  { %13769 = vst [vmem:[#allocation95_spill] sm:$0xff] %v8841_v8  ;;  %13770 = vst [vmem:[#allocation96_spill] sm:$0xff] %v8843_v13  ;;  %v8888_v61 = vld [vmem:[%s13437_s0 + $0xec] sm:$0x8]  ;;  %v8893_v58 = vld [vmem:[%s13437_s0 + $0x108] sm:$0x8]  ;;  %v2104_v33 = vunpack.c.l.bf16 %v8808_v52  ;;  %v2105_v18 = vunpack.c.l.bf16 %v8813_v46  ;;  %v2106_v3 = vunpack.c.l.bf16 %v8822_v7  ;;  %v2107_v6 = vunpack.c.l.bf16 %v8827_v10 }
 0x17d   :  { %13771 = vst [vmem:[#allocation97_spill] sm:$0xff] %v8845_v19  ;;  %13772 = vst [vmem:[#allocation98_spill] sm:$0xff] %v8867_v50  ;;  %v8895_v2 = vmul.f32 0.25, %v2034_v34  ;;  %v8900_v14 = vld [vmem:[%s13437_s0 + $0x10c] sm:$0x8]  ;;  %v8910_v0 = vmul.f32 0.25, %v2043_v21  ;;  %v2108_v55 = vunpack.c.l.bf16 %v8832_v4  ;;  %v2109_v26 = vunpack.c.l.bf16 %v8837_v45 }
 0x17e   :  { %13773 = vst [vmem:[#allocation99_spill] sm:$0xff] %v8869_v41  ;;  %13774 = vst [vmem:[#allocation100_spill] sm:$0xff] %v8871_v17  ;;  %v8905_v59 = vld [vmem:[%s13437_s0 + $0x128] sm:$0x8]  ;;  %v8915_v40 = vld [vmem:[%s13437_s0 + $0x12c] sm:$0x8]  ;;  %v2110_v34 = vunpack.c.l.bf16 %v8850_v57  ;;  %v2111_v52 = vunpack.c.l.bf16 %v8855_v9  ;;  %v2112_v46 = vunpack.c.l.bf16 %v8860_v28  ;;  %v2113_v21 = vunpack.c.l.bf16 %v8865_v48 }
 0x17f   :  { %13775 = vst [vmem:[#allocation101_spill] sm:$0xff] %v8873_v36  ;;  %13776 = vst [vmem:[#allocation102_spill] sm:$0xff] %v8895_v2  ;;  %v8920_v22 = vld [vmem:[%s13437_s0 + $0x148] sm:$0x8]  ;;  %v6616_v47 = vld [vmem:[%s13437_s0 + $0x14c] sm:$0x8]  ;;  %v2114_v4 = vunpack.c.l.bf16 %v8878_v62  ;;  %v2115_v45 = vunpack.c.l.bf16 %v8883_v49  ;;  %v2116_v57 = vunpack.c.l.bf16 %v8888_v61  ;;  %v2117_v9 = vunpack.c.l.bf16 %v8893_v58 }
 0x180   :  { %13777 = vst [vmem:[#allocation103_spill] sm:$0xff] %v8910_v0  ;;  %v6617_v56 = vld [vmem:[%s13437_s0 + $0x168] sm:$0x8]  ;;  %v6618_v5 = vld [vmem:[%s13437_s0 + $0x16c] sm:$0x8]  ;;  %v8973_v28 = vmul.f32 0.25, %v2052_v1  ;;  %v2118_v2 = vunpack.c.l.bf16 %v8900_v14  ;;  %v2119_v62 = vunpack.c.l.bf16 %v8905_v59  ;;  %v2120_v49 = vunpack.c.l.bf16 %v8915_v40 }
 0x181   :  { %v6619_v44 = vld [vmem:[%s13437_s0 + $0x188] sm:$0x8]  ;;  %v8943_v35 = vld [vmem:[%s13437_s0 + $0x18c] sm:$0x8]  ;;  %v2121_v61 = vunpack.c.l.bf16 %v8920_v22  ;;  %v2122_v36 = vunpack.c.l.bf16 %v6616_v47  ;;  %v2123_v58 = vunpack.c.l.bf16 %v6617_v56  ;;  %v2124_v1 = vunpack.c.l.bf16 %v6618_v5 }
 0x182   :  { %v8948_v16 = vld [vmem:[%s13437_s0 + $0x1a8] sm:$0x8]  ;;  %v8957_v15 = vld [vmem:[%s13437_s0 + $0x1ac] sm:$0x8]  ;;  %13778 = vst [vmem:[#allocation104_spill] sm:$0xff] %v8973_v28  ;;  %v2125_v28 = vunpack.c.l.bf16 %v6619_v44  ;;  %v2126_v17 = vunpack.c.l.bf16 %v8943_v35  ;;  %v2165_v8 = vrot.slane %v2101_v54, 6 }
 0x183   :  { %v8962_v7 = vld [vmem:[%s13437_s0 + $0x1c8] sm:$0x8]  ;;  %v8967_v10 = vld [vmem:[%s13437_s0 + $0x1cc] sm:$0x8]  ;;  %v2127_v41 = vunpack.c.l.bf16 %v8948_v16  ;;  %v2128_v50 = vunpack.c.l.bf16 %v8957_v15  ;;  %v2166_v40 = vrot.slane %v2102_v43, 6  ;;  %v2167_v63 = vrot.slane %v2103_v25, 6 }
 0x184   :  { %v6625_v48 = vld [vmem:[%s13437_s0 + $0x1e8] sm:$0x8]  ;;  %v6626_v0 = vld [vmem:[%s13437_s0 + $0x1ec] sm:$0x8]  ;;  %v2129_v19 = vunpack.c.l.bf16 %v8962_v7  ;;  %v2130_v14 = vunpack.c.l.bf16 %v8967_v10  ;;  %v2168_v22 = vrot.slane %v2104_v33, 6  ;;  %v2169_v47 = vrot.slane %v2105_v18, 6 }
 0x185   :  { %v2131_v13 = vunpack.c.l.bf16 %v6625_v48  ;;  %v2132_v59 = vunpack.c.l.bf16 %v6626_v0  ;;  %v2170_v56 = vrot.slane %v2106_v3, 6  ;;  %v2171_v5 = vrot.slane %v2107_v6, 6 }
 0x186   :  { %v2172_v44 = vrot.slane %v2108_v55, 6  ;;  %v2173_v27 = vrot.slane %v2109_v26, 6  ;;  %v2174_v35 = vrot.slane %v2110_v34, 6  ;;  %v2175_v51 = vrot.slane %v2111_v52, 6 }
 0x187   :  { %v2176_v16 = vrot.slane %v2112_v46, 6  ;;  %v2177_v42 = vrot.slane %v2113_v21, 6  ;;  %v2178_v15 = vrot.slane %v2114_v4, 6  ;;  %v2179_v53 = vrot.slane %v2115_v45, 6 }
 0x188   :  { %v2180_v7 = vrot.slane %v2116_v57, 6  ;;  %v2181_v20 = vrot.slane %v2117_v9, 6  ;;  %v2182_v10 = vrot.slane %v2118_v2, 6  ;;  %v2229_v0 = vsel %vm83_vm0, %v2165_v8, 0.0 }
 0x189   :  { %v2230_v54 = vsel %vm83_vm0, %v2166_v40, 0.0  ;;  %v2183_v43 = vrot.slane %v2119_v62, 6  ;;  %v2184_v25 = vrot.slane %v2120_v49, 6  ;;  %v2185_v33 = vrot.slane %v2121_v61, 6 }
 0x18a   :  { %v2186_v18 = vrot.slane %v2122_v36, 6  ;;  %v2187_v3 = vrot.slane %v2123_v58, 6  ;;  %v2188_v6 = vrot.slane %v2124_v1, 6  ;;  %v2189_v55 = vrot.slane %v2125_v28, 6 }
 0x18b   :  { %v2238_v26 = vsel %vm83_vm0, %v2167_v63, 0.0  ;;  %v8993_v34 = vadd.f32 %v2230_v54, %v2229_v0  ;;  %v2239_v52 = vsel %vm83_vm0, %v2168_v22, 0.0  ;;  %v2247_v46 = vsel %vm83_vm0, %v2169_v47, 0.0 }
 0x18c   :  { %v2248_v2 = vsel %vm83_vm0, %v2170_v56, 0.0  ;;  %v2256_v8 = vsel %vm83_vm0, %v2171_v5, 0.0  ;;  %v2257_v21 = vsel %vm83_vm0, %v2172_v44, 0.0  ;;  %v2265_v4 = vsel %vm83_vm0, %v2173_v27, 0.0 }
 0x18d   :  { %v2266_v36 = vsel %vm83_vm0, %v2174_v35, 0.0  ;;  %v2190_v45 = vrot.slane %v2126_v17, 6  ;;  %v2191_v57 = vrot.slane %v2127_v41, 6  ;;  %v2192_v9 = vrot.slane %v2128_v50, 6 }
 0x18e   :  { %v2193_v63 = vrot.slane %v2129_v19, 6  ;;  %v2194_v28 = vrot.slane %v2130_v14, 6  ;;  %v2195_v48 = vrot.slane %v2131_v13, 6  ;;  %v2196_v62 = vrot.slane %v2132_v59, 6 }
 0x18f   :  { %v2240_v49 = vadd.f32 %v2239_v52, %v2238_v26  ;;  %v2232_v61 = vrot.slane %v8993_v34, 4  ;;  %v2249_v58 = vadd.f32 %v2248_v2, %v2247_v46  ;;  %v2258_v1 = vadd.f32 %v2257_v21, %v2256_v8 }
 0x190   :  { %v2267_v40 = vadd.f32 %v2266_v36, %v2265_v4  ;;  %v2274_v22 = vsel %vm83_vm0, %v2175_v51, 0.0  ;;  %v2275_v47 = vsel %vm83_vm0, %v2176_v16, 0.0  ;;  %v2283_v27 = vsel %vm83_vm0, %v2177_v42, 0.0 }
 0x191   :  { %v2284_v17 = vsel %vm83_vm0, %v2178_v15, 0.0  ;;  %v2292_v50 = vsel %vm83_vm0, %v2179_v53, 0.0  ;;  %v2293_v19 = vsel %vm83_vm0, %v2180_v7, 0.0  ;;  %v2301_v13 = vsel %vm83_vm0, %v2181_v20, 0.0 }
 0x192   :  { %v2302_v41 = vsel %vm83_vm0, %v2182_v10, 0.0  ;;  %v2310_v14 = vsel %vm83_vm0, %v2183_v43, 0.0  ;;  %v2311_v59 = vsel %vm83_vm0, %v2184_v25, 0.0  ;;  %v2319_v51 = vsel %vm83_vm0, %v2185_v33, 0.0 }
 0x193   :  { %v2320_v56 = vsel %vm83_vm0, %v2186_v18, 0.0  ;;  %v2328_v42 = vsel %vm83_vm0, %v2187_v3, 0.0  ;;  %v2329_v5 = vsel %vm83_vm0, %v2188_v6, 0.0  ;;  %v2337_v53 = vsel %vm83_vm0, %v2189_v55, 0.0 }
 0x194   :  { %v2338_v44 = vsel %vm83_vm0, %v2190_v45, 0.0  ;;  %v2276_v35 = vadd.f32 %v2275_v47, %v2274_v22  ;;  %v2285_v20 = vadd.f32 %v2284_v17, %v2283_v27  ;;  %v2346_v16 = vsel %vm83_vm0, %v2191_v57, 0.0 }
 0x195   :  { %v2347_v15 = vsel %vm83_vm0, %v2192_v9, 0.0  ;;  %v2294_v7 = vadd.f32 %v2293_v19, %v2292_v50  ;;  %v2303_v10 = vadd.f32 %v2302_v41, %v2301_v13  ;;  %v2355_v0 = vsel %vm83_vm0, %v2193_v63, 0.0 }
 0x196   :  { %v2356_v54 = vsel %vm83_vm0, %v2194_v28, 0.0  ;;  %v2312_v43 = vadd.f32 %v2311_v59, %v2310_v14  ;;  %v2321_v25 = vadd.f32 %v2320_v56, %v2319_v51  ;;  %v2330_v33 = vadd.f32 %v2329_v5, %v2328_v42 }
 0x197   :  { %v2339_v18 = vadd.f32 %v2338_v44, %v2337_v53  ;;  %v2241_v3 = vrot.slane %v2240_v49, 4  ;;  %v2250_v6 = vrot.slane %v2249_v58, 4  ;;  %v2259_v55 = vrot.slane %v2258_v1, 4 }
 0x198   :  { %v2348_v26 = vadd.f32 %v2347_v15, %v2346_v16  ;;  %v2268_v52 = vrot.slane %v2267_v40, 4  ;;  %v2277_v46 = vrot.slane %v2276_v35, 4  ;;  %v2286_v2 = vrot.slane %v2285_v20, 4 }
 0x199   :  { %v2357_v8 = vadd.f32 %v2356_v54, %v2355_v0  ;;  %v2295_v21 = vrot.slane %v2294_v7, 4  ;;  %v2304_v4 = vrot.slane %v2303_v10, 4  ;;  %v2364_v36 = vsel %vm83_vm0, %v2195_v48, 0.0 }
 0x19a   :  { %v2365_v45 = vsel %vm83_vm0, %v2196_v62, 0.0  ;;  %v2313_v57 = vrot.slane %v2312_v43, 4  ;;  %v2322_v9 = vrot.slane %v2321_v25, 4  ;;  %v2331_v63 = vrot.slane %v2330_v33, 4 }
 0x19b   :  { %v2340_v28 = vrot.slane %v2339_v18, 4  ;;  %v2233_v22 = vadd.f32 %v2232_v61, %v8993_v34  ;;  %v2242_v47 = vadd.f32 %v2241_v3, %v2240_v49  ;;  %v2251_v27 = vadd.f32 %v2250_v6, %v2249_v58 }
 0x19c   :  { %v2349_v17 = vrot.slane %v2348_v26, 4  ;;  %v2260_v50 = vadd.f32 %v2259_v55, %v2258_v1  ;;  %v2269_v19 = vadd.f32 %v2268_v52, %v2267_v40  ;;  %v2358_v13 = vrot.slane %v2357_v8, 4 }
 0x19d   :  { %v2366_v41 = vadd.f32 %v2365_v45, %v2364_v36  ;;  %v2278_v14 = vadd.f32 %v2277_v46, %v2276_v35  ;;  %v2287_v59 = vadd.f32 %v2286_v2, %v2285_v20  ;;  %v2296_v51 = vadd.f32 %v2295_v21, %v2294_v7 }
 0x19e   :  { %v2305_v56 = vadd.f32 %v2304_v4, %v2303_v10  ;;  %v2314_v48 = vadd.f32 %v2313_v57, %v2312_v43  ;;  %v2323_v42 = vadd.f32 %v2322_v9, %v2321_v25  ;;  %v2332_v62 = vadd.f32 %v2331_v63, %v2330_v33 }
 0x19f   :  { %v2341_v5 = vadd.f32 %v2340_v28, %v2339_v18  ;;  %v2234_v53 = vrot.slane %v2233_v22, 2  ;;  %v2243_v44 = vrot.slane %v2242_v47, 2  ;;  %v2252_v16 = vrot.slane %v2251_v27, 2 }
 0x1a0   :  { %v2350_v15 = vadd.f32 %v2349_v17, %v2348_v26  ;;  %v2261_v34 = vrot.slane %v2260_v50, 2  ;;  %v2270_v49 = vrot.slane %v2269_v19, 2  ;;  %v2359_v61 = vadd.f32 %v2358_v13, %v2357_v8 }
 0x1a1   :  { %v2367_v58 = vrot.slane %v2366_v41, 4  ;;  %v2279_v1 = vrot.slane %v2278_v14, 2  ;;  %v2288_v40 = vrot.slane %v2287_v59, 2  ;;  %v2297_v0 = vrot.slane %v2296_v51, 2 }
 0x1a2   :  { %v2306_v54 = vrot.slane %v2305_v56, 2  ;;  %v2315_v35 = vrot.slane %v2314_v48, 2  ;;  %v2324_v20 = vrot.slane %v2323_v42, 2  ;;  %v2333_v7 = vrot.slane %v2332_v62, 2 }
 0x1a3   :  { %v2342_v10 = vrot.slane %v2341_v5, 2  ;;  %v2235_v43 = vadd.f32 %v2234_v53, %v2233_v22  ;;  %v2244_v25 = vadd.f32 %v2243_v44, %v2242_v47  ;;  %v2253_v33 = vadd.f32 %v2252_v16, %v2251_v27 }
 0x1a4   :  { %v2351_v18 = vrot.slane %v2350_v15, 2  ;;  %v2262_v3 = vadd.f32 %v2261_v34, %v2260_v50  ;;  %v2271_v6 = vadd.f32 %v2270_v49, %v2269_v19  ;;  %v2360_v55 = vrot.slane %v2359_v61, 2 }
 0x1a5   :  { %v2368_v26 = vadd.f32 %v2367_v58, %v2366_v41  ;;  %v2280_v52 = vadd.f32 %v2279_v1, %v2278_v14  ;;  %v2289_v46 = vadd.f32 %v2288_v40, %v2287_v59  ;;  %v2298_v2 = vadd.f32 %v2297_v0, %v2296_v51 }
 0x1a6   :  { %v2307_v8 = vadd.f32 %v2306_v54, %v2305_v56  ;;  %v2316_v21 = vadd.f32 %v2315_v35, %v2314_v48  ;;  %v2325_v4 = vadd.f32 %v2324_v20, %v2323_v42  ;;  %v2334_v36 = vadd.f32 %v2333_v7, %v2332_v62  ;;  %v9029_v35 = vld [vmem:[%s13437_s0 + $0x10] sm:$0x1]  ;;  %v9034_v20 = vld [vmem:[%s13437_s0 + $0x14] sm:$0x1] }
 0x1a7   :  { %v2343_v45 = vadd.f32 %v2342_v10, %v2341_v5  ;;  %v2236_v57 = vrot.slane %v2235_v43, 1  ;;  %v2245_v9 = vrot.slane %v2244_v25, 1  ;;  %v2254_v63 = vrot.slane %v2253_v33, 1  ;;  %v9039_v7 = vld [vmem:[%s13437_s0 + $0x30] sm:$0x1] }
 0x1a8   :  { %v2352_v28 = vadd.f32 %v2351_v18, %v2350_v15  ;;  %v2263_v22 = vrot.slane %v2262_v3, 1  ;;  %v2272_v47 = vrot.slane %v2271_v6, 1  ;;  %v2361_v27 = vadd.f32 %v2360_v55, %v2359_v61  ;;  %v9050_v18 = vld [vmem:[%s13437_s0 + $0x34] sm:$0x1] }
 0x1a9   :  { %v2369_v17 = vrot.slane %v2368_v26, 2  ;;  %v2281_v50 = vrot.slane %v2280_v52, 1  ;;  %v2290_v19 = vrot.slane %v2289_v46, 1  ;;  %v2299_v13 = vrot.slane %v2298_v2, 1 }
 0x1aa   :  { %v2308_v41 = vrot.slane %v2307_v8, 1  ;;  %v2317_v14 = vrot.slane %v2316_v21, 1  ;;  %v2326_v59 = vrot.slane %v2325_v4, 1  ;;  %v2335_v51 = vrot.slane %v2334_v36, 1 }
 0x1ab   :  { %v2344_v56 = vrot.slane %v2343_v45, 1  ;;  %v2237_v48 = vadd.f32 %v2236_v57, %v2235_v43  ;;  %v2246_v42 = vadd.f32 %v2245_v9, %v2244_v25  ;;  %v2255_v62 = vadd.f32 %v2254_v63, %v2253_v33  ;;  %v9092_v9 = vld [vmem:[%s13437_s0 + $0x94] sm:$0x1]  ;;  %v9097_v63 = vld [vmem:[%s13437_s0 + $0xb0] sm:$0x1] }
 0x1ac   :  { %v2353_v5 = vrot.slane %v2352_v28, 1  ;;  %v2264_v53 = vadd.f32 %v2263_v22, %v2262_v3  ;;  %v2273_v44 = vadd.f32 %v2272_v47, %v2271_v6  ;;  %v2362_v16 = vrot.slane %v2361_v27, 1  ;;  %v9055_v3 = vld [vmem:[%s13437_s0 + $0x50] sm:$0x1] }
 0x1ad   :  { %v2370_v15 = vadd.f32 %v2369_v17, %v2368_v26  ;;  %v2282_v34 = vadd.f32 %v2281_v50, %v2280_v52  ;;  %v2291_v49 = vadd.f32 %v2290_v19, %v2289_v46  ;;  %v2300_v61 = vadd.f32 %v2299_v13, %v2298_v2  ;;  %v9064_v46 = vld [vmem:[%s13437_s0 + $0x54] sm:$0x1]  ;;  %v9069_v2 = vld [vmem:[%s13437_s0 + $0x70] sm:$0x1] }
 0x1ae   :  { %v2309_v58 = vadd.f32 %v2308_v41, %v2307_v8  ;;  %v2318_v1 = vadd.f32 %v2317_v14, %v2316_v21  ;;  %v2327_v40 = vadd.f32 %v2326_v59, %v2325_v4  ;;  %v2336_v0 = vadd.f32 %v2335_v51, %v2334_v36  ;;  %v9074_v8 = vld [vmem:[%s13437_s0 + $0x74] sm:$0x1]  ;;  %v9079_v21 = vld [vmem:[%s13437_s0 + $0x90] sm:$0x1] }
 0x1af   :  { %v2345_v54 = vadd.f32 %v2344_v56, %v2343_v45  ;;  %v2354_v10 = vadd.f32 %v2353_v5, %v2352_v28  ;;  %v9041_v43 = vmul.f32 0.25, %v2237_v48  ;;  %v9043_v25 = vmul.f32 0.25, %v2246_v42  ;;  %v9102_v28 = vld [vmem:[%s13437_s0 + $0xb4] sm:$0x1]  ;;  %v9115_v50 = vld [vmem:[%s13437_s0 + $0xd0] sm:$0x1] }
 0x1b0   :  { %v9045_v33 = vmul.f32 0.25, %v2255_v62  ;;  %v2363_v6 = vadd.f32 %v2362_v16, %v2361_v27  ;;  %v2371_v55 = vrot.slane %v2370_v15, 1  ;;  %v9057_v26 = vmul.f32 0.25, %v2264_v53  ;;  %v9122_v13 = vld [vmem:[%s13437_s0 + $0xd4] sm:$0x1] }
 0x1b1   :  { %13779 = vst [vmem:[#allocation105_spill] sm:$0xff] %v9041_v43  ;;  %13780 = vst [vmem:[#allocation106_spill] sm:$0xff] %v9043_v25  ;;  %v9059_v52 = vmul.f32 0.25, %v2273_v44  ;;  %v9081_v4 = vmul.f32 0.25, %v2282_v34  ;;  %v9083_v36 = vmul.f32 0.25, %v2291_v49  ;;  %v9085_v45 = vmul.f32 0.25, %v2300_v61 }
 0x1b2   :  { %13781 = vst [vmem:[#allocation107_spill] sm:$0xff] %v9045_v33  ;;  %13782 = vst [vmem:[#allocation108_spill] sm:$0xff] %v9057_v26  ;;  %v9087_v57 = vmul.f32 0.25, %v2309_v58  ;;  %v9104_v22 = vmul.f32 0.25, %v2318_v1  ;;  %v9106_v47 = vmul.f32 0.25, %v2327_v40  ;;  %v9108_v27 = vmul.f32 0.25, %v2336_v0 }
 0x1b3   :  { %13783 = vst [vmem:[#allocation109_spill] sm:$0xff] %v9059_v52  ;;  %13784 = vst [vmem:[#allocation110_spill] sm:$0xff] %v9081_v4  ;;  %v9110_v17 = vmul.f32 0.25, %v2345_v54  ;;  %v9117_v19 = vmul.f32 0.25, %v2354_v10  ;;  %v9127_v41 = vld [vmem:[%s13437_s0 + $0xf0] sm:$0x1]  ;;  %v2422_v14 = vunpack.c.l.bf16 %v9029_v35  ;;  %v2423_v59 = vunpack.c.l.bf16 %v9034_v20 }
 0x1b4   :  { %13785 = vst [vmem:[#allocation111_spill] sm:$0xff] %v9083_v36  ;;  %13786 = vst [vmem:[#allocation112_spill] sm:$0xff] %v9085_v45  ;;  %v2424_v51 = vunpack.c.l.bf16 %v9039_v7  ;;  %v2372_v56 = vadd.f32 %v2371_v55, %v2370_v15  ;;  %v9132_v48 = vmul.f32 0.25, %v2363_v6  ;;  %v9137_v42 = vld [vmem:[%s13437_s0 + $0xf4] sm:$0x1]  ;;  %v2425_v5 = vunpack.c.l.bf16 %v9050_v18 }
 0x1b5   :  { %13787 = vst [vmem:[#allocation113_spill] sm:$0xff] %v9087_v57  ;;  %13788 = vst [vmem:[#allocation114_spill] sm:$0xff] %v9104_v22  ;;  %v9142_v62 = vld [vmem:[%s13437_s0 + $0x110] sm:$0x1]  ;;  %v2426_v53 = vunpack.c.l.bf16 %v9055_v3  ;;  %v9149_v44 = vld [vmem:[%s13437_s0 + $0x114] sm:$0x1]  ;;  %v2427_v15 = vunpack.c.l.bf16 %v9064_v46  ;;  %v2428_v34 = vunpack.c.l.bf16 %v9069_v2  ;;  %v2429_v49 = vunpack.c.l.bf16 %v9074_v8 }
 0x1b6   :  { %13789 = vst [vmem:[#allocation115_spill] sm:$0xff] %v9106_v47  ;;  %13790 = vst [vmem:[#allocation116_spill] sm:$0xff] %v9108_v27  ;;  %v9154_v16 = vld [vmem:[%s13437_s0 + $0x130] sm:$0x1]  ;;  %v2430_v61 = vunpack.c.l.bf16 %v9079_v21  ;;  %v9163_v58 = vld [vmem:[%s13437_s0 + $0x134] sm:$0x1]  ;;  %v2431_v0 = vunpack.c.l.bf16 %v9092_v9  ;;  %v2432_v54 = vunpack.c.l.bf16 %v9097_v63  ;;  %v2433_v35 = vunpack.c.l.bf16 %v9102_v28 }
 0x1b7   :  { %13791 = vst [vmem:[#allocation117_spill] sm:$0xff] %v9110_v17  ;;  %13792 = vst [vmem:[#allocation118_spill] sm:$0xff] %v9117_v19  ;;  %v9168_v1 = vld [vmem:[%s13437_s0 + $0x150] sm:$0x1]  ;;  %v9173_v40 = vld [vmem:[%s13437_s0 + $0x154] sm:$0x1]  ;;  %v2434_v20 = vunpack.c.l.bf16 %v9115_v50  ;;  %v2435_v3 = vunpack.c.l.bf16 %v9122_v13  ;;  %v2436_v6 = vunpack.c.l.bf16 %v9127_v41  ;;  %v2437_v55 = vunpack.c.l.bf16 %v9137_v42 }
 0x1b8   :  { %13793 = vst [vmem:[#allocation119_spill] sm:$0xff] %v9132_v48  ;;  %v6649_v7 = vld [vmem:[%s13437_s0 + $0x170] sm:$0x1]  ;;  %v6650_v10 = vld [vmem:[%s13437_s0 + $0x174] sm:$0x1]  ;;  %v2438_v46 = vunpack.c.l.bf16 %v9142_v62  ;;  %v9192_v2 = vmul.f32 0.25, %v2372_v56  ;;  %v2439_v21 = vunpack.c.l.bf16 %v9149_v44  ;;  %v2440_v41 = vunpack.c.l.bf16 %v9154_v16 }
 0x1b9   :  { %v6651_v18 = vld [vmem:[%s13437_s0 + $0x190] sm:$0x1]  ;;  %v6652_v8 = vld [vmem:[%s13437_s0 + $0x194] sm:$0x1]  ;;  %v2454_v9 = vsel %vm83_vm0, %v2422_v14, 0.0  ;;  %v2455_v63 = vsel %vm83_vm0, %v2423_v59, 0.0  ;;  %v2441_v56 = vunpack.c.l.bf16 %v9163_v58  ;;  %v2442_v14 = vunpack.c.l.bf16 %v9168_v1 }
 0x1ba   :  { %13794 = vst [vmem:[#allocation120_spill] sm:$0xff] %v9192_v2  ;;  %v6653_v28 = vld [vmem:[%s13437_s0 + $0x1b0] sm:$0x1]  ;;  %v6654_v50 = vld [vmem:[%s13437_s0 + $0x1b4] sm:$0x1]  ;;  %v2443_v59 = vunpack.c.l.bf16 %v9173_v40  ;;  %v2444_v44 = vunpack.c.l.bf16 %v6649_v7  ;;  %v2445_v2 = vunpack.c.l.bf16 %v6650_v10  ;;  %v2446_v48 = vunpack.c.l.bf16 %v6651_v18 }
 0x1bb   :  { %v6655_v13 = vld [vmem:[%s13437_s0 + $0x1d0] sm:$0x1]  ;;  %v6656_v42 = vld [vmem:[%s13437_s0 + $0x1d4] sm:$0x1]  ;;  %v2463_v16 = vsel %vm83_vm0, %v2424_v51, 0.0  ;;  %v9225_v1 = vadd.f32 %v2455_v63, %v2454_v9  ;;  %v2464_v40 = vsel %vm83_vm0, %v2425_v5, 0.0  ;;  %v2447_v18 = vunpack.c.l.bf16 %v6652_v8 }
 0x1bc   :  { %v9219_v62 = vld [vmem:[%s13437_s0 + $0x1f0] sm:$0x1]  ;;  %v6658_v58 = vld [vmem:[%s13437_s0 + $0x1f4] sm:$0x1]  ;;  %v2472_v19 = vsel %vm83_vm0, %v2426_v53, 0.0  ;;  %v2473_v17 = vsel %vm83_vm0, %v2427_v15, 0.0  ;;  %v2448_v47 = vunpack.c.l.bf16 %v6653_v28  ;;  %v2449_v22 = vunpack.c.l.bf16 %v6654_v50 }
 0x1bd   :  { %v2481_v27 = vsel %vm83_vm0, %v2428_v34, 0.0  ;;  %v2482_v7 = vsel %vm83_vm0, %v2429_v49, 0.0  ;;  %v2490_v10 = vsel %vm83_vm0, %v2430_v61, 0.0  ;;  %v2491_v51 = vsel %vm83_vm0, %v2431_v0, 0.0 }
 0x1be   :  { %v2450_v57 = vunpack.c.l.bf16 %v6655_v13  ;;  %v2451_v9 = vunpack.c.l.bf16 %v6656_v42  ;;  %v2452_v63 = vunpack.c.l.bf16 %v9219_v62  ;;  %v2453_v5 = vunpack.c.l.bf16 %v6658_v58 }
 0x1bf   :  { %v2465_v45 = vadd.f32 %v2464_v40, %v2463_v16  ;;  %v2457_v53 = vrot.slane %v9225_v1, 4  ;;  %v2474_v15 = vadd.f32 %v2473_v17, %v2472_v19  ;;  %v2483_v36 = vadd.f32 %v2482_v7, %v2481_v27 }
 0x1c0   :  { %v2492_v34 = vadd.f32 %v2491_v51, %v2490_v10  ;;  %v2499_v49 = vsel %vm83_vm0, %v2432_v54, 0.0  ;;  %v2500_v61 = vsel %vm83_vm0, %v2433_v35, 0.0  ;;  %v2508_v0 = vsel %vm83_vm0, %v2434_v20, 0.0 }
 0x1c1   :  { %v2509_v8 = vsel %vm83_vm0, %v2435_v3, 0.0  ;;  %v2517_v28 = vsel %vm83_vm0, %v2436_v6, 0.0  ;;  %v2518_v50 = vsel %vm83_vm0, %v2437_v55, 0.0  ;;  %v2526_v13 = vsel %vm83_vm0, %v2438_v46, 0.0 }
 0x1c2   :  { %v2527_v42 = vsel %vm83_vm0, %v2439_v21, 0.0  ;;  %v2535_v17 = vsel %vm83_vm0, %v2440_v41, 0.0  ;;  %v2536_v27 = vsel %vm83_vm0, %v2441_v56, 0.0  ;;  %v2544_v19 = vsel %vm83_vm0, %v2442_v14, 0.0 }
 0x1c3   :  { %v2545_v54 = vsel %vm83_vm0, %v2443_v59, 0.0  ;;  %v2553_v35 = vsel %vm83_vm0, %v2444_v44, 0.0  ;;  %v2554_v20 = vsel %vm83_vm0, %v2445_v2, 0.0  ;;  %v2562_v3 = vsel %vm83_vm0, %v2446_v48, 0.0 }
 0x1c4   :  { %v2563_v6 = vsel %vm83_vm0, %v2447_v18, 0.0  ;;  %v2501_v55 = vadd.f32 %v2500_v61, %v2499_v49  ;;  %v2510_v46 = vadd.f32 %v2509_v8, %v2508_v0  ;;  %v2571_v21 = vsel %vm83_vm0, %v2448_v47, 0.0 }
 0x1c5   :  { %v2572_v41 = vsel %vm83_vm0, %v2449_v22, 0.0  ;;  %v2519_v62 = vadd.f32 %v2518_v50, %v2517_v28  ;;  %v2528_v56 = vadd.f32 %v2527_v42, %v2526_v13  ;;  %v2580_v14 = vsel %vm83_vm0, %v2450_v57, 0.0 }
 0x1c6   :  { %v2581_v59 = vsel %vm83_vm0, %v2451_v9, 0.0  ;;  %v2537_v16 = vadd.f32 %v2536_v27, %v2535_v17  ;;  %v2546_v44 = vadd.f32 %v2545_v54, %v2544_v19  ;;  %v2555_v58 = vadd.f32 %v2554_v20, %v2553_v35 }
 0x1c7   :  { %v2564_v2 = vadd.f32 %v2563_v6, %v2562_v3  ;;  %v2466_v40 = vrot.slane %v2465_v45, 4  ;;  %v2475_v48 = vrot.slane %v2474_v15, 4  ;;  %v2484_v7 = vrot.slane %v2483_v36, 4 }
 0x1c8   :  { %v2573_v10 = vadd.f32 %v2572_v41, %v2571_v21  ;;  %v2493_v51 = vrot.slane %v2492_v34, 4  ;;  %v2502_v18 = vrot.slane %v2501_v55, 4  ;;  %v2511_v49 = vrot.slane %v2510_v46, 4 }
 0x1c9   :  { %v2582_v47 = vadd.f32 %v2581_v59, %v2580_v14  ;;  %v2520_v61 = vrot.slane %v2519_v62, 4  ;;  %v2529_v22 = vrot.slane %v2528_v56, 4  ;;  %v2589_v0 = vsel %vm83_vm0, %v2452_v63, 0.0 }
 0x1ca   :  { %v2590_v57 = vsel %vm83_vm0, %v2453_v5, 0.0  ;;  %v2538_v8 = vrot.slane %v2537_v16, 4  ;;  %v2547_v9 = vrot.slane %v2546_v44, 4  ;;  %v2556_v28 = vrot.slane %v2555_v58, 4 }
 0x1cb   :  { %v2565_v50 = vrot.slane %v2564_v2, 4  ;;  %v2458_v13 = vadd.f32 %v2457_v53, %v9225_v1  ;;  %v2467_v42 = vadd.f32 %v2466_v40, %v2465_v45  ;;  %v2476_v17 = vadd.f32 %v2475_v48, %v2474_v15 }
 0x1cc   :  { %v2574_v27 = vrot.slane %v2573_v10, 4  ;;  %v2485_v19 = vadd.f32 %v2484_v7, %v2483_v36  ;;  %v2494_v54 = vadd.f32 %v2493_v51, %v2492_v34  ;;  %v2583_v35 = vrot.slane %v2582_v47, 4 }
 0x1cd   :  { %v2591_v20 = vadd.f32 %v2590_v57, %v2589_v0  ;;  %v2503_v3 = vadd.f32 %v2502_v18, %v2501_v55  ;;  %v2512_v6 = vadd.f32 %v2511_v49, %v2510_v46  ;;  %v2521_v21 = vadd.f32 %v2520_v61, %v2519_v62 }
 0x1ce   :  { %v2530_v41 = vadd.f32 %v2529_v22, %v2528_v56  ;;  %v2539_v63 = vadd.f32 %v2538_v8, %v2537_v16  ;;  %v2548_v14 = vadd.f32 %v2547_v9, %v2546_v44  ;;  %v2557_v5 = vadd.f32 %v2556_v28, %v2555_v58 }
 0x1cf   :  { %v2566_v59 = vadd.f32 %v2565_v50, %v2564_v2  ;;  %v2459_v4 = vrot.slane %v2458_v13, 2  ;;  %v2468_v52 = vrot.slane %v2467_v42, 2  ;;  %v2477_v26 = vrot.slane %v2476_v17, 2 }
 0x1d0   :  { %v2575_v33 = vadd.f32 %v2574_v27, %v2573_v10  ;;  %v2486_v1 = vrot.slane %v2485_v19, 2  ;;  %v2495_v45 = vrot.slane %v2494_v54, 2  ;;  %v2584_v53 = vadd.f32 %v2583_v35, %v2582_v47 }
 0x1d1   :  { %v2592_v15 = vrot.slane %v2591_v20, 4  ;;  %v2504_v36 = vrot.slane %v2503_v3, 2  ;;  %v2513_v34 = vrot.slane %v2512_v6, 2  ;;  %v2522_v40 = vrot.slane %v2521_v21, 2 }
 0x1d2   :  { %v2531_v48 = vrot.slane %v2530_v41, 2  ;;  %v2540_v55 = vrot.slane %v2539_v63, 2  ;;  %v2549_v46 = vrot.slane %v2548_v14, 2  ;;  %v2558_v62 = vrot.slane %v2557_v5, 2 }
 0x1d3   :  { %v2567_v56 = vrot.slane %v2566_v59, 2  ;;  %v2460_v16 = vadd.f32 %v2459_v4, %v2458_v13  ;;  %v2469_v44 = vadd.f32 %v2468_v52, %v2467_v42  ;;  %v2478_v58 = vadd.f32 %v2477_v26, %v2476_v17 }
 0x1d4   :  { %v2576_v2 = vrot.slane %v2575_v33, 2  ;;  %v2487_v7 = vadd.f32 %v2486_v1, %v2485_v19  ;;  %v2496_v51 = vadd.f32 %v2495_v45, %v2494_v54  ;;  %v2585_v18 = vrot.slane %v2584_v53, 2 }
 0x1d5   :  { %v2593_v10 = vadd.f32 %v2592_v15, %v2591_v20  ;;  %v2505_v49 = vadd.f32 %v2504_v36, %v2503_v3  ;;  %v2514_v61 = vadd.f32 %v2513_v34, %v2512_v6  ;;  %v2523_v47 = vadd.f32 %v2522_v40, %v2521_v21 }
 0x1d6   :  { %v2532_v22 = vadd.f32 %v2531_v48, %v2530_v41  ;;  %v2541_v0 = vadd.f32 %v2540_v55, %v2539_v63  ;;  %v2550_v57 = vadd.f32 %v2549_v46, %v2548_v14  ;;  %v2559_v8 = vadd.f32 %v2558_v62, %v2557_v5  ;;  %v9262_v62 = vld [vmem:[%s13437_s0 + $0x10] sm:$0x2] }
 0x1d7   :  { %v2568_v9 = vadd.f32 %v2567_v56, %v2566_v59  ;;  %v2461_v28 = vrot.slane %v2460_v16, 1  ;;  %v2470_v50 = vrot.slane %v2469_v44, 1  ;;  %v2479_v27 = vrot.slane %v2478_v58, 1  ;;  %v9267_v56 = vld [vmem:[%s13437_s0 + $0x14] sm:$0x2] }
 0x1d8   :  { %v2577_v35 = vadd.f32 %v2576_v2, %v2575_v33  ;;  %v2488_v4 = vrot.slane %v2487_v7, 1  ;;  %v2497_v52 = vrot.slane %v2496_v51, 1  ;;  %v2586_v26 = vadd.f32 %v2585_v18, %v2584_v53  ;;  %v9288_v18 = vld [vmem:[%s13437_s0 + $0x50] sm:$0x2] }
 0x1d9   :  { %v2594_v13 = vrot.slane %v2593_v10, 2  ;;  %v2506_v42 = vrot.slane %v2505_v49, 1  ;;  %v2515_v17 = vrot.slane %v2514_v61, 1  ;;  %v2524_v19 = vrot.slane %v2523_v47, 1 }
 0x1da   :  { %v2533_v54 = vrot.slane %v2532_v22, 1  ;;  %v2542_v20 = vrot.slane %v2541_v0, 1  ;;  %v2551_v3 = vrot.slane %v2550_v57, 1  ;;  %v2560_v6 = vrot.slane %v2559_v8, 1 }
 0x1db   :  { %v2569_v21 = vrot.slane %v2568_v9, 1  ;;  %v2462_v41 = vadd.f32 %v2461_v28, %v2460_v16  ;;  %v2471_v63 = vadd.f32 %v2470_v50, %v2469_v44  ;;  %v2480_v14 = vadd.f32 %v2479_v27, %v2478_v58  ;;  %v9272_v16 = vld [vmem:[%s13437_s0 + $0x30] sm:$0x2] }
 0x1dc   :  { %v2578_v5 = vrot.slane %v2577_v35, 1  ;;  %v2489_v59 = vadd.f32 %v2488_v4, %v2487_v7  ;;  %v2498_v1 = vadd.f32 %v2497_v52, %v2496_v51  ;;  %v2587_v45 = vrot.slane %v2586_v26, 1  ;;  %v9283_v51 = vld [vmem:[%s13437_s0 + $0x34] sm:$0x2]  ;;  %v9330_v4 = vld [vmem:[%s13437_s0 + $0xb0] sm:$0x2] }
 0x1dd   :  { %v2595_v33 = vadd.f32 %v2594_v13, %v2593_v10  ;;  %v2507_v15 = vadd.f32 %v2506_v42, %v2505_v49  ;;  %v2516_v36 = vadd.f32 %v2515_v17, %v2514_v61  ;;  %v2525_v53 = vadd.f32 %v2524_v19, %v2523_v47  ;;  %v9335_v52 = vld [vmem:[%s13437_s0 + $0xb4] sm:$0x2] }
 0x1de   :  { %v2534_v34 = vadd.f32 %v2533_v54, %v2532_v22  ;;  %v2543_v40 = vadd.f32 %v2542_v20, %v2541_v0  ;;  %v2552_v48 = vadd.f32 %v2551_v3, %v2550_v57  ;;  %v2561_v55 = vadd.f32 %v2560_v6, %v2559_v8  ;;  %v9297_v22 = vld [vmem:[%s13437_s0 + $0x54] sm:$0x2]  ;;  %v9302_v0 = vld [vmem:[%s13437_s0 + $0x70] sm:$0x2] }
 0x1df   :  { %v2570_v46 = vadd.f32 %v2569_v21, %v2568_v9  ;;  %v2579_v44 = vadd.f32 %v2578_v5, %v2577_v35  ;;  %v9274_v58 = vmul.f32 0.25, %v2462_v41  ;;  %v9276_v2 = vmul.f32 0.25, %v2471_v63  ;;  %v9307_v57 = vld [vmem:[%s13437_s0 + $0x74] sm:$0x2]  ;;  %v9312_v8 = vld [vmem:[%s13437_s0 + $0x90] sm:$0x2] }
 0x1e0   :  { %v9278_v7 = vmul.f32 0.25, %v2480_v14  ;;  %v2588_v10 = vadd.f32 %v2587_v45, %v2586_v26  ;;  %v2596_v49 = vrot.slane %v2595_v33, 1  ;;  %v9290_v61 = vmul.f32 0.25, %v2489_v59  ;;  %v9325_v35 = vld [vmem:[%s13437_s0 + $0x94] sm:$0x2] }
 0x1e1   :  { %13795 = vst [vmem:[#allocation121_spill] sm:$0xff] %v9274_v58  ;;  %13796 = vst [vmem:[#allocation122_spill] sm:$0xff] %v9276_v2  ;;  %v9292_v47 = vmul.f32 0.25, %v2498_v1  ;;  %v9314_v9 = vmul.f32 0.25, %v2507_v15  ;;  %v9316_v28 = vmul.f32 0.25, %v2516_v36  ;;  %v9318_v50 = vmul.f32 0.25, %v2525_v53 }
 0x1e2   :  { %13797 = vst [vmem:[#allocation123_spill] sm:$0xff] %v9278_v7  ;;  %13798 = vst [vmem:[#allocation124_spill] sm:$0xff] %v9290_v61  ;;  %v9320_v27 = vmul.f32 0.25, %v2534_v34  ;;  %v9340_v26 = vld [vmem:[%s13437_s0 + $0xd0] sm:$0x2]  ;;  %v9342_v13 = vmul.f32 0.25, %v2543_v40  ;;  %v2646_v14 = vunpack.c.l.bf16 %v9262_v62  ;;  %v2647_v5 = vunpack.c.l.bf16 %v9267_v56 }
 0x1e3   :  { %13799 = vst [vmem:[#allocation125_spill] sm:$0xff] %v9292_v47  ;;  %13800 = vst [vmem:[#allocation126_spill] sm:$0xff] %v9314_v9  ;;  %v9344_v42 = vmul.f32 0.25, %v2552_v48  ;;  %v9346_v17 = vmul.f32 0.25, %v2561_v55  ;;  %v9348_v19 = vmul.f32 0.25, %v2570_v46  ;;  %v9370_v21 = vmul.f32 0.25, %v2579_v44 }
 0x1e4   :  { %13801 = vst [vmem:[#allocation127_spill] sm:$0xff] %v9316_v28  ;;  %13802 = vst [vmem:[#allocation128_spill] sm:$0xff] %v9318_v50  ;;  %v9353_v54 = vld [vmem:[%s13437_s0 + $0xd4] sm:$0x2]  ;;  %v9358_v20 = vld [vmem:[%s13437_s0 + $0xf0] sm:$0x2]  ;;  %v2648_v59 = vunpack.c.l.bf16 %v9272_v16  ;;  %v2597_v1 = vadd.f32 %v2596_v49, %v2595_v33  ;;  %v2649_v53 = vunpack.c.l.bf16 %v9283_v51  ;;  %v2650_v34 = vunpack.c.l.bf16 %v9288_v18 }
 0x1e5   :  { %13803 = vst [vmem:[#allocation129_spill] sm:$0xff] %v9320_v27  ;;  %13804 = vst [vmem:[#allocation130_spill] sm:$0xff] %v9342_v13  ;;  %v9363_v3 = vld [vmem:[%s13437_s0 + $0xf4] sm:$0x2]  ;;  %v9368_v6 = vld [vmem:[%s13437_s0 + $0x110] sm:$0x2]  ;;  %v2651_v55 = vunpack.c.l.bf16 %v9297_v22  ;;  %v2652_v46 = vunpack.c.l.bf16 %v9302_v0  ;;  %v2653_v62 = vunpack.c.l.bf16 %v9307_v57  ;;  %v2654_v56 = vunpack.c.l.bf16 %v9312_v8 }
 0x1e6   :  { %13805 = vst [vmem:[#allocation131_spill] sm:$0xff] %v9344_v42  ;;  %13806 = vst [vmem:[#allocation132_spill] sm:$0xff] %v9346_v17  ;;  %v9375_v41 = vld [vmem:[%s13437_s0 + $0x114] sm:$0x2]  ;;  %v9380_v63 = vld [vmem:[%s13437_s0 + $0x130] sm:$0x2]  ;;  %v2655_v18 = vunpack.c.l.bf16 %v9325_v35  ;;  %v2657_v49 = vunpack.c.l.bf16 %v9335_v52  ;;  %v2658_v22 = vunpack.c.l.bf16 %v9340_v26  ;;  %v2659_v35 = vunpack.c.l.bf16 %v9353_v54 }
 0x1e7   :  { %13807 = vst [vmem:[#allocation133_spill] sm:$0xff] %v9348_v19  ;;  %13808 = vst [vmem:[#allocation134_spill] sm:$0xff] %v9370_v21  ;;  %v9385_v45 = vmul.f32 0.25, %v2588_v10  ;;  %v9390_v15 = vld [vmem:[%s13437_s0 + $0x134] sm:$0x2]  ;;  %v2656_v10 = vunpack.c.l.bf16 %v9330_v4  ;;  %v2660_v4 = vunpack.c.l.bf16 %v9358_v20  ;;  %v2661_v52 = vunpack.c.l.bf16 %v9363_v3 }
 0x1e8   :  { %v9395_v36 = vld [vmem:[%s13437_s0 + $0x150] sm:$0x2]  ;;  %v6680_v33 = vld [vmem:[%s13437_s0 + $0x154] sm:$0x2]  ;;  %v2662_v26 = vunpack.c.l.bf16 %v9368_v6  ;;  %v2663_v17 = vunpack.c.l.bf16 %v9375_v41  ;;  %v2664_v54 = vunpack.c.l.bf16 %v9380_v63  ;;  %v2665_v20 = vunpack.c.l.bf16 %v9390_v15 }
 0x1e9   :  { %13809 = vst [vmem:[#allocation135_spill] sm:$0xff] %v9385_v45  ;;  %v6681_v40 = vld [vmem:[%s13437_s0 + $0x170] sm:$0x2]  ;;  %v6682_v48 = vld [vmem:[%s13437_s0 + $0x174] sm:$0x2]  ;;  %v9448_v45 = vmul.f32 0.25, %v2597_v1  ;;  %v2666_v3 = vunpack.c.l.bf16 %v9395_v36  ;;  %v2667_v42 = vunpack.c.l.bf16 %v6680_v33 }
 0x1ea   :  { %v6683_v16 = vld [vmem:[%s13437_s0 + $0x190] sm:$0x2]  ;;  %v9418_v44 = vld [vmem:[%s13437_s0 + $0x194] sm:$0x2]  ;;  %v2668_v6 = vunpack.c.l.bf16 %v6681_v40  ;;  %v2669_v1 = vunpack.c.l.bf16 %v6682_v48  ;;  %v2710_v47 = vrot.slane %v2646_v14, 2  ;;  %v2711_v15 = vrot.slane %v2647_v5, 2 }
 0x1eb   :  { %v9423_v51 = vld [vmem:[%s13437_s0 + $0x1b0] sm:$0x2]  ;;  %v9432_v0 = vld [vmem:[%s13437_s0 + $0x1b4] sm:$0x2]  ;;  %13810 = vst [vmem:[#allocation136_spill] sm:$0xff] %v9448_v45  ;;  %v2670_v45 = vunpack.c.l.bf16 %v6683_v16  ;;  %v2671_v13 = vunpack.c.l.bf16 %v9418_v44  ;;  %v2712_v61 = vrot.slane %v2648_v59, 2 }
 0x1ec   :  { %v9437_v57 = vld [vmem:[%s13437_s0 + $0x1d0] sm:$0x2]  ;;  %v9442_v8 = vld [vmem:[%s13437_s0 + $0x1d4] sm:$0x2]  ;;  %v2672_v27 = vunpack.c.l.bf16 %v9423_v51  ;;  %v2673_v50 = vunpack.c.l.bf16 %v9432_v0  ;;  %v2713_v36 = vrot.slane %v2649_v53, 2  ;;  %v2714_v33 = vrot.slane %v2650_v34, 2 }
 0x1ed   :  { %v6689_v21 = vld [vmem:[%s13437_s0 + $0x1f0] sm:$0x2]  ;;  %v6690_v19 = vld [vmem:[%s13437_s0 + $0x1f4] sm:$0x2]  ;;  %v2674_v28 = vunpack.c.l.bf16 %v9437_v57  ;;  %v2675_v41 = vunpack.c.l.bf16 %v9442_v8  ;;  %v2715_v40 = vrot.slane %v2651_v55, 2  ;;  %v2716_v48 = vrot.slane %v2652_v46, 2 }
 0x1ee   :  { %v2676_v9 = vunpack.c.l.bf16 %v6689_v21  ;;  %v2677_v63 = vunpack.c.l.bf16 %v6690_v19  ;;  %v2717_v16 = vrot.slane %v2653_v62, 2  ;;  %v2718_v7 = vrot.slane %v2654_v56, 2 }
 0x1ef   :  { %v2719_v44 = vrot.slane %v2655_v18, 2  ;;  %v2720_v2 = vrot.slane %v2656_v10, 2  ;;  %v2721_v51 = vrot.slane %v2657_v49, 2  ;;  %v2722_v58 = vrot.slane %v2658_v22, 2 }
 0x1f0   :  { %v2723_v0 = vrot.slane %v2659_v35, 2  ;;  %v2724_v25 = vrot.slane %v2660_v4, 2  ;;  %v2725_v57 = vrot.slane %v2661_v52, 2  ;;  %v2726_v43 = vrot.slane %v2662_v26, 2 }
 0x1f1   :  { %v2727_v8 = vrot.slane %v2663_v17, 2  ;;  %v2774_v19 = vsel %vm83_vm0, %v2710_v47, 0.0  ;;  %v2775_v21 = vsel %vm83_vm0, %v2711_v15, 0.0  ;;  %v2728_v14 = vrot.slane %v2664_v54, 2 }
 0x1f2   :  { %v2729_v5 = vrot.slane %v2665_v20, 2  ;;  %v2730_v59 = vrot.slane %v2666_v3, 2  ;;  %v2731_v53 = vrot.slane %v2667_v42, 2  ;;  %v2732_v34 = vrot.slane %v2668_v6, 2 }
 0x1f3   :  { %v2733_v55 = vrot.slane %v2669_v1, 2  ;;  %v2734_v46 = vrot.slane %v2670_v45, 2  ;;  %v2783_v62 = vsel %vm83_vm0, %v2712_v61, 0.0  ;;  %v9468_v56 = vadd.f32 %v2775_v21, %v2774_v19 }
 0x1f4   :  { %v2784_v18 = vsel %vm83_vm0, %v2713_v36, 0.0  ;;  %v2792_v10 = vsel %vm83_vm0, %v2714_v33, 0.0  ;;  %v2793_v17 = vsel %vm83_vm0, %v2715_v40, 0.0  ;;  %v2801_v47 = vsel %vm83_vm0, %v2716_v48, 0.0 }
 0x1f5   :  { %v2802_v49 = vsel %vm83_vm0, %v2717_v16, 0.0  ;;  %v2810_v22 = vsel %vm83_vm0, %v2718_v7, 0.0  ;;  %v2811_v42 = vsel %vm83_vm0, %v2719_v44, 0.0  ;;  %v2735_v35 = vrot.slane %v2671_v13, 2 }
 0x1f6   :  { %v2736_v45 = vrot.slane %v2672_v27, 2  ;;  %v2737_v4 = vrot.slane %v2673_v50, 2  ;;  %v2738_v61 = vrot.slane %v2674_v28, 2  ;;  %v2739_v52 = vrot.slane %v2675_v41, 2 }
 0x1f7   :  { %v2740_v26 = vrot.slane %v2676_v9, 2  ;;  %v2741_v54 = vrot.slane %v2677_v63, 2  ;;  %v2785_v20 = vadd.f32 %v2784_v18, %v2783_v62  ;;  %v2777_v3 = vrot.slane %v9468_v56, 4 }
 0x1f8   :  { %v2794_v6 = vadd.f32 %v2793_v17, %v2792_v10  ;;  %v2803_v1 = vadd.f32 %v2802_v49, %v2801_v47  ;;  %v2812_v15 = vadd.f32 %v2811_v42, %v2810_v22  ;;  %v2819_v36 = vsel %vm83_vm0, %v2720_v2, 0.0 }
 0x1f9   :  { %v2820_v33 = vsel %vm83_vm0, %v2721_v51, 0.0  ;;  %v2828_v7 = vsel %vm83_vm0, %v2722_v58, 0.0  ;;  %v2829_v13 = vsel %vm83_vm0, %v2723_v0, 0.0  ;;  %v2837_v50 = vsel %vm83_vm0, %v2724_v25, 0.0 }
 0x1fa   :  { %v2838_v28 = vsel %vm83_vm0, %v2725_v57, 0.0  ;;  %v2846_v9 = vsel %vm83_vm0, %v2726_v43, 0.0  ;;  %v2847_v27 = vsel %vm83_vm0, %v2727_v8, 0.0  ;;  %v2855_v41 = vsel %vm83_vm0, %v2728_v14, 0.0 }
 0x1fb   :  { %v2856_v63 = vsel %vm83_vm0, %v2729_v5, 0.0  ;;  %v2864_v2 = vsel %vm83_vm0, %v2730_v59, 0.0  ;;  %v2865_v40 = vsel %vm83_vm0, %v2731_v53, 0.0  ;;  %v2873_v58 = vsel %vm83_vm0, %v2732_v34, 0.0 }
 0x1fc   :  { %v2874_v48 = vsel %vm83_vm0, %v2733_v55, 0.0  ;;  %v2882_v25 = vsel %vm83_vm0, %v2734_v46, 0.0  ;;  %v2883_v16 = vsel %vm83_vm0, %v2735_v35, 0.0  ;;  %v2821_v44 = vadd.f32 %v2820_v33, %v2819_v36 }
 0x1fd   :  { %v2830_v43 = vadd.f32 %v2829_v13, %v2828_v7  ;;  %v2891_v51 = vsel %vm83_vm0, %v2736_v45, 0.0  ;;  %v2892_v0 = vsel %vm83_vm0, %v2737_v4, 0.0  ;;  %v2839_v57 = vadd.f32 %v2838_v28, %v2837_v50 }
 0x1fe   :  { %v2848_v8 = vadd.f32 %v2847_v27, %v2846_v9  ;;  %v2900_v19 = vsel %vm83_vm0, %v2738_v61, 0.0  ;;  %v2901_v21 = vsel %vm83_vm0, %v2739_v52, 0.0  ;;  %v2857_v14 = vadd.f32 %v2856_v63, %v2855_v41 }
 0x1ff   :  { %v2866_v5 = vadd.f32 %v2865_v40, %v2864_v2  ;;  %v2875_v59 = vadd.f32 %v2874_v48, %v2873_v58  ;;  %v2884_v53 = vadd.f32 %v2883_v16, %v2882_v25  ;;  %v2786_v34 = vrot.slane %v2785_v20, 4 }
 0x200   :  { %v2795_v55 = vrot.slane %v2794_v6, 4  ;;  %v2804_v46 = vrot.slane %v2803_v1, 4  ;;  %v2893_v62 = vadd.f32 %v2892_v0, %v2891_v51  ;;  %v2813_v18 = vrot.slane %v2812_v15, 4 }
 0x201   :  { %v2822_v10 = vrot.slane %v2821_v44, 4  ;;  %v2831_v17 = vrot.slane %v2830_v43, 4  ;;  %v2902_v47 = vadd.f32 %v2901_v21, %v2900_v19  ;;  %v2840_v49 = vrot.slane %v2839_v57, 4 }
 0x202   :  { %v2849_v22 = vrot.slane %v2848_v8, 4  ;;  %v2909_v42 = vsel %vm83_vm0, %v2740_v26, 0.0  ;;  %v2910_v35 = vsel %vm83_vm0, %v2741_v54, 0.0  ;;  %v2858_v45 = vrot.slane %v2857_v14, 4 }
 0x203   :  { %v2867_v4 = vrot.slane %v2866_v5, 4  ;;  %v2876_v61 = vrot.slane %v2875_v59, 4  ;;  %v2885_v52 = vrot.slane %v2884_v53, 4  ;;  %v2778_v36 = vadd.f32 %v2777_v3, %v9468_v56 }
 0x204   :  { %v2787_v33 = vadd.f32 %v2786_v34, %v2785_v20  ;;  %v2796_v7 = vadd.f32 %v2795_v55, %v2794_v6  ;;  %v2894_v13 = vrot.slane %v2893_v62, 4  ;;  %v2805_v50 = vadd.f32 %v2804_v46, %v2803_v1 }
 0x205   :  { %v2814_v28 = vadd.f32 %v2813_v18, %v2812_v15  ;;  %v2903_v9 = vrot.slane %v2902_v47, 4  ;;  %v2911_v27 = vadd.f32 %v2910_v35, %v2909_v42  ;;  %v2823_v41 = vadd.f32 %v2822_v10, %v2821_v44 }
 0x206   :  { %v2832_v63 = vadd.f32 %v2831_v17, %v2830_v43  ;;  %v2841_v2 = vadd.f32 %v2840_v49, %v2839_v57  ;;  %v2850_v40 = vadd.f32 %v2849_v22, %v2848_v8  ;;  %v2859_v26 = vadd.f32 %v2858_v45, %v2857_v14 }
 0x207   :  { %v2868_v58 = vadd.f32 %v2867_v4, %v2866_v5  ;;  %v2877_v54 = vadd.f32 %v2876_v61, %v2875_v59  ;;  %v2886_v48 = vadd.f32 %v2885_v52, %v2884_v53  ;;  %v2779_v25 = vrot.slane %v2778_v36, 2 }
 0x208   :  { %v2788_v16 = vrot.slane %v2787_v33, 2  ;;  %v2797_v51 = vrot.slane %v2796_v7, 2  ;;  %v2895_v0 = vadd.f32 %v2894_v13, %v2893_v62  ;;  %v2806_v56 = vrot.slane %v2805_v50, 2 }
 0x209   :  { %v2815_v20 = vrot.slane %v2814_v28, 2  ;;  %v2904_v3 = vadd.f32 %v2903_v9, %v2902_v47  ;;  %v2912_v6 = vrot.slane %v2911_v27, 4  ;;  %v2824_v1 = vrot.slane %v2823_v41, 2 }
 0x20a   :  { %v2833_v15 = vrot.slane %v2832_v63, 2  ;;  %v2842_v19 = vrot.slane %v2841_v2, 2  ;;  %v2851_v21 = vrot.slane %v2850_v40, 2  ;;  %v2860_v44 = vrot.slane %v2859_v26, 2 }
 0x20b   :  { %v2869_v43 = vrot.slane %v2868_v58, 2  ;;  %v2878_v57 = vrot.slane %v2877_v54, 2  ;;  %v2887_v8 = vrot.slane %v2886_v48, 2  ;;  %v2780_v14 = vadd.f32 %v2779_v25, %v2778_v36 }
 0x20c   :  { %v2789_v5 = vadd.f32 %v2788_v16, %v2787_v33  ;;  %v2798_v59 = vadd.f32 %v2797_v51, %v2796_v7  ;;  %v2896_v53 = vrot.slane %v2895_v0, 2  ;;  %v2807_v34 = vadd.f32 %v2806_v56, %v2805_v50 }
 0x20d   :  { %v2816_v55 = vadd.f32 %v2815_v20, %v2814_v28  ;;  %v2905_v46 = vrot.slane %v2904_v3, 2  ;;  %v2913_v62 = vadd.f32 %v2912_v6, %v2911_v27  ;;  %v2825_v18 = vadd.f32 %v2824_v1, %v2823_v41 }
 0x20e   :  { %v2834_v10 = vadd.f32 %v2833_v15, %v2832_v63  ;;  %v2843_v17 = vadd.f32 %v2842_v19, %v2841_v2  ;;  %v2852_v47 = vadd.f32 %v2851_v21, %v2850_v40  ;;  %v2861_v49 = vadd.f32 %v2860_v44, %v2859_v26  ;;  %v9504_v44 = vld [vmem:[%s13437_s0 + $0x10] sm:$0x4] }
 0x20f   :  { %v2870_v22 = vadd.f32 %v2869_v43, %v2868_v58  ;;  %v2879_v42 = vadd.f32 %v2878_v57, %v2877_v54  ;;  %v2888_v35 = vadd.f32 %v2887_v8, %v2886_v48  ;;  %v2781_v45 = vrot.slane %v2780_v14, 1  ;;  %v9509_v43 = vld [vmem:[%s13437_s0 + $0x30] sm:$0x4] }
 0x210   :  { %v2790_v4 = vrot.slane %v2789_v5, 1  ;;  %v2799_v61 = vrot.slane %v2798_v59, 1  ;;  %v2897_v52 = vadd.f32 %v2896_v53, %v2895_v0  ;;  %v2808_v36 = vrot.slane %v2807_v34, 1  ;;  %v9525_v53 = vld [vmem:[%s13437_s0 + $0x34] sm:$0x4] }
 0x211   :  { %v2817_v33 = vrot.slane %v2816_v55, 1  ;;  %v2906_v7 = vadd.f32 %v2905_v46, %v2904_v3  ;;  %v2914_v13 = vrot.slane %v2913_v62, 2  ;;  %v2826_v50 = vrot.slane %v2825_v18, 1 }
 0x212   :  { %v2835_v28 = vrot.slane %v2834_v10, 1  ;;  %v2844_v9 = vrot.slane %v2843_v17, 1  ;;  %v2853_v27 = vrot.slane %v2852_v47, 1  ;;  %v2862_v41 = vrot.slane %v2861_v49, 1 }
 0x213   :  { %v2871_v63 = vrot.slane %v2870_v22, 1  ;;  %v2880_v2 = vrot.slane %v2879_v42, 1  ;;  %v2889_v40 = vrot.slane %v2888_v35, 1  ;;  %v2782_v26 = vadd.f32 %v2781_v45, %v2780_v14 }
 0x214   :  { %v2791_v58 = vadd.f32 %v2790_v4, %v2789_v5  ;;  %v2800_v54 = vadd.f32 %v2799_v61, %v2798_v59  ;;  %v2898_v48 = vrot.slane %v2897_v52, 1  ;;  %v2809_v25 = vadd.f32 %v2808_v36, %v2807_v34  ;;  %v9520_v59 = vld [vmem:[%s13437_s0 + $0x14] sm:$0x4]  ;;  %v9530_v34 = vld [vmem:[%s13437_s0 + $0x50] sm:$0x4] }
 0x215   :  { %v2818_v16 = vadd.f32 %v2817_v33, %v2816_v55  ;;  %v2907_v51 = vrot.slane %v2906_v7, 1  ;;  %v2915_v0 = vadd.f32 %v2914_v13, %v2913_v62  ;;  %v2827_v56 = vadd.f32 %v2826_v50, %v2825_v18  ;;  %v9567_v4 = vld [vmem:[%s13437_s0 + $0x94] sm:$0x4]  ;;  %v9572_v61 = vld [vmem:[%s13437_s0 + $0xb0] sm:$0x4] }
 0x216   :  { %v2836_v20 = vadd.f32 %v2835_v28, %v2834_v10  ;;  %v2845_v3 = vadd.f32 %v2844_v9, %v2843_v17  ;;  %v2854_v6 = vadd.f32 %v2853_v27, %v2852_v47  ;;  %v2863_v1 = vadd.f32 %v2862_v41, %v2861_v49  ;;  %v9539_v10 = vld [vmem:[%s13437_s0 + $0x54] sm:$0x4]  ;;  %v9544_v17 = vld [vmem:[%s13437_s0 + $0x70] sm:$0x4] }
 0x217   :  { %v2872_v15 = vadd.f32 %v2871_v63, %v2870_v22  ;;  %v2881_v19 = vadd.f32 %v2880_v2, %v2879_v42  ;;  %v2890_v21 = vadd.f32 %v2889_v40, %v2888_v35  ;;  %v2899_v57 = vadd.f32 %v2898_v48, %v2897_v52  ;;  %v9549_v47 = vld [vmem:[%s13437_s0 + $0x74] sm:$0x4]  ;;  %v9554_v49 = vld [vmem:[%s13437_s0 + $0x90] sm:$0x4] }
 0x218   :  { %v9511_v8 = vmul.f32 0.25, %v2782_v26  ;;  %v9513_v14 = vmul.f32 0.25, %v2791_v58  ;;  %v9515_v5 = vmul.f32 0.25, %v2800_v54  ;;  %v2908_v55 = vadd.f32 %v2907_v51, %v2906_v7  ;;  %v9577_v52 = vld [vmem:[%s13437_s0 + $0xb4] sm:$0x4] }
 0x219   :  { %v2916_v46 = vrot.slane %v2915_v0, 1  ;;  %v9532_v62 = vmul.f32 0.25, %v2809_v25  ;;  %v9534_v18 = vmul.f32 0.25, %v2818_v16  ;;  %v9556_v22 = vmul.f32 0.25, %v2827_v56  ;;  %v9582_v36 = vld [vmem:[%s13437_s0 + $0xd0] sm:$0x4] }
 0x21a   :  { %13811 = vst [vmem:[#allocation137_spill] sm:$0xff] %v9511_v8  ;;  %13812 = vst [vmem:[#allocation138_spill] sm:$0xff] %v9513_v14  ;;  %v9558_v42 = vmul.f32 0.25, %v2836_v20  ;;  %v9560_v35 = vmul.f32 0.25, %v2845_v3  ;;  %v9562_v45 = vmul.f32 0.25, %v2854_v6  ;;  %v9584_v33 = vmul.f32 0.25, %v2863_v1 }
 0x21b   :  { %13813 = vst [vmem:[#allocation139_spill] sm:$0xff] %v9515_v5  ;;  %13814 = vst [vmem:[#allocation140_spill] sm:$0xff] %v9532_v62  ;;  %v9586_v7 = vmul.f32 0.25, %v2872_v15  ;;  %v9588_v13 = vmul.f32 0.25, %v2881_v19  ;;  %v9590_v50 = vmul.f32 0.25, %v2890_v21  ;;  %v9612_v63 = vmul.f32 0.25, %v2899_v57 }
 0x21c   :  { %13815 = vst [vmem:[#allocation141_spill] sm:$0xff] %v9534_v18  ;;  %13816 = vst [vmem:[#allocation142_spill] sm:$0xff] %v9556_v22  ;;  %v9595_v28 = vld [vmem:[%s13437_s0 + $0xd4] sm:$0x4]  ;;  %v9600_v9 = vld [vmem:[%s13437_s0 + $0xf0] sm:$0x4]  ;;  %v2966_v26 = vunpack.c.l.bf16 %v9504_v44  ;;  %v2967_v58 = vunpack.c.l.bf16 %v9520_v59  ;;  %v2968_v54 = vunpack.c.l.bf16 %v9509_v43  ;;  %v2917_v48 = vadd.f32 %v2916_v46, %v2915_v0 }
 0x21d   :  { %13817 = vst [vmem:[#allocation143_spill] sm:$0xff] %v9558_v42  ;;  %13818 = vst [vmem:[#allocation144_spill] sm:$0xff] %v9560_v35  ;;  %v9605_v27 = vld [vmem:[%s13437_s0 + $0xf4] sm:$0x4]  ;;  %v9610_v41 = vld [vmem:[%s13437_s0 + $0x110] sm:$0x4]  ;;  %v2969_v56 = vunpack.c.l.bf16 %v9525_v53  ;;  %v2970_v20 = vunpack.c.l.bf16 %v9530_v34  ;;  %v2971_v1 = vunpack.c.l.bf16 %v9539_v10  ;;  %v2972_v15 = vunpack.c.l.bf16 %v9544_v17 }
 0x21e   :  { %13819 = vst [vmem:[#allocation145_spill] sm:$0xff] %v9562_v45  ;;  %13820 = vst [vmem:[#allocation146_spill] sm:$0xff] %v9584_v33  ;;  %v9617_v2 = vld [vmem:[%s13437_s0 + $0x114] sm:$0x4]  ;;  %v9622_v40 = vld [vmem:[%s13437_s0 + $0x130] sm:$0x4]  ;;  %v2973_v19 = vunpack.c.l.bf16 %v9549_v47  ;;  %v2974_v21 = vunpack.c.l.bf16 %v9554_v49  ;;  %v2975_v59 = vunpack.c.l.bf16 %v9567_v4  ;;  %v2976_v53 = vunpack.c.l.bf16 %v9572_v61 }
 0x21f   :  { %13821 = vst [vmem:[#allocation147_spill] sm:$0xff] %v9586_v7  ;;  %13822 = vst [vmem:[#allocation148_spill] sm:$0xff] %v9588_v13  ;;  %v9627_v25 = vmul.f32 0.25, %v2908_v55  ;;  %v9632_v16 = vld [vmem:[%s13437_s0 + $0x134] sm:$0x4]  ;;  %v2977_v34 = vunpack.c.l.bf16 %v9577_v52  ;;  %v2978_v55 = vunpack.c.l.bf16 %v9582_v36  ;;  %v2979_v47 = vunpack.c.l.bf16 %v9595_v28 }
 0x220   :  { %13823 = vst [vmem:[#allocation149_spill] sm:$0xff] %v9590_v50  ;;  %13824 = vst [vmem:[#allocation150_spill] sm:$0xff] %v9612_v63  ;;  %v9637_v51 = vld [vmem:[%s13437_s0 + $0x150] sm:$0x4]  ;;  %v6712_v0 = vld [vmem:[%s13437_s0 + $0x154] sm:$0x4]  ;;  %v2980_v49 = vunpack.c.l.bf16 %v9600_v9  ;;  %v2981_v4 = vunpack.c.l.bf16 %v9605_v27  ;;  %v2982_v61 = vunpack.c.l.bf16 %v9610_v41  ;;  %v2983_v63 = vunpack.c.l.bf16 %v9617_v2 }
 0x221   :  { %13825 = vst [vmem:[#allocation151_spill] sm:$0xff] %v9627_v25  ;;  %v6713_v3 = vld [vmem:[%s13437_s0 + $0x170] sm:$0x4]  ;;  %v6714_v6 = vld [vmem:[%s13437_s0 + $0x174] sm:$0x4]  ;;  %v9690_v52 = vmul.f32 0.25, %v2917_v48  ;;  %v2984_v28 = vunpack.c.l.bf16 %v9622_v40  ;;  %v2985_v9 = vunpack.c.l.bf16 %v9632_v16  ;;  %v2986_v27 = vunpack.c.l.bf16 %v9637_v51 }
 0x222   :  { %v6715_v44 = vld [vmem:[%s13437_s0 + $0x190] sm:$0x4]  ;;  %v9660_v43 = vld [vmem:[%s13437_s0 + $0x194] sm:$0x4]  ;;  %v2987_v50 = vunpack.c.l.bf16 %v6712_v0  ;;  %v2988_v41 = vunpack.c.l.bf16 %v6713_v3  ;;  %v2989_v48 = vunpack.c.l.bf16 %v6714_v6  ;;  %v3030_v42 = vrot.slane %v2966_v26, 4 }
 0x223   :  { %v9665_v57 = vld [vmem:[%s13437_s0 + $0x1b0] sm:$0x4]  ;;  %v9674_v46 = vld [vmem:[%s13437_s0 + $0x1b4] sm:$0x4]  ;;  %13826 = vst [vmem:[#allocation152_spill] sm:$0xff] %v9690_v52  ;;  %v2990_v52 = vunpack.c.l.bf16 %v6715_v44  ;;  %v2991_v13 = vunpack.c.l.bf16 %v9660_v43  ;;  %v3031_v16 = vrot.slane %v2967_v58, 4 }
 0x224   :  { %v9679_v10 = vld [vmem:[%s13437_s0 + $0x1d0] sm:$0x4]  ;;  %v9684_v17 = vld [vmem:[%s13437_s0 + $0x1d4] sm:$0x4]  ;;  %v2992_v7 = vunpack.c.l.bf16 %v9665_v57  ;;  %v2993_v33 = vunpack.c.l.bf16 %v9674_v46  ;;  %v3032_v22 = vrot.slane %v2968_v54, 4  ;;  %v3033_v51 = vrot.slane %v2969_v56, 4 }
 0x225   :  { %v6721_v36 = vld [vmem:[%s13437_s0 + $0x1f0] sm:$0x4]  ;;  %v6722_v25 = vld [vmem:[%s13437_s0 + $0x1f4] sm:$0x4]  ;;  %v2994_v45 = vunpack.c.l.bf16 %v9679_v10  ;;  %v2995_v2 = vunpack.c.l.bf16 %v9684_v17  ;;  %v3034_v0 = vrot.slane %v2970_v20, 4  ;;  %v3035_v3 = vrot.slane %v2971_v1, 4 }
 0x226   :  { %v2996_v35 = vunpack.c.l.bf16 %v6721_v36  ;;  %v2997_v40 = vunpack.c.l.bf16 %v6722_v25  ;;  %v3036_v6 = vrot.slane %v2972_v15, 4  ;;  %v3037_v44 = vrot.slane %v2973_v19, 4 }
 0x227   :  { %v3038_v18 = vrot.slane %v2974_v21, 4  ;;  %v3039_v43 = vrot.slane %v2975_v59, 4  ;;  %v3040_v62 = vrot.slane %v2976_v53, 4  ;;  %v3041_v57 = vrot.slane %v2977_v34, 4 }
 0x228   :  { %v3042_v5 = vrot.slane %v2978_v55, 4  ;;  %v3043_v46 = vrot.slane %v2979_v47, 4  ;;  %v3044_v14 = vrot.slane %v2980_v49, 4  ;;  %v3045_v10 = vrot.slane %v2981_v4, 4 }
 0x229   :  { %v3046_v8 = vrot.slane %v2982_v61, 4  ;;  %v3047_v17 = vrot.slane %v2983_v63, 4  ;;  %v3094_v25 = vsel %vm83_vm0, %v3030_v42, 0.0  ;;  %v3095_v26 = vsel %vm83_vm0, %v3031_v16, 0.0 }
 0x22a   :  { %v3048_v58 = vrot.slane %v2984_v28, 4  ;;  %v3049_v54 = vrot.slane %v2985_v9, 4  ;;  %v3050_v56 = vrot.slane %v2986_v27, 4  ;;  %v3051_v20 = vrot.slane %v2987_v50, 4 }
 0x22b   :  { %v3052_v1 = vrot.slane %v2988_v41, 4  ;;  %v3053_v15 = vrot.slane %v2989_v48, 4  ;;  %v3054_v19 = vrot.slane %v2990_v52, 4  ;;  %v3103_v21 = vsel %vm83_vm0, %v3032_v22, 0.0 }
 0x22c   :  { %v9710_v59 = vadd.f32 %v3095_v26, %v3094_v25  ;;  %v3104_v53 = vsel %vm83_vm0, %v3033_v51, 0.0  ;;  %v3112_v34 = vsel %vm83_vm0, %v3034_v0, 0.0  ;;  %v3113_v63 = vsel %vm83_vm0, %v3035_v3, 0.0 }
 0x22d   :  { %v3121_v42 = vsel %vm83_vm0, %v3036_v6, 0.0  ;;  %v3122_v55 = vsel %vm83_vm0, %v3037_v44, 0.0  ;;  %v3130_v47 = vsel %vm83_vm0, %v3038_v18, 0.0  ;;  %v3131_v50 = vsel %vm83_vm0, %v3039_v43, 0.0 }
 0x22e   :  { %v3055_v49 = vrot.slane %v2991_v13, 4  ;;  %v3056_v4 = vrot.slane %v2992_v7, 4  ;;  %v3057_v61 = vrot.slane %v2993_v33, 4  ;;  %v3058_v22 = vrot.slane %v2994_v45, 4 }
 0x22f   :  { %v3059_v52 = vrot.slane %v2995_v2, 4  ;;  %v3060_v36 = vrot.slane %v2996_v35, 4  ;;  %v3061_v28 = vrot.slane %v2997_v40, 4  ;;  %v3105_v9 = vadd.f32 %v3104_v53, %v3103_v21 }
 0x230   :  { %v3097_v27 = vrot.slane %v9710_v59, 4  ;;  %v3114_v41 = vadd.f32 %v3113_v63, %v3112_v34  ;;  %v3123_v48 = vadd.f32 %v3122_v55, %v3121_v42  ;;  %v3132_v16 = vadd.f32 %v3131_v50, %v3130_v47 }
 0x231   :  { %v3139_v51 = vsel %vm83_vm0, %v3040_v62, 0.0  ;;  %v3140_v0 = vsel %vm83_vm0, %v3041_v57, 0.0  ;;  %v3148_v18 = vsel %vm83_vm0, %v3042_v5, 0.0  ;;  %v3149_v13 = vsel %vm83_vm0, %v3043_v46, 0.0 }
 0x232   :  { %v3157_v33 = vsel %vm83_vm0, %v3044_v14, 0.0  ;;  %v3158_v45 = vsel %vm83_vm0, %v3045_v10, 0.0  ;;  %v3166_v35 = vsel %vm83_vm0, %v3046_v8, 0.0  ;;  %v3167_v7 = vsel %vm83_vm0, %v3047_v17, 0.0 }
 0x233   :  { %v3175_v2 = vsel %vm83_vm0, %v3048_v58, 0.0  ;;  %v3176_v40 = vsel %vm83_vm0, %v3049_v54, 0.0  ;;  %v3184_v62 = vsel %vm83_vm0, %v3050_v56, 0.0  ;;  %v3185_v3 = vsel %vm83_vm0, %v3051_v20, 0.0 }
 0x234   :  { %v3193_v5 = vsel %vm83_vm0, %v3052_v1, 0.0  ;;  %v3194_v6 = vsel %vm83_vm0, %v3053_v15, 0.0  ;;  %v3202_v14 = vsel %vm83_vm0, %v3054_v19, 0.0  ;;  %v3203_v44 = vsel %vm83_vm0, %v3055_v49, 0.0 }
 0x235   :  { %v3141_v43 = vadd.f32 %v3140_v0, %v3139_v51  ;;  %v3150_v8 = vadd.f32 %v3149_v13, %v3148_v18  ;;  %v3211_v57 = vsel %vm83_vm0, %v3056_v4, 0.0  ;;  %v3212_v46 = vsel %vm83_vm0, %v3057_v61, 0.0 }
 0x236   :  { %v3159_v10 = vadd.f32 %v3158_v45, %v3157_v33  ;;  %v3168_v17 = vadd.f32 %v3167_v7, %v3166_v35  ;;  %v3220_v25 = vsel %vm83_vm0, %v3058_v22, 0.0  ;;  %v3221_v26 = vsel %vm83_vm0, %v3059_v52, 0.0 }
 0x237   :  { %v3177_v58 = vadd.f32 %v3176_v40, %v3175_v2  ;;  %v3186_v54 = vadd.f32 %v3185_v3, %v3184_v62  ;;  %v3195_v56 = vadd.f32 %v3194_v6, %v3193_v5  ;;  %v3204_v20 = vadd.f32 %v3203_v44, %v3202_v14 }
 0x238   :  { %v3106_v1 = vrot.slane %v3105_v9, 4  ;;  %v3115_v15 = vrot.slane %v3114_v41, 4  ;;  %v3124_v19 = vrot.slane %v3123_v48, 4  ;;  %v3213_v21 = vadd.f32 %v3212_v46, %v3211_v57 }
 0x239   :  { %v3133_v53 = vrot.slane %v3132_v16, 4  ;;  %v3142_v34 = vrot.slane %v3141_v43, 4  ;;  %v3151_v63 = vrot.slane %v3150_v8, 4  ;;  %v3222_v42 = vadd.f32 %v3221_v26, %v3220_v25 }
 0x23a   :  { %v3160_v55 = vrot.slane %v3159_v10, 4  ;;  %v3169_v47 = vrot.slane %v3168_v17, 4  ;;  %v3229_v50 = vsel %vm83_vm0, %v3060_v36, 0.0  ;;  %v3230_v49 = vsel %vm83_vm0, %v3061_v28, 0.0 }
 0x23b   :  { %v3178_v4 = vrot.slane %v3177_v58, 4  ;;  %v3187_v61 = vrot.slane %v3186_v54, 4  ;;  %v3196_v22 = vrot.slane %v3195_v56, 4  ;;  %v3205_v52 = vrot.slane %v3204_v20, 4 }
 0x23c   :  { %v3098_v51 = vadd.f32 %v3097_v27, %v9710_v59  ;;  %v3107_v0 = vadd.f32 %v3106_v1, %v3105_v9  ;;  %v3116_v18 = vadd.f32 %v3115_v15, %v3114_v41  ;;  %v3214_v13 = vrot.slane %v3213_v21, 4 }
 0x23d   :  { %v3125_v33 = vadd.f32 %v3124_v19, %v3123_v48  ;;  %v3134_v45 = vadd.f32 %v3133_v53, %v3132_v16  ;;  %v3223_v35 = vrot.slane %v3222_v42, 4  ;;  %v3231_v7 = vadd.f32 %v3230_v49, %v3229_v50 }
 0x23e   :  { %v3143_v2 = vadd.f32 %v3142_v34, %v3141_v43  ;;  %v3152_v40 = vadd.f32 %v3151_v63, %v3150_v8  ;;  %v3161_v62 = vadd.f32 %v3160_v55, %v3159_v10  ;;  %v3170_v3 = vadd.f32 %v3169_v47, %v3168_v17 }
 0x23f   :  { %v3179_v36 = vadd.f32 %v3178_v4, %v3177_v58  ;;  %v3188_v5 = vadd.f32 %v3187_v61, %v3186_v54  ;;  %v3197_v28 = vadd.f32 %v3196_v22, %v3195_v56  ;;  %v3206_v6 = vadd.f32 %v3205_v52, %v3204_v20 }
 0x240   :  { %v3099_v14 = vrot.slane %v3098_v51, 2  ;;  %v3108_v44 = vrot.slane %v3107_v0, 2  ;;  %v3117_v57 = vrot.slane %v3116_v18, 2  ;;  %v3215_v46 = vadd.f32 %v3214_v13, %v3213_v21 }
 0x241   :  { %v3126_v59 = vrot.slane %v3125_v33, 2  ;;  %v3135_v9 = vrot.slane %v3134_v45, 2  ;;  %v3224_v27 = vadd.f32 %v3223_v35, %v3222_v42  ;;  %v3232_v41 = vrot.slane %v3231_v7, 4 }
 0x242   :  { %v3144_v48 = vrot.slane %v3143_v2, 2  ;;  %v3153_v16 = vrot.slane %v3152_v40, 2  ;;  %v3162_v25 = vrot.slane %v3161_v62, 2  ;;  %v3171_v26 = vrot.slane %v3170_v3, 2 }
 0x243   :  { %v3180_v43 = vrot.slane %v3179_v36, 2  ;;  %v3189_v8 = vrot.slane %v3188_v5, 2  ;;  %v3198_v10 = vrot.slane %v3197_v28, 2  ;;  %v3207_v17 = vrot.slane %v3206_v6, 2 }
 0x244   :  { %v3100_v58 = vadd.f32 %v3099_v14, %v3098_v51  ;;  %v3109_v54 = vadd.f32 %v3108_v44, %v3107_v0  ;;  %v3118_v56 = vadd.f32 %v3117_v57, %v3116_v18  ;;  %v3216_v20 = vrot.slane %v3215_v46, 2 }
 0x245   :  { %v3127_v1 = vadd.f32 %v3126_v59, %v3125_v33  ;;  %v3136_v15 = vadd.f32 %v3135_v9, %v3134_v45  ;;  %v3225_v19 = vrot.slane %v3224_v27, 2  ;;  %v3233_v21 = vadd.f32 %v3232_v41, %v3231_v7 }
 0x246   :  { %v3145_v53 = vadd.f32 %v3144_v48, %v3143_v2  ;;  %v3154_v34 = vadd.f32 %v3153_v16, %v3152_v40  ;;  %v3163_v63 = vadd.f32 %v3162_v25, %v3161_v62  ;;  %v3172_v42 = vadd.f32 %v3171_v26, %v3170_v3 }
 0x247   :  { %v3181_v55 = vadd.f32 %v3180_v43, %v3179_v36  ;;  %v3190_v47 = vadd.f32 %v3189_v8, %v3188_v5  ;;  %v3199_v50 = vadd.f32 %v3198_v10, %v3197_v28  ;;  %v3208_v49 = vadd.f32 %v3207_v17, %v3206_v6  ;;  %v9746_v43 = vld [vmem:[%s13437_s0 + $0x10] sm:$0x8]  ;;  %v9751_v8 = vld [vmem:[%s13437_s0 + $0x14] sm:$0x8] }
 0x248   :  { %v3101_v4 = vrot.slane %v3100_v58, 1  ;;  %v3110_v61 = vrot.slane %v3109_v54, 1  ;;  %v3119_v22 = vrot.slane %v3118_v56, 1  ;;  %v3217_v52 = vadd.f32 %v3216_v20, %v3215_v46  ;;  %v9756_v10 = vld [vmem:[%s13437_s0 + $0x30] sm:$0x8] }
 0x249   :  { %v3128_v51 = vrot.slane %v3127_v1, 1  ;;  %v3137_v0 = vrot.slane %v3136_v15, 1  ;;  %v3226_v18 = vadd.f32 %v3225_v19, %v3224_v27  ;;  %v3234_v13 = vrot.slane %v3233_v21, 2  ;;  %v9767_v20 = vld [vmem:[%s13437_s0 + $0x34] sm:$0x8] }
 0x24a   :  { %v3146_v33 = vrot.slane %v3145_v53, 1  ;;  %v3155_v45 = vrot.slane %v3154_v34, 1  ;;  %v3164_v35 = vrot.slane %v3163_v63, 1  ;;  %v3173_v7 = vrot.slane %v3172_v42, 1 }
 0x24b   :  { %v3182_v2 = vrot.slane %v3181_v55, 1  ;;  %v3191_v40 = vrot.slane %v3190_v47, 1  ;;  %v3200_v62 = vrot.slane %v3199_v50, 1  ;;  %v3209_v3 = vrot.slane %v3208_v49, 1 }
 0x24c   :  { %v3102_v36 = vadd.f32 %v3101_v4, %v3100_v58  ;;  %v3111_v5 = vadd.f32 %v3110_v61, %v3109_v54  ;;  %v3120_v28 = vadd.f32 %v3119_v22, %v3118_v56  ;;  %v3218_v6 = vrot.slane %v3217_v52, 1  ;;  %v9809_v61 = vld [vmem:[%s13437_s0 + $0x94] sm:$0x8]  ;;  %v9814_v22 = vld [vmem:[%s13437_s0 + $0xb0] sm:$0x8] }
 0x24d   :  { %v3129_v14 = vadd.f32 %v3128_v51, %v3127_v1  ;;  %v3138_v44 = vadd.f32 %v3137_v0, %v3136_v15  ;;  %v3227_v57 = vrot.slane %v3226_v18, 1  ;;  %v3235_v46 = vadd.f32 %v3234_v13, %v3233_v21  ;;  %v9772_v1 = vld [vmem:[%s13437_s0 + $0x50] sm:$0x8] }
 0x24e   :  { %v3147_v59 = vadd.f32 %v3146_v33, %v3145_v53  ;;  %v3156_v9 = vadd.f32 %v3155_v45, %v3154_v34  ;;  %v3165_v27 = vadd.f32 %v3164_v35, %v3163_v63  ;;  %v3174_v41 = vadd.f32 %v3173_v7, %v3172_v42  ;;  %v9781_v34 = vld [vmem:[%s13437_s0 + $0x54] sm:$0x8]  ;;  %v9786_v63 = vld [vmem:[%s13437_s0 + $0x70] sm:$0x8] }
 0x24f   :  { %v3183_v48 = vadd.f32 %v3182_v2, %v3181_v55  ;;  %v3192_v16 = vadd.f32 %v3191_v40, %v3190_v47  ;;  %v3201_v25 = vadd.f32 %v3200_v62, %v3199_v50  ;;  %v3210_v26 = vadd.f32 %v3209_v3, %v3208_v49  ;;  %v9791_v42 = vld [vmem:[%s13437_s0 + $0x74] sm:$0x8]  ;;  %v9796_v55 = vld [vmem:[%s13437_s0 + $0x90] sm:$0x8] }
 0x250   :  { %v3219_v17 = vadd.f32 %v3218_v6, %v3217_v52  ;;  %v9758_v58 = vmul.f32 0.25, %v3102_v36  ;;  %v9760_v54 = vmul.f32 0.25, %v3111_v5  ;;  %v9762_v56 = vmul.f32 0.25, %v3120_v28  ;;  %v9819_v52 = vld [vmem:[%s13437_s0 + $0xb4] sm:$0x8] }
 0x251   :  { %v3228_v15 = vadd.f32 %v3227_v57, %v3226_v18  ;;  %v3236_v19 = vrot.slane %v3235_v46, 1  ;;  %v9774_v21 = vmul.f32 0.25, %v3129_v14  ;;  %v9776_v53 = vmul.f32 0.25, %v3138_v44  ;;  %v9824_v51 = vld [vmem:[%s13437_s0 + $0xd0] sm:$0x8] }
 0x252   :  { %13827 = vst [vmem:[#allocation153_spill] sm:$0xff] %v9758_v58  ;;  %13828 = vst [vmem:[#allocation154_spill] sm:$0xff] %v9760_v54  ;;  %v9798_v47 = vmul.f32 0.25, %v3147_v59  ;;  %v9800_v50 = vmul.f32 0.25, %v3156_v9  ;;  %v9802_v49 = vmul.f32 0.25, %v3165_v27  ;;  %v9804_v4 = vmul.f32 0.25, %v3174_v41 }
 0x253   :  { %13829 = vst [vmem:[#allocation155_spill] sm:$0xff] %v9762_v56  ;;  %13830 = vst [vmem:[#allocation156_spill] sm:$0xff] %v9774_v21  ;;  %v9826_v0 = vmul.f32 0.25, %v3183_v48  ;;  %v9828_v18 = vmul.f32 0.25, %v3192_v16  ;;  %v9830_v13 = vmul.f32 0.25, %v3201_v25  ;;  %v9832_v33 = vmul.f32 0.25, %v3210_v26 }
 0x254   :  { %13831 = vst [vmem:[#allocation157_spill] sm:$0xff] %v9776_v53  ;;  %13832 = vst [vmem:[#allocation158_spill] sm:$0xff] %v9798_v47  ;;  %v9837_v45 = vld [vmem:[%s13437_s0 + $0xd4] sm:$0x8]  ;;  %v9842_v35 = vld [vmem:[%s13437_s0 + $0xf0] sm:$0x8]  ;;  %v3286_v36 = vunpack.c.l.bf16 %v9746_v43  ;;  %v3287_v5 = vunpack.c.l.bf16 %v9751_v8  ;;  %v3288_v28 = vunpack.c.l.bf16 %v9756_v10  ;;  %v3237_v6 = vadd.f32 %v3236_v19, %v3235_v46 }
 0x255   :  { %13833 = vst [vmem:[#allocation159_spill] sm:$0xff] %v9800_v50  ;;  %13834 = vst [vmem:[#allocation160_spill] sm:$0xff] %v9802_v49  ;;  %v9847_v7 = vld [vmem:[%s13437_s0 + $0xf4] sm:$0x8]  ;;  %v9852_v2 = vld [vmem:[%s13437_s0 + $0x110] sm:$0x8]  ;;  %v3289_v59 = vunpack.c.l.bf16 %v9767_v20  ;;  %v3290_v9 = vunpack.c.l.bf16 %v9772_v1  ;;  %v3291_v48 = vunpack.c.l.bf16 %v9781_v34  ;;  %v3292_v16 = vunpack.c.l.bf16 %v9786_v63 }
 0x256   :  { %13835 = vst [vmem:[#allocation161_spill] sm:$0xff] %v9804_v4  ;;  %13836 = vst [vmem:[#allocation162_spill] sm:$0xff] %v9826_v0  ;;  %v9854_v40 = vmul.f32 0.25, %v3219_v17  ;;  %v9859_v62 = vld [vmem:[%s13437_s0 + $0x114] sm:$0x8]  ;;  %v9869_v14 = vmul.f32 0.25, %v3228_v15  ;;  %v3293_v25 = vunpack.c.l.bf16 %v9791_v42  ;;  %v3294_v26 = vunpack.c.l.bf16 %v9796_v55 }
 0x257   :  { %13837 = vst [vmem:[#allocation163_spill] sm:$0xff] %v9828_v18  ;;  %13838 = vst [vmem:[#allocation164_spill] sm:$0xff] %v9830_v13  ;;  %v9864_v3 = vld [vmem:[%s13437_s0 + $0x130] sm:$0x8]  ;;  %v9874_v44 = vld [vmem:[%s13437_s0 + $0x134] sm:$0x8]  ;;  %v3295_v17 = vunpack.c.l.bf16 %v9809_v61  ;;  %v3296_v20 = vunpack.c.l.bf16 %v9814_v22  ;;  %v3297_v1 = vunpack.c.l.bf16 %v9819_v52  ;;  %v3298_v15 = vunpack.c.l.bf16 %v9824_v51 }
 0x258   :  { %13839 = vst [vmem:[#allocation165_spill] sm:$0xff] %v9832_v33  ;;  %13840 = vst [vmem:[#allocation166_spill] sm:$0xff] %v9854_v40  ;;  %v9879_v57 = vld [vmem:[%s13437_s0 + $0x150] sm:$0x8]  ;;  %v6744_v46 = vld [vmem:[%s13437_s0 + $0x154] sm:$0x8]  ;;  %v3299_v42 = vunpack.c.l.bf16 %v9837_v45  ;;  %v3300_v55 = vunpack.c.l.bf16 %v9842_v35  ;;  %v3301_v61 = vunpack.c.l.bf16 %v9847_v7  ;;  %v3302_v22 = vunpack.c.l.bf16 %v9852_v2 }
 0x259   :  { %13841 = vst [vmem:[#allocation167_spill] sm:$0xff] %v9869_v14  ;;  %v6745_v27 = vld [vmem:[%s13437_s0 + $0x170] sm:$0x8]  ;;  %v6746_v41 = vld [vmem:[%s13437_s0 + $0x174] sm:$0x8]  ;;  %v9932_v52 = vmul.f32 0.25, %v3237_v6  ;;  %v3303_v40 = vunpack.c.l.bf16 %v9859_v62  ;;  %v3304_v45 = vunpack.c.l.bf16 %v9864_v3  ;;  %v3305_v35 = vunpack.c.l.bf16 %v9874_v44 }
 0x25a   :  { %v6747_v43 = vld [vmem:[%s13437_s0 + $0x190] sm:$0x8]  ;;  %v9902_v8 = vld [vmem:[%s13437_s0 + $0x194] sm:$0x8]  ;;  %v3306_v7 = vunpack.c.l.bf16 %v9879_v57  ;;  %v3307_v33 = vunpack.c.l.bf16 %v6744_v46  ;;  %v3308_v2 = vunpack.c.l.bf16 %v6745_v27  ;;  %v3309_v6 = vunpack.c.l.bf16 %v6746_v41 }
 0x25b   :  { %v9907_v10 = vld [vmem:[%s13437_s0 + $0x1b0] sm:$0x8]  ;;  %v9916_v19 = vld [vmem:[%s13437_s0 + $0x1b4] sm:$0x8]  ;;  %13842 = vst [vmem:[#allocation168_spill] sm:$0xff] %v9932_v52  ;;  %v3310_v52 = vunpack.c.l.bf16 %v6747_v43  ;;  %v3311_v13 = vunpack.c.l.bf16 %v9902_v8  ;;  %v3350_v50 = vrot.slane %v3286_v36, 6 }
 0x25c   :  { %v9921_v34 = vld [vmem:[%s13437_s0 + $0x1d0] sm:$0x8]  ;;  %v9926_v63 = vld [vmem:[%s13437_s0 + $0x1d4] sm:$0x8]  ;;  %v3312_v18 = vunpack.c.l.bf16 %v9907_v10  ;;  %v3313_v0 = vunpack.c.l.bf16 %v9916_v19  ;;  %v3351_v44 = vrot.slane %v3287_v5, 6  ;;  %v3352_v47 = vrot.slane %v3288_v28, 6 }
 0x25d   :  { %v6753_v51 = vld [vmem:[%s13437_s0 + $0x1f0] sm:$0x8]  ;;  %v6754_v14 = vld [vmem:[%s13437_s0 + $0x1f4] sm:$0x8]  ;;  %v3314_v4 = vunpack.c.l.bf16 %v9921_v34  ;;  %v3315_v62 = vunpack.c.l.bf16 %v9926_v63  ;;  %v3353_v57 = vrot.slane %v3289_v59, 6  ;;  %v3354_v46 = vrot.slane %v3290_v9, 6 }
 0x25e   :  { %v3316_v49 = vunpack.c.l.bf16 %v6753_v51  ;;  %v3317_v3 = vunpack.c.l.bf16 %v6754_v14  ;;  %v3355_v27 = vrot.slane %v3291_v48, 6  ;;  %v3356_v41 = vrot.slane %v3292_v16, 6 }
 0x25f   :  { %v3357_v43 = vrot.slane %v3293_v25, 6  ;;  %v3358_v53 = vrot.slane %v3294_v26, 6  ;;  %v3359_v8 = vrot.slane %v3295_v17, 6  ;;  %v3360_v21 = vrot.slane %v3296_v20, 6 }
 0x260   :  { %v3361_v10 = vrot.slane %v3297_v1, 6  ;;  %v3362_v56 = vrot.slane %v3298_v15, 6  ;;  %v3363_v19 = vrot.slane %v3299_v42, 6  ;;  %v3364_v54 = vrot.slane %v3300_v55, 6 }
 0x261   :  { %v3365_v34 = vrot.slane %v3301_v61, 6  ;;  %v3366_v58 = vrot.slane %v3302_v22, 6  ;;  %v3367_v63 = vrot.slane %v3303_v40, 6  ;;  %v3414_v14 = vsel %vm83_vm0, %v3350_v50, 0.0 }
 0x262   :  { %v3415_v36 = vsel %vm83_vm0, %v3351_v44, 0.0  ;;  %v3368_v5 = vrot.slane %v3304_v45, 6  ;;  %v3369_v28 = vrot.slane %v3305_v35, 6  ;;  %v3370_v59 = vrot.slane %v3306_v7, 6 }
 0x263   :  { %v3371_v9 = vrot.slane %v3307_v33, 6  ;;  %v3372_v48 = vrot.slane %v3308_v2, 6  ;;  %v3373_v16 = vrot.slane %v3309_v6, 6  ;;  %v3374_v25 = vrot.slane %v3310_v52, 6 }
 0x264   :  { %v3423_v26 = vsel %vm83_vm0, %v3352_v47, 0.0  ;;  %v9952_v17 = vadd.f32 %v3415_v36, %v3414_v14  ;;  %v3424_v20 = vsel %vm83_vm0, %v3353_v57, 0.0  ;;  %v3432_v1 = vsel %vm83_vm0, %v3354_v46, 0.0 }
 0x265   :  { %v3433_v40 = vsel %vm83_vm0, %v3355_v27, 0.0  ;;  %v3441_v50 = vsel %vm83_vm0, %v3356_v41, 0.0  ;;  %v3442_v15 = vsel %vm83_vm0, %v3357_v43, 0.0  ;;  %v3450_v42 = vsel %vm83_vm0, %v3358_v53, 0.0 }
 0x266   :  { %v3451_v33 = vsel %vm83_vm0, %v3359_v8, 0.0  ;;  %v3375_v55 = vrot.slane %v3311_v13, 6  ;;  %v3376_v61 = vrot.slane %v3312_v18, 6  ;;  %v3377_v22 = vrot.slane %v3313_v0, 6 }
 0x267   :  { %v3378_v47 = vrot.slane %v3314_v4, 6  ;;  %v3379_v52 = vrot.slane %v3315_v62, 6  ;;  %v3380_v51 = vrot.slane %v3316_v49, 6  ;;  %v3381_v45 = vrot.slane %v3317_v3, 6 }
 0x268   :  { %v3425_v35 = vadd.f32 %v3424_v20, %v3423_v26  ;;  %v3417_v7 = vrot.slane %v9952_v17, 4  ;;  %v3434_v2 = vadd.f32 %v3433_v40, %v3432_v1  ;;  %v3443_v6 = vadd.f32 %v3442_v15, %v3441_v50 }
 0x269   :  { %v3452_v44 = vadd.f32 %v3451_v33, %v3450_v42  ;;  %v3459_v57 = vsel %vm83_vm0, %v3360_v21, 0.0  ;;  %v3460_v46 = vsel %vm83_vm0, %v3361_v10, 0.0  ;;  %v3468_v53 = vsel %vm83_vm0, %v3362_v56, 0.0 }
 0x26a   :  { %v3469_v13 = vsel %vm83_vm0, %v3363_v19, 0.0  ;;  %v3477_v0 = vsel %vm83_vm0, %v3364_v54, 0.0  ;;  %v3478_v4 = vsel %vm83_vm0, %v3365_v34, 0.0  ;;  %v3486_v49 = vsel %vm83_vm0, %v3366_v58, 0.0 }
 0x26b   :  { %v3487_v18 = vsel %vm83_vm0, %v3367_v63, 0.0  ;;  %v3495_v62 = vsel %vm83_vm0, %v3368_v5, 0.0  ;;  %v3496_v3 = vsel %vm83_vm0, %v3369_v28, 0.0  ;;  %v3504_v21 = vsel %vm83_vm0, %v3370_v59, 0.0 }
 0x26c   :  { %v3505_v27 = vsel %vm83_vm0, %v3371_v9, 0.0  ;;  %v3513_v56 = vsel %vm83_vm0, %v3372_v48, 0.0  ;;  %v3514_v41 = vsel %vm83_vm0, %v3373_v16, 0.0  ;;  %v3522_v54 = vsel %vm83_vm0, %v3374_v25, 0.0 }
 0x26d   :  { %v3523_v43 = vsel %vm83_vm0, %v3375_v55, 0.0  ;;  %v3461_v8 = vadd.f32 %v3460_v46, %v3459_v57  ;;  %v3470_v58 = vadd.f32 %v3469_v13, %v3468_v53  ;;  %v3531_v10 = vsel %vm83_vm0, %v3376_v61, 0.0 }
 0x26e   :  { %v3532_v19 = vsel %vm83_vm0, %v3377_v22, 0.0  ;;  %v3479_v34 = vadd.f32 %v3478_v4, %v3477_v0  ;;  %v3488_v63 = vadd.f32 %v3487_v18, %v3486_v49  ;;  %v3540_v14 = vsel %vm83_vm0, %v3378_v47, 0.0 }
 0x26f   :  { %v3541_v36 = vsel %vm83_vm0, %v3379_v52, 0.0  ;;  %v3497_v5 = vadd.f32 %v3496_v3, %v3495_v62  ;;  %v3506_v28 = vadd.f32 %v3505_v27, %v3504_v21  ;;  %v3515_v59 = vadd.f32 %v3514_v41, %v3513_v56 }
 0x270   :  { %v3524_v9 = vadd.f32 %v3523_v43, %v3522_v54  ;;  %v3426_v48 = vrot.slane %v3425_v35, 4  ;;  %v3435_v16 = vrot.slane %v3434_v2, 4  ;;  %v3444_v25 = vrot.slane %v3443_v6, 4 }
 0x271   :  { %v3533_v26 = vadd.f32 %v3532_v19, %v3531_v10  ;;  %v3453_v20 = vrot.slane %v3452_v44, 4  ;;  %v3462_v1 = vrot.slane %v3461_v8, 4  ;;  %v3471_v40 = vrot.slane %v3470_v58, 4 }
 0x272   :  { %v3542_v50 = vadd.f32 %v3541_v36, %v3540_v14  ;;  %v3480_v15 = vrot.slane %v3479_v34, 4  ;;  %v3489_v42 = vrot.slane %v3488_v63, 4  ;;  %v3549_v33 = vsel %vm83_vm0, %v3380_v51, 0.0 }
 0x273   :  { %v3550_v55 = vsel %vm83_vm0, %v3381_v45, 0.0  ;;  %v3498_v61 = vrot.slane %v3497_v5, 4  ;;  %v3507_v22 = vrot.slane %v3506_v28, 4  ;;  %v3516_v47 = vrot.slane %v3515_v59, 4 }
 0x274   :  { %v3525_v52 = vrot.slane %v3524_v9, 4  ;;  %v3418_v57 = vadd.f32 %v3417_v7, %v9952_v17  ;;  %v3427_v46 = vadd.f32 %v3426_v48, %v3425_v35  ;;  %v3436_v53 = vadd.f32 %v3435_v16, %v3434_v2 }
 0x275   :  { %v3534_v13 = vrot.slane %v3533_v26, 4  ;;  %v3445_v0 = vadd.f32 %v3444_v25, %v3443_v6  ;;  %v3454_v4 = vadd.f32 %v3453_v20, %v3452_v44  ;;  %v3543_v49 = vrot.slane %v3542_v50, 4 }
 0x276   :  { %v3551_v18 = vadd.f32 %v3550_v55, %v3549_v33  ;;  %v3463_v62 = vadd.f32 %v3462_v1, %v3461_v8  ;;  %v3472_v3 = vadd.f32 %v3471_v40, %v3470_v58  ;;  %v3481_v21 = vadd.f32 %v3480_v15, %v3479_v34 }
 0x277   :  { %v3490_v27 = vadd.f32 %v3489_v42, %v3488_v63  ;;  %v3499_v51 = vadd.f32 %v3498_v61, %v3497_v5  ;;  %v3508_v56 = vadd.f32 %v3507_v22, %v3506_v28  ;;  %v3517_v45 = vadd.f32 %v3516_v47, %v3515_v59 }
 0x278   :  { %v3526_v41 = vadd.f32 %v3525_v52, %v3524_v9  ;;  %v3419_v54 = vrot.slane %v3418_v57, 2  ;;  %v3428_v43 = vrot.slane %v3427_v46, 2  ;;  %v3437_v10 = vrot.slane %v3436_v53, 2 }
 0x279   :  { %v3535_v19 = vadd.f32 %v3534_v13, %v3533_v26  ;;  %v3446_v17 = vrot.slane %v3445_v0, 2  ;;  %v3455_v35 = vrot.slane %v3454_v4, 2  ;;  %v3544_v7 = vadd.f32 %v3543_v49, %v3542_v50 }
 0x27a   :  { %v3552_v2 = vrot.slane %v3551_v18, 4  ;;  %v3464_v6 = vrot.slane %v3463_v62, 2  ;;  %v3473_v44 = vrot.slane %v3472_v3, 2  ;;  %v3482_v14 = vrot.slane %v3481_v21, 2 }
 0x27b   :  { %v3491_v36 = vrot.slane %v3490_v27, 2  ;;  %v3500_v8 = vrot.slane %v3499_v51, 2  ;;  %v3509_v58 = vrot.slane %v3508_v56, 2  ;;  %v3518_v34 = vrot.slane %v3517_v45, 2 }
 0x27c   :  { %v3527_v63 = vrot.slane %v3526_v41, 2  ;;  %v3420_v5 = vadd.f32 %v3419_v54, %v3418_v57  ;;  %v3429_v28 = vadd.f32 %v3428_v43, %v3427_v46  ;;  %v3438_v59 = vadd.f32 %v3437_v10, %v3436_v53 }
 0x27d   :  { %v3536_v9 = vrot.slane %v3535_v19, 2  ;;  %v3447_v48 = vadd.f32 %v3446_v17, %v3445_v0  ;;  %v3456_v16 = vadd.f32 %v3455_v35, %v3454_v4  ;;  %v3545_v25 = vrot.slane %v3544_v7, 2 }
 0x27e   :  { %v3553_v26 = vadd.f32 %v3552_v2, %v3551_v18  ;;  %v3465_v20 = vadd.f32 %v3464_v6, %v3463_v62  ;;  %v3474_v1 = vadd.f32 %v3473_v44, %v3472_v3  ;;  %v3483_v40 = vadd.f32 %v3482_v14, %v3481_v21 }
 0x27f   :  { %v3492_v50 = vadd.f32 %v3491_v36, %v3490_v27  ;;  %v3501_v15 = vadd.f32 %v3500_v8, %v3499_v51  ;;  %v3510_v42 = vadd.f32 %v3509_v58, %v3508_v56  ;;  %v3519_v33 = vadd.f32 %v3518_v34, %v3517_v45  ;;  %v9988_v8 = vld [vmem:[%s13437_s0 + $0x18] sm:$0x1] }
 0x280   :  { %v3528_v55 = vadd.f32 %v3527_v63, %v3526_v41  ;;  %v3421_v61 = vrot.slane %v3420_v5, 1  ;;  %v3430_v22 = vrot.slane %v3429_v28, 1  ;;  %v3439_v47 = vrot.slane %v3438_v59, 1  ;;  %v9993_v58 = vld [vmem:[%s13437_s0 + $0x38] sm:$0x1] }
 0x281   :  { %v3537_v52 = vadd.f32 %v3536_v9, %v3535_v19  ;;  %v3448_v57 = vrot.slane %v3447_v48, 1  ;;  %v3457_v46 = vrot.slane %v3456_v16, 1  ;;  %v3546_v53 = vadd.f32 %v3545_v25, %v3544_v7  ;;  %v10007_v9 = vld [vmem:[%s13437_s0 + $0x3c] sm:$0x1] }
 0x282   :  { %v3554_v13 = vrot.slane %v3553_v26, 2  ;;  %v3466_v0 = vrot.slane %v3465_v20, 1  ;;  %v3475_v4 = vrot.slane %v3474_v1, 1  ;;  %v3484_v49 = vrot.slane %v3483_v40, 1 }
 0x283   :  { %v3493_v18 = vrot.slane %v3492_v50, 1  ;;  %v3502_v62 = vrot.slane %v3501_v15, 1  ;;  %v3511_v3 = vrot.slane %v3510_v42, 1  ;;  %v3520_v21 = vrot.slane %v3519_v33, 1 }
 0x284   :  { %v3529_v27 = vrot.slane %v3528_v55, 1  ;;  %v3422_v51 = vadd.f32 %v3421_v61, %v3420_v5  ;;  %v3431_v56 = vadd.f32 %v3430_v22, %v3429_v28  ;;  %v3440_v45 = vadd.f32 %v3439_v47, %v3438_v59  ;;  %v6756_v59 = vld [vmem:[%s13437_s0 + $0x1c] sm:$0x1]  ;;  %v10054_v47 = vld [vmem:[%s13437_s0 + $0xb8] sm:$0x1] }
 0x285   :  { %v3538_v41 = vrot.slane %v3537_v52, 1  ;;  %v3449_v54 = vadd.f32 %v3448_v57, %v3447_v48  ;;  %v3458_v43 = vadd.f32 %v3457_v46, %v3456_v16  ;;  %v3547_v10 = vrot.slane %v3546_v53, 1  ;;  %v10012_v48 = vld [vmem:[%s13437_s0 + $0x58] sm:$0x1]  ;;  %v10049_v22 = vld [vmem:[%s13437_s0 + $0x9c] sm:$0x1] }
 0x286   :  { %v3555_v19 = vadd.f32 %v3554_v13, %v3553_v26  ;;  %v3467_v17 = vadd.f32 %v3466_v0, %v3465_v20  ;;  %v3476_v35 = vadd.f32 %v3475_v4, %v3474_v1  ;;  %v3485_v7 = vadd.f32 %v3484_v49, %v3483_v40  ;;  %v10021_v1 = vld [vmem:[%s13437_s0 + $0x5c] sm:$0x1]  ;;  %v10026_v40 = vld [vmem:[%s13437_s0 + $0x78] sm:$0x1] }
 0x287   :  { %v3494_v2 = vadd.f32 %v3493_v18, %v3492_v50  ;;  %v3503_v6 = vadd.f32 %v3502_v62, %v3501_v15  ;;  %v3512_v44 = vadd.f32 %v3511_v3, %v3510_v42  ;;  %v3521_v14 = vadd.f32 %v3520_v21, %v3519_v33  ;;  %v10031_v50 = vld [vmem:[%s13437_s0 + $0x7c] sm:$0x1]  ;;  %v10036_v15 = vld [vmem:[%s13437_s0 + $0x98] sm:$0x1] }
 0x288   :  { %v3530_v36 = vadd.f32 %v3529_v27, %v3528_v55  ;;  %v3539_v34 = vadd.f32 %v3538_v41, %v3537_v52  ;;  %v9995_v63 = vmul.f32 0.25, %v3422_v51  ;;  %v9997_v5 = vmul.f32 0.25, %v3431_v56  ;;  %v10059_v52 = vld [vmem:[%s13437_s0 + $0xbc] sm:$0x1]  ;;  %v10072_v0 = vld [vmem:[%s13437_s0 + $0xd8] sm:$0x1] }
 0x289   :  { %v9999_v28 = vmul.f32 0.25, %v3440_v45  ;;  %v3548_v16 = vadd.f32 %v3547_v10, %v3546_v53  ;;  %v3556_v25 = vrot.slane %v3555_v19, 1  ;;  %v10014_v26 = vmul.f32 0.25, %v3449_v54  ;;  %v10079_v49 = vld [vmem:[%s13437_s0 + $0xdc] sm:$0x1] }
 0x28a   :  { %13843 = vst [vmem:[#allocation169_spill] sm:$0xff] %v9995_v63  ;;  %13844 = vst [vmem:[#allocation170_spill] sm:$0xff] %v9997_v5  ;;  %v10016_v20 = vmul.f32 0.25, %v3458_v43  ;;  %v10038_v42 = vmul.f32 0.25, %v3467_v17  ;;  %v10040_v33 = vmul.f32 0.25, %v3476_v35  ;;  %v10042_v55 = vmul.f32 0.25, %v3485_v7 }
 0x28b   :  { %13845 = vst [vmem:[#allocation171_spill] sm:$0xff] %v9999_v28  ;;  %13846 = vst [vmem:[#allocation172_spill] sm:$0xff] %v10014_v26  ;;  %v10044_v61 = vmul.f32 0.25, %v3494_v2  ;;  %v10061_v57 = vmul.f32 0.25, %v3503_v6  ;;  %v10063_v46 = vmul.f32 0.25, %v3512_v44  ;;  %v10065_v53 = vmul.f32 0.25, %v3521_v14 }
 0x28c   :  { %13847 = vst [vmem:[#allocation173_spill] sm:$0xff] %v10016_v20  ;;  %13848 = vst [vmem:[#allocation174_spill] sm:$0xff] %v10038_v42  ;;  %v10067_v13 = vmul.f32 0.25, %v3530_v36  ;;  %v10074_v4 = vmul.f32 0.25, %v3539_v34  ;;  %v10084_v18 = vld [vmem:[%s13437_s0 + $0xf8] sm:$0x1]  ;;  %v3607_v62 = vunpack.c.l.bf16 %v9988_v8  ;;  %v3608_v3 = vunpack.c.l.bf16 %v6756_v59 }
 0x28d   :  { %13849 = vst [vmem:[#allocation175_spill] sm:$0xff] %v10040_v33  ;;  %13850 = vst [vmem:[#allocation176_spill] sm:$0xff] %v10042_v55  ;;  %v3609_v21 = vunpack.c.l.bf16 %v9993_v58  ;;  %v3557_v27 = vadd.f32 %v3556_v25, %v3555_v19  ;;  %v10088_v51 = vmul.f32 0.25, %v3548_v16  ;;  %v10093_v56 = vld [vmem:[%s13437_s0 + $0xfc] sm:$0x1]  ;;  %v3610_v41 = vunpack.c.l.bf16 %v10007_v9 }
 0x28e   :  { %13851 = vst [vmem:[#allocation177_spill] sm:$0xff] %v10044_v61  ;;  %13852 = vst [vmem:[#allocation178_spill] sm:$0xff] %v10061_v57  ;;  %v10098_v45 = vld [vmem:[%s13437_s0 + $0x118] sm:$0x1]  ;;  %v3611_v54 = vunpack.c.l.bf16 %v10012_v48  ;;  %v10105_v43 = vld [vmem:[%s13437_s0 + $0x11c] sm:$0x1]  ;;  %v3612_v19 = vunpack.c.l.bf16 %v10021_v1  ;;  %v3613_v17 = vunpack.c.l.bf16 %v10026_v40  ;;  %v3614_v35 = vunpack.c.l.bf16 %v10031_v50 }
 0x28f   :  { %13853 = vst [vmem:[#allocation179_spill] sm:$0xff] %v10063_v46  ;;  %13854 = vst [vmem:[#allocation180_spill] sm:$0xff] %v10065_v53  ;;  %v10110_v10 = vld [vmem:[%s13437_s0 + $0x138] sm:$0x1]  ;;  %v3615_v7 = vunpack.c.l.bf16 %v10036_v15  ;;  %v10119_v2 = vld [vmem:[%s13437_s0 + $0x13c] sm:$0x1]  ;;  %v3616_v14 = vunpack.c.l.bf16 %v10049_v22  ;;  %v3617_v36 = vunpack.c.l.bf16 %v10054_v47  ;;  %v3618_v8 = vunpack.c.l.bf16 %v10059_v52 }
 0x290   :  { %13855 = vst [vmem:[#allocation181_spill] sm:$0xff] %v10067_v13  ;;  %13856 = vst [vmem:[#allocation182_spill] sm:$0xff] %v10074_v4  ;;  %v10124_v6 = vld [vmem:[%s13437_s0 + $0x158] sm:$0x1]  ;;  %v10129_v44 = vld [vmem:[%s13437_s0 + $0x15c] sm:$0x1]  ;;  %v3619_v58 = vunpack.c.l.bf16 %v10072_v0  ;;  %v3620_v48 = vunpack.c.l.bf16 %v10079_v49  ;;  %v3621_v16 = vunpack.c.l.bf16 %v10084_v18  ;;  %v3622_v25 = vunpack.c.l.bf16 %v10093_v56 }
 0x291   :  { %13857 = vst [vmem:[#allocation183_spill] sm:$0xff] %v10088_v51  ;;  %v6777_v34 = vld [vmem:[%s13437_s0 + $0x178] sm:$0x1]  ;;  %v6778_v59 = vld [vmem:[%s13437_s0 + $0x17c] sm:$0x1]  ;;  %v3623_v1 = vunpack.c.l.bf16 %v10098_v45  ;;  %v10148_v40 = vmul.f32 0.25, %v3557_v27  ;;  %v3624_v15 = vunpack.c.l.bf16 %v10105_v43  ;;  %v3625_v18 = vunpack.c.l.bf16 %v10110_v10 }
 0x292   :  { %v6779_v9 = vld [vmem:[%s13437_s0 + $0x198] sm:$0x1]  ;;  %v6780_v50 = vld [vmem:[%s13437_s0 + $0x19c] sm:$0x1]  ;;  %v3639_v22 = vsel %vm83_vm0, %v3607_v62, 0.0  ;;  %v3640_v47 = vsel %vm83_vm0, %v3608_v3, 0.0  ;;  %v3626_v27 = vunpack.c.l.bf16 %v10119_v2  ;;  %v3627_v62 = vunpack.c.l.bf16 %v10124_v6 }
 0x293   :  { %13858 = vst [vmem:[#allocation184_spill] sm:$0xff] %v10148_v40  ;;  %v6781_v52 = vld [vmem:[%s13437_s0 + $0x1b8] sm:$0x1]  ;;  %v6782_v0 = vld [vmem:[%s13437_s0 + $0x1bc] sm:$0x1]  ;;  %v3628_v3 = vunpack.c.l.bf16 %v10129_v44  ;;  %v3629_v43 = vunpack.c.l.bf16 %v6777_v34  ;;  %v3630_v40 = vunpack.c.l.bf16 %v6778_v59  ;;  %v3631_v51 = vunpack.c.l.bf16 %v6779_v9 }
 0x294   :  { %v6783_v49 = vld [vmem:[%s13437_s0 + $0x1d8] sm:$0x1]  ;;  %v6784_v56 = vld [vmem:[%s13437_s0 + $0x1dc] sm:$0x1]  ;;  %v3648_v10 = vsel %vm83_vm0, %v3609_v21, 0.0  ;;  %v10181_v6 = vadd.f32 %v3640_v47, %v3639_v22  ;;  %v3649_v44 = vsel %vm83_vm0, %v3610_v41, 0.0  ;;  %v3632_v9 = vunpack.c.l.bf16 %v6780_v50 }
 0x295   :  { %v10175_v45 = vld [vmem:[%s13437_s0 + $0x1f8] sm:$0x1]  ;;  %v6786_v2 = vld [vmem:[%s13437_s0 + $0x1fc] sm:$0x1]  ;;  %v3657_v4 = vsel %vm83_vm0, %v3611_v54, 0.0  ;;  %v3658_v13 = vsel %vm83_vm0, %v3612_v19, 0.0  ;;  %v3633_v46 = vunpack.c.l.bf16 %v6781_v52  ;;  %v3634_v57 = vunpack.c.l.bf16 %v6782_v0 }
 0x296   :  { %v3666_v53 = vsel %vm83_vm0, %v3613_v17, 0.0  ;;  %v3667_v34 = vsel %vm83_vm0, %v3614_v35, 0.0  ;;  %v3675_v59 = vsel %vm83_vm0, %v3615_v7, 0.0  ;;  %v3676_v21 = vsel %vm83_vm0, %v3616_v14, 0.0 }
 0x297   :  { %v3635_v61 = vunpack.c.l.bf16 %v6783_v49  ;;  %v3636_v22 = vunpack.c.l.bf16 %v6784_v56  ;;  %v3637_v47 = vunpack.c.l.bf16 %v10175_v45  ;;  %v3638_v41 = vunpack.c.l.bf16 %v6786_v2 }
 0x298   :  { %v3650_v55 = vadd.f32 %v3649_v44, %v3648_v10  ;;  %v3642_v54 = vrot.slane %v10181_v6, 4  ;;  %v3659_v19 = vadd.f32 %v3658_v13, %v3657_v4  ;;  %v3668_v33 = vadd.f32 %v3667_v34, %v3666_v53 }
 0x299   :  { %v3677_v17 = vadd.f32 %v3676_v21, %v3675_v59  ;;  %v3684_v35 = vsel %vm83_vm0, %v3617_v36, 0.0  ;;  %v3685_v7 = vsel %vm83_vm0, %v3618_v8, 0.0  ;;  %v3693_v14 = vsel %vm83_vm0, %v3619_v58, 0.0 }
 0x29a   :  { %v3694_v50 = vsel %vm83_vm0, %v3620_v48, 0.0  ;;  %v3702_v52 = vsel %vm83_vm0, %v3621_v16, 0.0  ;;  %v3703_v0 = vsel %vm83_vm0, %v3622_v25, 0.0  ;;  %v3711_v49 = vsel %vm83_vm0, %v3623_v1, 0.0 }
 0x29b   :  { %v3712_v56 = vsel %vm83_vm0, %v3624_v15, 0.0  ;;  %v3720_v13 = vsel %vm83_vm0, %v3625_v18, 0.0  ;;  %v3721_v53 = vsel %vm83_vm0, %v3626_v27, 0.0  ;;  %v3729_v4 = vsel %vm83_vm0, %v3627_v62, 0.0 }
 0x29c   :  { %v3730_v36 = vsel %vm83_vm0, %v3628_v3, 0.0  ;;  %v3738_v8 = vsel %vm83_vm0, %v3629_v43, 0.0  ;;  %v3739_v58 = vsel %vm83_vm0, %v3630_v40, 0.0  ;;  %v3747_v48 = vsel %vm83_vm0, %v3631_v51, 0.0 }
 0x29d   :  { %v3748_v16 = vsel %vm83_vm0, %v3632_v9, 0.0  ;;  %v3686_v25 = vadd.f32 %v3685_v7, %v3684_v35  ;;  %v3695_v1 = vadd.f32 %v3694_v50, %v3693_v14  ;;  %v3756_v15 = vsel %vm83_vm0, %v3633_v46, 0.0 }
 0x29e   :  { %v3757_v18 = vsel %vm83_vm0, %v3634_v57, 0.0  ;;  %v3704_v45 = vadd.f32 %v3703_v0, %v3702_v52  ;;  %v3713_v27 = vadd.f32 %v3712_v56, %v3711_v49  ;;  %v3765_v62 = vsel %vm83_vm0, %v3635_v61, 0.0 }
 0x29f   :  { %v3766_v3 = vsel %vm83_vm0, %v3636_v22, 0.0  ;;  %v3722_v10 = vadd.f32 %v3721_v53, %v3720_v13  ;;  %v3731_v43 = vadd.f32 %v3730_v36, %v3729_v4  ;;  %v3740_v2 = vadd.f32 %v3739_v58, %v3738_v8 }
 0x2a0   :  { %v3749_v40 = vadd.f32 %v3748_v16, %v3747_v48  ;;  %v3651_v44 = vrot.slane %v3650_v55, 4  ;;  %v3660_v51 = vrot.slane %v3659_v19, 4  ;;  %v3669_v34 = vrot.slane %v3668_v33, 4 }
 0x2a1   :  { %v3758_v59 = vadd.f32 %v3757_v18, %v3756_v15  ;;  %v3678_v21 = vrot.slane %v3677_v17, 4  ;;  %v3687_v9 = vrot.slane %v3686_v25, 4  ;;  %v3696_v35 = vrot.slane %v3695_v1, 4 }
 0x2a2   :  { %v3767_v46 = vadd.f32 %v3766_v3, %v3765_v62  ;;  %v3705_v7 = vrot.slane %v3704_v45, 4  ;;  %v3714_v57 = vrot.slane %v3713_v27, 4  ;;  %v3774_v14 = vsel %vm83_vm0, %v3637_v47, 0.0 }
 0x2a3   :  { %v3775_v61 = vsel %vm83_vm0, %v3638_v41, 0.0  ;;  %v3723_v50 = vrot.slane %v3722_v10, 4  ;;  %v3732_v22 = vrot.slane %v3731_v43, 4  ;;  %v3741_v52 = vrot.slane %v3740_v2, 4 }
 0x2a4   :  { %v3750_v0 = vrot.slane %v3749_v40, 4  ;;  %v3643_v49 = vadd.f32 %v3642_v54, %v10181_v6  ;;  %v3652_v56 = vadd.f32 %v3651_v44, %v3650_v55  ;;  %v3661_v13 = vadd.f32 %v3660_v51, %v3659_v19 }
 0x2a5   :  { %v3759_v53 = vrot.slane %v3758_v59, 4  ;;  %v3670_v4 = vadd.f32 %v3669_v34, %v3668_v33  ;;  %v3679_v36 = vadd.f32 %v3678_v21, %v3677_v17  ;;  %v3768_v8 = vrot.slane %v3767_v46, 4 }
 0x2a6   :  { %v3776_v58 = vadd.f32 %v3775_v61, %v3774_v14  ;;  %v3688_v48 = vadd.f32 %v3687_v9, %v3686_v25  ;;  %v3697_v16 = vadd.f32 %v3696_v35, %v3695_v1  ;;  %v3706_v15 = vadd.f32 %v3705_v7, %v3704_v45 }
 0x2a7   :  { %v3715_v18 = vadd.f32 %v3714_v57, %v3713_v27  ;;  %v3724_v47 = vadd.f32 %v3723_v50, %v3722_v10  ;;  %v3733_v62 = vadd.f32 %v3732_v22, %v3731_v43  ;;  %v3742_v41 = vadd.f32 %v3741_v52, %v3740_v2 }
 0x2a8   :  { %v3751_v3 = vadd.f32 %v3750_v0, %v3749_v40  ;;  %v3644_v42 = vrot.slane %v3643_v49, 2  ;;  %v3653_v20 = vrot.slane %v3652_v56, 2  ;;  %v3662_v26 = vrot.slane %v3661_v13, 2 }
 0x2a9   :  { %v3760_v28 = vadd.f32 %v3759_v53, %v3758_v59  ;;  %v3671_v6 = vrot.slane %v3670_v4, 2  ;;  %v3680_v55 = vrot.slane %v3679_v36, 2  ;;  %v3769_v54 = vadd.f32 %v3768_v8, %v3767_v46 }
 0x2aa   :  { %v3777_v19 = vrot.slane %v3776_v58, 4  ;;  %v3689_v33 = vrot.slane %v3688_v48, 2  ;;  %v3698_v17 = vrot.slane %v3697_v16, 2  ;;  %v3707_v44 = vrot.slane %v3706_v15, 2 }
 0x2ab   :  { %v3716_v51 = vrot.slane %v3715_v18, 2  ;;  %v3725_v25 = vrot.slane %v3724_v47, 2  ;;  %v3734_v1 = vrot.slane %v3733_v62, 2  ;;  %v3743_v45 = vrot.slane %v3742_v41, 2 }
 0x2ac   :  { %v3752_v27 = vrot.slane %v3751_v3, 2  ;;  %v3645_v10 = vadd.f32 %v3644_v42, %v3643_v49  ;;  %v3654_v43 = vadd.f32 %v3653_v20, %v3652_v56  ;;  %v3663_v2 = vadd.f32 %v3662_v26, %v3661_v13 }
 0x2ad   :  { %v3761_v40 = vrot.slane %v3760_v28, 2  ;;  %v3672_v34 = vadd.f32 %v3671_v6, %v3670_v4  ;;  %v3681_v21 = vadd.f32 %v3680_v55, %v3679_v36  ;;  %v3770_v9 = vrot.slane %v3769_v54, 2 }
 0x2ae   :  { %v3778_v59 = vadd.f32 %v3777_v19, %v3776_v58  ;;  %v3690_v35 = vadd.f32 %v3689_v33, %v3688_v48  ;;  %v3699_v7 = vadd.f32 %v3698_v17, %v3697_v16  ;;  %v3708_v46 = vadd.f32 %v3707_v44, %v3706_v15 }
 0x2af   :  { %v3717_v57 = vadd.f32 %v3716_v51, %v3715_v18  ;;  %v3726_v14 = vadd.f32 %v3725_v25, %v3724_v47  ;;  %v3735_v61 = vadd.f32 %v3734_v1, %v3733_v62  ;;  %v3744_v50 = vadd.f32 %v3743_v45, %v3742_v41  ;;  %v10218_v45 = vld [vmem:[%s13437_s0 + $0x18] sm:$0x2] }
 0x2b0   :  { %v3753_v22 = vadd.f32 %v3752_v27, %v3751_v3  ;;  %v3646_v52 = vrot.slane %v3645_v10, 1  ;;  %v3655_v0 = vrot.slane %v3654_v43, 1  ;;  %v3664_v53 = vrot.slane %v3663_v2, 1  ;;  %v10223_v27 = vld [vmem:[%s13437_s0 + $0x1c] sm:$0x2] }
 0x2b1   :  { %v3762_v8 = vadd.f32 %v3761_v40, %v3760_v28  ;;  %v3673_v42 = vrot.slane %v3672_v34, 1  ;;  %v3682_v20 = vrot.slane %v3681_v21, 1  ;;  %v3771_v26 = vadd.f32 %v3770_v9, %v3769_v54  ;;  %v10244_v9 = vld [vmem:[%s13437_s0 + $0x58] sm:$0x2] }
 0x2b2   :  { %v3779_v49 = vrot.slane %v3778_v59, 2  ;;  %v3691_v56 = vrot.slane %v3690_v35, 1  ;;  %v3700_v13 = vrot.slane %v3699_v7, 1  ;;  %v3709_v4 = vrot.slane %v3708_v46, 1 }
 0x2b3   :  { %v3718_v36 = vrot.slane %v3717_v57, 1  ;;  %v3727_v58 = vrot.slane %v3726_v14, 1  ;;  %v3736_v48 = vrot.slane %v3735_v61, 1  ;;  %v3745_v16 = vrot.slane %v3744_v50, 1 }
 0x2b4   :  { %v3754_v15 = vrot.slane %v3753_v22, 1  ;;  %v3647_v18 = vadd.f32 %v3646_v52, %v3645_v10  ;;  %v3656_v47 = vadd.f32 %v3655_v0, %v3654_v43  ;;  %v3665_v62 = vadd.f32 %v3664_v53, %v3663_v2  ;;  %v10228_v10 = vld [vmem:[%s13437_s0 + $0x38] sm:$0x2] }
 0x2b5   :  { %v3763_v41 = vrot.slane %v3762_v8, 1  ;;  %v3674_v3 = vadd.f32 %v3673_v42, %v3672_v34  ;;  %v3683_v6 = vadd.f32 %v3682_v20, %v3681_v21  ;;  %v3772_v55 = vrot.slane %v3771_v26, 1  ;;  %v10239_v21 = vld [vmem:[%s13437_s0 + $0x3c] sm:$0x2]  ;;  %v10286_v42 = vld [vmem:[%s13437_s0 + $0xb8] sm:$0x2] }
 0x2b6   :  { %v3780_v28 = vadd.f32 %v3779_v49, %v3778_v59  ;;  %v3692_v19 = vadd.f32 %v3691_v56, %v3690_v35  ;;  %v3701_v33 = vadd.f32 %v3700_v13, %v3699_v7  ;;  %v3710_v54 = vadd.f32 %v3709_v4, %v3708_v46  ;;  %v10291_v20 = vld [vmem:[%s13437_s0 + $0xbc] sm:$0x2] }
 0x2b7   :  { %v3719_v17 = vadd.f32 %v3718_v36, %v3717_v57  ;;  %v3728_v44 = vadd.f32 %v3727_v58, %v3726_v14  ;;  %v3737_v51 = vadd.f32 %v3736_v48, %v3735_v61  ;;  %v3746_v25 = vadd.f32 %v3745_v16, %v3744_v50  ;;  %v10253_v57 = vld [vmem:[%s13437_s0 + $0x5c] sm:$0x2]  ;;  %v10258_v14 = vld [vmem:[%s13437_s0 + $0x78] sm:$0x2] }
 0x2b8   :  { %v3755_v1 = vadd.f32 %v3754_v15, %v3753_v22  ;;  %v3764_v43 = vadd.f32 %v3763_v41, %v3762_v8  ;;  %v10230_v2 = vmul.f32 0.25, %v3647_v18  ;;  %v10232_v40 = vmul.f32 0.25, %v3656_v47  ;;  %v10263_v61 = vld [vmem:[%s13437_s0 + $0x7c] sm:$0x2]  ;;  %v10268_v50 = vld [vmem:[%s13437_s0 + $0x98] sm:$0x2] }
 0x2b9   :  { %v10234_v34 = vmul.f32 0.25, %v3665_v62  ;;  %v3773_v59 = vadd.f32 %v3772_v55, %v3771_v26  ;;  %v3781_v35 = vrot.slane %v3780_v28, 1  ;;  %v10246_v7 = vmul.f32 0.25, %v3674_v3  ;;  %v10281_v8 = vld [vmem:[%s13437_s0 + $0x9c] sm:$0x2] }
 0x2ba   :  { %13859 = vst [vmem:[#allocation185_spill] sm:$0xff] %v10230_v2  ;;  %13860 = vst [vmem:[#allocation186_spill] sm:$0xff] %v10232_v40  ;;  %v10248_v46 = vmul.f32 0.25, %v3683_v6  ;;  %v10270_v22 = vmul.f32 0.25, %v3692_v19  ;;  %v10272_v52 = vmul.f32 0.25, %v3701_v33  ;;  %v10274_v0 = vmul.f32 0.25, %v3710_v54 }
 0x2bb   :  { %13861 = vst [vmem:[#allocation187_spill] sm:$0xff] %v10234_v34  ;;  %13862 = vst [vmem:[#allocation188_spill] sm:$0xff] %v10246_v7  ;;  %v10276_v53 = vmul.f32 0.25, %v3719_v17  ;;  %v10296_v26 = vld [vmem:[%s13437_s0 + $0xd8] sm:$0x2]  ;;  %v10298_v49 = vmul.f32 0.25, %v3728_v44  ;;  %v3831_v62 = vunpack.c.l.bf16 %v10218_v45  ;;  %v3832_v41 = vunpack.c.l.bf16 %v10223_v27 }
 0x2bc   :  { %13863 = vst [vmem:[#allocation189_spill] sm:$0xff] %v10248_v46  ;;  %13864 = vst [vmem:[#allocation190_spill] sm:$0xff] %v10270_v22  ;;  %v10300_v56 = vmul.f32 0.25, %v3737_v51  ;;  %v10302_v13 = vmul.f32 0.25, %v3746_v25  ;;  %v10304_v4 = vmul.f32 0.25, %v3755_v1  ;;  %v10326_v15 = vmul.f32 0.25, %v3764_v43 }
 0x2bd   :  { %13865 = vst [vmem:[#allocation191_spill] sm:$0xff] %v10272_v52  ;;  %13866 = vst [vmem:[#allocation192_spill] sm:$0xff] %v10274_v0  ;;  %v10309_v36 = vld [vmem:[%s13437_s0 + $0xdc] sm:$0x2]  ;;  %v10314_v58 = vld [vmem:[%s13437_s0 + $0xf8] sm:$0x2]  ;;  %v3833_v3 = vunpack.c.l.bf16 %v10228_v10  ;;  %v3782_v6 = vadd.f32 %v3781_v35, %v3780_v28  ;;  %v3834_v54 = vunpack.c.l.bf16 %v10239_v21  ;;  %v3835_v17 = vunpack.c.l.bf16 %v10244_v9 }
 0x2be   :  { %13867 = vst [vmem:[#allocation193_spill] sm:$0xff] %v10276_v53  ;;  %13868 = vst [vmem:[#allocation194_spill] sm:$0xff] %v10298_v49  ;;  %v10319_v48 = vld [vmem:[%s13437_s0 + $0xfc] sm:$0x2]  ;;  %v10324_v16 = vld [vmem:[%s13437_s0 + $0x118] sm:$0x2]  ;;  %v3836_v25 = vunpack.c.l.bf16 %v10253_v57  ;;  %v3837_v1 = vunpack.c.l.bf16 %v10258_v14  ;;  %v3838_v45 = vunpack.c.l.bf16 %v10263_v61  ;;  %v3839_v27 = vunpack.c.l.bf16 %v10268_v50 }
 0x2bf   :  { %13869 = vst [vmem:[#allocation195_spill] sm:$0xff] %v10300_v56  ;;  %13870 = vst [vmem:[#allocation196_spill] sm:$0xff] %v10302_v13  ;;  %v10331_v18 = vld [vmem:[%s13437_s0 + $0x11c] sm:$0x2]  ;;  %v10336_v47 = vld [vmem:[%s13437_s0 + $0x138] sm:$0x2]  ;;  %v3840_v9 = vunpack.c.l.bf16 %v10281_v8  ;;  %v3842_v35 = vunpack.c.l.bf16 %v10291_v20  ;;  %v3843_v57 = vunpack.c.l.bf16 %v10296_v26  ;;  %v3844_v8 = vunpack.c.l.bf16 %v10309_v36 }
 0x2c0   :  { %13871 = vst [vmem:[#allocation197_spill] sm:$0xff] %v10304_v4  ;;  %13872 = vst [vmem:[#allocation198_spill] sm:$0xff] %v10326_v15  ;;  %v10341_v55 = vmul.f32 0.25, %v3773_v59  ;;  %v10346_v19 = vld [vmem:[%s13437_s0 + $0x13c] sm:$0x2]  ;;  %v3841_v59 = vunpack.c.l.bf16 %v10286_v42  ;;  %v3845_v42 = vunpack.c.l.bf16 %v10314_v58  ;;  %v3846_v20 = vunpack.c.l.bf16 %v10319_v48 }
 0x2c1   :  { %v10351_v33 = vld [vmem:[%s13437_s0 + $0x158] sm:$0x2]  ;;  %v6808_v28 = vld [vmem:[%s13437_s0 + $0x15c] sm:$0x2]  ;;  %v3847_v26 = vunpack.c.l.bf16 %v10324_v16  ;;  %v3848_v13 = vunpack.c.l.bf16 %v10331_v18  ;;  %v3849_v36 = vunpack.c.l.bf16 %v10336_v47  ;;  %v3850_v58 = vunpack.c.l.bf16 %v10346_v19 }
 0x2c2   :  { %13873 = vst [vmem:[#allocation199_spill] sm:$0xff] %v10341_v55  ;;  %v6809_v44 = vld [vmem:[%s13437_s0 + $0x178] sm:$0x2]  ;;  %v6810_v51 = vld [vmem:[%s13437_s0 + $0x17c] sm:$0x2]  ;;  %v10404_v55 = vmul.f32 0.25, %v3782_v6  ;;  %v3851_v48 = vunpack.c.l.bf16 %v10351_v33  ;;  %v3852_v56 = vunpack.c.l.bf16 %v6808_v28 }
 0x2c3   :  { %v6811_v10 = vld [vmem:[%s13437_s0 + $0x198] sm:$0x2]  ;;  %v10374_v43 = vld [vmem:[%s13437_s0 + $0x19c] sm:$0x2]  ;;  %v3853_v16 = vunpack.c.l.bf16 %v6809_v44  ;;  %v3854_v6 = vunpack.c.l.bf16 %v6810_v51  ;;  %v3895_v46 = vrot.slane %v3831_v62, 2  ;;  %v3896_v19 = vrot.slane %v3832_v41, 2 }
 0x2c4   :  { %v10379_v21 = vld [vmem:[%s13437_s0 + $0x1b8] sm:$0x2]  ;;  %v10388_v14 = vld [vmem:[%s13437_s0 + $0x1bc] sm:$0x2]  ;;  %13874 = vst [vmem:[#allocation200_spill] sm:$0xff] %v10404_v55  ;;  %v3855_v55 = vunpack.c.l.bf16 %v6811_v10  ;;  %v3856_v49 = vunpack.c.l.bf16 %v10374_v43  ;;  %v3897_v7 = vrot.slane %v3833_v3, 2 }
 0x2c5   :  { %v10393_v61 = vld [vmem:[%s13437_s0 + $0x1d8] sm:$0x2]  ;;  %v10398_v50 = vld [vmem:[%s13437_s0 + $0x1dc] sm:$0x2]  ;;  %v3857_v53 = vunpack.c.l.bf16 %v10379_v21  ;;  %v3858_v0 = vunpack.c.l.bf16 %v10388_v14  ;;  %v3898_v33 = vrot.slane %v3834_v54, 2  ;;  %v3899_v28 = vrot.slane %v3835_v17, 2 }
 0x2c6   :  { %v6817_v15 = vld [vmem:[%s13437_s0 + $0x1f8] sm:$0x2]  ;;  %v6818_v4 = vld [vmem:[%s13437_s0 + $0x1fc] sm:$0x2]  ;;  %v3859_v52 = vunpack.c.l.bf16 %v10393_v61  ;;  %v3860_v18 = vunpack.c.l.bf16 %v10398_v50  ;;  %v3900_v44 = vrot.slane %v3836_v25, 2  ;;  %v3901_v51 = vrot.slane %v3837_v1, 2 }
 0x2c7   :  { %v3861_v22 = vunpack.c.l.bf16 %v6817_v15  ;;  %v3862_v47 = vunpack.c.l.bf16 %v6818_v4  ;;  %v3902_v10 = vrot.slane %v3838_v45, 2  ;;  %v3903_v34 = vrot.slane %v3839_v27, 2 }
 0x2c8   :  { %v3904_v43 = vrot.slane %v3840_v9, 2  ;;  %v3905_v40 = vrot.slane %v3841_v59, 2  ;;  %v3906_v21 = vrot.slane %v3842_v35, 2  ;;  %v3907_v2 = vrot.slane %v3843_v57, 2 }
 0x2c9   :  { %v3908_v14 = vrot.slane %v3844_v8, 2  ;;  %v3909_v5 = vrot.slane %v3845_v42, 2  ;;  %v3910_v61 = vrot.slane %v3846_v20, 2  ;;  %v3911_v63 = vrot.slane %v3847_v26, 2 }
 0x2ca   :  { %v3912_v50 = vrot.slane %v3848_v13, 2  ;;  %v3959_v4 = vsel %vm83_vm0, %v3895_v46, 0.0  ;;  %v3960_v15 = vsel %vm83_vm0, %v3896_v19, 0.0  ;;  %v3913_v62 = vrot.slane %v3849_v36, 2 }
 0x2cb   :  { %v3914_v41 = vrot.slane %v3850_v58, 2  ;;  %v3915_v3 = vrot.slane %v3851_v48, 2  ;;  %v3916_v54 = vrot.slane %v3852_v56, 2  ;;  %v3917_v17 = vrot.slane %v3853_v16, 2 }
 0x2cc   :  { %v3918_v25 = vrot.slane %v3854_v6, 2  ;;  %v3919_v1 = vrot.slane %v3855_v55, 2  ;;  %v3968_v45 = vsel %vm83_vm0, %v3897_v7, 0.0  ;;  %v10424_v27 = vadd.f32 %v3960_v15, %v3959_v4 }
 0x2cd   :  { %v3969_v9 = vsel %vm83_vm0, %v3898_v33, 0.0  ;;  %v3977_v59 = vsel %vm83_vm0, %v3899_v28, 0.0  ;;  %v3978_v13 = vsel %vm83_vm0, %v3900_v44, 0.0  ;;  %v3986_v46 = vsel %vm83_vm0, %v3901_v51, 0.0 }
 0x2ce   :  { %v3987_v35 = vsel %vm83_vm0, %v3902_v10, 0.0  ;;  %v3995_v57 = vsel %vm83_vm0, %v3903_v34, 0.0  ;;  %v3996_v56 = vsel %vm83_vm0, %v3904_v43, 0.0  ;;  %v3920_v8 = vrot.slane %v3856_v49, 2 }
 0x2cf   :  { %v3921_v55 = vrot.slane %v3857_v53, 2  ;;  %v3922_v42 = vrot.slane %v3858_v0, 2  ;;  %v3923_v7 = vrot.slane %v3859_v52, 2  ;;  %v3924_v20 = vrot.slane %v3860_v18, 2 }
 0x2d0   :  { %v3925_v26 = vrot.slane %v3861_v22, 2  ;;  %v3926_v36 = vrot.slane %v3862_v47, 2  ;;  %v3970_v58 = vadd.f32 %v3969_v9, %v3968_v45  ;;  %v3962_v48 = vrot.slane %v10424_v27, 4 }
 0x2d1   :  { %v3979_v16 = vadd.f32 %v3978_v13, %v3977_v59  ;;  %v3988_v6 = vadd.f32 %v3987_v35, %v3986_v46  ;;  %v3997_v19 = vadd.f32 %v3996_v56, %v3995_v57  ;;  %v4004_v33 = vsel %vm83_vm0, %v3905_v40, 0.0 }
 0x2d2   :  { %v4005_v28 = vsel %vm83_vm0, %v3906_v21, 0.0  ;;  %v4013_v34 = vsel %vm83_vm0, %v3907_v2, 0.0  ;;  %v4014_v49 = vsel %vm83_vm0, %v3908_v14, 0.0  ;;  %v4022_v0 = vsel %vm83_vm0, %v3909_v5, 0.0 }
 0x2d3   :  { %v4023_v52 = vsel %vm83_vm0, %v3910_v61, 0.0  ;;  %v4031_v22 = vsel %vm83_vm0, %v3911_v63, 0.0  ;;  %v4032_v53 = vsel %vm83_vm0, %v3912_v50, 0.0  ;;  %v4040_v18 = vsel %vm83_vm0, %v3913_v62, 0.0 }
 0x2d4   :  { %v4041_v47 = vsel %vm83_vm0, %v3914_v41, 0.0  ;;  %v4049_v40 = vsel %vm83_vm0, %v3915_v3, 0.0  ;;  %v4050_v44 = vsel %vm83_vm0, %v3916_v54, 0.0  ;;  %v4058_v2 = vsel %vm83_vm0, %v3917_v17, 0.0 }
 0x2d5   :  { %v4059_v51 = vsel %vm83_vm0, %v3918_v25, 0.0  ;;  %v4067_v5 = vsel %vm83_vm0, %v3919_v1, 0.0  ;;  %v4068_v10 = vsel %vm83_vm0, %v3920_v8, 0.0  ;;  %v4006_v43 = vadd.f32 %v4005_v28, %v4004_v33 }
 0x2d6   :  { %v4015_v63 = vadd.f32 %v4014_v49, %v4013_v34  ;;  %v4076_v21 = vsel %vm83_vm0, %v3921_v55, 0.0  ;;  %v4077_v14 = vsel %vm83_vm0, %v3922_v42, 0.0  ;;  %v4024_v61 = vadd.f32 %v4023_v52, %v4022_v0 }
 0x2d7   :  { %v4033_v50 = vadd.f32 %v4032_v53, %v4031_v22  ;;  %v4085_v4 = vsel %vm83_vm0, %v3923_v7, 0.0  ;;  %v4086_v15 = vsel %vm83_vm0, %v3924_v20, 0.0  ;;  %v4042_v62 = vadd.f32 %v4041_v47, %v4040_v18 }
 0x2d8   :  { %v4051_v41 = vadd.f32 %v4050_v44, %v4049_v40  ;;  %v4060_v3 = vadd.f32 %v4059_v51, %v4058_v2  ;;  %v4069_v54 = vadd.f32 %v4068_v10, %v4067_v5  ;;  %v3971_v17 = vrot.slane %v3970_v58, 4 }
 0x2d9   :  { %v3980_v25 = vrot.slane %v3979_v16, 4  ;;  %v3989_v1 = vrot.slane %v3988_v6, 4  ;;  %v4078_v45 = vadd.f32 %v4077_v14, %v4076_v21  ;;  %v3998_v9 = vrot.slane %v3997_v19, 4 }
 0x2da   :  { %v4007_v59 = vrot.slane %v4006_v43, 4  ;;  %v4016_v13 = vrot.slane %v4015_v63, 4  ;;  %v4087_v46 = vadd.f32 %v4086_v15, %v4085_v4  ;;  %v4025_v35 = vrot.slane %v4024_v61, 4 }
 0x2db   :  { %v4034_v57 = vrot.slane %v4033_v50, 4  ;;  %v4094_v56 = vsel %vm83_vm0, %v3925_v26, 0.0  ;;  %v4095_v8 = vsel %vm83_vm0, %v3926_v36, 0.0  ;;  %v4043_v55 = vrot.slane %v4042_v62, 4 }
 0x2dc   :  { %v4052_v42 = vrot.slane %v4051_v41, 4  ;;  %v4061_v7 = vrot.slane %v4060_v3, 4  ;;  %v4070_v20 = vrot.slane %v4069_v54, 4  ;;  %v3963_v33 = vadd.f32 %v3962_v48, %v10424_v27 }
 0x2dd   :  { %v3972_v28 = vadd.f32 %v3971_v17, %v3970_v58  ;;  %v3981_v34 = vadd.f32 %v3980_v25, %v3979_v16  ;;  %v4079_v49 = vrot.slane %v4078_v45, 4  ;;  %v3990_v0 = vadd.f32 %v3989_v1, %v3988_v6 }
 0x2de   :  { %v3999_v52 = vadd.f32 %v3998_v9, %v3997_v19  ;;  %v4088_v22 = vrot.slane %v4087_v46, 4  ;;  %v4096_v53 = vadd.f32 %v4095_v8, %v4094_v56  ;;  %v4008_v18 = vadd.f32 %v4007_v59, %v4006_v43 }
 0x2df   :  { %v4017_v47 = vadd.f32 %v4016_v13, %v4015_v63  ;;  %v4026_v40 = vadd.f32 %v4025_v35, %v4024_v61  ;;  %v4035_v44 = vadd.f32 %v4034_v57, %v4033_v50  ;;  %v4044_v26 = vadd.f32 %v4043_v55, %v4042_v62 }
 0x2e0   :  { %v4053_v2 = vadd.f32 %v4052_v42, %v4051_v41  ;;  %v4062_v36 = vadd.f32 %v4061_v7, %v4060_v3  ;;  %v4071_v51 = vadd.f32 %v4070_v20, %v4069_v54  ;;  %v3964_v5 = vrot.slane %v3963_v33, 2 }
 0x2e1   :  { %v3973_v10 = vrot.slane %v3972_v28, 2  ;;  %v3982_v21 = vrot.slane %v3981_v34, 2  ;;  %v4080_v14 = vadd.f32 %v4079_v49, %v4078_v45  ;;  %v3991_v27 = vrot.slane %v3990_v0, 2 }
 0x2e2   :  { %v4000_v58 = vrot.slane %v3999_v52, 2  ;;  %v4089_v48 = vadd.f32 %v4088_v22, %v4087_v46  ;;  %v4097_v16 = vrot.slane %v4096_v53, 4  ;;  %v4009_v6 = vrot.slane %v4008_v18, 2 }
 0x2e3   :  { %v4018_v19 = vrot.slane %v4017_v47, 2  ;;  %v4027_v4 = vrot.slane %v4026_v40, 2  ;;  %v4036_v15 = vrot.slane %v4035_v44, 2  ;;  %v4045_v43 = vrot.slane %v4044_v26, 2 }
 0x2e4   :  { %v4054_v63 = vrot.slane %v4053_v2, 2  ;;  %v4063_v61 = vrot.slane %v4062_v36, 2  ;;  %v4072_v50 = vrot.slane %v4071_v51, 2  ;;  %v3965_v62 = vadd.f32 %v3964_v5, %v3963_v33 }
 0x2e5   :  { %v3974_v41 = vadd.f32 %v3973_v10, %v3972_v28  ;;  %v3983_v3 = vadd.f32 %v3982_v21, %v3981_v34  ;;  %v4081_v54 = vrot.slane %v4080_v14, 2  ;;  %v3992_v17 = vadd.f32 %v3991_v27, %v3990_v0 }
 0x2e6   :  { %v4001_v25 = vadd.f32 %v4000_v58, %v3999_v52  ;;  %v4090_v1 = vrot.slane %v4089_v48, 2  ;;  %v4098_v45 = vadd.f32 %v4097_v16, %v4096_v53  ;;  %v4010_v9 = vadd.f32 %v4009_v6, %v4008_v18 }
 0x2e7   :  { %v4019_v59 = vadd.f32 %v4018_v19, %v4017_v47  ;;  %v4028_v13 = vadd.f32 %v4027_v4, %v4026_v40  ;;  %v4037_v46 = vadd.f32 %v4036_v15, %v4035_v44  ;;  %v4046_v35 = vadd.f32 %v4045_v43, %v4044_v26  ;;  %v10460_v43 = vld [vmem:[%s13437_s0 + $0x18] sm:$0x4] }
 0x2e8   :  { %v4055_v57 = vadd.f32 %v4054_v63, %v4053_v2  ;;  %v4064_v56 = vadd.f32 %v4063_v61, %v4062_v36  ;;  %v4073_v8 = vadd.f32 %v4072_v50, %v4071_v51  ;;  %v3966_v55 = vrot.slane %v3965_v62, 1  ;;  %v10465_v63 = vld [vmem:[%s13437_s0 + $0x38] sm:$0x4] }
 0x2e9   :  { %v3975_v42 = vrot.slane %v3974_v41, 1  ;;  %v3984_v7 = vrot.slane %v3983_v3, 1  ;;  %v4082_v20 = vadd.f32 %v4081_v54, %v4080_v14  ;;  %v3993_v33 = vrot.slane %v3992_v17, 1  ;;  %v10481_v54 = vld [vmem:[%s13437_s0 + $0x3c] sm:$0x4] }
 0x2ea   :  { %v4002_v28 = vrot.slane %v4001_v25, 1  ;;  %v4091_v34 = vadd.f32 %v4090_v1, %v4089_v48  ;;  %v4099_v49 = vrot.slane %v4098_v45, 2  ;;  %v4011_v0 = vrot.slane %v4010_v9, 1 }
 0x2eb   :  { %v4020_v52 = vrot.slane %v4019_v59, 1  ;;  %v4029_v22 = vrot.slane %v4028_v13, 1  ;;  %v4038_v53 = vrot.slane %v4037_v46, 1  ;;  %v4047_v18 = vrot.slane %v4046_v35, 1 }
 0x2ec   :  { %v4056_v47 = vrot.slane %v4055_v57, 1  ;;  %v4065_v40 = vrot.slane %v4064_v56, 1  ;;  %v4074_v44 = vrot.slane %v4073_v8, 1  ;;  %v3967_v26 = vadd.f32 %v3966_v55, %v3965_v62 }
 0x2ed   :  { %v3976_v2 = vadd.f32 %v3975_v42, %v3974_v41  ;;  %v3985_v36 = vadd.f32 %v3984_v7, %v3983_v3  ;;  %v4083_v51 = vrot.slane %v4082_v20, 1  ;;  %v3994_v5 = vadd.f32 %v3993_v33, %v3992_v17  ;;  %v10476_v3 = vld [vmem:[%s13437_s0 + $0x1c] sm:$0x4]  ;;  %v10486_v17 = vld [vmem:[%s13437_s0 + $0x58] sm:$0x4] }
 0x2ee   :  { %v4003_v10 = vadd.f32 %v4002_v28, %v4001_v25  ;;  %v4092_v21 = vrot.slane %v4091_v34, 1  ;;  %v4100_v14 = vadd.f32 %v4099_v49, %v4098_v45  ;;  %v4012_v27 = vadd.f32 %v4011_v0, %v4010_v9  ;;  %v10523_v42 = vld [vmem:[%s13437_s0 + $0x9c] sm:$0x4]  ;;  %v10528_v7 = vld [vmem:[%s13437_s0 + $0xb8] sm:$0x4] }
 0x2ef   :  { %v4021_v58 = vadd.f32 %v4020_v52, %v4019_v59  ;;  %v4030_v48 = vadd.f32 %v4029_v22, %v4028_v13  ;;  %v4039_v16 = vadd.f32 %v4038_v53, %v4037_v46  ;;  %v4048_v6 = vadd.f32 %v4047_v18, %v4046_v35  ;;  %v10495_v59 = vld [vmem:[%s13437_s0 + $0x5c] sm:$0x4]  ;;  %v10500_v13 = vld [vmem:[%s13437_s0 + $0x78] sm:$0x4] }
 0x2f0   :  { %v4057_v19 = vadd.f32 %v4056_v47, %v4055_v57  ;;  %v4066_v4 = vadd.f32 %v4065_v40, %v4064_v56  ;;  %v4075_v15 = vadd.f32 %v4074_v44, %v4073_v8  ;;  %v4084_v61 = vadd.f32 %v4083_v51, %v4082_v20  ;;  %v10505_v46 = vld [vmem:[%s13437_s0 + $0x7c] sm:$0x4]  ;;  %v10510_v35 = vld [vmem:[%s13437_s0 + $0x98] sm:$0x4] }
 0x2f1   :  { %v10467_v50 = vmul.f32 0.25, %v3967_v26  ;;  %v10469_v62 = vmul.f32 0.25, %v3976_v2  ;;  %v10471_v41 = vmul.f32 0.25, %v3985_v36  ;;  %v4093_v25 = vadd.f32 %v4092_v21, %v4091_v34  ;;  %v10533_v20 = vld [vmem:[%s13437_s0 + $0xbc] sm:$0x4] }
 0x2f2   :  { %v4101_v1 = vrot.slane %v4100_v14, 1  ;;  %v10488_v45 = vmul.f32 0.25, %v3994_v5  ;;  %v10490_v9 = vmul.f32 0.25, %v4003_v10  ;;  %v10512_v57 = vmul.f32 0.25, %v4012_v27  ;;  %v10538_v33 = vld [vmem:[%s13437_s0 + $0xd8] sm:$0x4] }
 0x2f3   :  { %13875 = vst [vmem:[#allocation201_spill] sm:$0xff] %v10467_v50  ;;  %13876 = vst [vmem:[#allocation202_spill] sm:$0xff] %v10469_v62  ;;  %v10514_v56 = vmul.f32 0.25, %v4021_v58  ;;  %v10516_v8 = vmul.f32 0.25, %v4030_v48  ;;  %v10518_v55 = vmul.f32 0.25, %v4039_v16  ;;  %v10540_v28 = vmul.f32 0.25, %v4048_v6 }
 0x2f4   :  { %13877 = vst [vmem:[#allocation203_spill] sm:$0xff] %v10471_v41  ;;  %13878 = vst [vmem:[#allocation204_spill] sm:$0xff] %v10488_v45  ;;  %v10542_v34 = vmul.f32 0.25, %v4057_v19  ;;  %v10544_v49 = vmul.f32 0.25, %v4066_v4  ;;  %v10546_v0 = vmul.f32 0.25, %v4075_v15  ;;  %v10568_v47 = vmul.f32 0.25, %v4084_v61 }
 0x2f5   :  { %13879 = vst [vmem:[#allocation205_spill] sm:$0xff] %v10490_v9  ;;  %13880 = vst [vmem:[#allocation206_spill] sm:$0xff] %v10512_v57  ;;  %v10551_v52 = vld [vmem:[%s13437_s0 + $0xdc] sm:$0x4]  ;;  %v10556_v22 = vld [vmem:[%s13437_s0 + $0xf8] sm:$0x4]  ;;  %v4151_v26 = vunpack.c.l.bf16 %v10460_v43  ;;  %v4152_v2 = vunpack.c.l.bf16 %v10476_v3  ;;  %v4153_v36 = vunpack.c.l.bf16 %v10465_v63  ;;  %v4102_v51 = vadd.f32 %v4101_v1, %v4100_v14 }
 0x2f6   :  { %13881 = vst [vmem:[#allocation207_spill] sm:$0xff] %v10514_v56  ;;  %13882 = vst [vmem:[#allocation208_spill] sm:$0xff] %v10516_v8  ;;  %v10561_v53 = vld [vmem:[%s13437_s0 + $0xfc] sm:$0x4]  ;;  %v10566_v18 = vld [vmem:[%s13437_s0 + $0x118] sm:$0x4]  ;;  %v4154_v27 = vunpack.c.l.bf16 %v10481_v54  ;;  %v4155_v58 = vunpack.c.l.bf16 %v10486_v17  ;;  %v4156_v6 = vunpack.c.l.bf16 %v10495_v59  ;;  %v4157_v19 = vunpack.c.l.bf16 %v10500_v13 }
 0x2f7   :  { %13883 = vst [vmem:[#allocation209_spill] sm:$0xff] %v10518_v55  ;;  %13884 = vst [vmem:[#allocation210_spill] sm:$0xff] %v10540_v28  ;;  %v10573_v40 = vld [vmem:[%s13437_s0 + $0x11c] sm:$0x4]  ;;  %v10578_v44 = vld [vmem:[%s13437_s0 + $0x138] sm:$0x4]  ;;  %v4158_v4 = vunpack.c.l.bf16 %v10505_v46  ;;  %v4159_v15 = vunpack.c.l.bf16 %v10510_v35  ;;  %v4160_v3 = vunpack.c.l.bf16 %v10523_v42  ;;  %v4161_v54 = vunpack.c.l.bf16 %v10528_v7 }
 0x2f8   :  { %13885 = vst [vmem:[#allocation211_spill] sm:$0xff] %v10542_v34  ;;  %13886 = vst [vmem:[#allocation212_spill] sm:$0xff] %v10544_v49  ;;  %v10583_v5 = vmul.f32 0.25, %v4093_v25  ;;  %v10588_v10 = vld [vmem:[%s13437_s0 + $0x13c] sm:$0x4]  ;;  %v4162_v17 = vunpack.c.l.bf16 %v10533_v20  ;;  %v4163_v25 = vunpack.c.l.bf16 %v10538_v33  ;;  %v4164_v46 = vunpack.c.l.bf16 %v10551_v52 }
 0x2f9   :  { %13887 = vst [vmem:[#allocation213_spill] sm:$0xff] %v10546_v0  ;;  %13888 = vst [vmem:[#allocation214_spill] sm:$0xff] %v10568_v47  ;;  %v10593_v21 = vld [vmem:[%s13437_s0 + $0x158] sm:$0x4]  ;;  %v6840_v14 = vld [vmem:[%s13437_s0 + $0x15c] sm:$0x4]  ;;  %v4165_v35 = vunpack.c.l.bf16 %v10556_v22  ;;  %v4166_v42 = vunpack.c.l.bf16 %v10561_v53  ;;  %v4167_v7 = vunpack.c.l.bf16 %v10566_v18  ;;  %v4168_v47 = vunpack.c.l.bf16 %v10573_v40 }
 0x2fa   :  { %13889 = vst [vmem:[#allocation215_spill] sm:$0xff] %v10583_v5  ;;  %v6841_v48 = vld [vmem:[%s13437_s0 + $0x178] sm:$0x4]  ;;  %v6842_v16 = vld [vmem:[%s13437_s0 + $0x17c] sm:$0x4]  ;;  %v10646_v20 = vmul.f32 0.25, %v4102_v51  ;;  %v4169_v52 = vunpack.c.l.bf16 %v10578_v44  ;;  %v4170_v22 = vunpack.c.l.bf16 %v10588_v10  ;;  %v4171_v53 = vunpack.c.l.bf16 %v10593_v21 }
 0x2fb   :  { %v6843_v43 = vld [vmem:[%s13437_s0 + $0x198] sm:$0x4]  ;;  %v10616_v63 = vld [vmem:[%s13437_s0 + $0x19c] sm:$0x4]  ;;  %v4172_v0 = vunpack.c.l.bf16 %v6840_v14  ;;  %v4173_v18 = vunpack.c.l.bf16 %v6841_v48  ;;  %v4174_v51 = vunpack.c.l.bf16 %v6842_v16  ;;  %v4215_v56 = vrot.slane %v4151_v26, 4 }
 0x2fc   :  { %v10621_v61 = vld [vmem:[%s13437_s0 + $0x1b8] sm:$0x4]  ;;  %v10630_v1 = vld [vmem:[%s13437_s0 + $0x1bc] sm:$0x4]  ;;  %13890 = vst [vmem:[#allocation216_spill] sm:$0xff] %v10646_v20  ;;  %v4175_v20 = vunpack.c.l.bf16 %v6843_v43  ;;  %v4176_v49 = vunpack.c.l.bf16 %v10616_v63  ;;  %v4216_v10 = vrot.slane %v4152_v2, 4 }
 0x2fd   :  { %v10635_v59 = vld [vmem:[%s13437_s0 + $0x1d8] sm:$0x4]  ;;  %v10640_v13 = vld [vmem:[%s13437_s0 + $0x1dc] sm:$0x4]  ;;  %v4177_v34 = vunpack.c.l.bf16 %v10621_v61  ;;  %v4178_v28 = vunpack.c.l.bf16 %v10630_v1  ;;  %v4217_v57 = vrot.slane %v4153_v36, 4  ;;  %v4218_v21 = vrot.slane %v4154_v27, 4 }
 0x2fe   :  { %v6849_v33 = vld [vmem:[%s13437_s0 + $0x1f8] sm:$0x4]  ;;  %v6850_v5 = vld [vmem:[%s13437_s0 + $0x1fc] sm:$0x4]  ;;  %v4179_v55 = vunpack.c.l.bf16 %v10635_v59  ;;  %v4180_v40 = vunpack.c.l.bf16 %v10640_v13  ;;  %v4219_v14 = vrot.slane %v4155_v58, 4  ;;  %v4220_v48 = vrot.slane %v4156_v6, 4 }
 0x2ff   :  { %v4181_v8 = vunpack.c.l.bf16 %v6849_v33  ;;  %v4182_v44 = vunpack.c.l.bf16 %v6850_v5  ;;  %v4221_v16 = vrot.slane %v4157_v19, 4  ;;  %v4222_v43 = vrot.slane %v4158_v4, 4 }
 0x300   :  { %v4223_v9 = vrot.slane %v4159_v15, 4  ;;  %v4224_v63 = vrot.slane %v4160_v3, 4  ;;  %v4225_v45 = vrot.slane %v4161_v54, 4  ;;  %v4226_v61 = vrot.slane %v4162_v17, 4 }
 0x301   :  { %v4227_v41 = vrot.slane %v4163_v25, 4  ;;  %v4228_v1 = vrot.slane %v4164_v46, 4  ;;  %v4229_v62 = vrot.slane %v4165_v35, 4  ;;  %v4230_v59 = vrot.slane %v4166_v42, 4 }
 0x302   :  { %v4231_v50 = vrot.slane %v4167_v7, 4  ;;  %v4232_v13 = vrot.slane %v4168_v47, 4  ;;  %v4279_v5 = vsel %vm83_vm0, %v4215_v56, 0.0  ;;  %v4280_v26 = vsel %vm83_vm0, %v4216_v10, 0.0 }
 0x303   :  { %v4233_v2 = vrot.slane %v4169_v52, 4  ;;  %v4234_v36 = vrot.slane %v4170_v22, 4  ;;  %v4235_v27 = vrot.slane %v4171_v53, 4  ;;  %v4236_v58 = vrot.slane %v4172_v0, 4 }
 0x304   :  { %v4237_v6 = vrot.slane %v4173_v18, 4  ;;  %v4238_v19 = vrot.slane %v4174_v51, 4  ;;  %v4239_v4 = vrot.slane %v4175_v20, 4  ;;  %v4288_v15 = vsel %vm83_vm0, %v4217_v57, 0.0 }
 0x305   :  { %v10666_v3 = vadd.f32 %v4280_v26, %v4279_v5  ;;  %v4289_v54 = vsel %vm83_vm0, %v4218_v21, 0.0  ;;  %v4297_v17 = vsel %vm83_vm0, %v4219_v14, 0.0  ;;  %v4298_v47 = vsel %vm83_vm0, %v4220_v48, 0.0 }
 0x306   :  { %v4306_v56 = vsel %vm83_vm0, %v4221_v16, 0.0  ;;  %v4307_v25 = vsel %vm83_vm0, %v4222_v43, 0.0  ;;  %v4315_v46 = vsel %vm83_vm0, %v4223_v9, 0.0  ;;  %v4316_v0 = vsel %vm83_vm0, %v4224_v63, 0.0 }
 0x307   :  { %v4240_v35 = vrot.slane %v4176_v49, 4  ;;  %v4241_v42 = vrot.slane %v4177_v34, 4  ;;  %v4242_v7 = vrot.slane %v4178_v28, 4  ;;  %v4243_v57 = vrot.slane %v4179_v55, 4 }
 0x308   :  { %v4244_v20 = vrot.slane %v4180_v40, 4  ;;  %v4245_v33 = vrot.slane %v4181_v8, 4  ;;  %v4246_v52 = vrot.slane %v4182_v44, 4  ;;  %v4290_v22 = vadd.f32 %v4289_v54, %v4288_v15 }
 0x309   :  { %v4282_v53 = vrot.slane %v10666_v3, 4  ;;  %v4299_v18 = vadd.f32 %v4298_v47, %v4297_v17  ;;  %v4308_v51 = vadd.f32 %v4307_v25, %v4306_v56  ;;  %v4317_v10 = vadd.f32 %v4316_v0, %v4315_v46 }
 0x30a   :  { %v4324_v21 = vsel %vm83_vm0, %v4225_v45, 0.0  ;;  %v4325_v14 = vsel %vm83_vm0, %v4226_v61, 0.0  ;;  %v4333_v9 = vsel %vm83_vm0, %v4227_v41, 0.0  ;;  %v4334_v49 = vsel %vm83_vm0, %v4228_v1, 0.0 }
 0x30b   :  { %v4342_v28 = vsel %vm83_vm0, %v4229_v62, 0.0  ;;  %v4343_v55 = vsel %vm83_vm0, %v4230_v59, 0.0  ;;  %v4351_v8 = vsel %vm83_vm0, %v4231_v50, 0.0  ;;  %v4352_v34 = vsel %vm83_vm0, %v4232_v13, 0.0 }
 0x30c   :  { %v4360_v40 = vsel %vm83_vm0, %v4233_v2, 0.0  ;;  %v4361_v44 = vsel %vm83_vm0, %v4234_v36, 0.0  ;;  %v4369_v45 = vsel %vm83_vm0, %v4235_v27, 0.0  ;;  %v4370_v48 = vsel %vm83_vm0, %v4236_v58, 0.0 }
 0x30d   :  { %v4378_v41 = vsel %vm83_vm0, %v4237_v6, 0.0  ;;  %v4379_v16 = vsel %vm83_vm0, %v4238_v19, 0.0  ;;  %v4387_v62 = vsel %vm83_vm0, %v4239_v4, 0.0  ;;  %v4388_v43 = vsel %vm83_vm0, %v4240_v35, 0.0 }
 0x30e   :  { %v4326_v63 = vadd.f32 %v4325_v14, %v4324_v21  ;;  %v4335_v50 = vadd.f32 %v4334_v49, %v4333_v9  ;;  %v4396_v61 = vsel %vm83_vm0, %v4241_v42, 0.0  ;;  %v4397_v1 = vsel %vm83_vm0, %v4242_v7, 0.0 }
 0x30f   :  { %v4344_v59 = vadd.f32 %v4343_v55, %v4342_v28  ;;  %v4353_v13 = vadd.f32 %v4352_v34, %v4351_v8  ;;  %v4405_v5 = vsel %vm83_vm0, %v4243_v57, 0.0  ;;  %v4406_v26 = vsel %vm83_vm0, %v4244_v20, 0.0 }
 0x310   :  { %v4362_v2 = vadd.f32 %v4361_v44, %v4360_v40  ;;  %v4371_v36 = vadd.f32 %v4370_v48, %v4369_v45  ;;  %v4380_v27 = vadd.f32 %v4379_v16, %v4378_v41  ;;  %v4389_v58 = vadd.f32 %v4388_v43, %v4387_v62 }
 0x311   :  { %v4291_v6 = vrot.slane %v4290_v22, 4  ;;  %v4300_v19 = vrot.slane %v4299_v18, 4  ;;  %v4309_v4 = vrot.slane %v4308_v51, 4  ;;  %v4398_v15 = vadd.f32 %v4397_v1, %v4396_v61 }
 0x312   :  { %v4318_v54 = vrot.slane %v4317_v10, 4  ;;  %v4327_v17 = vrot.slane %v4326_v63, 4  ;;  %v4336_v47 = vrot.slane %v4335_v50, 4  ;;  %v4407_v56 = vadd.f32 %v4406_v26, %v4405_v5 }
 0x313   :  { %v4345_v25 = vrot.slane %v4344_v59, 4  ;;  %v4354_v46 = vrot.slane %v4353_v13, 4  ;;  %v4414_v0 = vsel %vm83_vm0, %v4245_v33, 0.0  ;;  %v4415_v35 = vsel %vm83_vm0, %v4246_v52, 0.0 }
 0x314   :  { %v4363_v42 = vrot.slane %v4362_v2, 4  ;;  %v4372_v7 = vrot.slane %v4371_v36, 4  ;;  %v4381_v57 = vrot.slane %v4380_v27, 4  ;;  %v4390_v20 = vrot.slane %v4389_v58, 4 }
 0x315   :  { %v4283_v21 = vadd.f32 %v4282_v53, %v10666_v3  ;;  %v4292_v14 = vadd.f32 %v4291_v6, %v4290_v22  ;;  %v4301_v9 = vadd.f32 %v4300_v19, %v4299_v18  ;;  %v4399_v49 = vrot.slane %v4398_v15, 4 }
 0x316   :  { %v4310_v28 = vadd.f32 %v4309_v4, %v4308_v51  ;;  %v4319_v55 = vadd.f32 %v4318_v54, %v4317_v10  ;;  %v4408_v8 = vrot.slane %v4407_v56, 4  ;;  %v4416_v34 = vadd.f32 %v4415_v35, %v4414_v0 }
 0x317   :  { %v4328_v40 = vadd.f32 %v4327_v17, %v4326_v63  ;;  %v4337_v44 = vadd.f32 %v4336_v47, %v4335_v50  ;;  %v4346_v45 = vadd.f32 %v4345_v25, %v4344_v59  ;;  %v4355_v48 = vadd.f32 %v4354_v46, %v4353_v13 }
 0x318   :  { %v4364_v33 = vadd.f32 %v4363_v42, %v4362_v2  ;;  %v4373_v41 = vadd.f32 %v4372_v7, %v4371_v36  ;;  %v4382_v52 = vadd.f32 %v4381_v57, %v4380_v27  ;;  %v4391_v16 = vadd.f32 %v4390_v20, %v4389_v58 }
 0x319   :  { %v4284_v62 = vrot.slane %v4283_v21, 2  ;;  %v4293_v43 = vrot.slane %v4292_v14, 2  ;;  %v4302_v61 = vrot.slane %v4301_v9, 2  ;;  %v4400_v1 = vadd.f32 %v4399_v49, %v4398_v15 }
 0x31a   :  { %v4311_v3 = vrot.slane %v4310_v28, 2  ;;  %v4320_v22 = vrot.slane %v4319_v55, 2  ;;  %v4409_v53 = vadd.f32 %v4408_v8, %v4407_v56  ;;  %v4417_v18 = vrot.slane %v4416_v34, 4 }
 0x31b   :  { %v4329_v51 = vrot.slane %v4328_v40, 2  ;;  %v4338_v10 = vrot.slane %v4337_v44, 2  ;;  %v4347_v5 = vrot.slane %v4346_v45, 2  ;;  %v4356_v26 = vrot.slane %v4355_v48, 2 }
 0x31c   :  { %v4365_v63 = vrot.slane %v4364_v33, 2  ;;  %v4374_v50 = vrot.slane %v4373_v41, 2  ;;  %v4383_v59 = vrot.slane %v4382_v52, 2  ;;  %v4392_v13 = vrot.slane %v4391_v16, 2 }
 0x31d   :  { %v4285_v2 = vadd.f32 %v4284_v62, %v4283_v21  ;;  %v4294_v36 = vadd.f32 %v4293_v43, %v4292_v14  ;;  %v4303_v27 = vadd.f32 %v4302_v61, %v4301_v9  ;;  %v4401_v58 = vrot.slane %v4400_v1, 2 }
 0x31e   :  { %v4312_v6 = vadd.f32 %v4311_v3, %v4310_v28  ;;  %v4321_v19 = vadd.f32 %v4320_v22, %v4319_v55  ;;  %v4410_v4 = vrot.slane %v4409_v53, 2  ;;  %v4418_v15 = vadd.f32 %v4417_v18, %v4416_v34 }
 0x31f   :  { %v4330_v54 = vadd.f32 %v4329_v51, %v4328_v40  ;;  %v4339_v17 = vadd.f32 %v4338_v10, %v4337_v44  ;;  %v4348_v47 = vadd.f32 %v4347_v5, %v4346_v45  ;;  %v4357_v56 = vadd.f32 %v4356_v26, %v4355_v48 }
 0x320   :  { %v4366_v25 = vadd.f32 %v4365_v63, %v4364_v33  ;;  %v4375_v46 = vadd.f32 %v4374_v50, %v4373_v41  ;;  %v4384_v0 = vadd.f32 %v4383_v59, %v4382_v52  ;;  %v4393_v35 = vadd.f32 %v4392_v13, %v4391_v16  ;;  %v10702_v63 = vld [vmem:[%s13437_s0 + $0x18] sm:$0x8]  ;;  %v10707_v50 = vld [vmem:[%s13437_s0 + $0x1c] sm:$0x8] }
 0x321   :  { %v4286_v42 = vrot.slane %v4285_v2, 1  ;;  %v4295_v7 = vrot.slane %v4294_v36, 1  ;;  %v4304_v57 = vrot.slane %v4303_v27, 1  ;;  %v4402_v20 = vadd.f32 %v4401_v58, %v4400_v1  ;;  %v10712_v59 = vld [vmem:[%s13437_s0 + $0x38] sm:$0x8] }
 0x322   :  { %v4313_v21 = vrot.slane %v4312_v6, 1  ;;  %v4322_v14 = vrot.slane %v4321_v19, 1  ;;  %v4411_v9 = vadd.f32 %v4410_v4, %v4409_v53  ;;  %v4419_v49 = vrot.slane %v4418_v15, 2  ;;  %v10723_v58 = vld [vmem:[%s13437_s0 + $0x3c] sm:$0x8] }
 0x323   :  { %v4331_v28 = vrot.slane %v4330_v54, 1  ;;  %v4340_v55 = vrot.slane %v4339_v17, 1  ;;  %v4349_v8 = vrot.slane %v4348_v47, 1  ;;  %v4358_v34 = vrot.slane %v4357_v56, 1 }
 0x324   :  { %v4367_v40 = vrot.slane %v4366_v25, 1  ;;  %v4376_v44 = vrot.slane %v4375_v46, 1  ;;  %v4385_v45 = vrot.slane %v4384_v0, 1  ;;  %v4394_v48 = vrot.slane %v4393_v35, 1 }
 0x325   :  { %v4287_v33 = vadd.f32 %v4286_v42, %v4285_v2  ;;  %v4296_v41 = vadd.f32 %v4295_v7, %v4294_v36  ;;  %v4305_v52 = vadd.f32 %v4304_v57, %v4303_v27  ;;  %v4403_v16 = vrot.slane %v4402_v20, 1  ;;  %v10765_v7 = vld [vmem:[%s13437_s0 + $0x9c] sm:$0x8]  ;;  %v10770_v57 = vld [vmem:[%s13437_s0 + $0xb8] sm:$0x8] }
 0x326   :  { %v4314_v62 = vadd.f32 %v4313_v21, %v4312_v6  ;;  %v4323_v43 = vadd.f32 %v4322_v14, %v4321_v19  ;;  %v4412_v61 = vrot.slane %v4411_v9, 1  ;;  %v4420_v1 = vadd.f32 %v4419_v49, %v4418_v15  ;;  %v10728_v6 = vld [vmem:[%s13437_s0 + $0x58] sm:$0x8] }
 0x327   :  { %v4332_v3 = vadd.f32 %v4331_v28, %v4330_v54  ;;  %v4341_v22 = vadd.f32 %v4340_v55, %v4339_v17  ;;  %v4350_v53 = vadd.f32 %v4349_v8, %v4348_v47  ;;  %v4359_v18 = vadd.f32 %v4358_v34, %v4357_v56  ;;  %v10737_v17 = vld [vmem:[%s13437_s0 + $0x5c] sm:$0x8]  ;;  %v10742_v47 = vld [vmem:[%s13437_s0 + $0x78] sm:$0x8] }
 0x328   :  { %v4368_v51 = vadd.f32 %v4367_v40, %v4366_v25  ;;  %v4377_v10 = vadd.f32 %v4376_v44, %v4375_v46  ;;  %v4386_v5 = vadd.f32 %v4385_v45, %v4384_v0  ;;  %v4395_v26 = vadd.f32 %v4394_v48, %v4393_v35  ;;  %v10747_v56 = vld [vmem:[%s13437_s0 + $0x7c] sm:$0x8]  ;;  %v10752_v25 = vld [vmem:[%s13437_s0 + $0x98] sm:$0x8] }
 0x329   :  { %v4404_v13 = vadd.f32 %v4403_v16, %v4402_v20  ;;  %v10714_v2 = vmul.f32 0.25, %v4287_v33  ;;  %v10716_v36 = vmul.f32 0.25, %v4296_v41  ;;  %v10718_v27 = vmul.f32 0.25, %v4305_v52  ;;  %v10775_v20 = vld [vmem:[%s13437_s0 + $0xbc] sm:$0x8] }
 0x32a   :  { %v4413_v19 = vadd.f32 %v4412_v61, %v4411_v9  ;;  %v4421_v4 = vrot.slane %v4420_v1, 1  ;;  %v10730_v15 = vmul.f32 0.25, %v4314_v62  ;;  %v10732_v54 = vmul.f32 0.25, %v4323_v43  ;;  %v10780_v21 = vld [vmem:[%s13437_s0 + $0xd8] sm:$0x8] }
 0x32b   :  { %13891 = vst [vmem:[#allocation217_spill] sm:$0xff] %v10714_v2  ;;  %13892 = vst [vmem:[#allocation218_spill] sm:$0xff] %v10716_v36  ;;  %v10754_v46 = vmul.f32 0.25, %v4332_v3  ;;  %v10756_v0 = vmul.f32 0.25, %v4341_v22  ;;  %v10758_v35 = vmul.f32 0.25, %v4350_v53  ;;  %v10760_v42 = vmul.f32 0.25, %v4359_v18 }
 0x32c   :  { %13893 = vst [vmem:[#allocation219_spill] sm:$0xff] %v10718_v27  ;;  %13894 = vst [vmem:[#allocation220_spill] sm:$0xff] %v10730_v15  ;;  %v10782_v14 = vmul.f32 0.25, %v4368_v51  ;;  %v10784_v9 = vmul.f32 0.25, %v4377_v10  ;;  %v10786_v49 = vmul.f32 0.25, %v4386_v5  ;;  %v10788_v28 = vmul.f32 0.25, %v4395_v26 }
 0x32d   :  { %13895 = vst [vmem:[#allocation221_spill] sm:$0xff] %v10732_v54  ;;  %13896 = vst [vmem:[#allocation222_spill] sm:$0xff] %v10754_v46  ;;  %v10793_v55 = vld [vmem:[%s13437_s0 + $0xdc] sm:$0x8]  ;;  %v10798_v8 = vld [vmem:[%s13437_s0 + $0xf8] sm:$0x8]  ;;  %v4471_v33 = vunpack.c.l.bf16 %v10702_v63  ;;  %v4472_v41 = vunpack.c.l.bf16 %v10707_v50  ;;  %v4473_v52 = vunpack.c.l.bf16 %v10712_v59  ;;  %v4422_v16 = vadd.f32 %v4421_v4, %v4420_v1 }
 0x32e   :  { %13897 = vst [vmem:[#allocation223_spill] sm:$0xff] %v10756_v0  ;;  %13898 = vst [vmem:[#allocation224_spill] sm:$0xff] %v10758_v35  ;;  %v10803_v34 = vld [vmem:[%s13437_s0 + $0xfc] sm:$0x8]  ;;  %v10808_v40 = vld [vmem:[%s13437_s0 + $0x118] sm:$0x8]  ;;  %v4474_v3 = vunpack.c.l.bf16 %v10723_v58  ;;  %v4475_v22 = vunpack.c.l.bf16 %v10728_v6  ;;  %v4476_v51 = vunpack.c.l.bf16 %v10737_v17  ;;  %v4477_v10 = vunpack.c.l.bf16 %v10742_v47 }
 0x32f   :  { %13899 = vst [vmem:[#allocation225_spill] sm:$0xff] %v10760_v42  ;;  %13900 = vst [vmem:[#allocation226_spill] sm:$0xff] %v10782_v14  ;;  %v10810_v44 = vmul.f32 0.25, %v4404_v13  ;;  %v10815_v45 = vld [vmem:[%s13437_s0 + $0x11c] sm:$0x8]  ;;  %v10825_v62 = vmul.f32 0.25, %v4413_v19  ;;  %v4478_v5 = vunpack.c.l.bf16 %v10747_v56  ;;  %v4479_v26 = vunpack.c.l.bf16 %v10752_v25 }
 0x330   :  { %13901 = vst [vmem:[#allocation227_spill] sm:$0xff] %v10784_v9  ;;  %13902 = vst [vmem:[#allocation228_spill] sm:$0xff] %v10786_v49  ;;  %v10820_v48 = vld [vmem:[%s13437_s0 + $0x138] sm:$0x8]  ;;  %v10830_v43 = vld [vmem:[%s13437_s0 + $0x13c] sm:$0x8]  ;;  %v4480_v13 = vunpack.c.l.bf16 %v10765_v7  ;;  %v4481_v58 = vunpack.c.l.bf16 %v10770_v57  ;;  %v4482_v6 = vunpack.c.l.bf16 %v10775_v20  ;;  %v4483_v19 = vunpack.c.l.bf16 %v10780_v21 }
 0x331   :  { %13903 = vst [vmem:[#allocation229_spill] sm:$0xff] %v10788_v28  ;;  %13904 = vst [vmem:[#allocation230_spill] sm:$0xff] %v10810_v44  ;;  %v10835_v61 = vld [vmem:[%s13437_s0 + $0x158] sm:$0x8]  ;;  %v6872_v1 = vld [vmem:[%s13437_s0 + $0x15c] sm:$0x8]  ;;  %v4484_v56 = vunpack.c.l.bf16 %v10793_v55  ;;  %v4485_v25 = vunpack.c.l.bf16 %v10798_v8  ;;  %v4486_v7 = vunpack.c.l.bf16 %v10803_v34  ;;  %v4487_v57 = vunpack.c.l.bf16 %v10808_v40 }
 0x332   :  { %13905 = vst [vmem:[#allocation231_spill] sm:$0xff] %v10825_v62  ;;  %v6873_v53 = vld [vmem:[%s13437_s0 + $0x178] sm:$0x8]  ;;  %v6874_v18 = vld [vmem:[%s13437_s0 + $0x17c] sm:$0x8]  ;;  %v10888_v20 = vmul.f32 0.25, %v4422_v16  ;;  %v4488_v44 = vunpack.c.l.bf16 %v10815_v45  ;;  %v4489_v55 = vunpack.c.l.bf16 %v10820_v48  ;;  %v4490_v8 = vunpack.c.l.bf16 %v10830_v43 }
 0x333   :  { %v6875_v63 = vld [vmem:[%s13437_s0 + $0x198] sm:$0x8]  ;;  %v10858_v50 = vld [vmem:[%s13437_s0 + $0x19c] sm:$0x8]  ;;  %v4491_v34 = vunpack.c.l.bf16 %v10835_v61  ;;  %v4492_v28 = vunpack.c.l.bf16 %v6872_v1  ;;  %v4493_v40 = vunpack.c.l.bf16 %v6873_v53  ;;  %v4494_v16 = vunpack.c.l.bf16 %v6874_v18 }
 0x334   :  { %v10863_v59 = vld [vmem:[%s13437_s0 + $0x1b8] sm:$0x8]  ;;  %v10872_v4 = vld [vmem:[%s13437_s0 + $0x1bc] sm:$0x8]  ;;  %13906 = vst [vmem:[#allocation232_spill] sm:$0xff] %v10888_v20  ;;  %v4495_v20 = vunpack.c.l.bf16 %v6875_v63  ;;  %v4496_v49 = vunpack.c.l.bf16 %v10858_v50  ;;  %v4535_v0 = vrot.slane %v4471_v33, 6 }
 0x335   :  { %v10877_v17 = vld [vmem:[%s13437_s0 + $0x1d8] sm:$0x8]  ;;  %v10882_v47 = vld [vmem:[%s13437_s0 + $0x1dc] sm:$0x8]  ;;  %v4497_v9 = vunpack.c.l.bf16 %v10863_v59  ;;  %v4498_v14 = vunpack.c.l.bf16 %v10872_v4  ;;  %v4536_v43 = vrot.slane %v4472_v41, 6  ;;  %v4537_v46 = vrot.slane %v4473_v52, 6 }
 0x336   :  { %v6881_v21 = vld [vmem:[%s13437_s0 + $0x1f8] sm:$0x8]  ;;  %v6882_v62 = vld [vmem:[%s13437_s0 + $0x1fc] sm:$0x8]  ;;  %v4499_v42 = vunpack.c.l.bf16 %v10877_v17  ;;  %v4500_v45 = vunpack.c.l.bf16 %v10882_v47  ;;  %v4538_v61 = vrot.slane %v4474_v3, 6  ;;  %v4539_v1 = vrot.slane %v4475_v22, 6 }
 0x337   :  { %v4501_v35 = vunpack.c.l.bf16 %v6881_v21  ;;  %v4502_v48 = vunpack.c.l.bf16 %v6882_v62  ;;  %v4540_v53 = vrot.slane %v4476_v51, 6  ;;  %v4541_v18 = vrot.slane %v4477_v10, 6 }
 0x338   :  { %v4542_v63 = vrot.slane %v4478_v5, 6  ;;  %v4543_v54 = vrot.slane %v4479_v26, 6  ;;  %v4544_v50 = vrot.slane %v4480_v13, 6  ;;  %v4545_v15 = vrot.slane %v4481_v58, 6 }
 0x339   :  { %v4546_v59 = vrot.slane %v4482_v6, 6  ;;  %v4547_v27 = vrot.slane %v4483_v19, 6  ;;  %v4548_v4 = vrot.slane %v4484_v56, 6  ;;  %v4549_v36 = vrot.slane %v4485_v25, 6 }
 0x33a   :  { %v4550_v17 = vrot.slane %v4486_v7, 6  ;;  %v4551_v2 = vrot.slane %v4487_v57, 6  ;;  %v4552_v47 = vrot.slane %v4488_v44, 6  ;;  %v4599_v62 = vsel %vm83_vm0, %v4535_v0, 0.0 }
 0x33b   :  { %v4600_v33 = vsel %vm83_vm0, %v4536_v43, 0.0  ;;  %v4553_v41 = vrot.slane %v4489_v55, 6  ;;  %v4554_v52 = vrot.slane %v4490_v8, 6  ;;  %v4555_v3 = vrot.slane %v4491_v34, 6 }
 0x33c   :  { %v4556_v22 = vrot.slane %v4492_v28, 6  ;;  %v4557_v51 = vrot.slane %v4493_v40, 6  ;;  %v4558_v10 = vrot.slane %v4494_v16, 6  ;;  %v4559_v5 = vrot.slane %v4495_v20, 6 }
 0x33d   :  { %v4608_v26 = vsel %vm83_vm0, %v4537_v46, 0.0  ;;  %v10908_v13 = vadd.f32 %v4600_v33, %v4599_v62  ;;  %v4609_v58 = vsel %vm83_vm0, %v4538_v61, 0.0  ;;  %v4617_v6 = vsel %vm83_vm0, %v4539_v1, 0.0 }
 0x33e   :  { %v4618_v44 = vsel %vm83_vm0, %v4540_v53, 0.0  ;;  %v4626_v0 = vsel %vm83_vm0, %v4541_v18, 0.0  ;;  %v4627_v19 = vsel %vm83_vm0, %v4542_v63, 0.0  ;;  %v4635_v56 = vsel %vm83_vm0, %v4543_v54, 0.0 }
 0x33f   :  { %v4636_v28 = vsel %vm83_vm0, %v4544_v50, 0.0  ;;  %v4560_v25 = vrot.slane %v4496_v49, 6  ;;  %v4561_v7 = vrot.slane %v4497_v9, 6  ;;  %v4562_v57 = vrot.slane %v4498_v14, 6 }
 0x340   :  { %v4563_v46 = vrot.slane %v4499_v42, 6  ;;  %v4564_v20 = vrot.slane %v4500_v45, 6  ;;  %v4565_v21 = vrot.slane %v4501_v35, 6  ;;  %v4566_v55 = vrot.slane %v4502_v48, 6 }
 0x341   :  { %v4610_v8 = vadd.f32 %v4609_v58, %v4608_v26  ;;  %v4602_v34 = vrot.slane %v10908_v13, 4  ;;  %v4619_v40 = vadd.f32 %v4618_v44, %v4617_v6  ;;  %v4628_v16 = vadd.f32 %v4627_v19, %v4626_v0 }
 0x342   :  { %v4637_v43 = vadd.f32 %v4636_v28, %v4635_v56  ;;  %v4644_v61 = vsel %vm83_vm0, %v4545_v15, 0.0  ;;  %v4645_v1 = vsel %vm83_vm0, %v4546_v59, 0.0  ;;  %v4653_v54 = vsel %vm83_vm0, %v4547_v27, 0.0 }
 0x343   :  { %v4654_v49 = vsel %vm83_vm0, %v4548_v4, 0.0  ;;  %v4662_v14 = vsel %vm83_vm0, %v4549_v36, 0.0  ;;  %v4663_v42 = vsel %vm83_vm0, %v4550_v17, 0.0  ;;  %v4671_v35 = vsel %vm83_vm0, %v4551_v2, 0.0 }
 0x344   :  { %v4672_v9 = vsel %vm83_vm0, %v4552_v47, 0.0  ;;  %v4680_v45 = vsel %vm83_vm0, %v4553_v41, 0.0  ;;  %v4681_v48 = vsel %vm83_vm0, %v4554_v52, 0.0  ;;  %v4689_v15 = vsel %vm83_vm0, %v4555_v3, 0.0 }
 0x345   :  { %v4690_v53 = vsel %vm83_vm0, %v4556_v22, 0.0  ;;  %v4698_v27 = vsel %vm83_vm0, %v4557_v51, 0.0  ;;  %v4699_v18 = vsel %vm83_vm0, %v4558_v10, 0.0  ;;  %v4707_v36 = vsel %vm83_vm0, %v4559_v5, 0.0 }
 0x346   :  { %v4708_v63 = vsel %vm83_vm0, %v4560_v25, 0.0  ;;  %v4646_v50 = vadd.f32 %v4645_v1, %v4644_v61  ;;  %v4655_v2 = vadd.f32 %v4654_v49, %v4653_v54  ;;  %v4716_v59 = vsel %vm83_vm0, %v4561_v7, 0.0 }
 0x347   :  { %v4717_v4 = vsel %vm83_vm0, %v4562_v57, 0.0  ;;  %v4664_v17 = vadd.f32 %v4663_v42, %v4662_v14  ;;  %v4673_v47 = vadd.f32 %v4672_v9, %v4671_v35  ;;  %v4725_v62 = vsel %vm83_vm0, %v4563_v46, 0.0 }
 0x348   :  { %v4726_v33 = vsel %vm83_vm0, %v4564_v20, 0.0  ;;  %v4682_v41 = vadd.f32 %v4681_v48, %v4680_v45  ;;  %v4691_v52 = vadd.f32 %v4690_v53, %v4689_v15  ;;  %v4700_v3 = vadd.f32 %v4699_v18, %v4698_v27 }
 0x349   :  { %v4709_v22 = vadd.f32 %v4708_v63, %v4707_v36  ;;  %v4611_v51 = vrot.slane %v4610_v8, 4  ;;  %v4620_v10 = vrot.slane %v4619_v40, 4  ;;  %v4629_v5 = vrot.slane %v4628_v16, 4 }
 0x34a   :  { %v4718_v26 = vadd.f32 %v4717_v4, %v4716_v59  ;;  %v4638_v58 = vrot.slane %v4637_v43, 4  ;;  %v4647_v6 = vrot.slane %v4646_v50, 4  ;;  %v4656_v44 = vrot.slane %v4655_v2, 4 }
 0x34b   :  { %v4727_v0 = vadd.f32 %v4726_v33, %v4725_v62  ;;  %v4665_v19 = vrot.slane %v4664_v17, 4  ;;  %v4674_v56 = vrot.slane %v4673_v47, 4  ;;  %v4734_v28 = vsel %vm83_vm0, %v4565_v21, 0.0 }
 0x34c   :  { %v4735_v25 = vsel %vm83_vm0, %v4566_v55, 0.0  ;;  %v4683_v7 = vrot.slane %v4682_v41, 4  ;;  %v4692_v57 = vrot.slane %v4691_v52, 4  ;;  %v4701_v46 = vrot.slane %v4700_v3, 4 }
 0x34d   :  { %v4710_v20 = vrot.slane %v4709_v22, 4  ;;  %v4603_v61 = vadd.f32 %v4602_v34, %v10908_v13  ;;  %v4612_v1 = vadd.f32 %v4611_v51, %v4610_v8  ;;  %v4621_v54 = vadd.f32 %v4620_v10, %v4619_v40 }
 0x34e   :  { %v4719_v49 = vrot.slane %v4718_v26, 4  ;;  %v4630_v14 = vadd.f32 %v4629_v5, %v4628_v16  ;;  %v4639_v42 = vadd.f32 %v4638_v58, %v4637_v43  ;;  %v4728_v35 = vrot.slane %v4727_v0, 4 }
 0x34f   :  { %v4736_v9 = vadd.f32 %v4735_v25, %v4734_v28  ;;  %v4648_v45 = vadd.f32 %v4647_v6, %v4646_v50  ;;  %v4657_v48 = vadd.f32 %v4656_v44, %v4655_v2  ;;  %v4666_v15 = vadd.f32 %v4665_v19, %v4664_v17 }
 0x350   :  { %v4675_v53 = vadd.f32 %v4674_v56, %v4673_v47  ;;  %v4684_v21 = vadd.f32 %v4683_v7, %v4682_v41  ;;  %v4693_v27 = vadd.f32 %v4692_v57, %v4691_v52  ;;  %v4702_v55 = vadd.f32 %v4701_v46, %v4700_v3 }
 0x351   :  { %v4711_v18 = vadd.f32 %v4710_v20, %v4709_v22  ;;  %v4604_v36 = vrot.slane %v4603_v61, 2  ;;  %v4613_v63 = vrot.slane %v4612_v1, 2  ;;  %v4622_v59 = vrot.slane %v4621_v54, 2 }
 0x352   :  { %v4720_v4 = vadd.f32 %v4719_v49, %v4718_v26  ;;  %v4631_v13 = vrot.slane %v4630_v14, 2  ;;  %v4640_v8 = vrot.slane %v4639_v42, 2  ;;  %v4729_v34 = vadd.f32 %v4728_v35, %v4727_v0 }
 0x353   :  { %v4737_v40 = vrot.slane %v4736_v9, 4  ;;  %v4649_v16 = vrot.slane %v4648_v45, 2  ;;  %v4658_v43 = vrot.slane %v4657_v48, 2  ;;  %v4667_v62 = vrot.slane %v4666_v15, 2 }
 0x354   :  { %v4676_v33 = vrot.slane %v4675_v53, 2  ;;  %v4685_v50 = vrot.slane %v4684_v21, 2  ;;  %v4694_v2 = vrot.slane %v4693_v27, 2  ;;  %v4703_v17 = vrot.slane %v4702_v55, 2 }
 0x355   :  { %v4712_v47 = vrot.slane %v4711_v18, 2  ;;  %v4605_v41 = vadd.f32 %v4604_v36, %v4603_v61  ;;  %v4614_v52 = vadd.f32 %v4613_v63, %v4612_v1  ;;  %v4623_v3 = vadd.f32 %v4622_v59, %v4621_v54 }
 0x356   :  { %v4721_v22 = vrot.slane %v4720_v4, 2  ;;  %v4632_v51 = vadd.f32 %v4631_v13, %v4630_v14  ;;  %v4641_v10 = vadd.f32 %v4640_v8, %v4639_v42  ;;  %v4730_v5 = vrot.slane %v4729_v34, 2 }
 0x357   :  { %v4738_v26 = vadd.f32 %v4737_v40, %v4736_v9  ;;  %v4650_v58 = vadd.f32 %v4649_v16, %v4648_v45  ;;  %v4659_v6 = vadd.f32 %v4658_v43, %v4657_v48  ;;  %v4668_v44 = vadd.f32 %v4667_v62, %v4666_v15 }
 0x358   :  { %v4677_v0 = vadd.f32 %v4676_v33, %v4675_v53  ;;  %v4686_v19 = vadd.f32 %v4685_v50, %v4684_v21  ;;  %v4695_v56 = vadd.f32 %v4694_v2, %v4693_v27  ;;  %v4704_v28 = vadd.f32 %v4703_v17, %v4702_v55 }
 0x359   :  { %v4713_v25 = vadd.f32 %v4712_v47, %v4711_v18  ;;  %v4606_v7 = vrot.slane %v4605_v41, 1  ;;  %v4615_v57 = vrot.slane %v4614_v52, 1  ;;  %v4624_v46 = vrot.slane %v4623_v3, 1 }
 0x35a   :  { %v4722_v20 = vadd.f32 %v4721_v22, %v4720_v4  ;;  %v4633_v61 = vrot.slane %v4632_v51, 1  ;;  %v4642_v1 = vrot.slane %v4641_v10, 1  ;;  %v4731_v54 = vadd.f32 %v4730_v5, %v4729_v34 }
 0x35b   :  { %v4739_v49 = vrot.slane %v4738_v26, 2  ;;  %v4651_v14 = vrot.slane %v4650_v58, 1  ;;  %v4660_v42 = vrot.slane %v4659_v6, 1  ;;  %v4669_v35 = vrot.slane %v4668_v44, 1 }
 0x35c   :  { %v4678_v9 = vrot.slane %v4677_v0, 1  ;;  %v4687_v45 = vrot.slane %v4686_v19, 1  ;;  %v4696_v48 = vrot.slane %v4695_v56, 1  ;;  %v4705_v15 = vrot.slane %v4704_v28, 1 }
 0x35d   :  { %v4714_v53 = vrot.slane %v4713_v25, 1  ;;  %v4607_v21 = vadd.f32 %v4606_v7, %v4605_v41  ;;  %v4616_v27 = vadd.f32 %v4615_v57, %v4614_v52  ;;  %v4625_v55 = vadd.f32 %v4624_v46, %v4623_v3  ;;  %v14134_v46 = vld [vmem:[#allocation230_spill] sm:$0xff] }
 0x35e   :  { %v4723_v18 = vrot.slane %v4722_v20, 1  ;;  %v4634_v36 = vadd.f32 %v4633_v61, %v4632_v51  ;;  %v4643_v63 = vadd.f32 %v4642_v1, %v4641_v10  ;;  %v4732_v59 = vrot.slane %v4731_v54, 1  ;;  %v14131_v1 = vld [vmem:[#allocation227_spill] sm:$0xff]  ;;  %v14132_v61 = vld [vmem:[#allocation228_spill] sm:$0xff] }
 0x35f   :  { %v4740_v4 = vadd.f32 %v4739_v49, %v4738_v26  ;;  %v4652_v13 = vadd.f32 %v4651_v14, %v4650_v58  ;;  %v4661_v8 = vadd.f32 %v4660_v42, %v4659_v6  ;;  %v4670_v34 = vadd.f32 %v4669_v35, %v4668_v44  ;;  %v13926_v35 = vld [vmem:[#allocation22_spill] sm:$0xff]  ;;  %v13927_v42 = vld [vmem:[#allocation23_spill] sm:$0xff]  ;;  %v13928_v14 = vld [vmem:[#allocation24_spill] sm:$0xff] }
 0x360   :  { %v4679_v40 = vadd.f32 %v4678_v9, %v4677_v0  ;;  %v4688_v16 = vadd.f32 %v4687_v45, %v4686_v19  ;;  %v4697_v43 = vadd.f32 %v4696_v48, %v4695_v56  ;;  %v4706_v62 = vadd.f32 %v4705_v15, %v4704_v28  ;;  %v13909_v9 = vld [vmem:[#allocation5_spill] sm:$0xff]  ;;  %v13910_v48 = vld [vmem:[#allocation6_spill] sm:$0xff]  ;;  %v13924_v15 = vld [vmem:[#allocation20_spill] sm:$0xff] }
 0x361   :  { %v4715_v33 = vadd.f32 %v4714_v53, %v4713_v25  ;;  %v4724_v50 = vadd.f32 %v4723_v18, %v4722_v20  ;;  %v10941_v2 = vmul.f32 0.25, %v4607_v21  ;;  %v10943_v17 = vmul.f32 0.25, %v4616_v27  ;;  %v13911_v53 = vld [vmem:[#allocation7_spill] sm:$0xff]  ;;  %v13912_v27 = vld [vmem:[#allocation8_spill] sm:$0xff]  ;;  %v13913_v18 = vld [vmem:[#allocation9_spill] sm:$0xff] }
 0x362   :  { %v10945_v47 = vmul.f32 0.25, %v4625_v55  ;;  %v4733_v41 = vadd.f32 %v4732_v59, %v4731_v54  ;;  %v4741_v52 = vrot.slane %v4740_v4, 1  ;;  %v10947_v3 = vmul.f32 0.25, %v4634_v36  ;;  %v13914_v59 = vld [vmem:[#allocation10_spill] sm:$0xff]  ;;  %v13921_v36 = vld [vmem:[#allocation17_spill] sm:$0xff]  ;;  %v13923_v21 = vld [vmem:[#allocation19_spill] sm:$0xff] }
 0x363   :  { %v10949_v22 = vmul.f32 0.25, %v4643_v63  ;;  %v10951_v51 = vmul.f32 0.25, %v4652_v13  ;;  %v10953_v10 = vmul.f32 0.25, %v4661_v8  ;;  %v10955_v5 = vmul.f32 0.25, %v4670_v34  ;;  %v13915_v13 = vld [vmem:[#allocation11_spill] sm:$0xff]  ;;  %v13916_v34 = vld [vmem:[#allocation12_spill] sm:$0xff] }
 0x364   :  { %v10957_v26 = vmul.f32 0.25, %v4679_v40  ;;  %v10959_v58 = vmul.f32 0.25, %v4688_v16  ;;  %v10961_v6 = vmul.f32 0.25, %v4697_v43  ;;  %v10963_v44 = vmul.f32 0.25, %v4706_v62  ;;  %v13917_v16 = vld [vmem:[#allocation13_spill] sm:$0xff]  ;;  %v13918_v62 = vld [vmem:[#allocation14_spill] sm:$0xff] }
 0x365   :  { %v10965_v0 = vmul.f32 0.25, %v4715_v33  ;;  %v10967_v19 = vmul.f32 0.25, %v4724_v50  ;;  %v4742_v7 = vadd.f32 %v4741_v52, %v4740_v4  ;;  %v10975_v57 = vmul.f32 0.25, %v4733_v41  ;;  %v13919_v50 = vld [vmem:[#allocation15_spill] sm:$0xff]  ;;  %v13920_v52 = vld [vmem:[#allocation16_spill] sm:$0xff]  ;;  %v13922_v55 = vld [vmem:[#allocation18_spill] sm:$0xff] }
 0x366   :  { %13907 = vst [vmem:[#allocation233_spill] sm:$0xff] %v10959_v58  ;;  %v13925_v45 = vld [vmem:[#allocation21_spill] sm:$0xff]  ;;  %v14130_v54 = vld [vmem:[#allocation226_spill] sm:$0xff]  ;;  %v14135_v25 = vld [vmem:[#allocation231_spill] sm:$0xff]  ;;  %v14137_v8 = vpack.c.bf16 %v7359_v60, %v7359_v60  ;;  %v14138_v43 = vpack.c.bf16 %v7361_v11, %v7361_v11  ;;  %v14139_v33 = vpack.c.bf16 %v7363_v12, %v7363_v12  ;;  %v14141_v60 = vpack.c.bf16 %v7377_v24, %v7377_v24 }
 0x367   :  { %13908 = vst [vmem:[#allocation234_spill] sm:$0xff] %v10975_v57  ;;  %v11005_v63 = vmul.f32 0.25, %v4742_v7  ;;  %v13929_v49 = vld [vmem:[#allocation25_spill] sm:$0xff]  ;;  %v14136_v28 = vld [vmem:[#allocation232_spill] sm:$0xff]  ;;  %v14140_v7 = vpack.c.bf16 %v7375_v23, %v7375_v23  ;;  %v14142_v11 = vpack.c.bf16 %v7399_v29, %v7399_v29  ;;  %v14143_v12 = vpack.c.bf16 %v7401_v30, %v7401_v30  ;;  %v14179_v4 = vld [vmem:[#allocation26_spill] sm:$0xff] }
 0x368   :  { %v14129_v56 = vld [vmem:[#allocation225_spill] sm:$0xff]  ;;  %v11488_v58 = vunpack.c.l.b16 %v14137_v8  ;;  %v11493_v40 = vunpack.c.l.b16 %v14138_v43  ;;  %v11498_v41 = vunpack.c.l.b16 %v14139_v33  ;;  %v11508_v8 = vunpack.c.l.b16 %v14141_v60 }
 0x369   :  { %v14133_v20 = vld [vmem:[#allocation229_spill] sm:$0xff]  ;;  %v11503_v57 = vunpack.c.l.b16 %v14140_v7  ;;  %v11513_v43 = vunpack.c.l.b16 %v14142_v11  ;;  %v11518_v33 = vunpack.c.l.b16 %v14143_v12  ;;  %v14144_v23 = vpack.c.bf16 %v7403_v31, %v7403_v31 }
 0x36a   :  { %v14145_v24 = vpack.c.bf16 %v7405_v32, %v7405_v32  ;;  %v14146_v29 = vpack.c.bf16 %v7427_v37, %v7427_v37  ;;  %v14147_v30 = vpack.c.bf16 %v7429_v38, %v7429_v38  ;;  %v14148_v31 = vpack.c.bf16 %v7431_v39, %v7431_v39 }
 0x36b   :  { %v11523_v7 = vunpack.c.l.b16 %v14144_v23  ;;  %v14149_v32 = vpack.c.bf16 %v13909_v9, %v13909_v9  ;;  %v14150_v37 = vpack.c.bf16 %v13910_v48, %v13910_v48  ;;  %v14151_v38 = vpack.c.bf16 %v13911_v53, %v13911_v53 }
 0x36c   :  { %v11528_v60 = vunpack.c.l.b16 %v14145_v24  ;;  %v11533_v11 = vunpack.c.l.b16 %v14146_v29  ;;  %v11538_v12 = vunpack.c.l.b16 %v14147_v30  ;;  %v11543_v23 = vunpack.c.l.b16 %v14148_v31 }
 0x36d   :  { %v11548_v24 = vunpack.c.l.b16 %v14149_v32  ;;  %v11553_v29 = vunpack.c.l.b16 %v14150_v37  ;;  %v11558_v30 = vunpack.c.l.b16 %v14151_v38  ;;  %v14152_v39 = vpack.c.bf16 %v13912_v27, %v13912_v27 }
 0x36e   :  { %v14154_v9 = vpack.c.bf16 %v13913_v18, %v13913_v18  ;;  %v14155_v48 = vpack.c.bf16 %v13914_v59, %v13914_v59  ;;  %v14156_v53 = vpack.c.bf16 %v13915_v13, %v13915_v13  ;;  %v14157_v27 = vpack.c.bf16 %v13916_v34, %v13916_v34 }
 0x36f   :  { %v11563_v31 = vunpack.c.l.b16 %v14152_v39  ;;  %v14158_v18 = vpack.c.bf16 %v13917_v16, %v13917_v16  ;;  %v14160_v59 = vpack.c.bf16 %v13918_v62, %v13918_v62  ;;  %v14162_v13 = vpack.c.bf16 %v13919_v50, %v13919_v50 }
 0x370   :  { %v11568_v32 = vunpack.c.l.b16 %v14154_v9  ;;  %v11573_v37 = vunpack.c.l.b16 %v14155_v48  ;;  %v11578_v38 = vunpack.c.l.b16 %v14156_v53  ;;  %v11583_v39 = vunpack.c.l.b16 %v14157_v27 }
 0x371   :  { %14153 = vst [vmem:[#allocation5_spill] sm:$0xff] %v11563_v31  ;;  %v11588_v9 = vunpack.c.l.b16 %v14158_v18  ;;  %v11593_v48 = vunpack.c.l.b16 %v14160_v59  ;;  %v11598_v53 = vunpack.c.l.b16 %v14162_v13  ;;  %v14164_v34 = vpack.c.bf16 %v13920_v52, %v13920_v52  ;;  %v14197_v31 = vld [vmem:[#allocation33_spill] sm:$0xff] }
 0x372   :  { %v14166_v16 = vpack.c.bf16 %v13921_v36, %v13921_v36  ;;  %v14167_v62 = vpack.c.bf16 %v13922_v55, %v13922_v55  ;;  %v14168_v50 = vpack.c.bf16 %v13923_v21, %v13923_v21  ;;  %v14169_v52 = vpack.c.bf16 %v13924_v15, %v13924_v15 }
 0x373   :  { %14159 = vst [vmem:[#allocation6_spill] sm:$0xff] %v11588_v9  ;;  %14161 = vst [vmem:[#allocation7_spill] sm:$0xff] %v11593_v48  ;;  %v11603_v27 = vunpack.c.l.b16 %v14164_v34  ;;  %v14170_v36 = vpack.c.bf16 %v13925_v45, %v13925_v45  ;;  %v14172_v55 = vpack.c.bf16 %v13926_v35, %v13926_v35  ;;  %v14174_v21 = vpack.c.bf16 %v13927_v42, %v13927_v42  ;;  %v14194_v48 = vld [vmem:[#allocation32_spill] sm:$0xff] }
 0x374   :  { %14163 = vst [vmem:[#allocation8_spill] sm:$0xff] %v11598_v53  ;;  %v11608_v18 = vunpack.c.l.b16 %v14166_v16  ;;  %v11613_v59 = vunpack.c.l.b16 %v14167_v62  ;;  %v11618_v13 = vunpack.c.l.b16 %v14168_v50  ;;  %v11623_v34 = vunpack.c.l.b16 %v14169_v52  ;;  %v14188_v53 = vld [vmem:[#allocation30_spill] sm:$0xff]  ;;  %v14216_v9 = vld [vmem:[#allocation40_spill] sm:$0xff] }
 0x375   :  { %14165 = vst [vmem:[#allocation9_spill] sm:$0xff] %v11603_v27  ;;  %v11628_v16 = vunpack.c.l.b16 %v14170_v36  ;;  %v11633_v62 = vunpack.c.l.b16 %v14172_v55  ;;  %v11638_v50 = vunpack.c.l.b16 %v14174_v21  ;;  %v14176_v15 = vpack.c.bf16 %v13928_v14, %v13928_v14  ;;  %v14181_v27 = vld [vmem:[#allocation27_spill] sm:$0xff] }
 0x376   :  { %v14178_v45 = vpack.c.bf16 %v13929_v49, %v13929_v49  ;;  %v14180_v35 = vpack.c.bf16 %v14179_v4, %v14179_v4  ;;  %v14182_v42 = vpack.c.bf16 %v14181_v27, %v14181_v27  ;;  %v14189_v4 = vpack.c.bf16 %v14188_v53, %v14188_v53 }
 0x377   :  { %14171 = vst [vmem:[#allocation10_spill] sm:$0xff] %v11628_v16  ;;  %14173 = vst [vmem:[#allocation11_spill] sm:$0xff] %v11633_v62  ;;  %v11643_v52 = vunpack.c.l.b16 %v14176_v15  ;;  %v14191_v62 = vld [vmem:[#allocation31_spill] sm:$0xff]  ;;  %v14210_v16 = vld [vmem:[#allocation38_spill] sm:$0xff] }
 0x378   :  { %14175 = vst [vmem:[#allocation12_spill] sm:$0xff] %v11638_v50  ;;  %v11648_v36 = vunpack.c.l.b16 %v14178_v45  ;;  %v11653_v55 = vunpack.c.l.b16 %v14180_v35  ;;  %v11658_v21 = vunpack.c.l.b16 %v14182_v42  ;;  %v14183_v50 = vld [vmem:[#allocation28_spill] sm:$0xff]  ;;  %v11673_v35 = vunpack.c.l.b16 %v14189_v4 }
 0x379   :  { %14177 = vst [vmem:[#allocation13_spill] sm:$0xff] %v11643_v52  ;;  %v14184_v14 = vpack.c.bf16 %v14183_v50, %v14183_v50  ;;  %v14185_v52 = vld [vmem:[#allocation29_spill] sm:$0xff]  ;;  %v14192_v27 = vpack.c.bf16 %v14191_v62, %v14191_v62  ;;  %v14195_v50 = vpack.c.bf16 %v14194_v48, %v14194_v48 }
 0x37a   :  { %v14186_v49 = vpack.c.bf16 %v14185_v52, %v14185_v52  ;;  %14190 = vst [vmem:[#allocation15_spill] sm:$0xff] %v11673_v35  ;;  %v14198_v52 = vpack.c.bf16 %v14197_v31, %v14197_v31  ;;  %v14202_v35 = vld [vmem:[#allocation35_spill] sm:$0xff] }
 0x37b   :  { %v11663_v15 = vunpack.c.l.b16 %v14184_v14  ;;  %v11678_v42 = vunpack.c.l.b16 %v14192_v27  ;;  %v11683_v14 = vunpack.c.l.b16 %v14195_v50  ;;  %v14203_v62 = vpack.c.bf16 %v14202_v35, %v14202_v35 }
 0x37c   :  { %v11668_v45 = vunpack.c.l.b16 %v14186_v49  ;;  %v11688_v49 = vunpack.c.l.b16 %v14198_v52 }
 0x37d   :  { %14193 = vst [vmem:[#allocation16_spill] sm:$0xff] %v11678_v42  ;;  %14196 = vst [vmem:[#allocation17_spill] sm:$0xff] %v11683_v14  ;;  %v11698_v27 = vunpack.c.l.b16 %v14203_v62  ;;  %v14204_v42 = vld [vmem:[#allocation36_spill] sm:$0xff]  ;;  %v14207_v14 = vld [vmem:[#allocation37_spill] sm:$0xff] }
 0x37e   :  { %14187 = vst [vmem:[#allocation14_spill] sm:$0xff] %v11668_v45  ;;  %14199 = vst [vmem:[#allocation18_spill] sm:$0xff] %v11688_v49  ;;  %v14200_v45 = vld [vmem:[#allocation34_spill] sm:$0xff]  ;;  %v14205_v48 = vpack.c.bf16 %v14204_v42, %v14204_v42  ;;  %v14208_v31 = vpack.c.bf16 %v14207_v14, %v14207_v14  ;;  %v14213_v49 = vld [vmem:[#allocation39_spill] sm:$0xff]  ;;  %v14217_v42 = vpack.c.bf16 %v14216_v9, %v14216_v9 }
 0x37f   :  { %v14201_v53 = vpack.c.bf16 %v14200_v45, %v14200_v45  ;;  %v14211_v45 = vpack.c.bf16 %v14210_v16, %v14210_v16  ;;  %v14214_v35 = vpack.c.bf16 %v14213_v49, %v14213_v49 }
 0x380   :  { %v11703_v50 = vunpack.c.l.b16 %v14205_v48  ;;  %v11708_v52 = vunpack.c.l.b16 %v14208_v31  ;;  %v11723_v48 = vunpack.c.l.b16 %v14217_v42 }
 0x381   :  { %v11693_v4 = vunpack.c.l.b16 %v14201_v53  ;;  %v11713_v53 = vunpack.c.l.b16 %v14211_v45  ;;  %v11718_v62 = vunpack.c.l.b16 %v14214_v35 }
 0x382   :  { %14206 = vst [vmem:[#allocation19_spill] sm:$0xff] %v11703_v50  ;;  %14209 = vst [vmem:[#allocation20_spill] sm:$0xff] %v11708_v52  ;;  %v14219_v50 = vld [vmem:[#allocation41_spill] sm:$0xff]  ;;  %v14222_v52 = vld [vmem:[#allocation42_spill] sm:$0xff] }
 0x383   :  { %14212 = vst [vmem:[#allocation21_spill] sm:$0xff] %v11713_v53  ;;  %14215 = vst [vmem:[#allocation22_spill] sm:$0xff] %v11718_v62  ;;  %v14220_v14 = vpack.c.bf16 %v14219_v50, %v14219_v50  ;;  %v14223_v16 = vpack.c.bf16 %v14222_v52, %v14222_v52  ;;  %v14225_v53 = vld [vmem:[#allocation43_spill] sm:$0xff]  ;;  %v14228_v62 = vld [vmem:[#allocation44_spill] sm:$0xff] }
 0x384   :  { %14218 = vst [vmem:[#allocation23_spill] sm:$0xff] %v11723_v48  ;;  %v14226_v49 = vpack.c.bf16 %v14225_v53, %v14225_v53  ;;  %v14229_v9 = vpack.c.bf16 %v14228_v62, %v14228_v62  ;;  %v14231_v48 = vld [vmem:[#allocation45_spill] sm:$0xff] }
 0x385   :  { %v11728_v31 = vunpack.c.l.b16 %v14220_v14  ;;  %v11733_v45 = vunpack.c.l.b16 %v14223_v16  ;;  %v14232_v50 = vpack.c.bf16 %v14231_v48, %v14231_v48 }
 0x386   :  { %v11738_v35 = vunpack.c.l.b16 %v14226_v49  ;;  %v11743_v42 = vunpack.c.l.b16 %v14229_v9 }
 0x387   :  { %14221 = vst [vmem:[#allocation24_spill] sm:$0xff] %v11728_v31  ;;  %14224 = vst [vmem:[#allocation25_spill] sm:$0xff] %v11733_v45  ;;  %v11748_v14 = vunpack.c.l.b16 %v14232_v50  ;;  %v14234_v31 = vld [vmem:[#allocation46_spill] sm:$0xff]  ;;  %v14237_v45 = vld [vmem:[#allocation47_spill] sm:$0xff] }
 0x388   :  { %14227 = vst [vmem:[#allocation225_spill] sm:$0xff] %v11738_v35  ;;  %14230 = vst [vmem:[#allocation226_spill] sm:$0xff] %v11743_v42  ;;  %v14235_v52 = vpack.c.bf16 %v14234_v31, %v14234_v31  ;;  %v14238_v53 = vpack.c.bf16 %v14237_v45, %v14237_v45  ;;  %v14240_v35 = vld [vmem:[#allocation48_spill] sm:$0xff]  ;;  %v14243_v42 = vld [vmem:[#allocation49_spill] sm:$0xff] }
 0x389   :  { %14233 = vst [vmem:[#allocation227_spill] sm:$0xff] %v11748_v14  ;;  %v14241_v62 = vpack.c.bf16 %v14240_v35, %v14240_v35  ;;  %v14244_v48 = vpack.c.bf16 %v14243_v42, %v14243_v42  ;;  %v14246_v14 = vld [vmem:[#allocation50_spill] sm:$0xff] }
 0x38a   :  { %v11753_v16 = vunpack.c.l.b16 %v14235_v52  ;;  %v11758_v49 = vunpack.c.l.b16 %v14238_v53  ;;  %v14247_v31 = vpack.c.bf16 %v14246_v14, %v14246_v14 }
 0x38b   :  { %v11763_v9 = vunpack.c.l.b16 %v14241_v62  ;;  %v11768_v50 = vunpack.c.l.b16 %v14244_v48 }
 0x38c   :  { %14236 = vst [vmem:[#allocation228_spill] sm:$0xff] %v11753_v16  ;;  %14239 = vst [vmem:[#allocation229_spill] sm:$0xff] %v11758_v49  ;;  %v11773_v52 = vunpack.c.l.b16 %v14247_v31  ;;  %v14249_v16 = vld [vmem:[#allocation51_spill] sm:$0xff]  ;;  %v14252_v49 = vld [vmem:[#allocation52_spill] sm:$0xff] }
 0x38d   :  { %14242 = vst [vmem:[#allocation230_spill] sm:$0xff] %v11763_v9  ;;  %14245 = vst [vmem:[#allocation231_spill] sm:$0xff] %v11768_v50  ;;  %v14250_v45 = vpack.c.bf16 %v14249_v16, %v14249_v16  ;;  %v14253_v35 = vpack.c.bf16 %v14252_v49, %v14252_v49  ;;  %v14255_v9 = vld [vmem:[#allocation53_spill] sm:$0xff]  ;;  %v14258_v50 = vld [vmem:[#allocation54_spill] sm:$0xff] }
 0x38e   :  { %14248 = vst [vmem:[#allocation232_spill] sm:$0xff] %v11773_v52  ;;  %v14256_v42 = vpack.c.bf16 %v14255_v9, %v14255_v9  ;;  %v14259_v14 = vpack.c.bf16 %v14258_v50, %v14258_v50  ;;  %v14261_v52 = vld [vmem:[#allocation55_spill] sm:$0xff] }
 0x38f   :  { %v11778_v53 = vunpack.c.l.b16 %v14250_v45  ;;  %v11783_v62 = vunpack.c.l.b16 %v14253_v35  ;;  %v14262_v16 = vpack.c.bf16 %v14261_v52, %v14261_v52 }
 0x390   :  { %v11788_v48 = vunpack.c.l.b16 %v14256_v42  ;;  %v11793_v31 = vunpack.c.l.b16 %v14259_v14 }
 0x391   :  { %14251 = vst [vmem:[#allocation26_spill] sm:$0xff] %v11778_v53  ;;  %14254 = vst [vmem:[#allocation27_spill] sm:$0xff] %v11783_v62  ;;  %v11798_v45 = vunpack.c.l.b16 %v14262_v16  ;;  %v14264_v53 = vld [vmem:[#allocation56_spill] sm:$0xff]  ;;  %v14267_v62 = vld [vmem:[#allocation57_spill] sm:$0xff] }
 0x392   :  { %14257 = vst [vmem:[#allocation28_spill] sm:$0xff] %v11788_v48  ;;  %14260 = vst [vmem:[#allocation29_spill] sm:$0xff] %v11793_v31  ;;  %v14265_v49 = vpack.c.bf16 %v14264_v53, %v14264_v53  ;;  %v14268_v9 = vpack.c.bf16 %v14267_v62, %v14267_v62  ;;  %v14270_v48 = vld [vmem:[#allocation58_spill] sm:$0xff]  ;;  %v14273_v31 = vld [vmem:[#allocation59_spill] sm:$0xff] }
 0x393   :  { %14263 = vst [vmem:[#allocation30_spill] sm:$0xff] %v11798_v45  ;;  %v14271_v50 = vpack.c.bf16 %v14270_v48, %v14270_v48  ;;  %v14274_v52 = vpack.c.bf16 %v14273_v31, %v14273_v31  ;;  %v14276_v45 = vld [vmem:[#allocation60_spill] sm:$0xff] }
 0x394   :  { %v11803_v35 = vunpack.c.l.b16 %v14265_v49  ;;  %v11808_v42 = vunpack.c.l.b16 %v14268_v9  ;;  %v14277_v53 = vpack.c.bf16 %v14276_v45, %v14276_v45 }
 0x395   :  { %v11813_v14 = vunpack.c.l.b16 %v14271_v50  ;;  %v11818_v16 = vunpack.c.l.b16 %v14274_v52 }
 0x396   :  { %14266 = vst [vmem:[#allocation31_spill] sm:$0xff] %v11803_v35  ;;  %14269 = vst [vmem:[#allocation32_spill] sm:$0xff] %v11808_v42  ;;  %v11823_v49 = vunpack.c.l.b16 %v14277_v53  ;;  %v14279_v35 = vld [vmem:[#allocation61_spill] sm:$0xff]  ;;  %v14282_v42 = vld [vmem:[#allocation62_spill] sm:$0xff] }
 0x397   :  { %14272 = vst [vmem:[#allocation33_spill] sm:$0xff] %v11813_v14  ;;  %14275 = vst [vmem:[#allocation34_spill] sm:$0xff] %v11818_v16  ;;  %v14280_v62 = vpack.c.bf16 %v14279_v35, %v14279_v35  ;;  %v14283_v48 = vpack.c.bf16 %v14282_v42, %v14282_v42  ;;  %v14285_v14 = vld [vmem:[#allocation63_spill] sm:$0xff]  ;;  %v14288_v16 = vld [vmem:[#allocation64_spill] sm:$0xff] }
 0x398   :  { %14278 = vst [vmem:[#allocation35_spill] sm:$0xff] %v11823_v49  ;;  %v14286_v31 = vpack.c.bf16 %v14285_v14, %v14285_v14  ;;  %v14289_v45 = vpack.c.bf16 %v14288_v16, %v14288_v16  ;;  %v14291_v49 = vld [vmem:[#allocation65_spill] sm:$0xff] }
 0x399   :  { %v11828_v9 = vunpack.c.l.b16 %v14280_v62  ;;  %v11833_v50 = vunpack.c.l.b16 %v14283_v48  ;;  %v14292_v35 = vpack.c.bf16 %v14291_v49, %v14291_v49 }
 0x39a   :  { %v11838_v52 = vunpack.c.l.b16 %v14286_v31  ;;  %v11843_v53 = vunpack.c.l.b16 %v14289_v45 }
 0x39b   :  { %14281 = vst [vmem:[#allocation36_spill] sm:$0xff] %v11828_v9  ;;  %14284 = vst [vmem:[#allocation37_spill] sm:$0xff] %v11833_v50  ;;  %v11848_v62 = vunpack.c.l.b16 %v14292_v35  ;;  %v14294_v9 = vld [vmem:[#allocation66_spill] sm:$0xff]  ;;  %v14297_v50 = vld [vmem:[#allocation67_spill] sm:$0xff] }
 0x39c   :  { %14287 = vst [vmem:[#allocation38_spill] sm:$0xff] %v11838_v52  ;;  %14290 = vst [vmem:[#allocation39_spill] sm:$0xff] %v11843_v53  ;;  %v14295_v42 = vpack.c.bf16 %v14294_v9, %v14294_v9  ;;  %v14298_v14 = vpack.c.bf16 %v14297_v50, %v14297_v50  ;;  %v14300_v52 = vld [vmem:[#allocation68_spill] sm:$0xff]  ;;  %v14303_v53 = vld [vmem:[#allocation69_spill] sm:$0xff] }
 0x39d   :  { %14293 = vst [vmem:[#allocation40_spill] sm:$0xff] %v11848_v62  ;;  %v14301_v16 = vpack.c.bf16 %v14300_v52, %v14300_v52  ;;  %v14304_v49 = vpack.c.bf16 %v14303_v53, %v14303_v53  ;;  %v14306_v62 = vld [vmem:[#allocation70_spill] sm:$0xff] }
 0x39e   :  { %v11853_v48 = vunpack.c.l.b16 %v14295_v42  ;;  %v11858_v31 = vunpack.c.l.b16 %v14298_v14  ;;  %v14307_v9 = vpack.c.bf16 %v14306_v62, %v14306_v62 }
 0x39f   :  { %v11863_v45 = vunpack.c.l.b16 %v14301_v16  ;;  %v11868_v35 = vunpack.c.l.b16 %v14304_v49 }
 0x3a0   :  { %14296 = vst [vmem:[#allocation41_spill] sm:$0xff] %v11853_v48  ;;  %14299 = vst [vmem:[#allocation42_spill] sm:$0xff] %v11858_v31  ;;  %v11873_v42 = vunpack.c.l.b16 %v14307_v9  ;;  %v14309_v48 = vld [vmem:[#allocation71_spill] sm:$0xff]  ;;  %v14312_v31 = vld [vmem:[#allocation72_spill] sm:$0xff] }
 0x3a1   :  { %14302 = vst [vmem:[#allocation43_spill] sm:$0xff] %v11863_v45  ;;  %14305 = vst [vmem:[#allocation44_spill] sm:$0xff] %v11868_v35  ;;  %v14310_v50 = vpack.c.bf16 %v14309_v48, %v14309_v48  ;;  %v14313_v52 = vpack.c.bf16 %v14312_v31, %v14312_v31  ;;  %v14315_v45 = vld [vmem:[#allocation73_spill] sm:$0xff]  ;;  %v14318_v35 = vld [vmem:[#allocation74_spill] sm:$0xff] }
 0x3a2   :  { %14308 = vst [vmem:[#allocation45_spill] sm:$0xff] %v11873_v42  ;;  %v14316_v53 = vpack.c.bf16 %v14315_v45, %v14315_v45  ;;  %v14319_v62 = vpack.c.bf16 %v14318_v35, %v14318_v35  ;;  %v14321_v42 = vld [vmem:[#allocation75_spill] sm:$0xff] }
 0x3a3   :  { %v11878_v14 = vunpack.c.l.b16 %v14310_v50  ;;  %v11883_v16 = vunpack.c.l.b16 %v14313_v52  ;;  %v14322_v48 = vpack.c.bf16 %v14321_v42, %v14321_v42 }
 0x3a4   :  { %v11888_v49 = vunpack.c.l.b16 %v14316_v53  ;;  %v11893_v9 = vunpack.c.l.b16 %v14319_v62 }
 0x3a5   :  { %14311 = vst [vmem:[#allocation46_spill] sm:$0xff] %v11878_v14  ;;  %14314 = vst [vmem:[#allocation47_spill] sm:$0xff] %v11883_v16  ;;  %v11898_v50 = vunpack.c.l.b16 %v14322_v48  ;;  %v14324_v14 = vld [vmem:[#allocation76_spill] sm:$0xff]  ;;  %v14327_v16 = vld [vmem:[#allocation77_spill] sm:$0xff] }
 0x3a6   :  { %14317 = vst [vmem:[#allocation48_spill] sm:$0xff] %v11888_v49  ;;  %14320 = vst [vmem:[#allocation49_spill] sm:$0xff] %v11893_v9  ;;  %v14325_v31 = vpack.c.bf16 %v14324_v14, %v14324_v14  ;;  %v14328_v45 = vpack.c.bf16 %v14327_v16, %v14327_v16  ;;  %v14330_v49 = vld [vmem:[#allocation78_spill] sm:$0xff]  ;;  %v14333_v9 = vld [vmem:[#allocation79_spill] sm:$0xff] }
 0x3a7   :  { %14323 = vst [vmem:[#allocation50_spill] sm:$0xff] %v11898_v50  ;;  %v14331_v35 = vpack.c.bf16 %v14330_v49, %v14330_v49  ;;  %v14334_v42 = vpack.c.bf16 %v14333_v9, %v14333_v9  ;;  %v14336_v50 = vld [vmem:[#allocation80_spill] sm:$0xff] }
 0x3a8   :  { %v11903_v52 = vunpack.c.l.b16 %v14325_v31  ;;  %v11908_v53 = vunpack.c.l.b16 %v14328_v45  ;;  %v14337_v14 = vpack.c.bf16 %v14336_v50, %v14336_v50 }
 0x3a9   :  { %v11913_v62 = vunpack.c.l.b16 %v14331_v35  ;;  %v11918_v48 = vunpack.c.l.b16 %v14334_v42 }
 0x3aa   :  { %14326 = vst [vmem:[#allocation51_spill] sm:$0xff] %v11903_v52  ;;  %14329 = vst [vmem:[#allocation52_spill] sm:$0xff] %v11908_v53  ;;  %v11923_v31 = vunpack.c.l.b16 %v14337_v14  ;;  %v14339_v52 = vld [vmem:[#allocation81_spill] sm:$0xff]  ;;  %v14342_v53 = vld [vmem:[#allocation82_spill] sm:$0xff] }
 0x3ab   :  { %14332 = vst [vmem:[#allocation53_spill] sm:$0xff] %v11913_v62  ;;  %14335 = vst [vmem:[#allocation54_spill] sm:$0xff] %v11918_v48  ;;  %v14340_v16 = vpack.c.bf16 %v14339_v52, %v14339_v52  ;;  %v14343_v49 = vpack.c.bf16 %v14342_v53, %v14342_v53  ;;  %v14345_v62 = vld [vmem:[#allocation83_spill] sm:$0xff]  ;;  %v14348_v48 = vld [vmem:[#allocation84_spill] sm:$0xff] }
 0x3ac   :  { %14338 = vst [vmem:[#allocation55_spill] sm:$0xff] %v11923_v31  ;;  %v14346_v9 = vpack.c.bf16 %v14345_v62, %v14345_v62  ;;  %v14349_v50 = vpack.c.bf16 %v14348_v48, %v14348_v48  ;;  %v14351_v31 = vld [vmem:[#allocation85_spill] sm:$0xff] }
 0x3ad   :  { %v11928_v45 = vunpack.c.l.b16 %v14340_v16  ;;  %v11933_v35 = vunpack.c.l.b16 %v14343_v49  ;;  %v14352_v52 = vpack.c.bf16 %v14351_v31, %v14351_v31 }
 0x3ae   :  { %v11938_v42 = vunpack.c.l.b16 %v14346_v9  ;;  %v11943_v14 = vunpack.c.l.b16 %v14349_v50 }
 0x3af   :  { %14341 = vst [vmem:[#allocation56_spill] sm:$0xff] %v11928_v45  ;;  %14344 = vst [vmem:[#allocation57_spill] sm:$0xff] %v11933_v35  ;;  %v11948_v16 = vunpack.c.l.b16 %v14352_v52  ;;  %v14354_v45 = vld [vmem:[#allocation86_spill] sm:$0xff]  ;;  %v14357_v35 = vld [vmem:[#allocation87_spill] sm:$0xff] }
 0x3b0   :  { %14347 = vst [vmem:[#allocation58_spill] sm:$0xff] %v11938_v42  ;;  %14350 = vst [vmem:[#allocation59_spill] sm:$0xff] %v11943_v14  ;;  %v14355_v53 = vpack.c.bf16 %v14354_v45, %v14354_v45  ;;  %v14358_v62 = vpack.c.bf16 %v14357_v35, %v14357_v35  ;;  %v14360_v42 = vld [vmem:[#allocation88_spill] sm:$0xff]  ;;  %v14363_v14 = vld [vmem:[#allocation89_spill] sm:$0xff] }
 0x3b1   :  { %14353 = vst [vmem:[#allocation60_spill] sm:$0xff] %v11948_v16  ;;  %v14361_v48 = vpack.c.bf16 %v14360_v42, %v14360_v42  ;;  %v14364_v31 = vpack.c.bf16 %v14363_v14, %v14363_v14  ;;  %v14366_v16 = vld [vmem:[#allocation90_spill] sm:$0xff] }
 0x3b2   :  { %v11953_v49 = vunpack.c.l.b16 %v14355_v53  ;;  %v11958_v9 = vunpack.c.l.b16 %v14358_v62  ;;  %v14367_v45 = vpack.c.bf16 %v14366_v16, %v14366_v16 }
 0x3b3   :  { %v11963_v50 = vunpack.c.l.b16 %v14361_v48  ;;  %v11968_v52 = vunpack.c.l.b16 %v14364_v31 }
 0x3b4   :  { %14356 = vst [vmem:[#allocation61_spill] sm:$0xff] %v11953_v49  ;;  %14359 = vst [vmem:[#allocation62_spill] sm:$0xff] %v11958_v9  ;;  %v11973_v53 = vunpack.c.l.b16 %v14367_v45  ;;  %v14369_v49 = vld [vmem:[#allocation91_spill] sm:$0xff]  ;;  %v14372_v9 = vld [vmem:[#allocation92_spill] sm:$0xff] }
 0x3b5   :  { %14362 = vst [vmem:[#allocation63_spill] sm:$0xff] %v11963_v50  ;;  %14365 = vst [vmem:[#allocation64_spill] sm:$0xff] %v11968_v52  ;;  %v14370_v35 = vpack.c.bf16 %v14369_v49, %v14369_v49  ;;  %v14373_v42 = vpack.c.bf16 %v14372_v9, %v14372_v9  ;;  %v14375_v50 = vld [vmem:[#allocation93_spill] sm:$0xff]  ;;  %v14378_v52 = vld [vmem:[#allocation94_spill] sm:$0xff] }
 0x3b6   :  { %14368 = vst [vmem:[#allocation65_spill] sm:$0xff] %v11973_v53  ;;  %v14376_v14 = vpack.c.bf16 %v14375_v50, %v14375_v50  ;;  %v14379_v16 = vpack.c.bf16 %v14378_v52, %v14378_v52  ;;  %v14381_v53 = vld [vmem:[#allocation95_spill] sm:$0xff] }
 0x3b7   :  { %v11978_v62 = vunpack.c.l.b16 %v14370_v35  ;;  %v11983_v48 = vunpack.c.l.b16 %v14373_v42  ;;  %v14382_v49 = vpack.c.bf16 %v14381_v53, %v14381_v53 }
 0x3b8   :  { %v11988_v31 = vunpack.c.l.b16 %v14376_v14  ;;  %v11993_v45 = vunpack.c.l.b16 %v14379_v16 }
 0x3b9   :  { %14371 = vst [vmem:[#allocation66_spill] sm:$0xff] %v11978_v62  ;;  %14374 = vst [vmem:[#allocation67_spill] sm:$0xff] %v11983_v48  ;;  %v11998_v35 = vunpack.c.l.b16 %v14382_v49  ;;  %v14384_v62 = vld [vmem:[#allocation96_spill] sm:$0xff]  ;;  %v14387_v48 = vld [vmem:[#allocation97_spill] sm:$0xff] }
 0x3ba   :  { %14377 = vst [vmem:[#allocation68_spill] sm:$0xff] %v11988_v31  ;;  %14380 = vst [vmem:[#allocation69_spill] sm:$0xff] %v11993_v45  ;;  %v14385_v9 = vpack.c.bf16 %v14384_v62, %v14384_v62  ;;  %v14388_v50 = vpack.c.bf16 %v14387_v48, %v14387_v48  ;;  %v14390_v31 = vld [vmem:[#allocation98_spill] sm:$0xff]  ;;  %v14393_v45 = vld [vmem:[#allocation99_spill] sm:$0xff] }
 0x3bb   :  { %14383 = vst [vmem:[#allocation70_spill] sm:$0xff] %v11998_v35  ;;  %v14391_v52 = vpack.c.bf16 %v14390_v31, %v14390_v31  ;;  %v14394_v53 = vpack.c.bf16 %v14393_v45, %v14393_v45  ;;  %v14396_v35 = vld [vmem:[#allocation100_spill] sm:$0xff] }
 0x3bc   :  { %v12003_v42 = vunpack.c.l.b16 %v14385_v9  ;;  %v12008_v14 = vunpack.c.l.b16 %v14388_v50  ;;  %v14397_v62 = vpack.c.bf16 %v14396_v35, %v14396_v35 }
 0x3bd   :  { %v12013_v16 = vunpack.c.l.b16 %v14391_v52  ;;  %v12018_v49 = vunpack.c.l.b16 %v14394_v53 }
 0x3be   :  { %14386 = vst [vmem:[#allocation71_spill] sm:$0xff] %v12003_v42  ;;  %14389 = vst [vmem:[#allocation72_spill] sm:$0xff] %v12008_v14  ;;  %v12023_v9 = vunpack.c.l.b16 %v14397_v62  ;;  %v14399_v42 = vld [vmem:[#allocation101_spill] sm:$0xff]  ;;  %v14402_v14 = vld [vmem:[#allocation102_spill] sm:$0xff] }
 0x3bf   :  { %14392 = vst [vmem:[#allocation73_spill] sm:$0xff] %v12013_v16  ;;  %14395 = vst [vmem:[#allocation74_spill] sm:$0xff] %v12018_v49  ;;  %v14400_v48 = vpack.c.bf16 %v14399_v42, %v14399_v42  ;;  %v14403_v31 = vpack.c.bf16 %v14402_v14, %v14402_v14  ;;  %v14405_v16 = vld [vmem:[#allocation103_spill] sm:$0xff]  ;;  %v14408_v49 = vld [vmem:[#allocation104_spill] sm:$0xff] }
 0x3c0   :  { %14398 = vst [vmem:[#allocation75_spill] sm:$0xff] %v12023_v9  ;;  %v14406_v45 = vpack.c.bf16 %v14405_v16, %v14405_v16  ;;  %v14409_v35 = vpack.c.bf16 %v14408_v49, %v14408_v49  ;;  %v14411_v9 = vld [vmem:[#allocation105_spill] sm:$0xff] }
 0x3c1   :  { %v12028_v50 = vunpack.c.l.b16 %v14400_v48  ;;  %v12033_v52 = vunpack.c.l.b16 %v14403_v31  ;;  %v14412_v42 = vpack.c.bf16 %v14411_v9, %v14411_v9 }
 0x3c2   :  { %v12038_v53 = vunpack.c.l.b16 %v14406_v45  ;;  %v12043_v62 = vunpack.c.l.b16 %v14409_v35 }
 0x3c3   :  { %14401 = vst [vmem:[#allocation76_spill] sm:$0xff] %v12028_v50  ;;  %14404 = vst [vmem:[#allocation77_spill] sm:$0xff] %v12033_v52  ;;  %v12048_v48 = vunpack.c.l.b16 %v14412_v42  ;;  %v14414_v50 = vld [vmem:[#allocation106_spill] sm:$0xff]  ;;  %v14417_v52 = vld [vmem:[#allocation107_spill] sm:$0xff] }
 0x3c4   :  { %14407 = vst [vmem:[#allocation78_spill] sm:$0xff] %v12038_v53  ;;  %14410 = vst [vmem:[#allocation79_spill] sm:$0xff] %v12043_v62  ;;  %v14415_v14 = vpack.c.bf16 %v14414_v50, %v14414_v50  ;;  %v14418_v16 = vpack.c.bf16 %v14417_v52, %v14417_v52  ;;  %v14420_v53 = vld [vmem:[#allocation108_spill] sm:$0xff]  ;;  %v14423_v62 = vld [vmem:[#allocation109_spill] sm:$0xff] }
 0x3c5   :  { %14413 = vst [vmem:[#allocation80_spill] sm:$0xff] %v12048_v48  ;;  %v14421_v49 = vpack.c.bf16 %v14420_v53, %v14420_v53  ;;  %v14424_v9 = vpack.c.bf16 %v14423_v62, %v14423_v62  ;;  %v14426_v48 = vld [vmem:[#allocation110_spill] sm:$0xff] }
 0x3c6   :  { %v12053_v31 = vunpack.c.l.b16 %v14415_v14  ;;  %v12058_v45 = vunpack.c.l.b16 %v14418_v16  ;;  %v14427_v50 = vpack.c.bf16 %v14426_v48, %v14426_v48 }
 0x3c7   :  { %v12063_v35 = vunpack.c.l.b16 %v14421_v49  ;;  %v12068_v42 = vunpack.c.l.b16 %v14424_v9 }
 0x3c8   :  { %14416 = vst [vmem:[#allocation81_spill] sm:$0xff] %v12053_v31  ;;  %14419 = vst [vmem:[#allocation82_spill] sm:$0xff] %v12058_v45  ;;  %v12073_v14 = vunpack.c.l.b16 %v14427_v50  ;;  %v14429_v31 = vld [vmem:[#allocation111_spill] sm:$0xff]  ;;  %v14432_v45 = vld [vmem:[#allocation112_spill] sm:$0xff] }
 0x3c9   :  { %14422 = vst [vmem:[#allocation83_spill] sm:$0xff] %v12063_v35  ;;  %14425 = vst [vmem:[#allocation84_spill] sm:$0xff] %v12068_v42  ;;  %v14430_v52 = vpack.c.bf16 %v14429_v31, %v14429_v31  ;;  %v14433_v53 = vpack.c.bf16 %v14432_v45, %v14432_v45  ;;  %v14435_v35 = vld [vmem:[#allocation113_spill] sm:$0xff]  ;;  %v14438_v42 = vld [vmem:[#allocation114_spill] sm:$0xff] }
 0x3ca   :  { %14428 = vst [vmem:[#allocation85_spill] sm:$0xff] %v12073_v14  ;;  %v14436_v62 = vpack.c.bf16 %v14435_v35, %v14435_v35  ;;  %v14439_v48 = vpack.c.bf16 %v14438_v42, %v14438_v42  ;;  %v14441_v14 = vld [vmem:[#allocation115_spill] sm:$0xff] }
 0x3cb   :  { %v12078_v16 = vunpack.c.l.b16 %v14430_v52  ;;  %v12083_v49 = vunpack.c.l.b16 %v14433_v53  ;;  %v14442_v31 = vpack.c.bf16 %v14441_v14, %v14441_v14 }
 0x3cc   :  { %v12088_v9 = vunpack.c.l.b16 %v14436_v62  ;;  %v12093_v50 = vunpack.c.l.b16 %v14439_v48 }
 0x3cd   :  { %14431 = vst [vmem:[#allocation86_spill] sm:$0xff] %v12078_v16  ;;  %14434 = vst [vmem:[#allocation87_spill] sm:$0xff] %v12083_v49  ;;  %v12098_v52 = vunpack.c.l.b16 %v14442_v31  ;;  %v14444_v16 = vld [vmem:[#allocation116_spill] sm:$0xff]  ;;  %v14447_v49 = vld [vmem:[#allocation117_spill] sm:$0xff] }
 0x3ce   :  { %14437 = vst [vmem:[#allocation88_spill] sm:$0xff] %v12088_v9  ;;  %14440 = vst [vmem:[#allocation89_spill] sm:$0xff] %v12093_v50  ;;  %v14445_v45 = vpack.c.bf16 %v14444_v16, %v14444_v16  ;;  %v14448_v35 = vpack.c.bf16 %v14447_v49, %v14447_v49  ;;  %v14450_v9 = vld [vmem:[#allocation118_spill] sm:$0xff]  ;;  %v14453_v50 = vld [vmem:[#allocation119_spill] sm:$0xff] }
 0x3cf   :  { %14443 = vst [vmem:[#allocation90_spill] sm:$0xff] %v12098_v52  ;;  %v14451_v42 = vpack.c.bf16 %v14450_v9, %v14450_v9  ;;  %v14454_v14 = vpack.c.bf16 %v14453_v50, %v14453_v50  ;;  %v14456_v52 = vld [vmem:[#allocation120_spill] sm:$0xff] }
 0x3d0   :  { %v12103_v53 = vunpack.c.l.b16 %v14445_v45  ;;  %v12108_v62 = vunpack.c.l.b16 %v14448_v35  ;;  %v14457_v16 = vpack.c.bf16 %v14456_v52, %v14456_v52 }
 0x3d1   :  { %v12113_v48 = vunpack.c.l.b16 %v14451_v42  ;;  %v12118_v31 = vunpack.c.l.b16 %v14454_v14 }
 0x3d2   :  { %14446 = vst [vmem:[#allocation91_spill] sm:$0xff] %v12103_v53  ;;  %14449 = vst [vmem:[#allocation92_spill] sm:$0xff] %v12108_v62  ;;  %v12123_v45 = vunpack.c.l.b16 %v14457_v16  ;;  %v14459_v53 = vld [vmem:[#allocation121_spill] sm:$0xff]  ;;  %v14462_v62 = vld [vmem:[#allocation122_spill] sm:$0xff] }
 0x3d3   :  { %14452 = vst [vmem:[#allocation93_spill] sm:$0xff] %v12113_v48  ;;  %14455 = vst [vmem:[#allocation94_spill] sm:$0xff] %v12118_v31  ;;  %v14460_v49 = vpack.c.bf16 %v14459_v53, %v14459_v53  ;;  %v14463_v9 = vpack.c.bf16 %v14462_v62, %v14462_v62  ;;  %v14465_v48 = vld [vmem:[#allocation123_spill] sm:$0xff]  ;;  %v14468_v31 = vld [vmem:[#allocation124_spill] sm:$0xff] }
 0x3d4   :  { %14458 = vst [vmem:[#allocation95_spill] sm:$0xff] %v12123_v45  ;;  %v14466_v50 = vpack.c.bf16 %v14465_v48, %v14465_v48  ;;  %v14469_v52 = vpack.c.bf16 %v14468_v31, %v14468_v31  ;;  %v14471_v45 = vld [vmem:[#allocation125_spill] sm:$0xff] }
 0x3d5   :  { %v12128_v35 = vunpack.c.l.b16 %v14460_v49  ;;  %v12133_v42 = vunpack.c.l.b16 %v14463_v9  ;;  %v14472_v53 = vpack.c.bf16 %v14471_v45, %v14471_v45 }
 0x3d6   :  { %v12138_v14 = vunpack.c.l.b16 %v14466_v50  ;;  %v12143_v16 = vunpack.c.l.b16 %v14469_v52 }
 0x3d7   :  { %14461 = vst [vmem:[#allocation96_spill] sm:$0xff] %v12128_v35  ;;  %14464 = vst [vmem:[#allocation97_spill] sm:$0xff] %v12133_v42  ;;  %v12148_v49 = vunpack.c.l.b16 %v14472_v53  ;;  %v14474_v35 = vld [vmem:[#allocation126_spill] sm:$0xff]  ;;  %v14477_v42 = vld [vmem:[#allocation127_spill] sm:$0xff] }
 0x3d8   :  { %14467 = vst [vmem:[#allocation98_spill] sm:$0xff] %v12138_v14  ;;  %14470 = vst [vmem:[#allocation99_spill] sm:$0xff] %v12143_v16  ;;  %v14475_v62 = vpack.c.bf16 %v14474_v35, %v14474_v35  ;;  %v14478_v48 = vpack.c.bf16 %v14477_v42, %v14477_v42  ;;  %v14480_v14 = vld [vmem:[#allocation128_spill] sm:$0xff]  ;;  %v14483_v16 = vld [vmem:[#allocation129_spill] sm:$0xff] }
 0x3d9   :  { %14473 = vst [vmem:[#allocation100_spill] sm:$0xff] %v12148_v49  ;;  %v14481_v31 = vpack.c.bf16 %v14480_v14, %v14480_v14  ;;  %v14484_v45 = vpack.c.bf16 %v14483_v16, %v14483_v16  ;;  %v14486_v49 = vld [vmem:[#allocation130_spill] sm:$0xff] }
 0x3da   :  { %v12153_v9 = vunpack.c.l.b16 %v14475_v62  ;;  %v12158_v50 = vunpack.c.l.b16 %v14478_v48  ;;  %v14487_v35 = vpack.c.bf16 %v14486_v49, %v14486_v49 }
 0x3db   :  { %v12163_v52 = vunpack.c.l.b16 %v14481_v31  ;;  %v12168_v53 = vunpack.c.l.b16 %v14484_v45 }
 0x3dc   :  { %14476 = vst [vmem:[#allocation101_spill] sm:$0xff] %v12153_v9  ;;  %14479 = vst [vmem:[#allocation102_spill] sm:$0xff] %v12158_v50  ;;  %v12173_v62 = vunpack.c.l.b16 %v14487_v35  ;;  %v14489_v9 = vld [vmem:[#allocation131_spill] sm:$0xff]  ;;  %v14492_v50 = vld [vmem:[#allocation132_spill] sm:$0xff] }
 0x3dd   :  { %14482 = vst [vmem:[#allocation103_spill] sm:$0xff] %v12163_v52  ;;  %14485 = vst [vmem:[#allocation104_spill] sm:$0xff] %v12168_v53  ;;  %v14490_v42 = vpack.c.bf16 %v14489_v9, %v14489_v9  ;;  %v14493_v14 = vpack.c.bf16 %v14492_v50, %v14492_v50  ;;  %v14495_v52 = vld [vmem:[#allocation133_spill] sm:$0xff]  ;;  %v14498_v53 = vld [vmem:[#allocation134_spill] sm:$0xff] }
 0x3de   :  { %14488 = vst [vmem:[#allocation105_spill] sm:$0xff] %v12173_v62  ;;  %v14496_v16 = vpack.c.bf16 %v14495_v52, %v14495_v52  ;;  %v14499_v49 = vpack.c.bf16 %v14498_v53, %v14498_v53  ;;  %v14501_v62 = vld [vmem:[#allocation135_spill] sm:$0xff] }
 0x3df   :  { %v12178_v48 = vunpack.c.l.b16 %v14490_v42  ;;  %v12183_v31 = vunpack.c.l.b16 %v14493_v14  ;;  %v14502_v9 = vpack.c.bf16 %v14501_v62, %v14501_v62 }
 0x3e0   :  { %v12188_v45 = vunpack.c.l.b16 %v14496_v16  ;;  %v12193_v35 = vunpack.c.l.b16 %v14499_v49 }
 0x3e1   :  { %14491 = vst [vmem:[#allocation106_spill] sm:$0xff] %v12178_v48  ;;  %14494 = vst [vmem:[#allocation107_spill] sm:$0xff] %v12183_v31  ;;  %v12198_v42 = vunpack.c.l.b16 %v14502_v9  ;;  %v14504_v48 = vld [vmem:[#allocation136_spill] sm:$0xff]  ;;  %v14507_v31 = vld [vmem:[#allocation137_spill] sm:$0xff] }
 0x3e2   :  { %14497 = vst [vmem:[#allocation108_spill] sm:$0xff] %v12188_v45  ;;  %14500 = vst [vmem:[#allocation109_spill] sm:$0xff] %v12193_v35  ;;  %v14505_v50 = vpack.c.bf16 %v14504_v48, %v14504_v48  ;;  %v14508_v52 = vpack.c.bf16 %v14507_v31, %v14507_v31  ;;  %v14510_v45 = vld [vmem:[#allocation138_spill] sm:$0xff]  ;;  %v14513_v35 = vld [vmem:[#allocation139_spill] sm:$0xff] }
 0x3e3   :  { %14503 = vst [vmem:[#allocation110_spill] sm:$0xff] %v12198_v42  ;;  %v14511_v53 = vpack.c.bf16 %v14510_v45, %v14510_v45  ;;  %v14514_v62 = vpack.c.bf16 %v14513_v35, %v14513_v35  ;;  %v14516_v42 = vld [vmem:[#allocation140_spill] sm:$0xff] }
 0x3e4   :  { %v12203_v14 = vunpack.c.l.b16 %v14505_v50  ;;  %v12208_v16 = vunpack.c.l.b16 %v14508_v52  ;;  %v14517_v48 = vpack.c.bf16 %v14516_v42, %v14516_v42 }
 0x3e5   :  { %v12213_v49 = vunpack.c.l.b16 %v14511_v53  ;;  %v12218_v9 = vunpack.c.l.b16 %v14514_v62 }
 0x3e6   :  { %14506 = vst [vmem:[#allocation111_spill] sm:$0xff] %v12203_v14  ;;  %14509 = vst [vmem:[#allocation112_spill] sm:$0xff] %v12208_v16  ;;  %v12223_v50 = vunpack.c.l.b16 %v14517_v48  ;;  %v14519_v14 = vld [vmem:[#allocation141_spill] sm:$0xff]  ;;  %v14522_v16 = vld [vmem:[#allocation142_spill] sm:$0xff] }
 0x3e7   :  { %14512 = vst [vmem:[#allocation113_spill] sm:$0xff] %v12213_v49  ;;  %14515 = vst [vmem:[#allocation114_spill] sm:$0xff] %v12218_v9  ;;  %v14520_v31 = vpack.c.bf16 %v14519_v14, %v14519_v14  ;;  %v14523_v45 = vpack.c.bf16 %v14522_v16, %v14522_v16  ;;  %v14525_v49 = vld [vmem:[#allocation143_spill] sm:$0xff]  ;;  %v14528_v9 = vld [vmem:[#allocation144_spill] sm:$0xff] }
 0x3e8   :  { %14518 = vst [vmem:[#allocation115_spill] sm:$0xff] %v12223_v50  ;;  %v14526_v35 = vpack.c.bf16 %v14525_v49, %v14525_v49  ;;  %v14529_v42 = vpack.c.bf16 %v14528_v9, %v14528_v9  ;;  %v14531_v50 = vld [vmem:[#allocation145_spill] sm:$0xff] }
 0x3e9   :  { %v12228_v52 = vunpack.c.l.b16 %v14520_v31  ;;  %v12233_v53 = vunpack.c.l.b16 %v14523_v45  ;;  %v14532_v14 = vpack.c.bf16 %v14531_v50, %v14531_v50 }
 0x3ea   :  { %v12238_v62 = vunpack.c.l.b16 %v14526_v35  ;;  %v12243_v48 = vunpack.c.l.b16 %v14529_v42 }
 0x3eb   :  { %14521 = vst [vmem:[#allocation116_spill] sm:$0xff] %v12228_v52  ;;  %14524 = vst [vmem:[#allocation117_spill] sm:$0xff] %v12233_v53  ;;  %v12248_v31 = vunpack.c.l.b16 %v14532_v14  ;;  %v14534_v52 = vld [vmem:[#allocation146_spill] sm:$0xff]  ;;  %v14537_v53 = vld [vmem:[#allocation147_spill] sm:$0xff] }
 0x3ec   :  { %14527 = vst [vmem:[#allocation118_spill] sm:$0xff] %v12238_v62  ;;  %14530 = vst [vmem:[#allocation119_spill] sm:$0xff] %v12243_v48  ;;  %v14535_v16 = vpack.c.bf16 %v14534_v52, %v14534_v52  ;;  %v14538_v49 = vpack.c.bf16 %v14537_v53, %v14537_v53  ;;  %v14540_v62 = vld [vmem:[#allocation148_spill] sm:$0xff]  ;;  %v14543_v48 = vld [vmem:[#allocation149_spill] sm:$0xff] }
 0x3ed   :  { %14533 = vst [vmem:[#allocation120_spill] sm:$0xff] %v12248_v31  ;;  %v14541_v9 = vpack.c.bf16 %v14540_v62, %v14540_v62  ;;  %v14544_v50 = vpack.c.bf16 %v14543_v48, %v14543_v48  ;;  %v14546_v31 = vld [vmem:[#allocation150_spill] sm:$0xff] }
 0x3ee   :  { %v12253_v45 = vunpack.c.l.b16 %v14535_v16  ;;  %v12258_v35 = vunpack.c.l.b16 %v14538_v49  ;;  %v14547_v52 = vpack.c.bf16 %v14546_v31, %v14546_v31 }
 0x3ef   :  { %v12263_v42 = vunpack.c.l.b16 %v14541_v9  ;;  %v12268_v14 = vunpack.c.l.b16 %v14544_v50 }
 0x3f0   :  { %14536 = vst [vmem:[#allocation121_spill] sm:$0xff] %v12253_v45  ;;  %14539 = vst [vmem:[#allocation122_spill] sm:$0xff] %v12258_v35  ;;  %v12273_v16 = vunpack.c.l.b16 %v14547_v52  ;;  %v14549_v45 = vld [vmem:[#allocation151_spill] sm:$0xff]  ;;  %v14552_v35 = vld [vmem:[#allocation152_spill] sm:$0xff] }
 0x3f1   :  { %14542 = vst [vmem:[#allocation123_spill] sm:$0xff] %v12263_v42  ;;  %14545 = vst [vmem:[#allocation124_spill] sm:$0xff] %v12268_v14  ;;  %v14550_v53 = vpack.c.bf16 %v14549_v45, %v14549_v45  ;;  %v14553_v62 = vpack.c.bf16 %v14552_v35, %v14552_v35  ;;  %v14555_v42 = vld [vmem:[#allocation153_spill] sm:$0xff]  ;;  %v14558_v14 = vld [vmem:[#allocation154_spill] sm:$0xff] }
 0x3f2   :  { %14548 = vst [vmem:[#allocation125_spill] sm:$0xff] %v12273_v16  ;;  %v14556_v48 = vpack.c.bf16 %v14555_v42, %v14555_v42  ;;  %v14559_v31 = vpack.c.bf16 %v14558_v14, %v14558_v14  ;;  %v14561_v16 = vld [vmem:[#allocation155_spill] sm:$0xff] }
 0x3f3   :  { %v12278_v49 = vunpack.c.l.b16 %v14550_v53  ;;  %v12283_v9 = vunpack.c.l.b16 %v14553_v62  ;;  %v14562_v45 = vpack.c.bf16 %v14561_v16, %v14561_v16 }
 0x3f4   :  { %v12288_v50 = vunpack.c.l.b16 %v14556_v48  ;;  %v12293_v52 = vunpack.c.l.b16 %v14559_v31 }
 0x3f5   :  { %14551 = vst [vmem:[#allocation126_spill] sm:$0xff] %v12278_v49  ;;  %14554 = vst [vmem:[#allocation127_spill] sm:$0xff] %v12283_v9  ;;  %v12298_v53 = vunpack.c.l.b16 %v14562_v45  ;;  %v14564_v49 = vld [vmem:[#allocation156_spill] sm:$0xff]  ;;  %v14567_v9 = vld [vmem:[#allocation157_spill] sm:$0xff] }
 0x3f6   :  { %14557 = vst [vmem:[#allocation128_spill] sm:$0xff] %v12288_v50  ;;  %14560 = vst [vmem:[#allocation129_spill] sm:$0xff] %v12293_v52  ;;  %v14565_v35 = vpack.c.bf16 %v14564_v49, %v14564_v49  ;;  %v14568_v42 = vpack.c.bf16 %v14567_v9, %v14567_v9  ;;  %v14570_v50 = vld [vmem:[#allocation158_spill] sm:$0xff]  ;;  %v14573_v52 = vld [vmem:[#allocation159_spill] sm:$0xff] }
 0x3f7   :  { %14563 = vst [vmem:[#allocation130_spill] sm:$0xff] %v12298_v53  ;;  %v14571_v14 = vpack.c.bf16 %v14570_v50, %v14570_v50  ;;  %v14574_v16 = vpack.c.bf16 %v14573_v52, %v14573_v52  ;;  %v14576_v53 = vld [vmem:[#allocation160_spill] sm:$0xff] }
 0x3f8   :  { %v12303_v62 = vunpack.c.l.b16 %v14565_v35  ;;  %v12308_v48 = vunpack.c.l.b16 %v14568_v42  ;;  %v14577_v49 = vpack.c.bf16 %v14576_v53, %v14576_v53 }
 0x3f9   :  { %v12313_v31 = vunpack.c.l.b16 %v14571_v14  ;;  %v12318_v45 = vunpack.c.l.b16 %v14574_v16 }
 0x3fa   :  { %14566 = vst [vmem:[#allocation131_spill] sm:$0xff] %v12303_v62  ;;  %14569 = vst [vmem:[#allocation132_spill] sm:$0xff] %v12308_v48  ;;  %v12323_v35 = vunpack.c.l.b16 %v14577_v49  ;;  %v14579_v62 = vld [vmem:[#allocation161_spill] sm:$0xff]  ;;  %v14582_v48 = vld [vmem:[#allocation162_spill] sm:$0xff] }
 0x3fb   :  { %14572 = vst [vmem:[#allocation133_spill] sm:$0xff] %v12313_v31  ;;  %14575 = vst [vmem:[#allocation134_spill] sm:$0xff] %v12318_v45  ;;  %v14580_v9 = vpack.c.bf16 %v14579_v62, %v14579_v62  ;;  %v14583_v50 = vpack.c.bf16 %v14582_v48, %v14582_v48  ;;  %v14585_v31 = vld [vmem:[#allocation163_spill] sm:$0xff]  ;;  %v14588_v45 = vld [vmem:[#allocation164_spill] sm:$0xff] }
 0x3fc   :  { %14578 = vst [vmem:[#allocation135_spill] sm:$0xff] %v12323_v35  ;;  %v14586_v52 = vpack.c.bf16 %v14585_v31, %v14585_v31  ;;  %v14589_v53 = vpack.c.bf16 %v14588_v45, %v14588_v45  ;;  %v14591_v35 = vld [vmem:[#allocation165_spill] sm:$0xff] }
 0x3fd   :  { %v12328_v42 = vunpack.c.l.b16 %v14580_v9  ;;  %v12333_v14 = vunpack.c.l.b16 %v14583_v50  ;;  %v14592_v62 = vpack.c.bf16 %v14591_v35, %v14591_v35 }
 0x3fe   :  { %v12338_v16 = vunpack.c.l.b16 %v14586_v52  ;;  %v12343_v49 = vunpack.c.l.b16 %v14589_v53 }
 0x3ff   :  { %14581 = vst [vmem:[#allocation136_spill] sm:$0xff] %v12328_v42  ;;  %14584 = vst [vmem:[#allocation137_spill] sm:$0xff] %v12333_v14  ;;  %v12348_v9 = vunpack.c.l.b16 %v14592_v62  ;;  %v14594_v42 = vld [vmem:[#allocation166_spill] sm:$0xff]  ;;  %v14597_v14 = vld [vmem:[#allocation167_spill] sm:$0xff] }
 0x400   :  { %14587 = vst [vmem:[#allocation138_spill] sm:$0xff] %v12338_v16  ;;  %14590 = vst [vmem:[#allocation139_spill] sm:$0xff] %v12343_v49  ;;  %v14595_v48 = vpack.c.bf16 %v14594_v42, %v14594_v42  ;;  %v14598_v31 = vpack.c.bf16 %v14597_v14, %v14597_v14  ;;  %v14600_v16 = vld [vmem:[#allocation168_spill] sm:$0xff]  ;;  %v14603_v49 = vld [vmem:[#allocation169_spill] sm:$0xff] }
 0x401   :  { %14593 = vst [vmem:[#allocation140_spill] sm:$0xff] %v12348_v9  ;;  %v14601_v45 = vpack.c.bf16 %v14600_v16, %v14600_v16  ;;  %v14604_v35 = vpack.c.bf16 %v14603_v49, %v14603_v49  ;;  %v14606_v9 = vld [vmem:[#allocation170_spill] sm:$0xff] }
 0x402   :  { %v12353_v50 = vunpack.c.l.b16 %v14595_v48  ;;  %v12358_v52 = vunpack.c.l.b16 %v14598_v31  ;;  %v14607_v42 = vpack.c.bf16 %v14606_v9, %v14606_v9 }
 0x403   :  { %v12363_v53 = vunpack.c.l.b16 %v14601_v45  ;;  %v12368_v62 = vunpack.c.l.b16 %v14604_v35 }
 0x404   :  { %14596 = vst [vmem:[#allocation141_spill] sm:$0xff] %v12353_v50  ;;  %14599 = vst [vmem:[#allocation142_spill] sm:$0xff] %v12358_v52  ;;  %v12373_v48 = vunpack.c.l.b16 %v14607_v42  ;;  %v14609_v50 = vld [vmem:[#allocation171_spill] sm:$0xff]  ;;  %v14612_v52 = vld [vmem:[#allocation172_spill] sm:$0xff] }
 0x405   :  { %14602 = vst [vmem:[#allocation143_spill] sm:$0xff] %v12363_v53  ;;  %14605 = vst [vmem:[#allocation144_spill] sm:$0xff] %v12368_v62  ;;  %v14610_v14 = vpack.c.bf16 %v14609_v50, %v14609_v50  ;;  %v14613_v16 = vpack.c.bf16 %v14612_v52, %v14612_v52  ;;  %v14615_v53 = vld [vmem:[#allocation173_spill] sm:$0xff]  ;;  %v14618_v62 = vld [vmem:[#allocation174_spill] sm:$0xff] }
 0x406   :  { %14608 = vst [vmem:[#allocation145_spill] sm:$0xff] %v12373_v48  ;;  %v14616_v49 = vpack.c.bf16 %v14615_v53, %v14615_v53  ;;  %v14619_v9 = vpack.c.bf16 %v14618_v62, %v14618_v62  ;;  %v14621_v48 = vld [vmem:[#allocation175_spill] sm:$0xff] }
 0x407   :  { %v12378_v31 = vunpack.c.l.b16 %v14610_v14  ;;  %v12383_v45 = vunpack.c.l.b16 %v14613_v16  ;;  %v14622_v50 = vpack.c.bf16 %v14621_v48, %v14621_v48 }
 0x408   :  { %v12388_v35 = vunpack.c.l.b16 %v14616_v49  ;;  %v12393_v42 = vunpack.c.l.b16 %v14619_v9 }
 0x409   :  { %14611 = vst [vmem:[#allocation146_spill] sm:$0xff] %v12378_v31  ;;  %14614 = vst [vmem:[#allocation147_spill] sm:$0xff] %v12383_v45  ;;  %v12398_v14 = vunpack.c.l.b16 %v14622_v50  ;;  %v14624_v31 = vld [vmem:[#allocation176_spill] sm:$0xff]  ;;  %v14627_v45 = vld [vmem:[#allocation177_spill] sm:$0xff] }
 0x40a   :  { %14617 = vst [vmem:[#allocation148_spill] sm:$0xff] %v12388_v35  ;;  %14620 = vst [vmem:[#allocation149_spill] sm:$0xff] %v12393_v42  ;;  %v14625_v52 = vpack.c.bf16 %v14624_v31, %v14624_v31  ;;  %v14628_v53 = vpack.c.bf16 %v14627_v45, %v14627_v45  ;;  %v14630_v35 = vld [vmem:[#allocation178_spill] sm:$0xff]  ;;  %v14633_v42 = vld [vmem:[#allocation179_spill] sm:$0xff] }
 0x40b   :  { %14623 = vst [vmem:[#allocation150_spill] sm:$0xff] %v12398_v14  ;;  %v14631_v62 = vpack.c.bf16 %v14630_v35, %v14630_v35  ;;  %v14634_v48 = vpack.c.bf16 %v14633_v42, %v14633_v42  ;;  %v14636_v14 = vld [vmem:[#allocation180_spill] sm:$0xff] }
 0x40c   :  { %v12403_v16 = vunpack.c.l.b16 %v14625_v52  ;;  %v12408_v49 = vunpack.c.l.b16 %v14628_v53  ;;  %v14637_v31 = vpack.c.bf16 %v14636_v14, %v14636_v14 }
 0x40d   :  { %v12413_v9 = vunpack.c.l.b16 %v14631_v62  ;;  %v12418_v50 = vunpack.c.l.b16 %v14634_v48 }
 0x40e   :  { %14626 = vst [vmem:[#allocation151_spill] sm:$0xff] %v12403_v16  ;;  %14629 = vst [vmem:[#allocation152_spill] sm:$0xff] %v12408_v49  ;;  %v12423_v52 = vunpack.c.l.b16 %v14637_v31  ;;  %v14639_v16 = vld [vmem:[#allocation181_spill] sm:$0xff]  ;;  %v14642_v49 = vld [vmem:[#allocation182_spill] sm:$0xff] }
 0x40f   :  { %14632 = vst [vmem:[#allocation153_spill] sm:$0xff] %v12413_v9  ;;  %14635 = vst [vmem:[#allocation154_spill] sm:$0xff] %v12418_v50  ;;  %v14640_v45 = vpack.c.bf16 %v14639_v16, %v14639_v16  ;;  %v14643_v35 = vpack.c.bf16 %v14642_v49, %v14642_v49  ;;  %v14645_v9 = vld [vmem:[#allocation183_spill] sm:$0xff]  ;;  %v14648_v50 = vld [vmem:[#allocation184_spill] sm:$0xff] }
 0x410   :  { %14638 = vst [vmem:[#allocation155_spill] sm:$0xff] %v12423_v52  ;;  %v14646_v42 = vpack.c.bf16 %v14645_v9, %v14645_v9  ;;  %v14649_v14 = vpack.c.bf16 %v14648_v50, %v14648_v50  ;;  %v14651_v52 = vld [vmem:[#allocation185_spill] sm:$0xff] }
 0x411   :  { %v12428_v53 = vunpack.c.l.b16 %v14640_v45  ;;  %v12433_v62 = vunpack.c.l.b16 %v14643_v35  ;;  %v14652_v16 = vpack.c.bf16 %v14651_v52, %v14651_v52 }
 0x412   :  { %v12438_v48 = vunpack.c.l.b16 %v14646_v42  ;;  %v12443_v31 = vunpack.c.l.b16 %v14649_v14 }
 0x413   :  { %14641 = vst [vmem:[#allocation156_spill] sm:$0xff] %v12428_v53  ;;  %14644 = vst [vmem:[#allocation157_spill] sm:$0xff] %v12433_v62  ;;  %v12448_v45 = vunpack.c.l.b16 %v14652_v16  ;;  %v14654_v53 = vld [vmem:[#allocation186_spill] sm:$0xff]  ;;  %v14657_v62 = vld [vmem:[#allocation187_spill] sm:$0xff] }
 0x414   :  { %14647 = vst [vmem:[#allocation158_spill] sm:$0xff] %v12438_v48  ;;  %14650 = vst [vmem:[#allocation159_spill] sm:$0xff] %v12443_v31  ;;  %v14655_v49 = vpack.c.bf16 %v14654_v53, %v14654_v53  ;;  %v14658_v9 = vpack.c.bf16 %v14657_v62, %v14657_v62  ;;  %v14660_v48 = vld [vmem:[#allocation188_spill] sm:$0xff]  ;;  %v14663_v31 = vld [vmem:[#allocation189_spill] sm:$0xff] }
 0x415   :  { %14653 = vst [vmem:[#allocation160_spill] sm:$0xff] %v12448_v45  ;;  %v14661_v50 = vpack.c.bf16 %v14660_v48, %v14660_v48  ;;  %v14664_v52 = vpack.c.bf16 %v14663_v31, %v14663_v31  ;;  %v14666_v45 = vld [vmem:[#allocation190_spill] sm:$0xff] }
 0x416   :  { %v12453_v35 = vunpack.c.l.b16 %v14655_v49  ;;  %v12458_v42 = vunpack.c.l.b16 %v14658_v9  ;;  %v14667_v53 = vpack.c.bf16 %v14666_v45, %v14666_v45 }
 0x417   :  { %v12463_v14 = vunpack.c.l.b16 %v14661_v50  ;;  %v12468_v16 = vunpack.c.l.b16 %v14664_v52 }
 0x418   :  { %14656 = vst [vmem:[#allocation161_spill] sm:$0xff] %v12453_v35  ;;  %14659 = vst [vmem:[#allocation162_spill] sm:$0xff] %v12458_v42  ;;  %v12473_v49 = vunpack.c.l.b16 %v14667_v53  ;;  %v14669_v35 = vld [vmem:[#allocation191_spill] sm:$0xff]  ;;  %v14672_v42 = vld [vmem:[#allocation192_spill] sm:$0xff] }
 0x419   :  { %14662 = vst [vmem:[#allocation163_spill] sm:$0xff] %v12463_v14  ;;  %14665 = vst [vmem:[#allocation164_spill] sm:$0xff] %v12468_v16  ;;  %v14670_v62 = vpack.c.bf16 %v14669_v35, %v14669_v35  ;;  %v14673_v48 = vpack.c.bf16 %v14672_v42, %v14672_v42  ;;  %v14675_v14 = vld [vmem:[#allocation193_spill] sm:$0xff]  ;;  %v14678_v16 = vld [vmem:[#allocation194_spill] sm:$0xff] }
 0x41a   :  { %14668 = vst [vmem:[#allocation165_spill] sm:$0xff] %v12473_v49  ;;  %v14676_v31 = vpack.c.bf16 %v14675_v14, %v14675_v14  ;;  %v14679_v45 = vpack.c.bf16 %v14678_v16, %v14678_v16  ;;  %v14681_v49 = vld [vmem:[#allocation195_spill] sm:$0xff] }
 0x41b   :  { %v12478_v9 = vunpack.c.l.b16 %v14670_v62  ;;  %v12483_v50 = vunpack.c.l.b16 %v14673_v48  ;;  %v14682_v35 = vpack.c.bf16 %v14681_v49, %v14681_v49 }
 0x41c   :  { %v12488_v52 = vunpack.c.l.b16 %v14676_v31  ;;  %v12493_v53 = vunpack.c.l.b16 %v14679_v45 }
 0x41d   :  { %14671 = vst [vmem:[#allocation166_spill] sm:$0xff] %v12478_v9  ;;  %14674 = vst [vmem:[#allocation167_spill] sm:$0xff] %v12483_v50  ;;  %v12498_v62 = vunpack.c.l.b16 %v14682_v35  ;;  %v14684_v9 = vld [vmem:[#allocation196_spill] sm:$0xff]  ;;  %v14687_v50 = vld [vmem:[#allocation197_spill] sm:$0xff] }
 0x41e   :  { %14677 = vst [vmem:[#allocation168_spill] sm:$0xff] %v12488_v52  ;;  %14680 = vst [vmem:[#allocation169_spill] sm:$0xff] %v12493_v53  ;;  %v14685_v42 = vpack.c.bf16 %v14684_v9, %v14684_v9  ;;  %v14688_v14 = vpack.c.bf16 %v14687_v50, %v14687_v50  ;;  %v14690_v52 = vld [vmem:[#allocation198_spill] sm:$0xff]  ;;  %v14693_v53 = vld [vmem:[#allocation199_spill] sm:$0xff] }
 0x41f   :  { %14683 = vst [vmem:[#allocation170_spill] sm:$0xff] %v12498_v62  ;;  %v14691_v16 = vpack.c.bf16 %v14690_v52, %v14690_v52  ;;  %v14694_v49 = vpack.c.bf16 %v14693_v53, %v14693_v53  ;;  %v14696_v62 = vld [vmem:[#allocation200_spill] sm:$0xff] }
 0x420   :  { %v12503_v48 = vunpack.c.l.b16 %v14685_v42  ;;  %v12508_v31 = vunpack.c.l.b16 %v14688_v14  ;;  %v14697_v9 = vpack.c.bf16 %v14696_v62, %v14696_v62 }
 0x421   :  { %v12513_v45 = vunpack.c.l.b16 %v14691_v16  ;;  %v12518_v35 = vunpack.c.l.b16 %v14694_v49 }
 0x422   :  { %14686 = vst [vmem:[#allocation171_spill] sm:$0xff] %v12503_v48  ;;  %14689 = vst [vmem:[#allocation172_spill] sm:$0xff] %v12508_v31  ;;  %v12523_v42 = vunpack.c.l.b16 %v14697_v9  ;;  %v14699_v48 = vld [vmem:[#allocation201_spill] sm:$0xff]  ;;  %v14702_v31 = vld [vmem:[#allocation202_spill] sm:$0xff] }
 0x423   :  { %14692 = vst [vmem:[#allocation173_spill] sm:$0xff] %v12513_v45  ;;  %14695 = vst [vmem:[#allocation174_spill] sm:$0xff] %v12518_v35  ;;  %v14700_v50 = vpack.c.bf16 %v14699_v48, %v14699_v48  ;;  %v14703_v52 = vpack.c.bf16 %v14702_v31, %v14702_v31  ;;  %v14705_v45 = vld [vmem:[#allocation203_spill] sm:$0xff]  ;;  %v14708_v35 = vld [vmem:[#allocation204_spill] sm:$0xff] }
 0x424   :  { %14698 = vst [vmem:[#allocation175_spill] sm:$0xff] %v12523_v42  ;;  %v14706_v53 = vpack.c.bf16 %v14705_v45, %v14705_v45  ;;  %v14709_v62 = vpack.c.bf16 %v14708_v35, %v14708_v35  ;;  %v14711_v42 = vld [vmem:[#allocation205_spill] sm:$0xff] }
 0x425   :  { %v12528_v14 = vunpack.c.l.b16 %v14700_v50  ;;  %v12533_v16 = vunpack.c.l.b16 %v14703_v52  ;;  %v14712_v48 = vpack.c.bf16 %v14711_v42, %v14711_v42 }
 0x426   :  { %v12538_v49 = vunpack.c.l.b16 %v14706_v53  ;;  %v12543_v9 = vunpack.c.l.b16 %v14709_v62 }
 0x427   :  { %14701 = vst [vmem:[#allocation176_spill] sm:$0xff] %v12528_v14  ;;  %14704 = vst [vmem:[#allocation177_spill] sm:$0xff] %v12533_v16  ;;  %v12548_v50 = vunpack.c.l.b16 %v14712_v48  ;;  %v14714_v14 = vld [vmem:[#allocation206_spill] sm:$0xff]  ;;  %v14717_v16 = vld [vmem:[#allocation207_spill] sm:$0xff] }
 0x428   :  { %14707 = vst [vmem:[#allocation178_spill] sm:$0xff] %v12538_v49  ;;  %14710 = vst [vmem:[#allocation179_spill] sm:$0xff] %v12543_v9  ;;  %v14715_v31 = vpack.c.bf16 %v14714_v14, %v14714_v14  ;;  %v14718_v45 = vpack.c.bf16 %v14717_v16, %v14717_v16  ;;  %v14720_v49 = vld [vmem:[#allocation208_spill] sm:$0xff]  ;;  %v14723_v9 = vld [vmem:[#allocation209_spill] sm:$0xff] }
 0x429   :  { %14713 = vst [vmem:[#allocation180_spill] sm:$0xff] %v12548_v50  ;;  %v14721_v35 = vpack.c.bf16 %v14720_v49, %v14720_v49  ;;  %v14724_v42 = vpack.c.bf16 %v14723_v9, %v14723_v9  ;;  %v14726_v50 = vld [vmem:[#allocation210_spill] sm:$0xff] }
 0x42a   :  { %v12553_v52 = vunpack.c.l.b16 %v14715_v31  ;;  %v12558_v53 = vunpack.c.l.b16 %v14718_v45  ;;  %v14727_v14 = vpack.c.bf16 %v14726_v50, %v14726_v50 }
 0x42b   :  { %v12563_v62 = vunpack.c.l.b16 %v14721_v35  ;;  %v12568_v48 = vunpack.c.l.b16 %v14724_v42 }
 0x42c   :  { %14716 = vst [vmem:[#allocation181_spill] sm:$0xff] %v12553_v52  ;;  %14719 = vst [vmem:[#allocation182_spill] sm:$0xff] %v12558_v53  ;;  %v12573_v31 = vunpack.c.l.b16 %v14727_v14  ;;  %v14729_v52 = vld [vmem:[#allocation211_spill] sm:$0xff]  ;;  %v14732_v53 = vld [vmem:[#allocation212_spill] sm:$0xff] }
 0x42d   :  { %14722 = vst [vmem:[#allocation183_spill] sm:$0xff] %v12563_v62  ;;  %14725 = vst [vmem:[#allocation184_spill] sm:$0xff] %v12568_v48  ;;  %v14730_v16 = vpack.c.bf16 %v14729_v52, %v14729_v52  ;;  %v14733_v49 = vpack.c.bf16 %v14732_v53, %v14732_v53  ;;  %v14735_v62 = vld [vmem:[#allocation213_spill] sm:$0xff]  ;;  %v14738_v48 = vld [vmem:[#allocation214_spill] sm:$0xff] }
 0x42e   :  { %14728 = vst [vmem:[#allocation185_spill] sm:$0xff] %v12573_v31  ;;  %v14736_v9 = vpack.c.bf16 %v14735_v62, %v14735_v62  ;;  %v14739_v50 = vpack.c.bf16 %v14738_v48, %v14738_v48  ;;  %v14741_v31 = vld [vmem:[#allocation215_spill] sm:$0xff] }
 0x42f   :  { %v12578_v45 = vunpack.c.l.b16 %v14730_v16  ;;  %v12583_v35 = vunpack.c.l.b16 %v14733_v49  ;;  %v14742_v52 = vpack.c.bf16 %v14741_v31, %v14741_v31 }
 0x430   :  { %v12588_v42 = vunpack.c.l.b16 %v14736_v9  ;;  %v12593_v14 = vunpack.c.l.b16 %v14739_v50 }
 0x431   :  { %14731 = vst [vmem:[#allocation186_spill] sm:$0xff] %v12578_v45  ;;  %14734 = vst [vmem:[#allocation187_spill] sm:$0xff] %v12583_v35  ;;  %v12598_v16 = vunpack.c.l.b16 %v14742_v52  ;;  %v14744_v45 = vld [vmem:[#allocation216_spill] sm:$0xff]  ;;  %v14747_v35 = vld [vmem:[#allocation217_spill] sm:$0xff] }
 0x432   :  { %14737 = vst [vmem:[#allocation188_spill] sm:$0xff] %v12588_v42  ;;  %14740 = vst [vmem:[#allocation189_spill] sm:$0xff] %v12593_v14  ;;  %v14745_v53 = vpack.c.bf16 %v14744_v45, %v14744_v45  ;;  %v14748_v62 = vpack.c.bf16 %v14747_v35, %v14747_v35  ;;  %v14750_v42 = vld [vmem:[#allocation218_spill] sm:$0xff]  ;;  %v14753_v14 = vld [vmem:[#allocation219_spill] sm:$0xff] }
 0x433   :  { %14743 = vst [vmem:[#allocation190_spill] sm:$0xff] %v12598_v16  ;;  %v14751_v48 = vpack.c.bf16 %v14750_v42, %v14750_v42  ;;  %v14754_v31 = vpack.c.bf16 %v14753_v14, %v14753_v14  ;;  %v14756_v16 = vld [vmem:[#allocation220_spill] sm:$0xff] }
 0x434   :  { %v12603_v49 = vunpack.c.l.b16 %v14745_v53  ;;  %v12608_v9 = vunpack.c.l.b16 %v14748_v62  ;;  %v14757_v45 = vpack.c.bf16 %v14756_v16, %v14756_v16 }
 0x435   :  { %v12613_v50 = vunpack.c.l.b16 %v14751_v48  ;;  %v12618_v52 = vunpack.c.l.b16 %v14754_v31 }
 0x436   :  { %14746 = vst [vmem:[#allocation191_spill] sm:$0xff] %v12603_v49  ;;  %14749 = vst [vmem:[#allocation192_spill] sm:$0xff] %v12608_v9  ;;  %v12623_v53 = vunpack.c.l.b16 %v14757_v45  ;;  %v14758_v49 = vld [vmem:[#allocation221_spill] sm:$0xff]  ;;  %v14760_v9 = vld [vmem:[#allocation222_spill] sm:$0xff] }
 0x437   :  { %14752 = vst [vmem:[#allocation193_spill] sm:$0xff] %v12613_v50  ;;  %14755 = vst [vmem:[#allocation194_spill] sm:$0xff] %v12618_v52  ;;  %v14759_v35 = vpack.c.bf16 %v14758_v49, %v14758_v49  ;;  %v14761_v42 = vpack.c.bf16 %v14760_v9, %v14760_v9  ;;  %v14762_v50 = vld [vmem:[#allocation223_spill] sm:$0xff]  ;;  %v14765_v52 = vld [vmem:[#allocation224_spill] sm:$0xff]  ;;  %v14768_v49 = vpack.c.bf16 %v14129_v56, %v14129_v56 }
 0x438   :  { %v14763_v14 = vpack.c.bf16 %v14762_v50, %v14762_v50  ;;  %v14766_v16 = vpack.c.bf16 %v14765_v52, %v14765_v52  ;;  %v14769_v9 = vpack.c.bf16 %v14130_v54, %v14130_v54  ;;  %v14770_v50 = vpack.c.bf16 %v14131_v1, %v14131_v1 }
 0x439   :  { %v12628_v62 = vunpack.c.l.b16 %v14759_v35  ;;  %v12633_v48 = vunpack.c.l.b16 %v14761_v42  ;;  %v12648_v35 = vunpack.c.l.b16 %v14768_v49  ;;  %v14771_v52 = vpack.c.bf16 %v14132_v61, %v14132_v61 }
 0x43a   :  { %v12638_v31 = vunpack.c.l.b16 %v14763_v14  ;;  %v12643_v45 = vunpack.c.l.b16 %v14766_v16  ;;  %v12653_v42 = vunpack.c.l.b16 %v14769_v9  ;;  %v12658_v14 = vunpack.c.l.b16 %v14770_v50 }
 0x43b   :  { %v12664_v16 = vunpack.c.l.b16 %v14771_v52  ;;  %v14772_v56 = vpack.c.bf16 %v14133_v20, %v14133_v20  ;;  %v14773_v54 = vpack.c.bf16 %v14134_v46, %v14134_v46  ;;  %v14774_v1 = vpack.c.bf16 %v14135_v25, %v14135_v25 }
 0x43c   :  { %14764 = vst [vmem:[#allocation195_spill] sm:$0xff] %v12638_v31  ;;  %14767 = vst [vmem:[#allocation196_spill] sm:$0xff] %v12643_v45  ;;  %v5528_v31 = vrot.slane %v11493_v40, 7  ;;  %v14775_v61 = vpack.c.bf16 %v14136_v28, %v14136_v28  ;;  %v14777_v20 = vpack.c.bf16 %v10941_v2, %v10941_v2  ;;  %v14778_v46 = vpack.c.bf16 %v10943_v17, %v10943_v17  ;;  %v14956_v45 = vld [vmem:[#allocation160_spill] sm:$0xff] }
 0x43d   :  { %v12669_v49 = vunpack.c.l.b16 %v14772_v56  ;;  %v12674_v9 = vunpack.c.l.b16 %v14773_v54  ;;  %v12679_v40 = vunpack.c.l.b16 %v14774_v1  ;;  %v14779_v25 = vpack.c.bf16 %v10945_v47, %v10945_v47 }
 0x43e   :  { %v12684_v50 = vunpack.c.l.b16 %v14775_v61  ;;  %v12689_v52 = vunpack.c.l.b16 %v14777_v20  ;;  %v12694_v56 = vunpack.c.l.b16 %v14778_v46  ;;  %v14780_v28 = vpack.c.bf16 %v10947_v3, %v10947_v3 }
 0x43f   :  { %v12699_v54 = vunpack.c.l.b16 %v14779_v25  ;;  %v14781_v2 = vpack.c.bf16 %v10949_v22, %v10949_v22  ;;  %v5531_v20 = vrot.slane %v11498_v41, 6  ;;  %v14782_v17 = vpack.c.bf16 %v10951_v51, %v10951_v51 }
 0x440   :  { %14776 = vst [vmem:[#allocation197_spill] sm:$0xff] %v12684_v50  ;;  %v12704_v1 = vunpack.c.l.b16 %v14780_v28  ;;  %v14784_v47 = vpack.c.bf16 %v10953_v10, %v10953_v10  ;;  %v5530_v3 = vsel %vm5529_vm1, %v5528_v31, %v11488_v58  ;;  %v14786_v22 = vpack.c.bf16 %v10955_v5, %v10955_v5  ;;  %v14954_v50 = vld [vmem:[#allocation134_spill] sm:$0xff] }
 0x441   :  { %v12709_v61 = vunpack.c.l.b16 %v14781_v2  ;;  %v12715_v46 = vunpack.c.l.b16 %v14782_v17  ;;  %v14788_v41 = vpack.c.bf16 %v10957_v26, %v10957_v26  ;;  %v14789_v2 = vld [vmem:[#allocation233_spill] sm:$0xff]  ;;  %v14792_v5 = vpack.c.bf16 %v10963_v44, %v10963_v44 }
 0x442   :  { %v12720_v25 = vunpack.c.l.b16 %v14784_v47  ;;  %v12727_v28 = vunpack.c.l.b16 %v14786_v22  ;;  %v14790_v17 = vpack.c.bf16 %v14789_v2, %v14789_v2  ;;  %v14791_v47 = vpack.c.bf16 %v10961_v6, %v10961_v6 }
 0x443   :  { %14783 = vst [vmem:[#allocation198_spill] sm:$0xff] %v12715_v46  ;;  %v12732_v51 = vunpack.c.l.b16 %v14788_v41  ;;  %v12747_v31 = vunpack.c.l.b16 %v14792_v5  ;;  %v14793_v26 = vpack.c.bf16 %v10965_v0, %v10965_v0  ;;  %v14794_v41 = vpack.c.bf16 %v10967_v19, %v10967_v19  ;;  %v14796_v5 = vld [vmem:[#allocation234_spill] sm:$0xff] }
 0x444   :  { %14785 = vst [vmem:[#allocation199_spill] sm:$0xff] %v12720_v25  ;;  %14787 = vst [vmem:[#allocation200_spill] sm:$0xff] %v12727_v28  ;;  %v12737_v10 = vunpack.c.l.b16 %v14790_v17  ;;  %v12742_v58 = vunpack.c.l.b16 %v14791_v47  ;;  %v5534_v17 = vrot.slane %v11503_v57, 5  ;;  %v5533_v6 = vsel %vm5532_vm2, %v5531_v20, %v5530_v3 }
 0x445   :  { %v12752_v22 = vunpack.c.l.b16 %v14793_v26  ;;  %v12757_v2 = vunpack.c.l.b16 %v14794_v41  ;;  %v5549_v47 = vrot.slane %v11533_v11, 7  ;;  %v5563_v44 = vrot.slane %v11573_v37, 7 }
 0x446   :  { %v14797_v28 = vpack.c.bf16 %v14796_v5, %v14796_v5  ;;  %v14799_v26 = vpack.c.bf16 %v11005_v63, %v11005_v63  ;;  %v5537_v41 = vrot.slane %v11508_v8, 4  ;;  %v5577_v57 = vrot.slane %v11613_v59, 7 }
 0x447   :  { %14795 = vst [vmem:[#allocation201_spill] sm:$0xff] %v12757_v2  ;;  %v5540_v20 = vrot.slane %v11513_v43, 3  ;;  %v5591_v11 = vrot.slane %v11653_v55, 7  ;;  %v5536_v37 = vsel %vm5535_vm3, %v5534_v17, %v5533_v6  ;;  %v5543_v3 = vrot.slane %v11518_v33, 2 }
 0x448   :  { %v12766_v0 = vunpack.c.l.b16 %v14797_v28  ;;  %v12771_v19 = vunpack.c.l.b16 %v14799_v26  ;;  %v5551_v28 = vrot.slane %v11538_v12, 6  ;;  %v5565_v63 = vrot.slane %v11578_v38, 6  ;;  %v14801_v26 = vld [vmem:[#allocation6_spill] sm:$0xff] }
 0x449   :  { %v5550_v8 = vsel %vm5529_vm1, %v5549_v47, %v11528_v60  ;;  %v5564_v59 = vsel %vm5529_vm1, %v5563_v44, %v11568_v32  ;;  %v5579_v43 = vrot.slane %v11618_v13, 6  ;;  %v5546_v5 = vrot.slane %v11523_v7, 1 }
 0x44a   :  { %14798 = vst [vmem:[#allocation202_spill] sm:$0xff] %v12766_v0  ;;  %14800 = vst [vmem:[#allocation203_spill] sm:$0xff] %v12771_v19  ;;  %v5578_v55 = vsel %vm5529_vm1, %v5577_v57, %v11608_v18  ;;  %v5593_v33 = vrot.slane %v11658_v21, 6  ;;  %v5605_v12 = vrot.slane %v11693_v4, 7  ;;  %v5539_v38 = vsel %vm5538_vm4, %v5537_v41, %v5536_v37  ;;  %v14802_v57 = vld [vmem:[#allocation18_spill] sm:$0xff]  ;;  %v14866_v0 = vld [vmem:[#allocation73_spill] sm:$0xff] }
 0x44b   :  { %v5553_v17 = vrot.slane %v11543_v23, 5  ;;  %v5567_v60 = vrot.slane %v11583_v39, 5  ;;  %v5592_v32 = vsel %vm5529_vm1, %v5591_v11, %v11648_v36  ;;  %v5552_v13 = vsel %vm5532_vm2, %v5551_v28, %v5550_v8  ;;  %v14803_v11 = vld [vmem:[#allocation10_spill] sm:$0xff]  ;;  %v14804_v28 = vld [vmem:[#allocation25_spill] sm:$0xff] }
 0x44c   :  { %v5555_v6 = vrot.slane %v11548_v24, 4  ;;  %v5566_v47 = vsel %vm5532_vm2, %v5565_v63, %v5564_v59  ;;  %v5581_v18 = vrot.slane %v11623_v34, 5  ;;  %v5557_v21 = vrot.slane %v11553_v29, 3  ;;  %v14805_v63 = vld [vmem:[#allocation14_spill] sm:$0xff]  ;;  %v14806_v59 = vld [vmem:[#allocation19_spill] sm:$0xff] }
 0x44d   :  { %v5580_v4 = vsel %vm5532_vm2, %v5579_v43, %v5578_v55  ;;  %v5595_v44 = vrot.slane %v11663_v15, 5  ;;  %v5607_v23 = vrot.slane %v11698_v27, 6  ;;  %v5559_v39 = vrot.slane %v11558_v30, 2  ;;  %v14807_v55 = vld [vmem:[#allocation5_spill] sm:$0xff] }
 0x44e   :  { %v5569_v36 = vrot.slane %v14801_v26, 4  ;;  %v5594_v41 = vsel %vm5532_vm2, %v5593_v33, %v5592_v32  ;;  %v5606_v24 = vsel %vm5529_vm1, %v5605_v12, %v14802_v57  ;;  %v5554_v34 = vsel %vm5535_vm3, %v5553_v17, %v5552_v13  ;;  %v14808_v12 = vld [vmem:[#allocation7_spill] sm:$0xff] }
 0x44f   :  { %v5568_v29 = vsel %vm5535_vm3, %v5567_v60, %v5566_v47  ;;  %v5583_v37 = vrot.slane %v14803_v11, 4  ;;  %v5619_v15 = vrot.slane %v14804_v28, 7  ;;  %v5542_v27 = vsel %vm5541_vm5, %v5540_v20, %v5539_v38  ;;  %v14809_v26 = vld [vmem:[#allocation11_spill] sm:$0xff]  ;;  %v14810_v38 = vld [vmem:[#allocation225_spill] sm:$0xff]  ;;  %v14812_v28 = vld [vmem:[#allocation20_spill] sm:$0xff] }
 0x450   :  { %v5582_v30 = vsel %vm5535_vm3, %v5581_v18, %v5580_v4  ;;  %v5597_v8 = vrot.slane %v14805_v63, 4  ;;  %v5609_v43 = vrot.slane %v14806_v59, 5  ;;  %v5561_v33 = vrot.slane %v14807_v55, 1  ;;  %v14811_v57 = vld [vmem:[#allocation15_spill] sm:$0xff]  ;;  %v14813_v59 = vld [vmem:[#allocation24_spill] sm:$0xff] }
 0x451   :  { %v5571_v32 = vrot.slane %v14808_v12, 3  ;;  %v5596_v17 = vsel %vm5535_vm3, %v5595_v44, %v5594_v41  ;;  %v5608_v60 = vsel %vm5532_vm2, %v5607_v23, %v5606_v24  ;;  %v5556_v13 = vsel %vm5538_vm4, %v5555_v6, %v5554_v34  ;;  %v14814_v23 = vld [vmem:[#allocation8_spill] sm:$0xff] }
 0x452   :  { %v5570_v47 = vsel %vm5538_vm4, %v5569_v36, %v5568_v29  ;;  %v5585_v20 = vrot.slane %v14809_v26, 3  ;;  %v5621_v18 = vrot.slane %v14810_v38, 6  ;;  %v5584_v4 = vsel %vm5538_vm4, %v5583_v37, %v5582_v30  ;;  %v14815_v29 = vld [vmem:[#allocation12_spill] sm:$0xff]  ;;  %v14816_v30 = vld [vmem:[#allocation226_spill] sm:$0xff] }
 0x453   :  { %v5599_v11 = vrot.slane %v14811_v57, 3  ;;  %v5611_v63 = vrot.slane %v14812_v28, 4  ;;  %v5620_v55 = vsel %vm5529_vm1, %v5619_v15, %v14813_v59  ;;  %v5545_v44 = vsel %vm5544_vm6, %v5543_v3, %v5542_v27  ;;  %v14817_v38 = vld [vmem:[#allocation16_spill] sm:$0xff]  ;;  %v14818_v57 = vld [vmem:[#allocation21_spill] sm:$0xff] }
 0x454   :  { %v5573_v41 = vrot.slane %v14814_v23, 2  ;;  %v5598_v6 = vsel %vm5538_vm4, %v5597_v8, %v5596_v17  ;;  %v5610_v36 = vsel %vm5535_vm3, %v5609_v43, %v5608_v60  ;;  %v5558_v24 = vsel %vm5541_vm5, %v5557_v21, %v5556_v13  ;;  %v14819_v28 = vld [vmem:[#allocation9_spill] sm:$0xff]  ;;  %v14820_v17 = vld [vmem:[#allocation232_spill] sm:$0xff] }
 0x455   :  { %v5572_v34 = vsel %vm5541_vm5, %v5571_v32, %v5570_v47  ;;  %v5587_v37 = vrot.slane %v14815_v29, 2  ;;  %v5623_v12 = vrot.slane %v14816_v30, 5  ;;  %v5586_v26 = vsel %vm5541_vm5, %v5585_v20, %v5584_v4  ;;  %v14821_v47 = vld [vmem:[#allocation13_spill] sm:$0xff]  ;;  %v14822_v4 = vld [vmem:[#allocation227_spill] sm:$0xff] }
 0x456   :  { %v5601_v15 = vrot.slane %v14817_v38, 2  ;;  %v5613_v3 = vrot.slane %v14818_v57, 3  ;;  %v5622_v27 = vsel %vm5532_vm2, %v5621_v18, %v5620_v55  ;;  %v5575_v8 = vrot.slane %v14819_v28, 1  ;;  %v14823_v29 = vld [vmem:[#allocation17_spill] sm:$0xff]  ;;  %v14824_v55 = vld [vmem:[#allocation22_spill] sm:$0xff]  ;;  %v14830_v28 = vld [vmem:[#allocation27_spill] sm:$0xff] }
 0x457   :  { %v5600_v43 = vsel %vm5541_vm5, %v5599_v11, %v5598_v6  ;;  %v5612_v21 = vsel %vm5538_vm4, %v5611_v63, %v5610_v36  ;;  %v5633_v32 = vrot.slane %v14820_v17, 7  ;;  %v5560_v60 = vsel %vm5544_vm6, %v5559_v39, %v5558_v24  ;;  %v14825_v6 = vld [vmem:[#allocation26_spill] sm:$0xff] }
 0x458   :  { %v5574_v13 = vsel %vm5544_vm6, %v5573_v41, %v5572_v34  ;;  %v5589_v20 = vrot.slane %v14821_v47, 1  ;;  %v5625_v59 = vrot.slane %v14822_v4, 4  ;;  %v5588_v23 = vsel %vm5544_vm6, %v5587_v37, %v5586_v26  ;;  %v14826_v34 = vld [vmem:[#allocation228_spill] sm:$0xff]  ;;  %v14827_v26 = vld [vmem:[#allocation231_spill] sm:$0xff] }
 0x459   :  { %v5603_v18 = vrot.slane %v14823_v29, 1  ;;  %v5615_v30 = vrot.slane %v14824_v55, 2  ;;  %v5624_v11 = vsel %vm5535_vm3, %v5623_v12, %v5622_v27  ;;  %v12857_v63 = vsel %vm5547_vm7, %v5546_v5, %v5545_v44  ;;  %v14828_v12 = vld [vmem:[#allocation33_spill] sm:$0xff]  ;;  %v14829_v44 = vld [vmem:[#allocation23_spill] sm:$0xff] }
 0x45a   :  { %v5602_v39 = vsel %vm5544_vm6, %v5601_v15, %v5600_v43  ;;  %v5614_v41 = vsel %vm5541_vm5, %v5613_v3, %v5612_v21  ;;  %v5635_v36 = vrot.slane %v14825_v6, 6  ;;  %v12863_v24 = vsel %vm5547_vm7, %v5561_v33, %v5560_v60  ;;  %v14831_v21 = vld [vmem:[#allocation41_spill] sm:$0xff] }
 0x45b   :  { %v5627_v37 = vrot.slane %v14826_v34, 3  ;;  %v5634_v38 = vsel %vm5529_vm1, %v5633_v32, %v14827_v26  ;;  %v5647_v57 = vrot.slane %v14828_v12, 7  ;;  %v12870_v7 = vsel %vm5547_vm7, %v5575_v8, %v5574_v13  ;;  %v14832_v32 = vld [vmem:[#allocation229_spill] sm:$0xff]  ;;  %v14833_v8 = vld [vmem:[#allocation230_spill] sm:$0xff] }
 0x45c   :  { %v12873_v5 = vsel %vm5547_vm7, %v5589_v20, %v5588_v23  ;;  %v5617_v15 = vrot.slane %v14829_v44, 1  ;;  %v5626_v3 = vsel %vm5538_vm4, %v5625_v59, %v5624_v11  ;;  %v12878_v33 = vsel %vm5547_vm7, %v5603_v18, %v5602_v39  ;;  %v14834_v20 = vld [vmem:[#allocation34_spill] sm:$0xff]  ;;  %v14835_v59 = vld [vmem:[#allocation32_spill] sm:$0xff]  ;;  %v14836_v18 = vld [vmem:[#allocation49_spill] sm:$0xff] }
 0x45d   :  { %v5616_v27 = vsel %vm5544_vm6, %v5615_v30, %v5614_v41  ;;  %v5637_v43 = vrot.slane %v14830_v28, 5  ;;  %v5661_v17 = vrot.slane %v14831_v21, 7  ;;  %v5629_v60 = vrot.slane %v14832_v32, 2  ;;  %v14837_v30 = vld [vmem:[#allocation57_spill] sm:$0xff]  ;;  %v14838_v41 = vld [vmem:[#allocation28_spill] sm:$0xff]  ;;  %v14840_v12 = vld [vmem:[#allocation42_spill] sm:$0xff] }
 0x45e   :  { %v5631_v13 = vrot.slane %v14833_v8, 1  ;;  %v5636_v47 = vsel %vm5532_vm2, %v5635_v36, %v5634_v38  ;;  %v5649_v4 = vrot.slane %v14834_v20, 6  ;;  %v5628_v23 = vsel %vm5541_vm5, %v5627_v37, %v5626_v3  ;;  %v14839_v34 = vld [vmem:[#allocation29_spill] sm:$0xff]  ;;  %v14841_v44 = vld [vmem:[#allocation30_spill] sm:$0xff]  ;;  %v14842_v3 = vld [vmem:[#allocation35_spill] sm:$0xff] }
 0x45f   :  { %v5648_v29 = vsel %vm5529_vm1, %v5647_v57, %v14835_v59  ;;  %v5675_v55 = vrot.slane %v14836_v18, 7  ;;  %v5689_v11 = vrot.slane %v14837_v30, 7  ;;  %v12893_v39 = vsel %vm5547_vm7, %v5617_v15, %v5616_v27  ;;  %v14843_v57 = vld [vmem:[#allocation40_spill] sm:$0xff]  ;;  %v14844_v27 = vld [vmem:[#allocation50_spill] sm:$0xff]  ;;  %v14846_v18 = vld [vmem:[#allocation43_spill] sm:$0xff] }
 0x460   :  { %v5639_v6 = vrot.slane %v14838_v41, 4  ;;  %v5641_v26 = vrot.slane %v14839_v34, 3  ;;  %v5663_v36 = vrot.slane %v14840_v12, 6  ;;  %v5638_v38 = vsel %vm5535_vm3, %v5637_v43, %v5636_v47  ;;  %v14845_v20 = vld [vmem:[#allocation58_spill] sm:$0xff]  ;;  %v14847_v41 = vld [vmem:[#allocation48_spill] sm:$0xff]  ;;  %v14849_v12 = vld [vmem:[#allocation65_spill] sm:$0xff] }
 0x461   :  { %v5643_v37 = vrot.slane %v14841_v44, 2  ;;  %v5651_v28 = vrot.slane %v14842_v3, 5  ;;  %v5662_v21 = vsel %vm5529_vm1, %v5661_v17, %v14843_v57  ;;  %v5630_v32 = vsel %vm5544_vm6, %v5629_v60, %v5628_v23  ;;  %v14848_v47 = vld [vmem:[#allocation56_spill] sm:$0xff]  ;;  %v14850_v3 = vld [vmem:[#allocation31_spill] sm:$0xff] }
 0x462   :  { %v5650_v15 = vsel %vm5532_vm2, %v5649_v4, %v5648_v29  ;;  %v5677_v8 = vrot.slane %v14844_v27, 6  ;;  %v5691_v59 = vrot.slane %v14845_v20, 6  ;;  %v5665_v30 = vrot.slane %v14846_v18, 5  ;;  %v14851_v23 = vld [vmem:[#allocation36_spill] sm:$0xff]  ;;  %v14852_v20 = vld [vmem:[#allocation51_spill] sm:$0xff] }
 0x463   :  { %v5676_v43 = vsel %vm5529_vm1, %v5675_v55, %v14847_v41  ;;  %v5690_v34 = vsel %vm5529_vm1, %v5689_v11, %v14848_v47  ;;  %v5703_v44 = vrot.slane %v14849_v12, 7  ;;  %v5640_v17 = vsel %vm5538_vm4, %v5639_v6, %v5638_v38  ;;  %v14853_v18 = vld [vmem:[#allocation59_spill] sm:$0xff]  ;;  %v14854_v11 = vld [vmem:[#allocation44_spill] sm:$0xff]  ;;  %v14855_v38 = vld [vmem:[#allocation66_spill] sm:$0xff] }
 0x464   :  { %v5645_v60 = vrot.slane %v14850_v3, 1  ;;  %v5653_v4 = vrot.slane %v14851_v23, 4  ;;  %v5664_v29 = vsel %vm5532_vm2, %v5663_v36, %v5662_v21  ;;  %v12918_v57 = vsel %vm5547_vm7, %v5631_v13, %v5630_v32  ;;  %v14856_v36 = vld [vmem:[#allocation37_spill] sm:$0xff]  ;;  %v14857_v32 = vld [vmem:[#allocation64_spill] sm:$0xff] }
 0x465   :  { %v5652_v27 = vsel %vm5535_vm3, %v5651_v28, %v5650_v15  ;;  %v5679_v55 = vrot.slane %v14852_v20, 5  ;;  %v5693_v41 = vrot.slane %v14853_v18, 5  ;;  %v5667_v47 = vrot.slane %v14854_v11, 4  ;;  %v14858_v20 = vld [vmem:[#allocation38_spill] sm:$0xff]  ;;  %v14859_v11 = vld [vmem:[#allocation52_spill] sm:$0xff] }
 0x466   :  { %v5678_v12 = vsel %vm5532_vm2, %v5677_v8, %v5676_v43  ;;  %v5692_v6 = vsel %vm5532_vm2, %v5691_v59, %v5690_v34  ;;  %v5705_v3 = vrot.slane %v14855_v38, 6  ;;  %v5642_v23 = vsel %vm5541_vm5, %v5641_v26, %v5640_v17  ;;  %v14860_v8 = vld [vmem:[#allocation60_spill] sm:$0xff]  ;;  %v14861_v59 = vld [vmem:[#allocation45_spill] sm:$0xff]  ;;  %v14862_v17 = vld [vmem:[#allocation67_spill] sm:$0xff] }
 0x467   :  { %v5655_v21 = vrot.slane %v14856_v36, 3  ;;  %v5666_v13 = vsel %vm5535_vm3, %v5665_v30, %v5664_v29  ;;  %v5704_v28 = vsel %vm5529_vm1, %v5703_v44, %v14857_v32  ;;  %v5654_v15 = vsel %vm5538_vm4, %v5653_v4, %v5652_v27  ;;  %v14863_v29 = vld [vmem:[#allocation39_spill] sm:$0xff] }
 0x468   :  { %v5657_v18 = vrot.slane %v14858_v20, 2  ;;  %v5681_v19 = vrot.slane %v14859_v11, 4  ;;  %v5695_v43 = vrot.slane %v14860_v8, 4  ;;  %v5669_v34 = vrot.slane %v14861_v59, 3  ;;  %v14864_v20 = vld [vmem:[#allocation53_spill] sm:$0xff] }
 0x469   :  { %v5680_v38 = vsel %vm5535_vm3, %v5679_v55, %v5678_v12  ;;  %v5694_v26 = vsel %vm5535_vm3, %v5693_v41, %v5692_v6  ;;  %v5707_v36 = vrot.slane %v14862_v17, 5  ;;  %v5644_v30 = vsel %vm5544_vm6, %v5643_v37, %v5642_v23  ;;  %v14865_v8 = vld [vmem:[#allocation61_spill] sm:$0xff]  ;;  %v14867_v12 = vld [vmem:[#allocation46_spill] sm:$0xff]  ;;  %v14868_v23 = vld [vmem:[#allocation68_spill] sm:$0xff] }
 0x46a   :  { %v5659_v44 = vrot.slane %v14863_v29, 1  ;;  %v5668_v4 = vsel %vm5538_vm4, %v5667_v47, %v5666_v13  ;;  %v5706_v27 = vsel %vm5532_vm2, %v5705_v3, %v5704_v28  ;;  %v5656_v32 = vsel %vm5541_vm5, %v5655_v21, %v5654_v15  ;;  %v14869_v21 = vld [vmem:[#allocation47_spill] sm:$0xff] }
 0x46b   :  { %v5683_v11 = vrot.slane %v14864_v20, 3  ;;  %v5697_v59 = vrot.slane %v14865_v8, 3  ;;  %v5717_v55 = vrot.slane %v14866_v0, 7  ;;  %v5671_v41 = vrot.slane %v14867_v12, 2  ;;  %v14870_v0 = vld [vmem:[#allocation54_spill] sm:$0xff]  ;;  %v14874_v12 = vld [vmem:[#allocation72_spill] sm:$0xff] }
 0x46c   :  { %v5682_v6 = vsel %vm5538_vm4, %v5681_v19, %v5680_v38  ;;  %v5696_v37 = vsel %vm5538_vm4, %v5695_v43, %v5694_v26  ;;  %v5709_v17 = vrot.slane %v14868_v23, 4  ;;  %v12953_v47 = vsel %vm5547_vm7, %v5645_v60, %v5644_v30  ;;  %v14871_v20 = vld [vmem:[#allocation62_spill] sm:$0xff]  ;;  %v14873_v60 = vld [vmem:[#allocation69_spill] sm:$0xff] }
 0x46d   :  { %v5670_v3 = vsel %vm5541_vm5, %v5669_v34, %v5668_v4  ;;  %v5673_v13 = vrot.slane %v14869_v21, 1  ;;  %v5708_v28 = vsel %vm5535_vm3, %v5707_v36, %v5706_v27  ;;  %v5658_v15 = vsel %vm5544_vm6, %v5657_v18, %v5656_v32  ;;  %v14872_v19 = vld [vmem:[#allocation74_spill] sm:$0xff]  ;;  %v14875_v18 = vld [vmem:[#allocation97_spill] sm:$0xff] }
 0x46e   :  { %v5685_v29 = vrot.slane %v14870_v0, 2  ;;  %v5699_v8 = vrot.slane %v14871_v20, 2  ;;  %v5719_v38 = vrot.slane %v14872_v19, 6  ;;  %v5684_v43 = vsel %vm5541_vm5, %v5683_v11, %v5682_v6  ;;  %v14876_v32 = vld [vmem:[#allocation105_spill] sm:$0xff]  ;;  %v14878_v0 = vld [vmem:[#allocation55_spill] sm:$0xff] }
 0x46f   :  { %v5698_v26 = vsel %vm5541_vm5, %v5697_v59, %v5696_v37  ;;  %v5711_v30 = vrot.slane %v14873_v60, 3  ;;  %v5718_v34 = vsel %vm5529_vm1, %v5717_v55, %v14874_v12  ;;  %v5672_v4 = vsel %vm5544_vm6, %v5671_v41, %v5670_v3  ;;  %v14879_v6 = vld [vmem:[#allocation63_spill] sm:$0xff]  ;;  %v14881_v41 = vld [vmem:[#allocation70_spill] sm:$0xff] }
 0x470   :  { %v5710_v36 = vsel %vm5538_vm4, %v5709_v17, %v5708_v28  ;;  %v5759_v27 = vrot.slane %v14875_v18, 7  ;;  %v5773_v23 = vrot.slane %v14876_v32, 7  ;;  %v12972_v21 = vsel %vm5547_vm7, %v5659_v44, %v5658_v15  ;;  %v14880_v37 = vld [vmem:[#allocation75_spill] sm:$0xff]  ;;  %v14883_v15 = vld [vmem:[#allocation98_spill] sm:$0xff]  ;;  %v14885_v32 = vld [vmem:[#allocation76_spill] sm:$0xff] }
 0x471   :  { %14877 = vst [vmem:[#allocation204_spill] sm:$0xff] %v12972_v21  ;;  %v5687_v11 = vrot.slane %v14878_v0, 1  ;;  %v5701_v59 = vrot.slane %v14879_v6, 1  ;;  %v5721_v20 = vrot.slane %v14880_v37, 5  ;;  %v5686_v19 = vsel %vm5544_vm6, %v5685_v29, %v5684_v43  ;;  %v14884_v12 = vld [vmem:[#allocation106_spill] sm:$0xff]  ;;  %v14886_v6 = vld [vmem:[#allocation96_spill] sm:$0xff] }
 0x472   :  { %v5700_v55 = vsel %vm5544_vm6, %v5699_v8, %v5698_v26  ;;  %v5713_v3 = vrot.slane %v14881_v41, 2  ;;  %v5720_v17 = vsel %vm5532_vm2, %v5719_v38, %v5718_v34  ;;  %v12982_v28 = vsel %vm5547_vm7, %v5673_v13, %v5672_v4  ;;  %v14887_v43 = vld [vmem:[#allocation104_spill] sm:$0xff]  ;;  %v14888_v26 = vld [vmem:[#allocation113_spill] sm:$0xff]  ;;  %v14961_v21 = vld [vmem:[#allocation135_spill] sm:$0xff] }
 0x473   :  { %14882 = vst [vmem:[#allocation205_spill] sm:$0xff] %v12982_v28  ;;  %v5712_v44 = vsel %vm5541_vm5, %v5711_v30, %v5710_v36  ;;  %v5761_v60 = vrot.slane %v14883_v15, 6  ;;  %v5775_v18 = vrot.slane %v14884_v12, 6  ;;  %v5723_v0 = vrot.slane %v14885_v32, 4  ;;  %v14891_v30 = vld [vmem:[#allocation71_spill] sm:$0xff]  ;;  %v14892_v41 = vld [vmem:[#allocation77_spill] sm:$0xff] }
 0x474   :  { %v5760_v29 = vsel %vm5529_vm1, %v5759_v27, %v14886_v6  ;;  %v5774_v8 = vsel %vm5529_vm1, %v5773_v23, %v14887_v43  ;;  %v5787_v37 = vrot.slane %v14888_v26, 7  ;;  %v12994_v38 = vsel %vm5547_vm7, %v5687_v11, %v5686_v19  ;;  %v14893_v27 = vld [vmem:[#allocation99_spill] sm:$0xff]  ;;  %v14895_v6 = vld [vmem:[#allocation81_spill] sm:$0xff] }
 0x475   :  { %14889 = vst [vmem:[#allocation206_spill] sm:$0xff] %v12994_v38  ;;  %v12997_v13 = vsel %vm5547_vm7, %v5701_v59, %v5700_v55  ;;  %v5715_v34 = vrot.slane %v14891_v30, 1  ;;  %v5722_v4 = vsel %vm5535_vm3, %v5721_v20, %v5720_v17  ;;  %v5714_v36 = vsel %vm5544_vm6, %v5713_v3, %v5712_v44  ;;  %v14894_v32 = vld [vmem:[#allocation107_spill] sm:$0xff]  ;;  %v14896_v59 = vld [vmem:[#allocation114_spill] sm:$0xff]  ;;  %v14899_v44 = vld [vmem:[#allocation112_spill] sm:$0xff] }
 0x476   :  { %14890 = vst [vmem:[#allocation207_spill] sm:$0xff] %v12997_v13  ;;  %v5725_v15 = vrot.slane %v14892_v41, 3  ;;  %v5763_v12 = vrot.slane %v14893_v27, 5  ;;  %v5777_v23 = vrot.slane %v14894_v32, 5  ;;  %v5731_v43 = vrot.slane %v14895_v6, 7  ;;  %v14897_v30 = vld [vmem:[#allocation78_spill] sm:$0xff] }
 0x477   :  { %v5762_v11 = vsel %vm5532_vm2, %v5761_v60, %v5760_v29  ;;  %v5776_v19 = vsel %vm5532_vm2, %v5775_v18, %v5774_v8  ;;  %v5789_v55 = vrot.slane %v14896_v59, 6  ;;  %v5724_v26 = vsel %vm5538_vm4, %v5723_v0, %v5722_v4  ;;  %v14898_v17 = vld [vmem:[#allocation79_spill] sm:$0xff]  ;;  %v14901_v32 = vld [vmem:[#allocation82_spill] sm:$0xff]  ;;  %v14902_v13 = vld [vmem:[#allocation100_spill] sm:$0xff] }
 0x478   :  { %v5727_v20 = vrot.slane %v14897_v30, 2  ;;  %v5729_v3 = vrot.slane %v14898_v17, 1  ;;  %v5788_v41 = vsel %vm5529_vm1, %v5787_v37, %v14899_v44  ;;  %v13015_v27 = vsel %vm5547_vm7, %v5715_v34, %v5714_v36  ;;  %v14903_v29 = vld [vmem:[#allocation108_spill] sm:$0xff]  ;;  %v14904_v8 = vld [vmem:[#allocation83_spill] sm:$0xff]  ;;  %v14907_v36 = vld [vmem:[#allocation89_spill] sm:$0xff] }
 0x479   :  { %14900 = vst [vmem:[#allocation208_spill] sm:$0xff] %v13015_v27  ;;  %v5733_v6 = vrot.slane %v14901_v32, 6  ;;  %v5765_v60 = vrot.slane %v14902_v13, 4  ;;  %v5779_v18 = vrot.slane %v14903_v29, 4  ;;  %v5735_v59 = vrot.slane %v14904_v8, 5  ;;  %v14905_v30 = vld [vmem:[#allocation115_spill] sm:$0xff] }
 0x47a   :  { %v5764_v0 = vsel %vm5535_vm3, %v5763_v12, %v5762_v11  ;;  %v5778_v4 = vsel %vm5535_vm3, %v5777_v23, %v5776_v19  ;;  %v5791_v17 = vrot.slane %v14905_v30, 5  ;;  %v5726_v38 = vsel %vm5541_vm5, %v5725_v15, %v5724_v26  ;;  %v14906_v37 = vld [vmem:[#allocation80_spill] sm:$0xff]  ;;  %v14909_v29 = vld [vmem:[#allocation101_spill] sm:$0xff]  ;;  %v14917_v19 = vld [vmem:[#allocation110_spill] sm:$0xff] }
 0x47b   :  { %v5732_v34 = vsel %vm5529_vm1, %v5731_v43, %v14906_v37  ;;  %v5745_v44 = vrot.slane %v14907_v36, 7  ;;  %v5790_v32 = vsel %vm5532_vm2, %v5789_v55, %v5788_v41  ;;  %v14908_v13 = vld [vmem:[#allocation84_spill] sm:$0xff]  ;;  %v5767_v25 = vrot.slane %v14909_v29, 3  ;;  %v14910_v8 = vld [vmem:[#allocation109_spill] sm:$0xff]  ;;  %v14914_v41 = vld [vmem:[#allocation90_spill] sm:$0xff] }
 0x47c   :  { %v5737_v27 = vrot.slane %v14908_v13, 4  ;;  %v5781_v2 = vrot.slane %v14910_v8, 3  ;;  %v14911_v12 = vld [vmem:[#allocation121_spill] sm:$0xff]  ;;  %v5766_v30 = vsel %vm5538_vm4, %v5765_v60, %v5764_v0  ;;  %v5780_v15 = vsel %vm5538_vm4, %v5779_v18, %v5778_v4  ;;  %v14913_v26 = vld [vmem:[#allocation116_spill] sm:$0xff]  ;;  %v14918_v60 = vld [vmem:[#allocation122_spill] sm:$0xff] }
 0x47d   :  { %v5801_v11 = vrot.slane %v14911_v12, 7  ;;  %v5793_v43 = vrot.slane %v14913_v26, 4  ;;  %v5728_v37 = vsel %vm5544_vm6, %v5727_v20, %v5726_v38  ;;  %v5734_v55 = vsel %vm5532_vm2, %v5733_v6, %v5732_v34  ;;  %v14915_v29 = vld [vmem:[#allocation88_spill] sm:$0xff]  ;;  %v14916_v12 = vld [vmem:[#allocation102_spill] sm:$0xff]  ;;  %v14919_v38 = vld [vmem:[#allocation117_spill] sm:$0xff] }
 0x47e   :  { %v5747_v36 = vrot.slane %v14914_v41, 6  ;;  %v5792_v13 = vsel %vm5535_vm3, %v5791_v17, %v5790_v32  ;;  %v5746_v8 = vsel %vm5529_vm1, %v5745_v44, %v14915_v29  ;;  %v5769_v46 = vrot.slane %v14916_v12, 2  ;;  %v14920_v6 = vld [vmem:[#allocation120_spill] sm:$0xff]  ;;  %v14922_v32 = vld [vmem:[#allocation91_spill] sm:$0xff] }
 0x47f   :  { %v5783_v23 = vrot.slane %v14917_v19, 2  ;;  %v5803_v0 = vrot.slane %v14918_v60, 6  ;;  %v5768_v18 = vsel %vm5541_vm5, %v5767_v25, %v5766_v30  ;;  %v5782_v4 = vsel %vm5541_vm5, %v5781_v2, %v5780_v15  ;;  %v14923_v29 = vld [vmem:[#allocation103_spill] sm:$0xff] }
 0x480   :  { %v5795_v20 = vrot.slane %v14919_v38, 3  ;;  %v5802_v34 = vsel %vm5529_vm1, %v5801_v11, %v14920_v6  ;;  %v13052_v17 = vsel %vm5547_vm7, %v5729_v3, %v5728_v37  ;;  %v5736_v44 = vsel %vm5535_vm3, %v5735_v59, %v5734_v55  ;;  %v14924_v30 = vld [vmem:[#allocation111_spill] sm:$0xff]  ;;  %v14926_v3 = vld [vmem:[#allocation118_spill] sm:$0xff] }
 0x481   :  { %14921 = vst [vmem:[#allocation209_spill] sm:$0xff] %v13052_v17  ;;  %v5749_v26 = vrot.slane %v14922_v32, 5  ;;  %v5794_v19 = vsel %vm5538_vm4, %v5793_v43, %v5792_v13  ;;  %v5748_v41 = vsel %vm5532_vm2, %v5747_v36, %v5746_v8  ;;  %v5771_v25 = vrot.slane %v14923_v29, 1  ;;  %v14925_v15 = vld [vmem:[#allocation123_spill] sm:$0xff]  ;;  %v14929_v8 = vld [vmem:[#allocation129_spill] sm:$0xff]  ;;  %v14946_v32 = vld [vmem:[#allocation132_spill] sm:$0xff] }
 0x482   :  { %v5785_v2 = vrot.slane %v14924_v30, 1  ;;  %v5805_v12 = vrot.slane %v14925_v15, 5  ;;  %v5770_v60 = vsel %vm5544_vm6, %v5769_v46, %v5768_v18  ;;  %v5784_v11 = vsel %vm5544_vm6, %v5783_v23, %v5782_v4  ;;  %v14932_v18 = vld [vmem:[#allocation124_spill] sm:$0xff]  ;;  %v14933_v4 = vld [vmem:[#allocation137_spill] sm:$0xff]  ;;  %v14936_v30 = vld [vmem:[#allocation130_spill] sm:$0xff] }
 0x483   :  { %v5797_v37 = vrot.slane %v14926_v3, 2  ;;  %v5804_v59 = vsel %vm5532_vm2, %v5803_v0, %v5802_v34  ;;  %v13066_v55 = vsel %vm5538_vm4, %v5737_v27, %v5736_v44  ;;  %v5796_v36 = vsel %vm5541_vm5, %v5795_v20, %v5794_v19  ;;  %v14934_v34 = vld [vmem:[#allocation119_spill] sm:$0xff]  ;;  %v14937_v3 = vld [vmem:[#allocation145_spill] sm:$0xff]  ;;  %v14939_v46 = vld [vmem:[#allocation128_spill] sm:$0xff] }
 0x484   :  { %14927 = vst [vmem:[#allocation210_spill] sm:$0xff] %v13066_v55  ;;  %v5815_v38 = vrot.slane %v14929_v8, 7  ;;  %v13072_v6 = vsel %vm5535_vm3, %v5749_v26, %v5748_v41  ;;  %v5807_v23 = vrot.slane %v14932_v18, 4  ;;  %v5829_v29 = vrot.slane %v14933_v4, 7  ;;  %v14935_v26 = vld [vmem:[#allocation125_spill] sm:$0xff]  ;;  %v14938_v18 = vld [vmem:[#allocation126_spill] sm:$0xff] }
 0x485   :  { %14930 = vst [vmem:[#allocation211_spill] sm:$0xff] %v13072_v6  ;;  %v13078_v0 = vsel %vm5547_vm7, %v5771_v25, %v5770_v60  ;;  %v13081_v27 = vsel %vm5547_vm7, %v5785_v2, %v5784_v11  ;;  %v5799_v44 = vrot.slane %v14934_v34, 1  ;;  %v5806_v20 = vsel %vm5535_vm3, %v5805_v12, %v5804_v59  ;;  %v14940_v60 = vld [vmem:[#allocation138_spill] sm:$0xff]  ;;  %v14941_v11 = vld [vmem:[#allocation153_spill] sm:$0xff]  ;;  %v14942_v12 = vld [vmem:[#allocation127_spill] sm:$0xff] }
 0x486   :  { %v5798_v19 = vsel %vm5544_vm6, %v5797_v37, %v5796_v36  ;;  %v5809_v41 = vrot.slane %v14935_v26, 3  ;;  %v5817_v15 = vrot.slane %v14936_v30, 6  ;;  %v5843_v8 = vrot.slane %v14937_v3, 7  ;;  %v14943_v37 = vld [vmem:[#allocation136_spill] sm:$0xff]  ;;  %v14944_v26 = vld [vmem:[#allocation161_spill] sm:$0xff]  ;;  %v14948_v55 = vld [vmem:[#allocation139_spill] sm:$0xff] }
 0x487   :  { %v5811_v4 = vrot.slane %v14938_v18, 2  ;;  %v5816_v25 = vsel %vm5529_vm1, %v5815_v38, %v14939_v46  ;;  %v5831_v2 = vrot.slane %v14940_v60, 6  ;;  %v5857_v13 = vrot.slane %v14941_v11, 7  ;;  %v14945_v18 = vld [vmem:[#allocation131_spill] sm:$0xff]  ;;  %v14947_v46 = vld [vmem:[#allocation146_spill] sm:$0xff]  ;;  %v14953_v6 = vld [vmem:[#allocation133_spill] sm:$0xff] }
 0x488   :  { %v5808_v34 = vsel %vm5538_vm4, %v5807_v23, %v5806_v20  ;;  %v5813_v59 = vrot.slane %v14942_v12, 1  ;;  %v5830_v36 = vsel %vm5529_vm1, %v5829_v29, %v14943_v37  ;;  %v5871_v30 = vrot.slane %v14944_v26, 7  ;;  %v14949_v20 = vld [vmem:[#allocation144_spill] sm:$0xff]  ;;  %v14950_v43 = vld [vmem:[#allocation154_spill] sm:$0xff] }
 0x489   :  { %v13100_v3 = vsel %vm5547_vm7, %v5799_v44, %v5798_v19  ;;  %v5819_v17 = vrot.slane %v14945_v18, 5  ;;  %v5821_v38 = vrot.slane %v14946_v32, 4  ;;  %v5845_v60 = vrot.slane %v14947_v46, 6  ;;  %v14951_v19 = vld [vmem:[#allocation152_spill] sm:$0xff]  ;;  %v14952_v18 = vld [vmem:[#allocation162_spill] sm:$0xff] }
 0x48a   :  { %v5818_v11 = vsel %vm5532_vm2, %v5817_v15, %v5816_v25  ;;  %v5833_v23 = vrot.slane %v14948_v55, 5  ;;  %v5844_v12 = vsel %vm5529_vm1, %v5843_v8, %v14949_v20  ;;  %v5859_v29 = vrot.slane %v14950_v43, 6  ;;  %v14955_v25 = vld [vmem:[#allocation147_spill] sm:$0xff]  ;;  %v14957_v20 = vld [vmem:[#allocation140_spill] sm:$0xff] }
 0x48b   :  { %v5810_v37 = vsel %vm5541_vm5, %v5809_v41, %v5808_v34  ;;  %v5832_v44 = vsel %vm5532_vm2, %v5831_v2, %v5830_v36  ;;  %v5858_v26 = vsel %vm5529_vm1, %v5857_v13, %v14951_v19  ;;  %v5873_v32 = vrot.slane %v14952_v18, 6  ;;  %v14958_v34 = vld [vmem:[#allocation155_spill] sm:$0xff] }
 0x48c   :  { %v5823_v46 = vrot.slane %v14953_v6, 3  ;;  %v5825_v15 = vrot.slane %v14954_v50, 2  ;;  %v5847_v55 = vrot.slane %v14955_v25, 5  ;;  %v5872_v8 = vsel %vm5529_vm1, %v5871_v30, %v14956_v45  ;;  %v14959_v6 = vld [vmem:[#allocation163_spill] sm:$0xff]  ;;  %v14960_v50 = vld [vmem:[#allocation169_spill] sm:$0xff]  ;;  %v14962_v30 = vld [vmem:[#allocation148_spill] sm:$0xff] }
 0x48d   :  { %v5820_v43 = vsel %vm5535_vm3, %v5819_v17, %v5818_v11  ;;  %v5835_v41 = vrot.slane %v14957_v20, 4  ;;  %v5846_v2 = vsel %vm5532_vm2, %v5845_v60, %v5844_v12  ;;  %v5861_v36 = vrot.slane %v14958_v34, 5  ;;  %v14963_v12 = vld [vmem:[#allocation141_spill] sm:$0xff] }
 0x48e   :  { %v5834_v13 = vsel %vm5535_vm3, %v5833_v23, %v5832_v44  ;;  %v5860_v19 = vsel %vm5532_vm2, %v5859_v29, %v5858_v26  ;;  %v5875_v18 = vrot.slane %v14959_v6, 5  ;;  %v5885_v28 = vrot.slane %v14960_v50, 7  ;;  %v14964_v44 = vld [vmem:[#allocation156_spill] sm:$0xff] }
 0x48f   :  { %v5812_v25 = vsel %vm5544_vm6, %v5811_v4, %v5810_v37  ;;  %v5827_v45 = vrot.slane %v14961_v21, 1  ;;  %v5849_v17 = vrot.slane %v14962_v30, 4  ;;  %v5874_v11 = vsel %vm5532_vm2, %v5873_v32, %v5872_v8  ;;  %v14965_v6 = vld [vmem:[#allocation164_spill] sm:$0xff]  ;;  %v14966_v37 = vld [vmem:[#allocation170_spill] sm:$0xff]  ;;  %v14967_v32 = vld [vmem:[#allocation149_spill] sm:$0xff] }
 0x490   :  { %v5822_v60 = vsel %vm5538_vm4, %v5821_v38, %v5820_v43  ;;  %v5837_v20 = vrot.slane %v14963_v12, 3  ;;  %v5848_v23 = vsel %vm5535_vm3, %v5847_v55, %v5846_v2  ;;  %v5863_v29 = vrot.slane %v14964_v44, 4  ;;  %v14968_v43 = vld [vmem:[#allocation168_spill] sm:$0xff]  ;;  %v14969_v30 = vld [vmem:[#allocation142_spill] sm:$0xff] }
 0x491   :  { %v5836_v26 = vsel %vm5538_vm4, %v5835_v41, %v5834_v13  ;;  %v5862_v34 = vsel %vm5535_vm3, %v5861_v36, %v5860_v19  ;;  %v5877_v4 = vrot.slane %v14965_v6, 4  ;;  %v5887_v21 = vrot.slane %v14966_v37, 6  ;;  %v14970_v13 = vld [vmem:[#allocation157_spill] sm:$0xff]  ;;  %v14972_v6 = vld [vmem:[#allocation171_spill] sm:$0xff] }
 0x492   :  { %v13141_v50 = vsel %vm5547_vm7, %v5813_v59, %v5812_v25  ;;  %v5851_v8 = vrot.slane %v14967_v32, 3  ;;  %v5876_v38 = vsel %vm5535_vm3, %v5875_v18, %v5874_v11  ;;  %v5886_v55 = vsel %vm5529_vm1, %v5885_v28, %v14968_v43  ;;  %v14971_v25 = vld [vmem:[#allocation165_spill] sm:$0xff]  ;;  %v14973_v18 = vld [vmem:[#allocation150_spill] sm:$0xff] }
 0x493   :  { %v5824_v2 = vsel %vm5541_vm5, %v5823_v46, %v5822_v60  ;;  %v5839_v41 = vrot.slane %v14969_v30, 2  ;;  %v5850_v36 = vsel %vm5538_vm4, %v5849_v17, %v5848_v23  ;;  %v5865_v19 = vrot.slane %v14970_v13, 3  ;;  %v14974_v60 = vld [vmem:[#allocation177_spill] sm:$0xff]  ;;  %v14975_v23 = vld [vmem:[#allocation143_spill] sm:$0xff]  ;;  %v14977_v13 = vld [vmem:[#allocation166_spill] sm:$0xff] }
 0x494   :  { %v5838_v12 = vsel %vm5541_vm5, %v5837_v20, %v5836_v26  ;;  %v5864_v59 = vsel %vm5538_vm4, %v5863_v29, %v5862_v34  ;;  %v5879_v44 = vrot.slane %v14971_v25, 3  ;;  %v5889_v37 = vrot.slane %v14972_v6, 5  ;;  %v14976_v26 = vld [vmem:[#allocation158_spill] sm:$0xff]  ;;  %v14978_v6 = vld [vmem:[#allocation172_spill] sm:$0xff] }
 0x495   :  { %v5853_v11 = vrot.slane %v14973_v18, 2  ;;  %v5878_v28 = vsel %vm5538_vm4, %v5877_v4, %v5876_v38  ;;  %v5888_v46 = vsel %vm5532_vm2, %v5887_v21, %v5886_v55  ;;  %v5899_v32 = vrot.slane %v14974_v60, 7  ;;  %v14979_v38 = vld [vmem:[#allocation151_spill] sm:$0xff] }
 0x496   :  { %v5826_v17 = vsel %vm5544_vm6, %v5825_v15, %v5824_v2  ;;  %v5841_v43 = vrot.slane %v14975_v23, 1  ;;  %v5852_v20 = vsel %vm5541_vm5, %v5851_v8, %v5850_v36  ;;  %v5867_v29 = vrot.slane %v14976_v26, 2  ;;  %v14980_v2 = vld [vmem:[#allocation178_spill] sm:$0xff]  ;;  %v14981_v36 = vld [vmem:[#allocation159_spill] sm:$0xff]  ;;  %v14982_v23 = vld [vmem:[#allocation176_spill] sm:$0xff] }
 0x497   :  { %v5840_v34 = vsel %vm5544_vm6, %v5839_v41, %v5838_v12  ;;  %v5866_v30 = vsel %vm5541_vm5, %v5865_v19, %v5864_v59  ;;  %v5881_v25 = vrot.slane %v14977_v13, 2  ;;  %v5891_v4 = vrot.slane %v14978_v6, 4  ;;  %v14983_v19 = vld [vmem:[#allocation185_spill] sm:$0xff]  ;;  %v14984_v13 = vld [vmem:[#allocation167_spill] sm:$0xff] }
 0x498   :  { %v5855_v21 = vrot.slane %v14979_v38, 1  ;;  %v5880_v55 = vsel %vm5541_vm5, %v5879_v44, %v5878_v28  ;;  %v5890_v15 = vsel %vm5535_vm3, %v5889_v37, %v5888_v46  ;;  %v5901_v18 = vrot.slane %v14980_v2, 6  ;;  %v14985_v28 = vld [vmem:[#allocation173_spill] sm:$0xff]  ;;  %v14986_v6 = vld [vmem:[#allocation179_spill] sm:$0xff] }
 0x499   :  { %v5854_v8 = vsel %vm5544_vm6, %v5853_v11, %v5852_v20  ;;  %v5869_v60 = vrot.slane %v14981_v36, 1  ;;  %v5900_v41 = vsel %vm5529_vm1, %v5899_v32, %v14982_v23  ;;  %v5913_v12 = vrot.slane %v14983_v19, 7  ;;  %v14990_v23 = vld [vmem:[#allocation184_spill] sm:$0xff] }
 0x49a   :  { %v13177_v59 = vsel %vm5547_vm7, %v5827_v45, %v5826_v17  ;;  %v5868_v26 = vsel %vm5544_vm6, %v5867_v29, %v5866_v30  ;;  %v5883_v44 = vrot.slane %v14984_v13, 1  ;;  %v5893_v37 = vrot.slane %v14985_v28, 3  ;;  %v14987_v17 = vld [vmem:[#allocation186_spill] sm:$0xff]  ;;  %v14988_v30 = vld [vmem:[#allocation193_spill] sm:$0xff]  ;;  %v14994_v13 = vld [vmem:[#allocation187_spill] sm:$0xff] }
 0x49b   :  { %v13183_v46 = vsel %vm5547_vm7, %v5841_v43, %v5840_v34  ;;  %v5882_v11 = vsel %vm5544_vm6, %v5881_v25, %v5880_v55  ;;  %v5892_v20 = vsel %vm5538_vm4, %v5891_v4, %v5890_v15  ;;  %v5903_v32 = vrot.slane %v14986_v6, 5  ;;  %v14989_v43 = vld [vmem:[#allocation174_spill] sm:$0xff]  ;;  %v14991_v15 = vld [vmem:[#allocation175_spill] sm:$0xff] }
 0x49c   :  { %v13189_v38 = vsel %vm5547_vm7, %v5855_v21, %v5854_v8  ;;  %v5902_v45 = vsel %vm5532_vm2, %v5901_v18, %v5900_v41  ;;  %v5915_v29 = vrot.slane %v14987_v17, 6  ;;  %v5927_v2 = vrot.slane %v14988_v30, 7  ;;  %v14992_v8 = vld [vmem:[#allocation180_spill] sm:$0xff]  ;;  %v14995_v6 = vld [vmem:[#allocation194_spill] sm:$0xff] }
 0x49d   :  { %v13195_v36 = vsel %vm5547_vm7, %v5869_v60, %v5868_v26  ;;  %v5895_v34 = vrot.slane %v14989_v43, 2  ;;  %v5914_v25 = vsel %vm5529_vm1, %v5913_v12, %v14990_v23  ;;  %v5941_v4 = vrot.slane %v12653_v42, 7  ;;  %v14993_v60 = vld [vmem:[#allocation181_spill] sm:$0xff]  ;;  %v14996_v42 = vld [vmem:[#allocation192_spill] sm:$0xff]  ;;  %v14997_v30 = vld [vmem:[#allocation182_spill] sm:$0xff] }
 0x49e   :  { %v13202_v55 = vsel %vm5547_vm7, %v5883_v44, %v5882_v11  ;;  %v5894_v21 = vsel %vm5541_vm5, %v5893_v37, %v5892_v20  ;;  %v5897_v18 = vrot.slane %v14991_v15, 1  ;;  %v5905_v41 = vrot.slane %v14992_v8, 4 }
 0x49f   :  { %v5904_v19 = vsel %vm5535_vm3, %v5903_v32, %v5902_v45  ;;  %v5907_v26 = vrot.slane %v14993_v60, 3  ;;  %v5917_v28 = vrot.slane %v14994_v13, 5  ;;  %v5929_v17 = vrot.slane %v14995_v6, 6 }
 0x4a0   :  { %v5916_v12 = vsel %vm5532_vm2, %v5915_v29, %v5914_v25  ;;  %v5928_v44 = vsel %vm5529_vm1, %v5927_v2, %v14996_v42  ;;  %v5943_v11 = vrot.slane %v12658_v14, 6  ;;  %v5983_v37 = vpack.c.b16 %v12863_v24, %v12857_v63  ;;  %v5015_v29 = vld [vmem:[%s13438_s1] sm:$0xf]  ;;  %v14998_v14 = vld [vmem:[#allocation183_spill] sm:$0xff]  ;;  %v14999_v25 = vld [vmem:[#allocation188_spill] sm:$0xff] }
 0x4a1   :  { %v5896_v20 = vsel %vm5544_vm6, %v5895_v34, %v5894_v21  ;;  %v5909_v32 = vrot.slane %v14997_v30, 2  ;;  %v5942_v45 = vsel %vm5529_vm1, %v5941_v4, %v12648_v35  ;;  %v5991_v43 = vpack.c.b16 %v13081_v27, %v13078_v0  ;;  %7113 = vmatprep.subr.msk.bf16.mxu0 %vm6048_vm9, %v5015_v29  ;;  %7114 = vmatprep.subr.msk.bf16.mxu1 %vm6048_vm9, %v5015_v29  ;;  %v15003_v42 = vld [vmem:[#allocation195_spill] sm:$0xff]  ;;  %v15012_v30 = vld [vmem:[#allocation92_spill] sm:$0xff] }
 0x4a2   :  { %v5906_v2 = vsel %vm5538_vm4, %v5905_v41, %v5904_v19  ;;  %v5911_v23 = vrot.slane %v14998_v14, 1  ;;  %v5919_v63 = vrot.slane %v14999_v25, 4  ;;  %v5931_v24 = vrot.slane %v12623_v53, 5  ;;  %7079 = vmatprep.mubr.msk.bf16.mxu0 %vm5999_vm8, %v5983_v37  ;;  %v15005_v25 = vld [vmem:[#allocation205_spill] sm:$0xff] }
 0x4a3   :  { %v5918_v34 = vsel %vm5535_vm3, %v5917_v28, %v5916_v12  ;;  %v5930_v21 = vsel %vm5532_vm2, %v5929_v17, %v5928_v44  ;;  %v5945_v35 = vrot.slane %v12664_v16, 5  ;;  %v5944_v0 = vsel %vm5532_vm2, %v5943_v11, %v5942_v45  ;;  %7095 = vmatprep.mubr.msk.bf16.mxu1 %vm5999_vm8, %v5991_v43 }
 0x4a4   :  { %v5955_v27 = vrot.slane %v12694_v56, 7  ;;  %v5969_v4 = vrot.slane %v12737_v10, 7  ;;  %v5933_v53 = vrot.slane %v12628_v62, 4  ;;  %v5984_v15 = vpack.c.b16 %v12873_v5, %v12870_v7  ;;  %v15000_v62 = vld [vmem:[#allocation189_spill] sm:$0xff] }
 0x4a5   :  { %v5992_v16 = vpack.c.b16 %v13141_v50, %v13100_v3  ;;  %v6050_v8 = vsel %vm6048_vm9, %v5015_v29, 0  ;;  %v5932_v56 = vsel %vm5535_vm3, %v5931_v24, %v5930_v21  ;;  %v5947_v10 = vrot.slane %v12669_v49, 4  ;;  %v15006_v24 = vld [vmem:[#allocation196_spill] sm:$0xff]  ;;  %v15008_v21 = vld [vmem:[#allocation198_spill] sm:$0xff] }
 0x4a6   :  { %v5985_v41 = vpack.c.b16 %v12893_v39, %v12878_v33  ;;  %v5993_v19 = vpack.c.b16 %v13183_v46, %v13177_v59  ;;  %7078 = vmatpush3.bf16.msra.mxu0 %v6050_v8  ;;  %7112 = vmatpush3.bf16.msra.mxu1 %v6050_v8  ;;  %v5921_v7 = vrot.slane %v15000_v62, 3  ;;  %v5946_v5 = vsel %vm5535_vm3, %v5945_v35, %v5944_v0  ;;  %v15009_v0 = vld [vmem:[#allocation201_spill] sm:$0xff]  ;;  %v15017_v62 = vld [vmem:[#allocation94_spill] sm:$0xff] }
 0x4a7   :  { %v5957_v3 = vrot.slane %v12699_v54, 6  ;;  %v5971_v50 = vrot.slane %v12742_v58, 6  ;;  %v5920_v60 = vsel %vm5538_vm4, %v5919_v63, %v5918_v34  ;;  %v5935_v49 = vrot.slane %v12633_v48, 3  ;;  %v15001_v58 = vld [vmem:[#allocation190_spill] sm:$0xff] }
 0x4a8   :  { %v5956_v33 = vsel %vm5529_vm1, %v5955_v27, %v12689_v52  ;;  %v5970_v39 = vsel %vm5529_vm1, %v5969_v4, %v12732_v51  ;;  %v5898_v59 = vsel %vm5547_vm7, %v5897_v18, %v5896_v20  ;;  %v5908_v46 = vsel %vm5541_vm5, %v5907_v26, %v5906_v2  ;;  %v15002_v26 = vld [vmem:[#allocation191_spill] sm:$0xff]  ;;  %v15004_v2 = vld [vmem:[#allocation204_spill] sm:$0xff]  ;;  %v15010_v4 = vld [vmem:[#allocation86_spill] sm:$0xff] }
 0x4a9   :  { %v5934_v13 = vsel %vm5538_vm4, %v5933_v53, %v5932_v56  ;;  %v5949_v54 = vrot.slane %v12674_v9, 3  ;;  %7080 = vmatmul.mubr.msk.bf16.vlgmr.msra.gmra.mrb[0].mxu0 %vm5999_vm8, %v5984_v15  ;;  %7096 = vmatmul.mubr.msk.bf16.vlgmr.msra.gmra.mrb[0].mxu1 %vm5999_vm8, %v5992_v16  ;;  %v5923_v48 = vrot.slane %v15001_v58, 2  ;;  %v5948_v28 = vsel %vm5538_vm4, %v5947_v10, %v5946_v5  ;;  %v15011_v53 = vld [vmem:[#allocation211_spill] sm:$0xff]  ;;  %v15014_v56 = vld [vmem:[#allocation210_spill] sm:$0xff]  ;;  %v15015_v10 = vld [vmem:[#allocation85_spill] sm:$0xff] }
 0x4aa   :  { %v5959_v52 = vrot.slane %v12704_v1, 5  ;;  %v5973_v51 = vrot.slane %v12747_v31, 5  ;;  %7083 = vmatprep.mubr.msk.bf16.mxu0 %vm5999_vm8, %v5985_v41  ;;  %7099 = vmatprep.mubr.msk.bf16.mxu1 %vm5999_vm8, %v5993_v19  ;;  %v5922_v18 = vsel %vm5541_vm5, %v5921_v7, %v5920_v60  ;;  %v5925_v9 = vrot.slane %v15002_v26, 1  ;;  %v15025_v26 = vld [vmem:[#allocation207_spill] sm:$0xff] }
 0x4ab   :  { %v5958_v6 = vsel %vm5532_vm2, %v5957_v3, %v5956_v33  ;;  %v5972_v17 = vsel %vm5532_vm2, %v5971_v50, %v5970_v39  ;;  %v5936_v12 = vsel %vm5541_vm5, %v5935_v49, %v5934_v13  ;;  %v5937_v44 = vrot.slane %v15003_v42, 2  ;;  %v15018_v49 = vld [vmem:[#allocation199_spill] sm:$0xff]  ;;  %v15019_v39 = vld [vmem:[#allocation202_spill] sm:$0xff] }
 0x4ac   :  { %v5951_v1 = vrot.slane %v12679_v40, 2  ;;  %v5961_v31 = vrot.slane %v12709_v61, 4  ;;  %v5950_v11 = vsel %vm5541_vm5, %v5949_v54, %v5948_v28  ;;  %v5975_v37 = vrot.slane %v12752_v22, 4  ;;  %v15021_v54 = vld [vmem:[#allocation93_spill] sm:$0xff]  ;;  %v15027_v42 = vld [vmem:[#allocation203_spill] sm:$0xff] }
 0x4ad   :  { %v5986_v20 = vpack.c.b16 %v12953_v47, %v12918_v57  ;;  %v5994_v45 = vpack.c.b16 %v13195_v36, %v13189_v38  ;;  %v5960_v43 = vsel %vm5535_vm3, %v5959_v52, %v5958_v6  ;;  %v5974_v29 = vsel %vm5535_vm3, %v5973_v51, %v5972_v17  ;;  %v15007_v47 = vld [vmem:[#allocation197_spill] sm:$0xff]  ;;  %v15023_v52 = vld [vmem:[#allocation95_spill] sm:$0xff]  ;;  %v15026_v17 = vld [vmem:[#allocation200_spill] sm:$0xff] }
 0x4ae   :  { %v5987_v63 = vpack.c.b16 %v15005_v25, %v15004_v2  ;;  %v5995_v40 = vpack.c.b16 %v5898_v59, %v13202_v55  ;;  %v5910_v61 = vsel %vm5544_vm6, %v5909_v32, %v5908_v46  ;;  %v5924_v22 = vsel %vm5544_vm6, %v5923_v48, %v5922_v18  ;;  %v15020_v46 = vld [vmem:[#allocation87_spill] sm:$0xff]  ;;  %v15024_v18 = vld [vmem:[#allocation206_spill] sm:$0xff] }
 0x4af   :  { %v5939_v57 = vrot.slane %v15006_v24, 1  ;;  %v5953_v34 = vrot.slane %v15007_v47, 1  ;;  %v5938_v38 = vsel %vm5544_vm6, %v5937_v44, %v5936_v12  ;;  %v5952_v36 = vsel %vm5544_vm6, %v5951_v1, %v5950_v11  ;;  %v15028_v1 = vld [vmem:[#allocation208_spill] sm:$0xff]  ;;  %v13359_v47 = vld [vmem:[%s13440_s3] ss:$0 sm:$0xff] }
 0x4b0   :  { %v5963_v35 = vrot.slane %v15008_v21, 3  ;;  %v5977_v27 = vrot.slane %v15009_v0, 3  ;;  %v5741_v55 = vrot.slane %v15010_v4, 2  ;;  %v15013_v15 = vrot.slane %v15012_v30, 4 }
 0x4b1   :  { %v5962_v16 = vsel %vm5538_vm4, %v5961_v31, %v5960_v43  ;;  %v5976_v8 = vsel %vm5538_vm4, %v5975_v37, %v5974_v29  ;;  %7084 = vmatmul.mubr.msk.bf16.gmra.mrb[4].mxu0 %vm5999_vm8, %v5986_v20  ;;  %7100 = vmatmul.mubr.msk.bf16.gmra.mrb[4].mxu1 %vm5999_vm8, %v5994_v45  ;;  %v15016_v41 = vrot.slane %v15015_v10, 3  ;;  %v5755_v7 = vrot.slane %v15017_v62, 2  ;;  %v15029_v31 = vld [vmem:[#allocation209_spill] sm:$0xff] }
 0x4b2   :  { %v5752_v32 = vsel %vm5538_vm4, %v15013_v15, %v15011_v53  ;;  %v5912_v5 = vsel %vm5547_vm7, %v5911_v23, %v5910_v61  ;;  %v5926_v3 = vsel %vm5547_vm7, %v5925_v9, %v5924_v22  ;;  %7087 = vmatprep.mubr.msk.bf16.mxu0 %vm5999_vm8, %v5987_v63  ;;  %7103 = vmatprep.mubr.msk.bf16.mxu1 %vm5999_vm8, %v5995_v40  ;;  %v5965_v33 = vrot.slane %v15018_v49, 2  ;;  %v13354_v22 = vld [vmem:[%s13439_s2] ss:$0 sm:$0xff]  ;;  %s7142_s2 = smov [#allocation2]  }
 0x4b3   :  { %v5740_v19 = vsel %vm5541_vm5, %v15016_v41, %v15014_v56  ;;  %v5940_v50 = vsel %vm5547_vm7, %v5939_v57, %v5938_v38  ;;  %v5954_v60 = vsel %vm5547_vm7, %v5953_v34, %v5952_v36  ;;  %v5979_v59 = vrot.slane %v15019_v39, 2  ;;  %s6488_s3 = sshll.u32 %s7142_s2, 4  ;;  %s6489_s3 = int_to_ptr.vmem [resolvable:$true] %s6488_s3 }
 0x4b4   :  { %v5743_v13 = vrot.slane %v15020_v46, 1  ;;  %v15022_v14 = vrot.slane %v15021_v54, 3  ;;  %v5964_v58 = vsel %vm5541_vm5, %v5963_v35, %v5962_v16  ;;  %v5978_v48 = vsel %vm5541_vm5, %v5977_v27, %v5976_v8  ;;  %s7118_s29 = scalar_lea.vmem %s6489_s3, 2048  ;;  %p7123_p1 = scmp.lt.s32.totalorder %s6489_s3, %s6489_s3 }
 0x4b5   :  { %v5742_v28 = vsel %vm5544_vm6, %v5741_v55, %v5740_v19  ;;  %v5757_v51 = vrot.slane %v15023_v52, 1  ;;  %v5988_v9 = vpack.c.b16 %v15025_v26, %v15024_v18  ;;  %v5996_v6 = vpack.c.b16 %v5926_v3, %v5912_v5  ;;  %p7119_p0 = scmp.ne.s32.totalorder %s6489_s3, %s7118_s29  ;;  %p7124_p2 = scmp.lt.s32.totalorder %s7118_s29, %s7118_s29 }
 0x4b6   :  { %v5754_v23 = vsel %vm5541_vm5, %v15022_v14, %v5752_v32  ;;  %v5967_v12 = vrot.slane %v15026_v17, 1  ;;  %v5981_v44 = vrot.slane %v15027_v42, 1  ;;  %v5989_v11 = vpack.c.b16 %v15029_v31, %v15028_v1 }
 0x4b7   :  { %v5997_v37 = vpack.c.b16 %v5954_v60, %v5940_v50  ;;  %v5756_v20 = vsel %vm5544_vm6, %v5755_v7, %v5754_v23  ;;  %v5966_v45 = vsel %vm5544_vm6, %v5965_v33, %v5964_v58  ;;  %v5980_v43 = vsel %vm5544_vm6, %v5979_v59, %v5978_v48  ;;  %p7125_p3 = por %p7124_p2, %p7123_p1 }
 0x4b8   :  { %v5744_v29 = vsel %vm5547_vm7, %v5743_v13, %v5742_v28  ;;  %v5758_v2 = vsel %vm5547_vm7, %v5757_v51, %v5756_v20  ;;  %v5968_v25 = vsel %vm5547_vm7, %v5967_v12, %v5966_v45  ;;  %v5982_v63 = vsel %vm5547_vm7, %v5981_v44, %v5980_v43 }
 0x4b9   :  { %7088 = vmatmul.mubr.msk.bf16.gmra.mrb[8].mxu0 %vm5999_vm8, %v5988_v9  ;;  %7104 = vmatmul.mubr.msk.bf16.gmra.mrb[8].mxu1 %vm5999_vm8, %v5996_v6  ;;  %v5990_v40 = vpack.c.b16 %v5758_v2, %v5744_v29  ;;  %v5998_v61 = vpack.c.b16 %v5982_v63, %v5968_v25  ;;  %p7126_p4 = pnand %p7125_p3, %p7119_p0 }
 0x4ba   :  { %7091 = vmatprep.mubr.msk.bf16.mxu0 %vm5999_vm8, %v5989_v11  ;;  %7107 = vmatprep.mubr.msk.bf16.mxu1 %vm5999_vm8, %v5997_v37 }
 0x4c1   :  { %7092 = vmatmul.mubr.msk.bf16.gmra.mrb[12].mxu0 %vm5999_vm8, %v5990_v40  ;;  %7108 = vmatmul.mubr.msk.bf16.gmra.mrb[12].mxu1 %vm5999_vm8, %v5998_v61 }
 0x57c   :  { %v7081_v24 = vpop.f32.mrb[0].mxu0  ;;  %v7097_v57 = vpop.f32.mrb[0].mxu1 }
 0x57d   :  { %v6086_v34 = vpop.f32.mrb[1].mxu0  ;;  %v6150_v38 = vpop.f32.mrb[1].mxu1  ;;  %v6222_v36 = vmul.f32 %v7081_v24, %v13354_v22  ;;  %v6238_v21 = vmul.f32 %v7097_v57, %v13354_v22 }
 0x57e   :  { %v7082_v35 = vpop.f32.mrb[2].mxu0  ;;  %v7098_v0 = vpop.f32.mrb[2].mxu1  ;;  %v6220_v27 = vmul.f32 %v13354_v22, %v6086_v34  ;;  %v6236_v4 = vmul.f32 %v13354_v22, %v6150_v38 }
 0x57f   :  { %v6089_v55 = vpop.f32.mrb[3].mxu0  ;;  %v6153_v53 = vpop.f32.mrb[3].mxu1  ;;  %v6223_v30 = vmul.f32 %v7082_v35, %v13354_v22  ;;  %v6239_v15 = vmul.f32 %v7098_v0, %v13354_v22  ;;  %v6261_v32 = vadd.f32 %v13359_v47, %v6222_v36  ;;  %v6277_v16 = vadd.f32 %v13359_v47, %v6238_v21 }
 0x580   :  { %v6221_v8 = vmul.f32 %v13354_v22, %v6089_v55  ;;  %v6237_v56 = vmul.f32 %v13354_v22, %v6153_v53  ;;  %v6259_v10 = vadd.f32 %v13359_v47, %v6220_v27  ;;  %v6275_v41 = vadd.f32 %v13359_v47, %v6236_v4 }
 0x581   :  { %v6262_v19 = vadd.f32 %v13359_v47, %v6223_v30  ;;  %v6278_v62 = vadd.f32 %v13359_v47, %v6239_v15  ;;  %v6293_v3 = vmax.f32 %v6261_v32, 0.0  ;;  %v6309_v60 = vmax.f32 %v6277_v16, 0.0 }
 0x582   :  { %v6260_v7 = vadd.f32 %v13359_v47, %v6221_v8  ;;  %v6276_v5 = vadd.f32 %v13359_v47, %v6237_v56  ;;  %v6291_v59 = vmax.f32 %v6259_v10, 0.0  ;;  %v6307_v13 = vmax.f32 %v6275_v41, 0.0 }
 0x583   :  { %v6294_v50 = vmax.f32 %v6262_v19, 0.0  ;;  %v6310_v49 = vmax.f32 %v6278_v62, 0.0 }
 0x584   :  { %v7085_v33 = vpop.f32.mrb[4].mxu0  ;;  %v7101_v39 = vpop.f32.mrb[4].mxu1  ;;  %v6292_v46 = vmax.f32 %v6260_v7, 0.0  ;;  %v6308_v54 = vmax.f32 %v6276_v5, 0.0 }
 0x585   :  { %v6102_v14 = vpop.f32.mrb[5].mxu0  ;;  %v6166_v23 = vpop.f32.mrb[5].mxu1  ;;  %v6226_v58 = vmul.f32 %v7085_v33, %v13354_v22  ;;  %v6242_v48 = vmul.f32 %v7101_v39, %v13354_v22  ;;  %v6973_v28 = vpack.c.bf16 %v6294_v50, %v6293_v3  ;;  %v7013_v52 = vpack.c.bf16 %v6310_v49, %v6309_v60 }
 0x586   :  { %v7086_v51 = vpop.f32.mrb[6].mxu0  ;;  %v7102_v18 = vpop.f32.mrb[6].mxu1  ;;  %v6224_v26 = vmul.f32 %v13354_v22, %v6102_v14  ;;  %v6240_v9 = vmul.f32 %v13354_v22, %v6166_v23  ;;  %v6968_v6 = vpack.c.bf16 %v6292_v46, %v6291_v59  ;;  %v7008_v17 = vpack.c.bf16 %v6308_v54, %v6307_v13 }
 0x587   :  { %v6105_v12 = vpop.f32.mrb[7].mxu0  ;;  %v6169_v42 = vpop.f32.mrb[7].mxu1  ;;  %v6227_v44 = vmul.f32 %v7086_v51, %v13354_v22  ;;  %v6243_v1 = vmul.f32 %v7102_v18, %v13354_v22  ;;  %v6265_v31 = vadd.f32 %v13359_v47, %v6226_v58  ;;  %v6281_v11 = vadd.f32 %v13359_v47, %v6242_v48  ;;  %7045 = vst [vmem:[#allocation2 + $0x8] sm:$0xff] %v6973_v28  }
 0x588   :  { %7053 = vst [vmem:[#allocation2 + $0x48] sm:$0xff] %v7013_v52   ;;  %v6225_v37 = vmul.f32 %v13354_v22, %v6105_v12  ;;  %v6241_v20 = vmul.f32 %v13354_v22, %v6169_v42  ;;  %v6263_v45 = vadd.f32 %v13359_v47, %v6224_v26  ;;  %v6279_v43 = vadd.f32 %v13359_v47, %v6240_v9 }
 0x589   :  { %6969 = vst [vmem:[#allocation2] sm:$0xff] %v6968_v6   ;;  %7052 = vst [vmem:[#allocation2 + $0x40] sm:$0xff] %v7008_v17   ;;  %v6266_v29 = vadd.f32 %v13359_v47, %v6227_v44  ;;  %v6282_v2 = vadd.f32 %v13359_v47, %v6243_v1  ;;  %v6297_v40 = vmax.f32 %v6265_v31, 0.0  ;;  %v6313_v24 = vmax.f32 %v6281_v11, 0.0 }
 0x58a   :  { %v6264_v25 = vadd.f32 %v13359_v47, %v6225_v37  ;;  %v6280_v63 = vadd.f32 %v13359_v47, %v6241_v20  ;;  %v6295_v36 = vmax.f32 %v6263_v45, 0.0  ;;  %v6311_v35 = vmax.f32 %v6279_v43, 0.0 }
 0x58b   :  { %v6298_v61 = vmax.f32 %v6266_v29, 0.0  ;;  %v6314_v57 = vmax.f32 %v6282_v2, 0.0 }
 0x58c   :  { %v7089_v34 = vpop.f32.mrb[8].mxu0  ;;  %v7105_v38 = vpop.f32.mrb[8].mxu1  ;;  %v6296_v21 = vmax.f32 %v6264_v25, 0.0  ;;  %v6312_v0 = vmax.f32 %v6280_v63, 0.0 }
 0x58d   :  { %v6118_v27 = vpop.f32.mrb[9].mxu0  ;;  %v6182_v4 = vpop.f32.mrb[9].mxu1  ;;  %v6230_v55 = vmul.f32 %v7089_v34, %v13354_v22  ;;  %v6246_v53 = vmul.f32 %v7105_v38, %v13354_v22  ;;  %v6983_v30 = vpack.c.bf16 %v6298_v61, %v6297_v40  ;;  %v7023_v15 = vpack.c.bf16 %v6314_v57, %v6313_v24 }
 0x58e   :  { %v7090_v32 = vpop.f32.mrb[10].mxu0  ;;  %v7106_v16 = vpop.f32.mrb[10].mxu1  ;;  %v6228_v8 = vmul.f32 %v13354_v22, %v6118_v27  ;;  %v6244_v56 = vmul.f32 %v13354_v22, %v6182_v4  ;;  %v6978_v10 = vpack.c.bf16 %v6296_v21, %v6295_v36  ;;  %v7018_v41 = vpack.c.bf16 %v6312_v0, %v6311_v35 }
 0x58f   :  { %v6121_v19 = vpop.f32.mrb[11].mxu0  ;;  %v6185_v62 = vpop.f32.mrb[11].mxu1  ;;  %v6231_v7 = vmul.f32 %v7090_v32, %v13354_v22  ;;  %v6247_v5 = vmul.f32 %v7106_v16, %v13354_v22  ;;  %v6269_v3 = vadd.f32 %v13359_v47, %v6230_v55  ;;  %v6285_v50 = vadd.f32 %v13359_v47, %v6246_v53  ;;  %7047 = vst [vmem:[#allocation2 + $0x18] sm:$0xff] %v6983_v30  }
 0x590   :  { %7055 = vst [vmem:[#allocation2 + $0x58] sm:$0xff] %v7023_v15   ;;  %v6229_v60 = vmul.f32 %v13354_v22, %v6121_v19  ;;  %v6245_v49 = vmul.f32 %v13354_v22, %v6185_v62  ;;  %v6267_v33 = vadd.f32 %v13359_v47, %v6228_v8  ;;  %v6283_v39 = vadd.f32 %v13359_v47, %v6244_v56 }
 0x591   :  { %7046 = vst [vmem:[#allocation2 + $0x10] sm:$0xff] %v6978_v10   ;;  %7054 = vst [vmem:[#allocation2 + $0x50] sm:$0xff] %v7018_v41   ;;  %v6270_v59 = vadd.f32 %v13359_v47, %v6231_v7  ;;  %v6286_v46 = vadd.f32 %v13359_v47, %v6247_v5  ;;  %v6301_v14 = vmax.f32 %v6269_v3, 0.0  ;;  %v6317_v58 = vmax.f32 %v6285_v50, 0.0 }
 0x592   :  { %v6268_v13 = vadd.f32 %v13359_v47, %v6229_v60  ;;  %v6284_v54 = vadd.f32 %v13359_v47, %v6245_v49  ;;  %v6299_v51 = vmax.f32 %v6267_v33, 0.0  ;;  %v6315_v26 = vmax.f32 %v6283_v39, 0.0 }
 0x593   :  { %v6302_v23 = vmax.f32 %v6270_v59, 0.0  ;;  %v6318_v48 = vmax.f32 %v6286_v46, 0.0 }
 0x594   :  { %v7093_v28 = vpop.f32.mrb[12].mxu0  ;;  %v7109_v52 = vpop.f32.mrb[12].mxu1  ;;  %v6300_v18 = vmax.f32 %v6268_v13, 0.0  ;;  %v6316_v9 = vmax.f32 %v6284_v54, 0.0 }
 0x595   :  { %v6134_v6 = vpop.f32.mrb[13].mxu0  ;;  %v6198_v17 = vpop.f32.mrb[13].mxu1  ;;  %v6234_v12 = vmul.f32 %v7093_v28, %v13354_v22  ;;  %v6250_v42 = vmul.f32 %v7109_v52, %v13354_v22  ;;  %v6993_v44 = vpack.c.bf16 %v6302_v23, %v6301_v14  ;;  %v7033_v1 = vpack.c.bf16 %v6318_v48, %v6317_v58 }
 0x596   :  { %v7094_v31 = vpop.f32.mrb[14].mxu0  ;;  %v7110_v11 = vpop.f32.mrb[14].mxu1  ;;  %v6232_v37 = vmul.f32 %v13354_v22, %v6134_v6  ;;  %v6248_v20 = vmul.f32 %v13354_v22, %v6198_v17  ;;  %v6988_v45 = vpack.c.bf16 %v6300_v18, %v6299_v51  ;;  %v7028_v43 = vpack.c.bf16 %v6316_v9, %v6315_v26 }
 0x597   :  { %v6137_v29 = vpop.f32.mrb[15].mxu0  ;;  %v6201_v2 = vpop.f32.mrb[15].mxu1  ;;  %v6235_v25 = vmul.f32 %v7094_v31, %v13354_v22  ;;  %v6251_v63 = vmul.f32 %v7110_v11, %v13354_v22  ;;  %v6273_v40 = vadd.f32 %v13359_v47, %v6234_v12  ;;  %v6289_v61 = vadd.f32 %v13359_v47, %v6250_v42  ;;  %7049 = vst [vmem:[#allocation2 + $0x28] sm:$0xff] %v6993_v44  }
 0x598   :  { %7057 = vst [vmem:[#allocation2 + $0x68] sm:$0xff] %v7033_v1   ;;  %v6233_v24 = vmul.f32 %v13354_v22, %v6137_v29  ;;  %v6249_v57 = vmul.f32 %v13354_v22, %v6201_v2  ;;  %v6271_v34 = vadd.f32 %v13359_v47, %v6232_v37  ;;  %v6287_v38 = vadd.f32 %v13359_v47, %v6248_v20 }
 0x599   :  { %7048 = vst [vmem:[#allocation2 + $0x20] sm:$0xff] %v6988_v45   ;;  %7056 = vst [vmem:[#allocation2 + $0x60] sm:$0xff] %v7028_v43   ;;  %v6274_v36 = vadd.f32 %v13359_v47, %v6235_v25  ;;  %v6290_v21 = vadd.f32 %v13359_v47, %v6251_v63  ;;  %v6305_v27 = vmax.f32 %v6273_v40, 0.0  ;;  %v6321_v55 = vmax.f32 %v6289_v61, 0.0 }
 0x59a   :  { %v6272_v35 = vadd.f32 %v13359_v47, %v6233_v24  ;;  %v6288_v0 = vadd.f32 %v13359_v47, %v6249_v57  ;;  %v6303_v53 = vmax.f32 %v6271_v34, 0.0  ;;  %v6319_v15 = vmax.f32 %v6287_v38, 0.0 }
 0x59b   :  { %v6306_v4 = vmax.f32 %v6274_v36, 0.0  ;;  %v6322_v22 = vmax.f32 %v6290_v21, 0.0 }
 0x59c   :  { %v6304_v30 = vmax.f32 %v6272_v35, 0.0  ;;  %v6320_v32 = vmax.f32 %v6288_v0, 0.0 }
 0x59d   :  { %v7003_v16 = vpack.c.bf16 %v6306_v4, %v6305_v27  ;;  %v7043_v8 = vpack.c.bf16 %v6322_v22, %v6321_v55 }
 0x59e   :  { %v6998_v56 = vpack.c.bf16 %v6304_v30, %v6303_v53  ;;  %v7038_v10 = vpack.c.bf16 %v6320_v32, %v6319_v15 }
 0x59f   :  { %7051 = vst [vmem:[#allocation2 + $0x38] sm:$0xff] %v7003_v16   ;;  %7059 = vst [vmem:[#allocation2 + $0x78] sm:$0xff] %v7043_v8  }
 0x5a0   :  { %7050 = vst [vmem:[#allocation2 + $0x30] sm:$0xff] %v6998_v56   ;;  %7058 = vst [vmem:[#allocation2 + $0x70] sm:$0xff] %v7038_v10  }
 0x5a1   :  { %7129 = shalt.err (!%p7126_p4)
}
 0x5a2   :  { %s7130_s6 = scalar_lea.hbm %s13441_s4, 2048 }
 0x5a3   :  { %p7131_p5 = scmp.ne.s32.totalorder %s13441_s4, %s7130_s6  ;;  %p7134_p6 = scmp.lt.u32.totalorder %s7130_s6, %s13441_s4 }
 0x5a5   :  { %p7136_p7 = pnand %p7134_p6, %p7131_p5 }
 0x5a7   :  { %7139 = shalt.err (!%p7136_p7)
}
 0x5a8   :  { %s7143_s11 = smov 64   ;;  %s7144_s12 = smov 4  }
 0x5a9   :  { %6494 = dma.vmem_to_hbm [thread:$0]  %s6489_s3, 2048, %s13441_s4, [#allocation3], %s7143_s11, %s7143_s11, %s7144_s12  }
 0x5aa   :  { %7140 = dma.done.wait [#allocation3], 2048  }
 0x5ab   :  { %7141 = vsyncadd [#allocation3], 4294965248 }
 0x5ac   :  { %6498 = vsyncpa [#allocation3], 1 }

</bundles_post_ra>
